<compile_context>
chip_gen: v5e
topology: v5e:2x2
jax: 0.10.0
libtpu: 0.0.40
codegen_flags: <defaults>
</compile_context>

<pallas_src>
import functools

import numpy as np
import jax
import jax.numpy as jnp
from jax.experimental import pallas as pl
from jax.experimental.pallas import tpu as pltpu


def _round_up(x, m):
    return (x + m - 1) // m * m


def _pick_depth_tile(D, HW):
    """Largest divisor of D giving <= ~1024 rows per grid step; keep >= 2 depth slabs
    when possible so the depth grid axis can be split across TensorCores (v7x)."""
    best = 1
    for cand in range(1, D + 1):
        if D % cand == 0 and cand * HW <= 1024:
            best = cand
    if best == D and D > 1:
        best = max(d for d in range(1, D) if D % d == 0)
    if (best * HW) % 8 != 0:          # out-block sublane dim must be 8-aligned
        best = D                      # fall back to a single full-extent block
    return best


# ---------------------------------------------------------------------------
# Fused subpixel-conv kernel:  ConvTranspose3d(2,2) -> Conv3d(3,1,1) -> BN -> ReLU
# ---------------------------------------------------------------------------
def _subpixel_conv_kernel(xp_ref, w_ref, scale_ref, shift_ref, o_ref, *, T, TDi, H, W):
    # xp_ref:    (1, Dp, Hp, Wp, Ca)   padded, bias-augmented, channels-last low-res
    #                                  input of one batch element (DMA'd once per b)
    # w_ref:     (T^3*Ca, 8*Cout)      folded weights, rows=(t,u,v,ci), cols=(pa,pb,pc,co)
    # scale_ref: (1, 8*Cout)           folded eval-BN scale, tiled over the 8 parities
    # shift_ref: (1, 8*Cout)           folded eval-BN shift (+ conv bias), tiled
    # o_ref:     (1, TDi*H*W, 8*Cout)  rows=(d,h,w) of this depth slab, lane-dense cols
    s = pl.program_id(1)
    i0 = s * TDi                       # first low-res depth row of this slab

    # im2col over the T^3 (=27) taps of the *low-res* padded input; column order
    # (t, u, v, ci) matches the row order of w_ref.
    taps = []
    for t in range(T):
        for u in range(T):
            for v in range(T):
                taps.append(xp_ref[0, pl.ds(i0 + t, TDi), u:u + H, v:v + W, :])
    slab = jnp.concatenate(taps, axis=-1)                    # (TDi, H, W, T^3*Ca)
    slab = slab.reshape(TDi * H * W, slab.shape[-1])         # free reshape (minor dim kept)

    acc = jnp.dot(slab, w_ref[...], preferred_element_type=jnp.float32)
    y = jnp.maximum(acc * scale_ref[...] + shift_ref[...], 0.0)   # BN(eval) + ReLU
    o_ref[0] = y.astype(o_ref.dtype)


def _fused_subpixel_conv(xp, w_big, scale8, shift8, *, D, H, W, T):
    B, Dp, Hp, Wp, Ca = xp.shape
    KK, N = w_big.shape
    TDi = _pick_depth_tile(D, H * W)
    n_slab = D // TDi
    M = TDi * H * W

    kernel = functools.partial(_subpixel_conv_kernel, T=T, TDi=TDi, H=H, W=W)
    flops = 2 * B * D * H * W * KK * N
    bytes_accessed = (xp.size * xp.dtype.itemsize
                      + w_big.size * w_big.dtype.itemsize
                      + 2 * N * 4
                      + B * D * H * W * N * 4)

    return pl.pallas_call(
        kernel,
        out_shape=jax.ShapeDtypeStruct((B, D * H * W, N), jnp.float32),
        grid_spec=pltpu.PrefetchScalarGridSpec(
            num_scalar_prefetch=0,
            grid=(B, n_slab),
            in_specs=[
                # Whole padded low-res volume of one batch element; block index does
                # not depend on the slab index, so the HBM->VMEM DMA only happens
                # when b changes.
                pl.BlockSpec((1, Dp, Hp, Wp, Ca), lambda b, s: (b, 0, 0, 0, 0)),
                pl.BlockSpec((KK, N), lambda b, s: (0, 0)),
                pl.BlockSpec((1, N), lambda b, s: (0, 0)),
                pl.BlockSpec((1, N), lambda b, s: (0, 0)),
            ],
            out_specs=pl.BlockSpec((1, M, N), lambda b, s: (b, s, 0)),
        ),
        compiler_params=pltpu.CompilerParams(
            dimension_semantics=("parallel", "parallel")),
        cost_estimate=pl.CostEstimate(
            flops=flops, transcendentals=0, bytes_accessed=bytes_accessed),
    )(xp, w_big, scale8, shift8)


# ---------------------------------------------------------------------------
# Full Deconv3DBlock forward
# ---------------------------------------------------------------------------
def deconv3d_block(x, params, eps=1e-5, compute_dtype=jnp.bfloat16):
    """x: (B, Cin, D, H, W) NCDHW float32 -> (B, Cout, 2D, 2H, 2W) float32."""
    w_dc, b_dc, w_cv, b_cv, gamma, beta, rmean, rvar = params
    B, Cin, D, H, W = x.shape
    Cout = w_dc.shape[1]
    K = w_cv.shape[2]
    assert K % 2 == 1, "SingleConv3DBlock uses padding=(K-1)//2; only odd K is size-preserving"

    # --- fold ConvTranspose3d(2,2) ∘ Conv3d(K,1,(K-1)//2) into per-parity weights ----
    # Output voxel (2i+p, ...) with conv tap dp reads upsampled voxel 2i+p+dp, i.e.
    # low-res voxel  i + (p+dp)//2  at deconv parity  (p+dp)%2.
    P = (K - 1) // 2
    qs = [(p + dp) // 2 for p in (0, 1) for dp in range(-P, P + 1)]
    front, back = -min(qs), max(qs)
    T = front + back + 1                      # low-res taps per spatial dim (K=3 -> 3)
    S = np.zeros((2, K, T, 2), np.float32)    # [out parity, conv tap, low-res tap, deconv parity]
    for p in (0, 1):
        for di, dp in enumerate(range(-P, P + 1)):
            S[p, di, (p + dp) // 2 + front, (p + dp) % 2] = 1.0
    S = jnp.asarray(S)

    # Bias-augmented (and 8-padded) deconv weight: an extra constant-1 input channel
    # carries the ConvTranspose3d bias, so zero halo padding handles every boundary
    # case of the composed operator exactly.
    Ca = _round_up(Cin + 1, 8)
    w_dc_aug = jnp.zeros((Ca, Cout, 2, 2, 2), jnp.float32)
    w_dc_aug = w_dc_aug.at[:Cin].set(w_dc.astype(jnp.float32))
    w_dc_aug = w_dc_aug.at[Cin].set(
        jnp.broadcast_to(b_dc.astype(jnp.float32)[:, None, None, None], (Cout, 2, 2, 2)))

    #   w_big[(t,u,v,ci), (pa,pb,pc,co)]
    w_big = jnp.einsum('PxTe,QyUf,RzVg,omxyz,cmefg->TUVcPQRo',
                       S, S, S, w_cv.astype(jnp.float32), w_dc_aug,
                       precision=jax.lax.Precision.HIGHEST)
    w_big = w_big.reshape(T * T * T * Ca, 8 * Cout).astype(compute_dtype)

    # Eval-mode BatchNorm (+ conv bias) folded to an affine epilogue, tiled over parities.
    inv_std = 1.0 / jnp.sqrt(rvar + eps)
    scale = gamma * inv_std
    shift = beta + (b_cv - rmean) * scale
    scale8 = jnp.tile(scale, 8).reshape(1, 8 * Cout).astype(jnp.float32)
    shift8 = jnp.tile(shift, 8).reshape(1, 8 * Cout).astype(jnp.float32)

    # Channels-last low-res input + constant-1 bias channel + zero halo + channel pad.
    # (These are passes over the SMALL pre-upsample tensor only.)
    x_cl = jnp.transpose(x, (0, 2, 3, 4, 1))
    x_aug = jnp.concatenate([x_cl, jnp.ones((B, D, H, W, 1), x.dtype)], axis=-1)
    xp = jnp.pad(x_aug, ((0, 0), (front, back), (front, back), (front, back),
                         (0, Ca - (Cin + 1)))).astype(compute_dtype)

    out_raw = _fused_subpixel_conv(xp, w_big, scale8, shift8, D=D, H=H, W=W, T=T)

    # Single full-volume layout pass: parity-blocked, lane-dense kernel output -> NCDHW
    # (this replaces the old scatter + pad + final transpose trio).
    out = (out_raw.reshape(B, D, H, W, 2, 2, 2, Cout)
                  .transpose(0, 7, 1, 4, 2, 5, 3, 6)
                  .reshape(B, Cout, 2 * D, 2 * H, 2 * W))
    return out


# ---------------------------------------------------------------------------
# Pure-JAX reference (module semantics)
# ---------------------------------------------------------------------------
def _reference(x, params, eps=1e-5):
    w_dc, b_dc, w_cv, b_cv, gamma, beta, rmean, rvar = params
    hp = jax.lax.Precision.HIGHEST
    # ConvTranspose3d(kernel=2, stride=2, padding=0)
    t = jnp.einsum('bidhw,iojkl->bdjhkwlo', x, w_dc, precision=hp)
    Bb, Dd, _, Hh, _, Ww, _, Oo = t.shape
    y = t.reshape(Bb, 2 * Dd, 2 * Hh, 2 * Ww, Oo) + b_dc
    y = jnp.transpose(y, (0, 4, 1, 2, 3))                      # NCDHW
    # Conv3d(kernel=3, stride=1, padding=1)
    z = jax.lax.conv_general_dilated(
        y, w_cv, window_strides=(1, 1, 1), padding='SAME',
        dimension_numbers=('NCDHW', 'OIDHW', 'NCDHW'), precision=hp)
    c = lambda v: v[None, :, None, None, None]
    z = z + c(b_cv)
    # BatchNorm3d (inference) + ReLU
    z = (z - c(rmean)) / jnp.sqrt(c(rvar) + eps) * c(gamma) + c(beta)
    return jnp.maximum(z, 0.0)


if __name__ == "__main__":
    B, Cin, Cout, D, H, W, K = 2, 4, 16, 8, 8, 8, 3
    key = jax.random.PRNGKey(0)
    ks = jax.random.split(key, 9)
    x = jax.random.normal(ks[0], (B, Cin, D, H, W), jnp.float32)
    w_dc = 0.2 * jax.random.normal(ks[1], (Cin, Cout, 2, 2, 2), jnp.float32)
    b_dc = 0.1 * jax.random.normal(ks[2], (Cout,), jnp.float32)
    w_cv = 0.1 * jax.random.normal(ks[3], (Cout, Cout, K, K, K), jnp.float32)
    b_cv = 0.1 * jax.random.normal(ks[4], (Cout,), jnp.float32)
    gamma = 1.0 + 0.2 * jax.random.normal(ks[5], (Cout,), jnp.float32)
    beta = 0.1 * jax.random.normal(ks[6], (Cout,), jnp.float32)
    rmean = 0.1 * jax.random.normal(ks[7], (Cout,), jnp.float32)
    rvar = 0.5 + jnp.abs(jax.random.normal(ks[8], (Cout,), jnp.float32))
    params = (w_dc, b_dc, w_cv, b_cv, gamma, beta, rmean, rvar)

    ref = _reference(x, params)

    # f32 operands: validates the deconv∘conv∘BN∘ReLU weight folding.
    out_f32 = jax.block_until_ready(
        jax.jit(functools.partial(deconv3d_block, compute_dtype=jnp.float32))(x, params))
    assert out_f32.shape == ref.shape == (B, Cout, 2 * D, 2 * H, 2 * W), (out_f32.shape, ref.shape)
    assert out_f32.dtype == ref.dtype
    err_f32 = float(jnp.max(jnp.abs(out_f32 - ref)))
    assert jnp.allclose(out_f32, ref, rtol=2e-2, atol=2e-2), err_f32

    # bf16 matmul operands (f32 accumulation + epilogue): the production config.
    # Tolerance widened from 1e-2 to 2e-2 to cover bf16 operand rounding only.
    out_bf16 = jax.block_until_ready(
        jax.jit(functools.partial(deconv3d_block, compute_dtype=jnp.bfloat16))(x, params))
    assert out_bf16.shape == ref.shape and out_bf16.dtype == ref.dtype
    err_bf16 = float(jnp.max(jnp.abs(out_bf16 - ref)))
    assert jnp.allclose(out_bf16, ref, rtol=2e-2, atol=2e-2), err_bf16

    print("KERNEL_OK")
</pallas_src>

<mosaic_0001>
module attributes {stable_mosaic.version = 11 : i64} {
  func.func @_subpixel_conv_kernel(%arg0: i32, %arg1: i32, %arg2: memref<1x10x10x10x8xf32, #tpu.memory_space<vmem>>, %arg3: memref<216x128xf32, #tpu.memory_space<vmem>>, %arg4: memref<1x128xf32, #tpu.memory_space<vmem>>, %arg5: memref<1x128xf32, #tpu.memory_space<vmem>>, %arg6: memref<1x256x128xf32, #tpu.memory_space<vmem>>) attributes {dimension_semantics = [#tpu.dimension_semantics<parallel>, #tpu.dimension_semantics<parallel>], iteration_bounds = array<i64: 2, 2>, scalar_prefetch = 0 : i64, scratch_operands = 0 : i64, tpu.core_type = #tpu.core_type<tc>, window_params = [{transform_indices = @transform_0, window_bounds = array<i64: 1, 10, 10, 10, 8>}, {pipeline_mode = #tpu.pipeline_mode<synchronous>, transform_indices = @transform_1, window_bounds = array<i64: 216, 128>}, {pipeline_mode = #tpu.pipeline_mode<synchronous>, transform_indices = @transform_2, window_bounds = array<i64: 1, 128>}, {pipeline_mode = #tpu.pipeline_mode<synchronous>, transform_indices = @transform_3, window_bounds = array<i64: 1, 128>}, {transform_indices = @transform_4, window_bounds = array<i64: 1, 256, 128>}]} {
    %c4_i32 = arith.constant 4 : i32
    %0 = arith.muli %arg1, %c4_i32 : i32
    %c0_i32 = arith.constant 0 : i32
    %1 = arith.addi %0, %c0_i32 : i32
    %c0 = arith.constant 0 : index
    %2 = arith.index_cast %1 : i32 to index
    %c0_0 = arith.constant 0 : index
    %c0_1 = arith.constant 0 : index
    %c0_2 = arith.constant 0 : index
    %3 = vector.load %arg2[%c0, %2, %c0_0, %c0_1, %c0_2] : memref<1x10x10x10x8xf32, #tpu.memory_space<vmem>>, vector<1x4x8x8x8xf32>
    %4 = vector.shape_cast %3 : vector<1x4x8x8x8xf32> to vector<4x8x8x8xf32>
    %c0_i32_3 = arith.constant 0 : i32
    %5 = arith.addi %0, %c0_i32_3 : i32
    %c0_4 = arith.constant 0 : index
    %6 = arith.index_cast %5 : i32 to index
    %c0_5 = arith.constant 0 : index
    %c1 = arith.constant 1 : index
    %c0_6 = arith.constant 0 : index
    %7 = vector.load %arg2[%c0_4, %6, %c0_5, %c1, %c0_6] : memref<1x10x10x10x8xf32, #tpu.memory_space<vmem>>, vector<1x4x8x8x8xf32>
    %8 = vector.shape_cast %7 : vector<1x4x8x8x8xf32> to vector<4x8x8x8xf32>
    %c0_i32_7 = arith.constant 0 : i32
    %9 = arith.addi %0, %c0_i32_7 : i32
    %c0_8 = arith.constant 0 : index
    %10 = arith.index_cast %9 : i32 to index
    %c0_9 = arith.constant 0 : index
    %c2 = arith.constant 2 : index
    %c0_10 = arith.constant 0 : index
    %11 = vector.load %arg2[%c0_8, %10, %c0_9, %c2, %c0_10] : memref<1x10x10x10x8xf32, #tpu.memory_space<vmem>>, vector<1x4x8x8x8xf32>
    %12 = vector.shape_cast %11 : vector<1x4x8x8x8xf32> to vector<4x8x8x8xf32>
    %c0_i32_11 = arith.constant 0 : i32
    %13 = arith.addi %0, %c0_i32_11 : i32
    %c0_12 = arith.constant 0 : index
    %14 = arith.index_cast %13 : i32 to index
    %c1_13 = arith.constant 1 : index
    %c0_14 = arith.constant 0 : index
    %c0_15 = arith.constant 0 : index
    %15 = vector.load %arg2[%c0_12, %14, %c1_13, %c0_14, %c0_15] : memref<1x10x10x10x8xf32, #tpu.memory_space<vmem>>, vector<1x4x8x8x8xf32>
    %16 = vector.shape_cast %15 : vector<1x4x8x8x8xf32> to vector<4x8x8x8xf32>
    %c0_i32_16 = arith.constant 0 : i32
    %17 = arith.addi %0, %c0_i32_16 : i32
    %c0_17 = arith.constant 0 : index
    %18 = arith.index_cast %17 : i32 to index
    %c1_18 = arith.constant 1 : index
    %c1_19 = arith.constant 1 : index
    %c0_20 = arith.constant 0 : index
    %19 = vector.load %arg2[%c0_17, %18, %c1_18, %c1_19, %c0_20] : memref<1x10x10x10x8xf32, #tpu.memory_space<vmem>>, vector<1x4x8x8x8xf32>
    %20 = vector.shape_cast %19 : vector<1x4x8x8x8xf32> to vector<4x8x8x8xf32>
    %c0_i32_21 = arith.constant 0 : i32
    %21 = arith.addi %0, %c0_i32_21 : i32
    %c0_22 = arith.constant 0 : index
    %22 = arith.index_cast %21 : i32 to index
    %c1_23 = arith.constant 1 : index
    %c2_24 = arith.constant 2 : index
    %c0_25 = arith.constant 0 : index
    %23 = vector.load %arg2[%c0_22, %22, %c1_23, %c2_24, %c0_25] : memref<1x10x10x10x8xf32, #tpu.memory_space<vmem>>, vector<1x4x8x8x8xf32>
    %24 = vector.shape_cast %23 : vector<1x4x8x8x8xf32> to vector<4x8x8x8xf32>
    %c0_i32_26 = arith.constant 0 : i32
    %25 = arith.addi %0, %c0_i32_26 : i32
    %c0_27 = arith.constant 0 : index
    %26 = arith.index_cast %25 : i32 to index
    %c2_28 = arith.constant 2 : index
    %c0_29 = arith.constant 0 : index
    %c0_30 = arith.constant 0 : index
    %27 = vector.load %arg2[%c0_27, %26, %c2_28, %c0_29, %c0_30] : memref<1x10x10x10x8xf32, #tpu.memory_space<vmem>>, vector<1x4x8x8x8xf32>
    %28 = vector.shape_cast %27 : vector<1x4x8x8x8xf32> to vector<4x8x8x8xf32>
    %c0_i32_31 = arith.constant 0 : i32
    %29 = arith.addi %0, %c0_i32_31 : i32
    %c0_32 = arith.constant 0 : index
    %30 = arith.index_cast %29 : i32 to index
    %c2_33 = arith.constant 2 : index
    %c1_34 = arith.constant 1 : index
    %c0_35 = arith.constant 0 : index
    %31 = vector.load %arg2[%c0_32, %30, %c2_33, %c1_34, %c0_35] : memref<1x10x10x10x8xf32, #tpu.memory_space<vmem>>, vector<1x4x8x8x8xf32>
    %32 = vector.shape_cast %31 : vector<1x4x8x8x8xf32> to vector<4x8x8x8xf32>
    %c0_i32_36 = arith.constant 0 : i32
    %33 = arith.addi %0, %c0_i32_36 : i32
    %c0_37 = arith.constant 0 : index
    %34 = arith.index_cast %33 : i32 to index
    %c2_38 = arith.constant 2 : index
    %c2_39 = arith.constant 2 : index
    %c0_40 = arith.constant 0 : index
    %35 = vector.load %arg2[%c0_37, %34, %c2_38, %c2_39, %c0_40] : memref<1x10x10x10x8xf32, #tpu.memory_space<vmem>>, vector<1x4x8x8x8xf32>
    %36 = vector.shape_cast %35 : vector<1x4x8x8x8xf32> to vector<4x8x8x8xf32>
    %c1_i32 = arith.constant 1 : i32
    %37 = arith.addi %0, %c1_i32 : i32
    %c0_41 = arith.constant 0 : index
    %38 = arith.index_cast %37 : i32 to index
    %c0_42 = arith.constant 0 : index
    %c0_43 = arith.constant 0 : index
    %c0_44 = arith.constant 0 : index
    %39 = vector.load %arg2[%c0_41, %38, %c0_42, %c0_43, %c0_44] : memref<1x10x10x10x8xf32, #tpu.memory_space<vmem>>, vector<1x4x8x8x8xf32>
    %40 = vector.shape_cast %39 : vector<1x4x8x8x8xf32> to vector<4x8x8x8xf32>
    %c1_i32_45 = arith.constant 1 : i32
    %41 = arith.addi %0, %c1_i32_45 : i32
    %c0_46 = arith.constant 0 : index
    %42 = arith.index_cast %41 : i32 to index
    %c0_47 = arith.constant 0 : index
    %c1_48 = arith.constant 1 : index
    %c0_49 = arith.constant 0 : index
    %43 = vector.load %arg2[%c0_46, %42, %c0_47, %c1_48, %c0_49] : memref<1x10x10x10x8xf32, #tpu.memory_space<vmem>>, vector<1x4x8x8x8xf32>
    %44 = vector.shape_cast %43 : vector<1x4x8x8x8xf32> to vector<4x8x8x8xf32>
    %c1_i32_50 = arith.constant 1 : i32
    %45 = arith.addi %0, %c1_i32_50 : i32
    %c0_51 = arith.constant 0 : index
    %46 = arith.index_cast %45 : i32 to index
    %c0_52 = arith.constant 0 : index
    %c2_53 = arith.constant 2 : index
    %c0_54 = arith.constant 0 : index
    %47 = vector.load %arg2[%c0_51, %46, %c0_52, %c2_53, %c0_54] : memref<1x10x10x10x8xf32, #tpu.memory_space<vmem>>, vector<1x4x8x8x8xf32>
    %48 = vector.shape_cast %47 : vector<1x4x8x8x8xf32> to vector<4x8x8x8xf32>
    %c1_i32_55 = arith.constant 1 : i32
    %49 = arith.addi %0, %c1_i32_55 : i32
    %c0_56 = arith.constant 0 : index
    %50 = arith.index_cast %49 : i32 to index
    %c1_57 = arith.constant 1 : index
    %c0_58 = arith.constant 0 : index
    %c0_59 = arith.constant 0 : index
    %51 = vector.load %arg2[%c0_56, %50, %c1_57, %c0_58, %c0_59] : memref<1x10x10x10x8xf32, #tpu.memory_space<vmem>>, vector<1x4x8x8x8xf32>
    %52 = vector.shape_cast %51 : vector<1x4x8x8x8xf32> to vector<4x8x8x8xf32>
    %c1_i32_60 = arith.constant 1 : i32
    %53 = arith.addi %0, %c1_i32_60 : i32
    %c0_61 = arith.constant 0 : index
    %54 = arith.index_cast %53 : i32 to index
    %c1_62 = arith.constant 1 : index
    %c1_63 = arith.constant 1 : index
    %c0_64 = arith.constant 0 : index
    %55 = vector.load %arg2[%c0_61, %54, %c1_62, %c1_63, %c0_64] : memref<1x10x10x10x8xf32, #tpu.memory_space<vmem>>, vector<1x4x8x8x8xf32>
    %56 = vector.shape_cast %55 : vector<1x4x8x8x8xf32> to vector<4x8x8x8xf32>
    %c1_i32_65 = arith.constant 1 : i32
    %57 = arith.addi %0, %c1_i32_65 : i32
    %c0_66 = arith.constant 0 : index
    %58 = arith.index_cast %57 : i32 to index
    %c1_67 = arith.constant 1 : index
    %c2_68 = arith.constant 2 : index
    %c0_69 = arith.constant 0 : index
    %59 = vector.load %arg2[%c0_66, %58, %c1_67, %c2_68, %c0_69] : memref<1x10x10x10x8xf32, #tpu.memory_space<vmem>>, vector<1x4x8x8x8xf32>
    %60 = vector.shape_cast %59 : vector<1x4x8x8x8xf32> to vector<4x8x8x8xf32>
    %c1_i32_70 = arith.constant 1 : i32
    %61 = arith.addi %0, %c1_i32_70 : i32
    %c0_71 = arith.constant 0 : index
    %62 = arith.index_cast %61 : i32 to index
    %c2_72 = arith.constant 2 : index
    %c0_73 = arith.constant 0 : index
    %c0_74 = arith.constant 0 : index
    %63 = vector.load %arg2[%c0_71, %62, %c2_72, %c0_73, %c0_74] : memref<1x10x10x10x8xf32, #tpu.memory_space<vmem>>, vector<1x4x8x8x8xf32>
    %64 = vector.shape_cast %63 : vector<1x4x8x8x8xf32> to vector<4x8x8x8xf32>
    %c1_i32_75 = arith.constant 1 : i32
    %65 = arith.addi %0, %c1_i32_75 : i32
    %c0_76 = arith.constant 0 : index
    %66 = arith.index_cast %65 : i32 to index
    %c2_77 = arith.constant 2 : index
    %c1_78 = arith.constant 1 : index
    %c0_79 = arith.constant 0 : index
    %67 = vector.load %arg2[%c0_76, %66, %c2_77, %c1_78, %c0_79] : memref<1x10x10x10x8xf32, #tpu.memory_space<vmem>>, vector<1x4x8x8x8xf32>
    %68 = vector.shape_cast %67 : vector<1x4x8x8x8xf32> to vector<4x8x8x8xf32>
    %c1_i32_80 = arith.constant 1 : i32
    %69 = arith.addi %0, %c1_i32_80 : i32
    %c0_81 = arith.constant 0 : index
    %70 = arith.index_cast %69 : i32 to index
    %c2_82 = arith.constant 2 : index
    %c2_83 = arith.constant 2 : index
    %c0_84 = arith.constant 0 : index
    %71 = vector.load %arg2[%c0_81, %70, %c2_82, %c2_83, %c0_84] : memref<1x10x10x10x8xf32, #tpu.memory_space<vmem>>, vector<1x4x8x8x8xf32>
    %72 = vector.shape_cast %71 : vector<1x4x8x8x8xf32> to vector<4x8x8x8xf32>
    %c2_i32 = arith.constant 2 : i32
    %73 = arith.addi %0, %c2_i32 : i32
    %c0_85 = arith.constant 0 : index
    %74 = arith.index_cast %73 : i32 to index
    %c0_86 = arith.constant 0 : index
    %c0_87 = arith.constant 0 : index
    %c0_88 = arith.constant 0 : index
    %75 = vector.load %arg2[%c0_85, %74, %c0_86, %c0_87, %c0_88] : memref<1x10x10x10x8xf32, #tpu.memory_space<vmem>>, vector<1x4x8x8x8xf32>
    %76 = vector.shape_cast %75 : vector<1x4x8x8x8xf32> to vector<4x8x8x8xf32>
    %c2_i32_89 = arith.constant 2 : i32
    %77 = arith.addi %0, %c2_i32_89 : i32
    %c0_90 = arith.constant 0 : index
    %78 = arith.index_cast %77 : i32 to index
    %c0_91 = arith.constant 0 : index
    %c1_92 = arith.constant 1 : index
    %c0_93 = arith.constant 0 : index
    %79 = vector.load %arg2[%c0_90, %78, %c0_91, %c1_92, %c0_93] : memref<1x10x10x10x8xf32, #tpu.memory_space<vmem>>, vector<1x4x8x8x8xf32>
    %80 = vector.shape_cast %79 : vector<1x4x8x8x8xf32> to vector<4x8x8x8xf32>
    %c2_i32_94 = arith.constant 2 : i32
    %81 = arith.addi %0, %c2_i32_94 : i32
    %c0_95 = arith.constant 0 : index
    %82 = arith.index_cast %81 : i32 to index
    %c0_96 = arith.constant 0 : index
    %c2_97 = arith.constant 2 : index
    %c0_98 = arith.constant 0 : index
    %83 = vector.load %arg2[%c0_95, %82, %c0_96, %c2_97, %c0_98] : memref<1x10x10x10x8xf32, #tpu.memory_space<vmem>>, vector<1x4x8x8x8xf32>
    %84 = vector.shape_cast %83 : vector<1x4x8x8x8xf32> to vector<4x8x8x8xf32>
    %c2_i32_99 = arith.constant 2 : i32
    %85 = arith.addi %0, %c2_i32_99 : i32
    %c0_100 = arith.constant 0 : index
    %86 = arith.index_cast %85 : i32 to index
    %c1_101 = arith.constant 1 : index
    %c0_102 = arith.constant 0 : index
    %c0_103 = arith.constant 0 : index
    %87 = vector.load %arg2[%c0_100, %86, %c1_101, %c0_102, %c0_103] : memref<1x10x10x10x8xf32, #tpu.memory_space<vmem>>, vector<1x4x8x8x8xf32>
    %88 = vector.shape_cast %87 : vector<1x4x8x8x8xf32> to vector<4x8x8x8xf32>
    %c2_i32_104 = arith.constant 2 : i32
    %89 = arith.addi %0, %c2_i32_104 : i32
    %c0_105 = arith.constant 0 : index
    %90 = arith.index_cast %89 : i32 to index
    %c1_106 = arith.constant 1 : index
    %c1_107 = arith.constant 1 : index
    %c0_108 = arith.constant 0 : index
    %91 = vector.load %arg2[%c0_105, %90, %c1_106, %c1_107, %c0_108] : memref<1x10x10x10x8xf32, #tpu.memory_space<vmem>>, vector<1x4x8x8x8xf32>
    %92 = vector.shape_cast %91 : vector<1x4x8x8x8xf32> to vector<4x8x8x8xf32>
    %c2_i32_109 = arith.constant 2 : i32
    %93 = arith.addi %0, %c2_i32_109 : i32
    %c0_110 = arith.constant 0 : index
    %94 = arith.index_cast %93 : i32 to index
    %c1_111 = arith.constant 1 : index
    %c2_112 = arith.constant 2 : index
    %c0_113 = arith.constant 0 : index
    %95 = vector.load %arg2[%c0_110, %94, %c1_111, %c2_112, %c0_113] : memref<1x10x10x10x8xf32, #tpu.memory_space<vmem>>, vector<1x4x8x8x8xf32>
    %96 = vector.shape_cast %95 : vector<1x4x8x8x8xf32> to vector<4x8x8x8xf32>
    %c2_i32_114 = arith.constant 2 : i32
    %97 = arith.addi %0, %c2_i32_114 : i32
    %c0_115 = arith.constant 0 : index
    %98 = arith.index_cast %97 : i32 to index
    %c2_116 = arith.constant 2 : index
    %c0_117 = arith.constant 0 : index
    %c0_118 = arith.constant 0 : index
    %99 = vector.load %arg2[%c0_115, %98, %c2_116, %c0_117, %c0_118] : memref<1x10x10x10x8xf32, #tpu.memory_space<vmem>>, vector<1x4x8x8x8xf32>
    %100 = vector.shape_cast %99 : vector<1x4x8x8x8xf32> to vector<4x8x8x8xf32>
    %c2_i32_119 = arith.constant 2 : i32
    %101 = arith.addi %0, %c2_i32_119 : i32
    %c0_120 = arith.constant 0 : index
    %102 = arith.index_cast %101 : i32 to index
    %c2_121 = arith.constant 2 : index
    %c1_122 = arith.constant 1 : index
    %c0_123 = arith.constant 0 : index
    %103 = vector.load %arg2[%c0_120, %102, %c2_121, %c1_122, %c0_123] : memref<1x10x10x10x8xf32, #tpu.memory_space<vmem>>, vector<1x4x8x8x8xf32>
    %104 = vector.shape_cast %103 : vector<1x4x8x8x8xf32> to vector<4x8x8x8xf32>
    %c2_i32_124 = arith.constant 2 : i32
    %105 = arith.addi %0, %c2_i32_124 : i32
    %c0_125 = arith.constant 0 : index
    %106 = arith.index_cast %105 : i32 to index
    %c2_126 = arith.constant 2 : index
    %c2_127 = arith.constant 2 : index
    %c0_128 = arith.constant 0 : index
    %107 = vector.load %arg2[%c0_125, %106, %c2_126, %c2_127, %c0_128] : memref<1x10x10x10x8xf32, #tpu.memory_space<vmem>>, vector<1x4x8x8x8xf32>
    %108 = vector.shape_cast %107 : vector<1x4x8x8x8xf32> to vector<4x8x8x8xf32>
    %109 = tpu.concatenate %4, %8, %12, %16, %20, %24, %28, %32, %36, %40, %44, %48, %52, %56, %60, %64 in 3 : vector<4x8x8x8xf32>, vector<4x8x8x8xf32>, vector<4x8x8x8xf32>, vector<4x8x8x8xf32>, vector<4x8x8x8xf32>, vector<4x8x8x8xf32>, vector<4x8x8x8xf32>, vector<4x8x8x8xf32>, vector<4x8x8x8xf32>, vector<4x8x8x8xf32>, vector<4x8x8x8xf32>, vector<4x8x8x8xf32>, vector<4x8x8x8xf32>, vector<4x8x8x8xf32>, vector<4x8x8x8xf32>, vector<4x8x8x8xf32> -> vector<4x8x8x128xf32>
    %110 = tpu.concatenate %68, %72, %76, %80, %84, %88, %92, %96, %100, %104, %108 in 3 : vector<4x8x8x8xf32>, vector<4x8x8x8xf32>, vector<4x8x8x8xf32>, vector<4x8x8x8xf32>, vector<4x8x8x8xf32>, vector<4x8x8x8xf32>, vector<4x8x8x8xf32>, vector<4x8x8x8xf32>, vector<4x8x8x8xf32>, vector<4x8x8x8xf32>, vector<4x8x8x8xf32> -> vector<4x8x8x88xf32>
    %111 = tpu.concatenate %109, %110 in 3 : vector<4x8x8x128xf32>, vector<4x8x8x88xf32> -> vector<4x8x8x216xf32>
    %112 = vector.shape_cast %111 : vector<4x8x8x216xf32> to vector<256x216xf32>
    %c0_129 = arith.constant 0 : index
    %c0_130 = arith.constant 0 : index
    %113 = vector.load %arg3[%c0_129, %c0_130] : memref<216x128xf32, #tpu.memory_space<vmem>>, vector<216x128xf32>
    %cst = arith.constant dense<0.000000e+00> : vector<256x128xf32>
    %114 = tpu.matmul %112, %113, %cst {dimension_numbers = #tpu.dot_dimension_numbers<[1], [0], [0], [1], [0, 0, 1, 1], [], []>} : vector<256x216xf32>, vector<216x128xf32>, vector<256x128xf32> -> vector<256x128xf32>
    %c0_131 = arith.constant 0 : index
    %c0_132 = arith.constant 0 : index
    %115 = vector.load %arg4[%c0_131, %c0_132] : memref<1x128xf32, #tpu.memory_space<vmem>>, vector<1x128xf32>
    %116 = vector.broadcast %115 : vector<1x128xf32> to vector<256x128xf32>
    %117 = arith.mulf %114, %116 : vector<256x128xf32>
    %c0_133 = arith.constant 0 : index
    %c0_134 = arith.constant 0 : index
    %118 = vector.load %arg5[%c0_133, %c0_134] : memref<1x128xf32, #tpu.memory_space<vmem>>, vector<1x128xf32>
    %119 = vector.broadcast %118 : vector<1x128xf32> to vector<256x128xf32>
    %120 = arith.addf %117, %119 : vector<256x128xf32>
    %cst_135 = arith.constant 0.000000e+00 : f32
    %121 = vector.broadcast %cst_135 : f32 to vector<256x128xf32>
    %122 = arith.maximumf %120, %121 : vector<256x128xf32>
    %c0_136 = arith.constant 0 : index
    %c0_137 = arith.constant 0 : index
    %c0_138 = arith.constant 0 : index
    %123 = vector.load %arg6[%c0_136, %c0_137, %c0_138] : memref<1x256x128xf32, #tpu.memory_space<vmem>>, vector<1x256x128xf32>
    %124 = vector.shape_cast %123 : vector<1x256x128xf32> to vector<256x128xf32>
    %125 = vector.shape_cast %122 : vector<256x128xf32> to vector<1x256x128xf32>
    tpu.vector_store %arg6[%c0_136, %c0_137, %c0_138], %125 {strides = array<i32>} : memref<1x256x128xf32, #tpu.memory_space<vmem>>, vector<1x256x128xf32>,
    return
  }
  func.func @transform_0(%arg0: i32, %arg1: i32) -> (i32, i32, i32, i32, i32) {
    %c0_i32 = arith.constant 0 : i32
    %c0_i32_0 = arith.constant 0 : i32
    %c0_i32_1 = arith.constant 0 : i32
    %c0_i32_2 = arith.constant 0 : i32
    %c0_i32_3 = arith.constant 0 : i32
    return %arg0, %c0_i32, %c0_i32_0, %c0_i32_1, %c0_i32_2 : i32, i32, i32, i32, i32
  }
  func.func @transform_1(%arg0: i32, %arg1: i32) -> (i32, i32) {
    %c0_i32 = arith.constant 0 : i32
    %c0_i32_0 = arith.constant 0 : i32
    %c0_i32_1 = arith.constant 0 : i32
    return %c0_i32, %c0_i32_0 : i32, i32
  }
  func.func @transform_2(%arg0: i32, %arg1: i32) -> (i32, i32) {
    %c0_i32 = arith.constant 0 : i32
    %c0_i32_0 = arith.constant 0 : i32
    %c0_i32_1 = arith.constant 0 : i32
    return %c0_i32, %c0_i32_0 : i32, i32
  }
  func.func @transform_3(%arg0: i32, %arg1: i32) -> (i32, i32) {
    %c0_i32 = arith.constant 0 : i32
    %c0_i32_0 = arith.constant 0 : i32
    %c0_i32_1 = arith.constant 0 : i32
    return %c0_i32, %c0_i32_0 : i32, i32
  }
  func.func @transform_4(%arg0: i32, %arg1: i32) -> (i32, i32, i32) {
    %c0_i32 = arith.constant 0 : i32
    %c0_i32_0 = arith.constant 0 : i32
    return %arg0, %arg1, %c0_i32 : i32, i32, i32
  }
}

</mosaic_0001>

<bundles_post_ra>
// kernel: tile.18
= control target key start
LH: loop header
LB: loop body
LE: loop exit
PB: predicated region body
PF: predicated region fallthrough
CT: control target
= control target key end

     0   :  { %s22_s0 = inlined_call_operand.vmem [shape: f32[16], index: 0, kind: input, shape index: {}]   ;;  %s23_s1 = inlined_call_operand.vmem [shape: f32[8,16], index: 1, kind: output, shape index: {}]  }
   0x1   :  { %v4_v0 = vld [vmem:[%s22_s0] ss:$0 sm:$0xff] }
   0x2   :  { %5 = vst [vmem:[%s23_s1] sm:$0xff] %v4_v0 }

// kernel: tile.19
= control target key start
LH: loop header
LB: loop body
LE: loop exit
PB: predicated region body
PF: predicated region fallthrough
CT: control target
= control target key end

     0   :  { %s67_s10 = smov 112   ;;  %s68_s11 = smov 80   ;;  %vm3_vm0 = vcmask 130048   ;;  %vm9_vm1 = vcmask 1048448   ;;  %vm15_vm2 = vcmask 917248   ;;  %vm21_vm3 = vcmask 786048   ;;  %s111_s0 = inlined_call_operand.vmem [shape: f32[8,16], index: 0, kind: input, shape index: {}]   ;;  %s112_s1 = inlined_call_operand.vmem [shape: f32[1,128], index: 1, kind: output, shape index: {}]  }
   0x1   :  { %v53_v0 = vld [vmem:[%s111_s0 + $0x7] sm:$0x1]   ;;  %v55_v1 = vld [vmem:[%s111_s0 + $0x5] sm:$0x1]   ;;  %v57_v2 = vld [vmem:[%s111_s0 + $0x3] sm:$0x1]  }
   0x2   :  { %7 = vrot.lane.b32.xlu0 %v53_v0, %s67_s10  ;;  %19 = vrot.lane.b32.xlu1 %v55_v1, %s68_s11  ;;  %s69_s14 = smov 48   ;;  %v54_v3 = vld [vmem:[%s111_s0 + $0x6] sm:$0x1]   ;;  %v56_v4 = vld [vmem:[%s111_s0 + $0x4] sm:$0x1]   ;;  %s70_s21 = smov 96  }
   0x3   :  { %31 = vrot.lane.b32.xlu2 %v57_v2, %s69_s14  ;;  %v58_v5 = vld [vmem:[%s111_s0 + $0x2] sm:$0x1]   ;;  %s71_s22 = smov 64   ;;  %s72_s23 = smov 32   ;;  %v59_v6 = vld [vmem:[%s111_s0 + $0x1] sm:$0x1]  }
   0x4   :  { %s73_s26 = smov 16   ;;  %v2_v7 = vld [vmem:[%s111_s0] sm:$0x1]   ;;  %vm27_vm4 = vcmask 654848   ;;  %vm33_vm5 = vcmask 523648   ;;  %vm39_vm6 = vcmask 392448  }
   0x5   :  { %4 = vst.msk [vmem:[#allocation0] sm:$0x1] %vm3_vm0, %v2_v7   ;;  %vm45_vm7 = vcmask 261248  }
   0xa   :  { %13 = vrot.lane.b32.xlu0 %v54_v3, %s70_s21  ;;  %25 = vrot.lane.b32.xlu1 %v56_v4, %s71_s22 }
   0xb   :  { %37 = vrot.lane.b32.xlu2 %v58_v5, %s72_s23 }
  0x12   :  { %43 = vrot.lane.b32.xlu0 %v59_v6, %s73_s26 }
  0x5d   :  { %v32_v8 = vpop.permute.xlu2 %31  }
  0x65   :  { %v38_v9 = vpop.permute.xlu2 %37  }
  0x74   :  { %v8_v10 = vpop.permute.xlu0 %7   ;;  %v20_v11 = vpop.permute.xlu1 %19  }
  0x75   :  { %10 = vst.msk [vmem:[#allocation0] sm:$0x1] %vm9_vm1, %v8_v10  }
  0x7c   :  { %v14_v12 = vpop.permute.xlu0 %13   ;;  %v26_v13 = vpop.permute.xlu1 %25  }
  0x7d   :  { %16 = vst.msk [vmem:[#allocation0] sm:$0x1] %vm15_vm2, %v14_v12  }
  0x7e   :  { %22 = vst.msk [vmem:[#allocation0] sm:$0x1] %vm21_vm3, %v20_v11  }
  0x7f   :  { %28 = vst.msk [vmem:[#allocation0] sm:$0x1] %vm27_vm4, %v26_v13  }
  0x80   :  { %34 = vst.msk [vmem:[#allocation0] sm:$0x1] %vm33_vm5, %v32_v8  }
  0x81   :  { %40 = vst.msk [vmem:[#allocation0] sm:$0x1] %vm39_vm6, %v38_v9  }
  0x84   :  { %v44_v14 = vpop.permute.xlu0 %43  }
  0x85   :  { %46 = vst.msk [vmem:[#allocation0] sm:$0x1] %vm45_vm7, %v44_v14  }
  0x8c   :  { %v49_v15 = vld [vmem:[#allocation0] sm:$0x1] }
  0x8d   :  { %52 = vst [vmem:[%s112_s1] sm:$0x1] %v49_v15 }

// kernel: deconv3d_block.1
= control target key start
LH: loop header
LB: loop body
LE: loop exit
PB: predicated region body
PF: predicated region fallthrough
CT: control target
= control target key end

     0   :  { %s7983_s15 = smov 0   ;;  %s7985_s16 = smov 0   ;;  %s13254_s0 = inlined_call_operand.vmem [shape: f32[2,10,10,10,8], index: 0, kind: input, shape index: {}]   ;;  %s13255_s1 = inlined_call_operand.vmem [shape: f32[216,128], index: 1, kind: input, shape index: {}]   ;;  %s13256_s2 = inlined_call_operand.vmem [shape: f32[1,128], index: 2, kind: input, shape index: {}]   ;;  %s13257_s3 = inlined_call_operand.vmem [shape: f32[1,128], index: 3, kind: input, shape index: {}]   ;;  %s13258_s4 = inlined_call_operand.vmem [shape: f32[2,512,128], index: 4, kind: output, shape index: {}]  }
   0x1   :  { %s7987_s17 = smov 0   ;;  %s7989_s18 = smov 0  }
   0x2   :  { %s7991_s19 = smov 0  }
   0x3 LB: > { %s23_s20 = sadd.s32 1, %s7933_s17  ;;  %s26_s21 = sadd.s32 1, %s7937_s18  ;;  %s7941_s19 = sphi %s7991_s19, %s14_s19   ;;  %s7937_s18 = sphi %s7989_s18, %s14368_s18   ;;  %s7933_s17 = sphi %s7987_s17, %s14367_s17   ;;  %s7929_s16 = sphi %s7985_s16, %s14366_s16   ;;  %s7925_s15 = sphi %s7983_s15, %s14365_s15  }
   0x4   : > { %p24_p0 = scmp.ge.s32.totalorder %s23_s20, 2  ;;  %p5726_p1 = scmp.ge.s32.totalorder %s7941_s19, 1 }
   0x5   : > { %p176_p2 = scmp.lt.s32.totalorder %s7941_s19, 5 }
   0x6   : > { %s14370_s20 = smov (%p24_p0, %s23_s20), 0  ;;  %s14372_s21 = smov (!%p24_p0, %s26_s21), %s7937_s18 }
   0x7   : > { %p177_p3 = pnand %p5726_p1, %p176_p2  ;;  %p28_p4 = scmp.ge.s32.totalorder %s14372_s21, 2 }
   0x9   : > { %s14374_s21 = smov (%p28_p4, %s14372_s21), 0  ;;  %180 = sbr.rel (%p177_p3) target bundleno = 1766 (0x6e6), region = 36 }
   0xe   : > { %p206_p5 = scmp.lt.s32.totalorder %s7929_s16, 1  ;;  %s5732_s22 = smul.u32 640, %s7925_s15  ;;  %vm3026_vm0 = vcmask 64512   ;;  %vm3059_vm1 = vcmask 130048   ;;  %vm3092_vm2 = vcmask 195584   ;;  %vm3125_vm3 = vcmask 261120  }
   0xf   : > { %s7943_s28 = smov 8   ;;  %s7944_s29 = smov 16   ;;  %vm3158_vm4 = vcmask 326656   ;;  %vm3191_vm5 = vcmask 392192   ;;  %vm3224_vm6 = vcmask 457728   ;;  %vm3290_vm7 = vcmask 588800  }
  0x10   : > { %s14376_s16 = smov (!%p206_p5, %s7929_s16), 1  ;;  %s7945_s30 = smov 24   ;;  %vm3257_vm8 = vcmask 523264   ;;  %vm3323_vm9 = vcmask 654336   ;;  %vm3389_vm10 = vcmask 785408   ;;  %vm3356_vm11 = vcmask 719872  }
  0x11   : > { %s6574_s23 = smul.u32 1600, %s14376_s16  ;;  %s7946_s5 = smov 32   ;;  %vm3422_vm12 = vcmask 850944   ;;  %vm3488_vm13 = vcmask 982016   ;;  %vm3455_vm14 = vcmask 916480  }
  0x12   : > { %s7947_s6 = smov 40   ;;  %s7948_s7 = smov 48  }
  0x13   : > { %s210_s26 = scalar_lea.vmem %s13254_s0, %s6574_s23  ;;  %s7949_s8 = smov 56  }
  0x14   : > { %s8022_s27 = scalar_lea.vmem %s210_s26, %s5732_s22  ;;  %s7950_s9 = smov 64  }
  0x15   : > { %v264_v0 = vld [vmem:[%s8022_s27 + $0xa1] sm:$0xff]  ;;  %v8026_v1 = vld [vmem:[%s8022_s27 + $0xb1] sm:$0xff]  ;;  %s7951_s10 = smov 72   ;;  %s7952_s11 = smov 80  }
  0x16   : > { %v8029_v2 = vld [vmem:[%s8022_s27 + $0x41] sm:$0xff]  ;;  %v6650_v3 = vpack.i.bf16 %v8026_v1, %v264_v0  ;;  %v8033_v4 = vld [vmem:[%s8022_s27 + $0x51] sm:$0xff]  ;;  %s7953_s12 = smov 88   ;;  %s7954_s13 = smov 96  }
  0x17   : > { %v256_v5 = vld [vmem:[%s8022_s27 + $0x1] sm:$0xff]  ;;  %v8037_v6 = vld [vmem:[%s8022_s27 + $0x11] sm:$0xff]  ;;  %v6640_v7 = vpack.i.bf16 %v8033_v4, %v8029_v2  ;;  %s7955_s14 = smov 104   ;;  %s7956_s22 = smov 112  }
  0x18   : > { %v6630_v8 = vpack.i.bf16 %v8037_v6, %v256_v5  ;;  %6651 = vrot.lane.b32.xlu2 %v6650_v3, %s7943_s28  ;;  %v8044_v9 = vld [vmem:[%s8022_s27 + $0xc1] sm:$0xff]  ;;  %v8049_v10 = vld [vmem:[%s8022_s27 + $0xd1] sm:$0xff]  ;;  %s7957_s23 = smov 120  }
  0x19   : > { %6641 = vrot.lane.b32.xlu1 %v6640_v7, %s7943_s28  ;;  %v8052_v11 = vld [vmem:[%s8022_s27 + $0x61] sm:$0xff]  ;;  %v8055_v12 = vld [vmem:[%s8022_s27 + $0x71] sm:$0xff]  ;;  %v6655_v15 = vpack.i.bf16 %v8049_v10, %v8044_v9 }
  0x1a   : > { %6631 = vrot.lane.b32.xlu0 %v6630_v8, %s7943_s28  ;;  %v8058_v13 = vld [vmem:[%s8022_s27 + $0x21] sm:$0xff]  ;;  %v8061_v14 = vld [vmem:[%s8022_s27 + $0x31] sm:$0xff]  ;;  %v6645_v16 = vpack.i.bf16 %v8055_v12, %v8052_v11 }
  0x1b   : > { %v6635_v17 = vpack.i.bf16 %v8061_v14, %v8058_v13  ;;  %v272_v18 = vld [vmem:[%s8022_s27 + $0x141] sm:$0xff]  ;;  %v8074_v19 = vld [vmem:[%s8022_s27 + $0x151] sm:$0xff] }
  0x1c   : > { %v8077_v20 = vld [vmem:[%s8022_s27 + $0x101] sm:$0xff]  ;;  %v8080_v21 = vld [vmem:[%s8022_s27 + $0x111] sm:$0xff]  ;;  %v6670_v24 = vpack.i.bf16 %v8074_v19, %v272_v18 }
  0x1d   : > { %v8083_v22 = vld [vmem:[%s8022_s27 + $0xe1] sm:$0xff]  ;;  %v8086_v23 = vld [vmem:[%s8022_s27 + $0xf1] sm:$0xff]  ;;  %v6665_v25 = vpack.i.bf16 %v8080_v21, %v8077_v20 }
  0x1e   : > { %v6660_v26 = vpack.i.bf16 %v8086_v23, %v8083_v22  ;;  %v8095_v27 = vld [vmem:[%s8022_s27 + $0x1a1] sm:$0xff]  ;;  %v8100_v28 = vld [vmem:[%s8022_s27 + $0x1b1] sm:$0xff] }
  0x1f   : > { %v8103_v29 = vld [vmem:[%s8022_s27 + $0x181] sm:$0xff]  ;;  %v8106_v30 = vld [vmem:[%s8022_s27 + $0x191] sm:$0xff]  ;;  %v6685_v33 = vpack.i.bf16 %v8100_v28, %v8095_v27 }
  0x20   : > { %6656 = vrot.lane.b32.xlu2 %v6655_v15, %s7943_s28  ;;  %v8109_v31 = vld [vmem:[%s8022_s27 + $0x161] sm:$0xff]  ;;  %v8112_v32 = vld [vmem:[%s8022_s27 + $0x171] sm:$0xff]  ;;  %v6680_v34 = vpack.i.bf16 %v8106_v30, %v8103_v29 }
  0x21   : > { %6646 = vrot.lane.b32.xlu1 %v6645_v16, %s7943_s28  ;;  %v6675_v35 = vpack.i.bf16 %v8112_v32, %v8109_v31  ;;  %v8122_v36 = vld [vmem:[%s8022_s27 + $0x221] sm:$0xff]  ;;  %v8127_v37 = vld [vmem:[%s8022_s27 + $0x231] sm:$0xff] }
  0x22   : > { %6636 = vrot.lane.b32.xlu0 %v6635_v17, %s7943_s28  ;;  %v8130_v38 = vld [vmem:[%s8022_s27 + $0x201] sm:$0xff]  ;;  %v8133_v39 = vld [vmem:[%s8022_s27 + $0x211] sm:$0xff]  ;;  %v6700_v42 = vpack.i.bf16 %v8127_v37, %v8122_v36 }
  0x23   : > { %v280_v40 = vld [vmem:[%s8022_s27 + $0x1e1] sm:$0xff]  ;;  %v8137_v41 = vld [vmem:[%s8022_s27 + $0x1f1] sm:$0xff]  ;;  %v6695_v43 = vpack.i.bf16 %v8133_v39, %v8130_v38 }
  0x24   : > { %v6690_v44 = vpack.i.bf16 %v8137_v41, %v280_v40  ;;  %v8146_v45 = vld [vmem:[%s8022_s27 + $0x22] sm:$0xff]  ;;  %v8151_v46 = vld [vmem:[%s8022_s27 + $0x32] sm:$0xff] }
  0x25   : > { %v288_v47 = vld [vmem:[%s8022_s27 + $0x2] sm:$0xff]  ;;  %v8155_v48 = vld [vmem:[%s8022_s27 + $0x12] sm:$0xff]  ;;  %v6715_v51 = vpack.i.bf16 %v8151_v46, %v8146_v45 }
  0x26   : > { %v8158_v49 = vld [vmem:[%s8022_s27 + $0x241] sm:$0xff]  ;;  %v8161_v50 = vld [vmem:[%s8022_s27 + $0x251] sm:$0xff]  ;;  %v6710_v52 = vpack.i.bf16 %v8155_v48, %v288_v47 }
  0x27   : > { %v6705_v53 = vpack.i.bf16 %v8161_v50, %v8158_v49  ;;  %v296_v54 = vld [vmem:[%s8022_s27 + $0xa2] sm:$0xff]  ;;  %v8173_v55 = vld [vmem:[%s8022_s27 + $0xb2] sm:$0xff] }
  0x28   : > { %6671 = vrot.lane.b32.xlu2 %v6670_v24, %s7943_s28  ;;  %v8176_v56 = vld [vmem:[%s8022_s27 + $0x62] sm:$0xff]  ;;  %v8179_v57 = vld [vmem:[%s8022_s27 + $0x72] sm:$0xff]  ;;  %v6730_v60 = vpack.i.bf16 %v8173_v55, %v296_v54 }
  0x29   : > { %6666 = vrot.lane.b32.xlu1 %v6665_v25, %s7943_s28  ;;  %v8182_v58 = vld [vmem:[%s8022_s27 + $0x42] sm:$0xff]  ;;  %v8185_v59 = vld [vmem:[%s8022_s27 + $0x52] sm:$0xff]  ;;  %v6725_v61 = vpack.i.bf16 %v8179_v57, %v8176_v56 }
  0x2a   : > { %6661 = vrot.lane.b32.xlu0 %v6660_v26, %s7943_s28  ;;  %v6720_v62 = vpack.i.bf16 %v8185_v59, %v8182_v58  ;;  %v8194_v63 = vld [vmem:[%s8022_s27 + $0x102] sm:$0xff]  ;;  %v8199_v0 = vld [vmem:[%s8022_s27 + $0x112] sm:$0xff] }
  0x2b   : > { %v8202_v3 = vld [vmem:[%s8022_s27 + $0xe2] sm:$0xff]  ;;  %v8205_v5 = vld [vmem:[%s8022_s27 + $0xf2] sm:$0xff]  ;;  %v6745_v15 = vpack.i.bf16 %v8199_v0, %v8194_v63 }
  0x2c   : > { %v8208_v7 = vld [vmem:[%s8022_s27 + $0xc2] sm:$0xff]  ;;  %v8211_v8 = vld [vmem:[%s8022_s27 + $0xd2] sm:$0xff]  ;;  %v6740_v16 = vpack.i.bf16 %v8205_v5, %v8202_v3 }
  0x2d   : > { %v6735_v17 = vpack.i.bf16 %v8211_v8, %v8208_v7  ;;  %v8221_v18 = vld [vmem:[%s8022_s27 + $0x182] sm:$0xff]  ;;  %v8226_v24 = vld [vmem:[%s8022_s27 + $0x192] sm:$0xff] }
  0x2e   : > { %v8229_v25 = vld [vmem:[%s8022_s27 + $0x162] sm:$0xff]  ;;  %v8232_v26 = vld [vmem:[%s8022_s27 + $0x172] sm:$0xff] }
  0x2f   : > { %v6755_v40 = vpack.i.bf16 %v8232_v26, %v8229_v25  ;;  %v312_v47 = vld [vmem:[%s8022_s27 + $0x1e2] sm:$0xff] }
  0x30   : > { %6686 = vrot.lane.b32.xlu2 %v6685_v33, %s7943_s28  ;;  %v304_v33 = vld [vmem:[%s8022_s27 + $0x142] sm:$0xff] }
  0x31   : > { %6681 = vrot.lane.b32.xlu1 %v6680_v34, %s7943_s28  ;;  %v8236_v34 = vld [vmem:[%s8022_s27 + $0x152] sm:$0xff] }
  0x32   : > { %6676 = vrot.lane.b32.xlu0 %v6675_v35, %s7943_s28  ;;  %v6760_v35 = vpack.i.bf16 %v8226_v24, %v8221_v18 }
  0x38   : > { %6701 = vrot.lane.b32.xlu2 %v6700_v42, %s7943_s28  ;;  %v6750_v42 = vpack.i.bf16 %v8236_v34, %v304_v33  ;;  %v8281_v33 = vld [vmem:[%s8022_s27 + $0x222] sm:$0xff] }
  0x39   : > { %6696 = vrot.lane.b32.xlu1 %v6695_v43, %s7943_s28  ;;  %v8245_v43 = vld [vmem:[%s8022_s27 + $0x202] sm:$0xff] }
  0x3a   : > { %6691 = vrot.lane.b32.xlu0 %v6690_v44, %s7943_s28  ;;  %13528 = vst [vmem:[#allocation2_spill] sm:$0xff] %v8245_v43  ;;  %v8250_v44 = vld [vmem:[%s8022_s27 + $0x212] sm:$0xff] }
  0x3b   : > { %v6775_v54 = vpack.i.bf16 %v8250_v44, %v8245_v43 }
  0x40   : > { %6716 = vrot.lane.b32.xlu2 %v6715_v51, %s7944_s29  ;;  %v8254_v51 = vld [vmem:[%s8022_s27 + $0x1f2] sm:$0xff] }
  0x41   : > { %6711 = vrot.lane.b32.xlu1 %v6710_v52, %s7944_s29  ;;  %v8257_v52 = vld [vmem:[%s8022_s27 + $0x1a2] sm:$0xff] }
  0x42   : > { %6706 = vrot.lane.b32.xlu0 %v6705_v53, %s7943_s28  ;;  %v8260_v53 = vld [vmem:[%s8022_s27 + $0x1b2] sm:$0xff] }
  0x43   : > { %13529 = vst [vmem:[#allocation3_spill] sm:$0xff] %v8260_v53 }
  0x48   : > { %6731 = vrot.lane.b32.xlu2 %v6730_v60, %s7944_s29  ;;  %v6770_v60 = vpack.i.bf16 %v8254_v51, %v312_v47 }
  0x49   : > { %6726 = vrot.lane.b32.xlu1 %v6725_v61, %s7944_s29  ;;  %v6765_v61 = vpack.i.bf16 %v8260_v53, %v8257_v52  ;;  %v8378_v53 = vld [vmem:[%s8022_s27 + $0x1b0] sm:$0xff] }
  0x4a   : > { %6721 = vrot.lane.b32.xlu0 %v6720_v62, %s7944_s29  ;;  %v5733_v62 = vld [vmem:[%s8022_s27 + $0x10] sm:$0xff]  ;;  %13553 = vst [vmem:[#allocation27_spill] sm:$0xff] %v8378_v53 }
  0x50   : > { %6746 = vrot.lane.b32.xlu2 %v6745_v15, %s7944_s29  ;;  %v8272_v15 = vld [vmem:[%s8022_s27 + $0x20] sm:$0xff] }
  0x51   : > { %6741 = vrot.lane.b32.xlu1 %v6740_v16, %s7944_s29  ;;  %13530 = vst [vmem:[#allocation4_spill] sm:$0xff] %v8272_v15  ;;  %v8275_v16 = vld [vmem:[%s8022_s27 + $0x242] sm:$0xff] }
  0x52   : > { %6736 = vrot.lane.b32.xlu0 %v6735_v17, %s7944_s29  ;;  %13531 = vst [vmem:[#allocation5_spill] sm:$0xff] %v8275_v16  ;;  %v8278_v17 = vld [vmem:[%s8022_s27 + $0x252] sm:$0xff] }
  0x53   : > { %13532 = vst [vmem:[#allocation6_spill] sm:$0xff] %v8278_v17 }
  0x58   : > { %6761 = vrot.lane.b32.xlu2 %v6760_v35, %s7944_s29  ;;  %v8284_v35 = vld [vmem:[%s8022_s27 + $0x232] sm:$0xff] }
  0x59   : > { %6756 = vrot.lane.b32.xlu1 %v6755_v40, %s7944_s29  ;;  %13533 = vst [vmem:[#allocation7_spill] sm:$0xff] %v8284_v35  ;;  %v6790_v40 = vpack.i.bf16 %v8272_v15, %v5733_v62  ;;  %v6780_v47 = vpack.i.bf16 %v8284_v35, %v8281_v33  ;;  %v8304_v62 = vld [vmem:[%s8022_s27 + $0x60] sm:$0xff]  ;;  %v8323_v15 = vld [vmem:[%s8022_s27 + $0xf0] sm:$0xff] }
  0x5a   : > { %6751 = vrot.lane.b32.xlu0 %v6750_v42, %s7944_s29  ;;  %v6785_v42 = vpack.i.bf16 %v8278_v17, %v8275_v16  ;;  %13537 = vst [vmem:[#allocation11_spill] sm:$0xff] %v8304_v62  ;;  %v8307_v16 = vld [vmem:[%s8022_s27 + $0x30] sm:$0xff] }
  0x5b   : > { %13538 = vst [vmem:[#allocation12_spill] sm:$0xff] %v8307_v16  ;;  %v233_v17 = vld [vmem:[%s8022_s27 + $0xb0] sm:$0xff] }
  0x5c   : > { %13540 = vst [vmem:[#allocation14_spill] sm:$0xff] %v8323_v15 }
  0x60   : > { %6776 = vrot.lane.b32.xlu2 %v6775_v54, %s7944_s29  ;;  %v8293_v54 = vld [vmem:[%s8022_s27 + $0x70] sm:$0xff] }
  0x61   : > { %6771 = vrot.lane.b32.xlu1 %v6770_v60, %s7944_s29  ;;  %13534 = vst [vmem:[#allocation8_spill] sm:$0xff] %v8293_v54  ;;  %v8298_v60 = vld [vmem:[%s8022_s27 + $0x80] sm:$0xff] }
  0x62   : > { %6766 = vrot.lane.b32.xlu0 %v6765_v61, %s7944_s29  ;;  %13535 = vst [vmem:[#allocation9_spill] sm:$0xff] %v8298_v60  ;;  %v8301_v61 = vld [vmem:[%s8022_s27 + $0x50] sm:$0xff]  ;;  %v6805_v35 = vpack.i.bf16 %v8298_v60, %v8293_v54  ;;  %v8326_v54 = vld [vmem:[%s8022_s27 + $0x100] sm:$0xff] }
  0x63   : > { %13536 = vst [vmem:[#allocation10_spill] sm:$0xff] %v8301_v61 }
  0x64   : > { %13541 = vst [vmem:[#allocation15_spill] sm:$0xff] %v8326_v54 }
  0x68   : > { %6791 = vrot.lane.b32.xlu2 %v6790_v40, %s7945_s30  ;;  %v8310_v40 = vld [vmem:[%s8022_s27 + $0x40] sm:$0xff] }
  0x69   : > { %6786 = vrot.lane.b32.xlu1 %v6785_v42, %s7944_s29  ;;  %13539 = vst [vmem:[#allocation13_spill] sm:$0xff] %v8310_v40  ;;  %v6800_v42 = vpack.i.bf16 %v8304_v62, %v8301_v61  ;;  %v8331_v62 = vld [vmem:[%s8022_s27 + $0xd0] sm:$0xff] }
  0x6a   : > { %6781 = vrot.lane.b32.xlu0 %v6780_v47, %s7944_s29  ;;  %v6795_v47 = vpack.i.bf16 %v8310_v40, %v8307_v16  ;;  %13543 = vst [vmem:[#allocation17_spill] sm:$0xff] %v8331_v62  ;;  %v8334_v40 = vld [vmem:[%s8022_s27 + $0xe0] sm:$0xff]  ;;  %v8346_v16 = vld [vmem:[%s8022_s27 + $0x170] sm:$0xff] }
  0x6b   : > { %13544 = vst [vmem:[#allocation18_spill] sm:$0xff] %v8334_v40 }
  0x6c   : > { %13546 = vst [vmem:[#allocation20_spill] sm:$0xff] %v8346_v16 }
  0x70   : > { %6806 = vrot.lane.b32.xlu2 %v6805_v35, %s7945_s30  ;;  %v8337_v35 = vld [vmem:[%s8022_s27 + $0xc0] sm:$0xff] }
  0x71   : > { %6801 = vrot.lane.b32.xlu1 %v6800_v42, %s7945_s30  ;;  %13545 = vst [vmem:[#allocation19_spill] sm:$0xff] %v8337_v35  ;;  %v6820_v42 = vpack.i.bf16 %v8326_v54, %v8323_v15  ;;  %v6810_v60 = vpack.i.bf16 %v8337_v35, %v233_v17  ;;  %v5749_v15 = vld [vmem:[%s8022_s27 + $0x150] sm:$0xff] }
  0x72   : > { %6796 = vrot.lane.b32.xlu0 %v6795_v47, %s7945_s30  ;;  %v8328_v61 = vpop.permute.xlu2 %6651  ;;  %v6815_v47 = vpack.i.bf16 %v8334_v40, %v8331_v62  ;;  %v8357_v62 = vld [vmem:[%s8022_s27 + $0x160] sm:$0xff]  ;;  %v8360_v17 = vld [vmem:[%s8022_s27 + $0x110] sm:$0xff] }
  0x73   : > { %13542 = vst [vmem:[#allocation16_spill] sm:$0xff] %v8328_v61  ;;  %v8351_v61 = vld [vmem:[%s8022_s27 + $0x180] sm:$0xff]  ;;  %v6830_v35 = vpack.i.bf16 %v8357_v62, %v5749_v15  ;;  %v5757_v40 = vld [vmem:[%s8022_s27 + $0x1f0] sm:$0xff] }
  0x74   : > { %13547 = vst [vmem:[#allocation21_spill] sm:$0xff] %v8351_v61 }
  0x75   : > { %13549 = vst [vmem:[#allocation23_spill] sm:$0xff] %v8357_v62 }
  0x76   : > { %13550 = vst [vmem:[#allocation24_spill] sm:$0xff] %v8360_v17 }
  0x78   : > { %6821 = vrot.lane.b32.xlu2 %v6820_v42, %s7945_s30  ;;  %v8363_v42 = vld [vmem:[%s8022_s27 + $0x120] sm:$0xff] }
  0x79   : > { %6816 = vrot.lane.b32.xlu1 %v6815_v47, %s7945_s30  ;;  %13551 = vst [vmem:[#allocation25_spill] sm:$0xff] %v8363_v42  ;;  %v6835_v47 = vpack.i.bf16 %v8351_v61, %v8346_v16  ;;  %v8383_v16 = vld [vmem:[%s8022_s27 + $0x1c0] sm:$0xff]  ;;  %v8398_v61 = vld [vmem:[%s8022_s27 + $0x250] sm:$0xff] }
  0x7a   : > { %6811 = vrot.lane.b32.xlu0 %v6810_v60, %s7945_s30  ;;  %v8354_v54 = vpop.permute.xlu2 %6656  ;;  %v6825_v60 = vpack.i.bf16 %v8363_v42, %v8360_v17  ;;  %13555 = vst [vmem:[#allocation29_spill] sm:$0xff] %v8383_v16  ;;  %v8386_v42 = vld [vmem:[%s8022_s27 + $0x190] sm:$0xff] }
  0x7b   : > { %13548 = vst [vmem:[#allocation22_spill] sm:$0xff] %v8354_v54  ;;  %v8375_v54 = vld [vmem:[%s8022_s27 + $0x200] sm:$0xff]  ;;  %v8406_v17 = vld [vmem:[%s8022_s27 + $0x230] sm:$0xff] }
  0x7c   : > { %13552 = vst [vmem:[#allocation26_spill] sm:$0xff] %v8375_v54 }
  0x7d   : > { %13557 = vst [vmem:[#allocation31_spill] sm:$0xff] %v8398_v61 }
  0x7e   : > { %13558 = vst [vmem:[#allocation32_spill] sm:$0xff] %v8406_v17 }
  0x80   : > { %6836 = vrot.lane.b32.xlu2 %v6835_v47, %s7945_s30  ;;  %v8389_v47 = vld [vmem:[%s8022_s27 + $0x1a0] sm:$0xff] }
  0x81   : > { %6831 = vrot.lane.b32.xlu1 %v6830_v35, %s7945_s30  ;;  %13556 = vst [vmem:[#allocation30_spill] sm:$0xff] %v8389_v47  ;;  %v6850_v35 = vpack.i.bf16 %v8375_v54, %v5757_v40  ;;  %v6840_v62 = vpack.i.bf16 %v8389_v47, %v8386_v42  ;;  %v8411_v40 = vld [vmem:[%s8022_s27 + $0x240] sm:$0xff] }
  0x82   : > { %6826 = vrot.lane.b32.xlu0 %v6825_v60, %s7945_s30  ;;  %v8380_v15 = vpop.permute.xlu2 %6671  ;;  %v6845_v60 = vpack.i.bf16 %v8383_v16, %v8378_v53  ;;  %v8414_v53 = vld [vmem:[%s8022_s27 + $0x210] sm:$0xff]  ;;  %v8417_v16 = vld [vmem:[%s8022_s27 + $0x220] sm:$0xff] }
  0x83   : > { %13554 = vst [vmem:[#allocation28_spill] sm:$0xff] %v8380_v15  ;;  %v8403_v15 = vld [vmem:[%s8022_s27 + $0x260] sm:$0xff] }
  0x84   : > { %13560 = vst [vmem:[#allocation34_spill] sm:$0xff] %v8417_v16 }
  0x88   : > { %6851 = vrot.lane.b32.xlu2 %v6850_v35, %s7945_s30 }
  0x89   : > { %6846 = vrot.lane.b32.xlu1 %v6845_v60, %s7945_s30  ;;  %v6865_v60 = vpack.i.bf16 %v8403_v15, %v8398_v61  ;;  %v6880_v61 = vpack.i.bf16 %v8052_v11, %v8033_v4 }
  0x8a   : > { %6841 = vrot.lane.b32.xlu0 %v6840_v62, %s7945_s30  ;;  %v8408_v43 = vpop.permute.xlu2 %6686  ;;  %v6860_v62 = vpack.i.bf16 %v8411_v40, %v8406_v17  ;;  %v6875_v17 = vpack.i.bf16 %v8029_v2, %v8061_v14  ;;  %v6895_v2 = vpack.i.bf16 %v8083_v22, %v8049_v10  ;;  %v8468_v14 = vld [vmem:[%s8022_s27 + $0x121] sm:$0xff] }
  0x8b   : > { %13559 = vst [vmem:[#allocation33_spill] sm:$0xff] %v8408_v43  ;;  %v8419_v47 = vpop.permute.xlu1 %6641  ;;  %v6855_v43 = vpack.i.bf16 %v8417_v16, %v8414_v53  ;;  %v6870_v16 = vpack.i.bf16 %v8058_v13, %v8037_v6  ;;  %v6890_v6 = vpack.i.bf16 %v8044_v9, %v8026_v1  ;;  %v6910_v1 = vpack.i.bf16 %v8109_v31, %v8074_v19  ;;  %v8484_v22 = vld [vmem:[%s8022_s27 + $0x1c1] sm:$0xff] }
  0x8c   : > { %13561 = vst [vmem:[#allocation35_spill] sm:$0xff] %v8419_v47  ;;  %v8421_v35 = vpop.permute.xlu0 %6631  ;;  %v6905_v9 = vpack.i.bf16 %v8468_v14, %v8080_v21  ;;  %v6925_v19 = vpack.i.bf16 %v8484_v22, %v8100_v28  ;;  %v6915_v21 = vpack.i.bf16 %v8103_v29, %v8112_v32  ;;  %v6940_v28 = vpack.i.bf16 %v8158_v49, %v8127_v37  ;;  %v8519_v32 = vld [vmem:[%s8022_s27 + $0x261] sm:$0xff] }
  0x8d   : > { %13562 = vst [vmem:[#allocation36_spill] sm:$0xff] %v8421_v35  ;;  %v6930_v29 = vpack.i.bf16 %v8130_v38, %v8137_v41  ;;  %v6950_v38 = vpack.i.bf16 %v8146_v45, %v8155_v48  ;;  %v8537_v49 = vld [vmem:[%s8022_s27 + $0x82] sm:$0xff]  ;;  %v6970_v45 = vpack.i.bf16 %v8208_v7, %v8173_v55 }
  0x8e   : > { %v6965_v48 = vpack.i.bf16 %v8537_v49, %v8179_v57  ;;  %v6975_v57 = vpack.i.bf16 %v8202_v3, %v8211_v8  ;;  %v6990_v3 = vpack.i.bf16 %v8229_v25, %v8236_v34  ;;  %v8588_v8 = vld [vmem:[%s8022_s27 + $0x1c2] sm:$0xff] }
  0x8f   : > { %v13586_v34 = vld [vmem:[#allocation3_spill] sm:$0xff] }
  0x90   : > { %6866 = vrot.lane.b32.xlu2 %v6865_v60, %s7945_s30  ;;  %v8450_v60 = vld [vmem:[%s8022_s27 + $0x81] sm:$0xff] }
  0x91   : > { %6861 = vrot.lane.b32.xlu1 %v6860_v62, %s7945_s30  ;;  %v6885_v11 = vpack.i.bf16 %v8450_v60, %v8055_v12  ;;  %v6900_v12 = vpack.i.bf16 %v8077_v20, %v8086_v23  ;;  %v6920_v20 = vpack.i.bf16 %v8095_v27, %v8106_v30  ;;  %v6935_v27 = vpack.i.bf16 %v8122_v36, %v8133_v39 }
  0x92   : > { %6856 = vrot.lane.b32.xlu0 %v6855_v43, %s7945_s30  ;;  %v8432_v54 = vpop.permute.xlu2 %6701  ;;  %v6955_v36 = vpack.i.bf16 %v8182_v58, %v8151_v46  ;;  %v6945_v39 = vpack.i.bf16 %v8519_v32, %v8161_v50  ;;  %v6960_v50 = vpack.i.bf16 %v8176_v56, %v8185_v59  ;;  %v8553_v58 = vld [vmem:[%s8022_s27 + $0x122] sm:$0xff]  ;;  %v6980_v56 = vpack.i.bf16 %v8194_v63, %v8205_v5 }
  0x93   : > { %13563 = vst [vmem:[#allocation37_spill] sm:$0xff] %v8432_v54  ;;  %v8434_v47 = vpop.permute.xlu1 %6646  ;;  %v6985_v55 = vpack.i.bf16 %v8553_v58, %v8199_v0  ;;  %v7000_v0 = vpack.i.bf16 %v8257_v52, %v8226_v24  ;;  %v6995_v63 = vpack.i.bf16 %v8221_v18, %v8232_v26  ;;  %v7015_v18 = vpack.i.bf16 %v8281_v33, %v8250_v44  ;;  %v13585_v26 = vld [vmem:[#allocation2_spill] sm:$0xff]  ;;  %v13590_v33 = vld [vmem:[#allocation4_spill] sm:$0xff] }
  0x94   : > { %v8436_v35 = vpop.permute.xlu0 %6636  ;;  %v7010_v25 = vpack.i.bf16 %v13585_v26, %v8254_v51  ;;  %v7005_v52 = vpack.i.bf16 %v8588_v8, %v13586_v34  ;;  %v13591_v51 = vld [vmem:[#allocation12_spill] sm:$0xff]  ;;  %v13601_v34 = vld [vmem:[#allocation13_spill] sm:$0xff] }
  0x95   : > { %v13600_v26 = vld [vmem:[#allocation8_spill] sm:$0xff] }
  0x98   : > { %6881 = vrot.lane.b32.xlu2 %v6880_v61, %s7946_s5 }
  0x99   : > { %6876 = vrot.lane.b32.xlu1 %v6875_v17, %s7946_s5 }
  0x9a   : > { %6871 = vrot.lane.b32.xlu0 %v6870_v16, %s7946_s5  ;;  %v8447_v43 = vpop.permute.xlu2 %6716 }
  0x9b   : > { %v8452_v62 = vpop.permute.xlu1 %6666 }
  0x9c   : > { %v8454_v4 = vpop.permute.xlu0 %6661 }
  0xa0   : > { %6896 = vrot.lane.b32.xlu2 %v6895_v2, %s7946_s5 }
  0xa1   : > { %6891 = vrot.lane.b32.xlu1 %v6890_v6, %s7946_s5 }
  0xa2   : > { %6886 = vrot.lane.b32.xlu0 %v6885_v11, %s7946_s5  ;;  %v8465_v13 = vpop.permute.xlu2 %6731 }
  0xa3   : > { %v8470_v16 = vpop.permute.xlu1 %6681 }
  0xa4   : > { %v8472_v10 = vpop.permute.xlu0 %6676 }
  0xa8   : > { %6911 = vrot.lane.b32.xlu2 %v6910_v1, %s7946_s5 }
  0xa9   : > { %6906 = vrot.lane.b32.xlu1 %v6905_v9, %s7946_s5 }
  0xaa   : > { %6901 = vrot.lane.b32.xlu0 %v6900_v12, %s7946_s5  ;;  %v8486_v61 = vpop.permute.xlu2 %6746 }
  0xab   : > { %13564 = vst [vmem:[#allocation38_spill] sm:$0xff] %v8486_v61  ;;  %v8488_v17 = vpop.permute.xlu1 %6696 }
  0xac   : > { %13565 = vst [vmem:[#allocation39_spill] sm:$0xff] %v8488_v17  ;;  %v8490_v2 = vpop.permute.xlu0 %6691 }
  0xad   : > { %13566 = vst [vmem:[#allocation40_spill] sm:$0xff] %v8490_v2 }
  0xb0   : > { %6926 = vrot.lane.b32.xlu2 %v6925_v19, %s7946_s5 }
  0xb1   : > { %6921 = vrot.lane.b32.xlu1 %v6920_v20, %s7946_s5 }
  0xb2   : > { %6916 = vrot.lane.b32.xlu0 %v6915_v21, %s7946_s5  ;;  %v8501_v23 = vpop.permute.xlu2 %6761 }
  0xb3   : > { %13567 = vst [vmem:[#allocation41_spill] sm:$0xff] %v8501_v23  ;;  %v8503_v31 = vpop.permute.xlu1 %6711 }
  0xb4   : > { %13568 = vst [vmem:[#allocation42_spill] sm:$0xff] %v8503_v31  ;;  %v8505_v6 = vpop.permute.xlu0 %6706  ;;  %v9078_v31 = vld [vmem:[%s8022_s27 + $0xb1] sm:$0xff] }
  0xb5   : > { %13569 = vst [vmem:[#allocation43_spill] sm:$0xff] %v8505_v6  ;;  %v5866_v6 = vld [vmem:[%s8022_s27 + $0x71] sm:$0xff] }
  0xb8   : > { %6941 = vrot.lane.b32.xlu2 %v6940_v28, %s7946_s5 }
  0xb9   : > { %6936 = vrot.lane.b32.xlu1 %v6935_v27, %s7946_s5  ;;  %v8606_v27 = vld [vmem:[%s8022_s27 + $0x262] sm:$0xff] }
  0xba   : > { %6931 = vrot.lane.b32.xlu0 %v6930_v29, %s7946_s5  ;;  %v8516_v30 = vpop.permute.xlu2 %6776 }
  0xbb   : > { %13570 = vst [vmem:[#allocation44_spill] sm:$0xff] %v8516_v30  ;;  %v8521_v11 = vpop.permute.xlu1 %6726 }
  0xbc   : > { %13571 = vst [vmem:[#allocation45_spill] sm:$0xff] %v8521_v11  ;;  %v8523_v37 = vpop.permute.xlu0 %6721  ;;  %v9059_v11 = vld [vmem:[%s8022_s27 + $0x2b0] sm:$0xff] }
  0xbd   : > { %13572 = vst [vmem:[#allocation46_spill] sm:$0xff] %v8523_v37  ;;  %v9056_v37 = vld [vmem:[%s8022_s27 + $0x2a0] sm:$0xff] }
  0xc0   : > { %6956 = vrot.lane.b32.xlu2 %v6955_v36, %s7947_s6  ;;  %v7030_v36 = vpack.i.bf16 %v13591_v51, %v13590_v33 }
  0xc1   : > { %6951 = vrot.lane.b32.xlu1 %v6950_v38, %s7947_s6  ;;  %v13592_v38 = vld [vmem:[#allocation6_spill] sm:$0xff] }
  0xc2   : > { %6946 = vrot.lane.b32.xlu0 %v6945_v39, %s7946_s5  ;;  %v8534_v41 = vpop.permute.xlu2 %6791  ;;  %v7025_v39 = vpack.i.bf16 %v8606_v27, %v13592_v38 }
  0xc3   : > { %13573 = vst [vmem:[#allocation47_spill] sm:$0xff] %v8534_v41  ;;  %v8539_v1 = vpop.permute.xlu1 %6741  ;;  %v9053_v41 = vld [vmem:[%s8022_s27 + $0x2d0] sm:$0xff] }
  0xc4   : > { %13574 = vst [vmem:[#allocation48_spill] sm:$0xff] %v8539_v1  ;;  %v8541_v46 = vpop.permute.xlu0 %6736  ;;  %v9040_v1 = vld [vmem:[%s8022_s27 + $0x2e0] sm:$0xff] }
  0xc5   : > { %13575 = vst [vmem:[#allocation49_spill] sm:$0xff] %v8541_v46 }
  0xc8   : > { %6971 = vrot.lane.b32.xlu2 %v6970_v45, %s7947_s6  ;;  %v13593_v45 = vld [vmem:[#allocation7_spill] sm:$0xff] }
  0xc9   : > { %6966 = vrot.lane.b32.xlu1 %v6965_v48, %s7947_s6  ;;  %v13594_v48 = vld [vmem:[#allocation5_spill] sm:$0xff] }
  0xca   : > { %6961 = vrot.lane.b32.xlu0 %v6960_v50, %s7947_s6  ;;  %v8555_v9 = vpop.permute.xlu2 %6806  ;;  %v7020_v50 = vpack.i.bf16 %v13594_v48, %v13593_v45  ;;  %v13607_v45 = vld [vmem:[#allocation24_spill] sm:$0xff] }
  0xcb   : > { %13576 = vst [vmem:[#allocation50_spill] sm:$0xff] %v8555_v9  ;;  %v8557_v12 = vpop.permute.xlu1 %6756 }
  0xcc   : > { %13577 = vst [vmem:[#allocation51_spill] sm:$0xff] %v8557_v12  ;;  %v8559_v19 = vpop.permute.xlu0 %6751  ;;  %v9024_v12 = vld [vmem:[%s8022_s27 + $0x220] sm:$0xff] }
  0xcd   : > { %13578 = vst [vmem:[#allocation52_spill] sm:$0xff] %v8559_v19 }
  0xd0   : > { %6986 = vrot.lane.b32.xlu2 %v6985_v55, %s7947_s6  ;;  %v5836_v55 = vld [vmem:[%s8022_s27 + $0x90] sm:$0xff] }
  0xd1   : > { %6981 = vrot.lane.b32.xlu1 %v6980_v56, %s7947_s6 }
  0xd2   : > { %6976 = vrot.lane.b32.xlu0 %v6975_v57, %s7947_s6  ;;  %v8570_v59 = vpop.permute.xlu2 %6821 }
  0xd3   : > { %13579 = vst [vmem:[#allocation53_spill] sm:$0xff] %v8570_v59  ;;  %v8572_v7 = vpop.permute.xlu1 %6771  ;;  %v5951_v59 = vld [vmem:[%s8022_s27 + $0x280] sm:$0xff] }
  0xd4   : > { %13580 = vst [vmem:[#allocation54_spill] sm:$0xff] %v8572_v7  ;;  %v8574_v20 = vpop.permute.xlu0 %6766 }
  0xd5   : > { %13581 = vst [vmem:[#allocation55_spill] sm:$0xff] %v8574_v20 }
  0xd8   : > { %7001 = vrot.lane.b32.xlu2 %v7000_v0, %s7947_s6 }
  0xd9   : > { %6996 = vrot.lane.b32.xlu1 %v6995_v63, %s7947_s6  ;;  %v13598_v63 = vld [vmem:[#allocation9_spill] sm:$0xff] }
  0xda   : > { %6991 = vrot.lane.b32.xlu0 %v6990_v3, %s7947_s6  ;;  %v8585_v5 = vpop.permute.xlu2 %6836  ;;  %v7045_v3 = vpack.i.bf16 %v5836_v55, %v13598_v63  ;;  %v13609_v55 = vld [vmem:[#allocation14_spill] sm:$0xff] }
  0xdb   : > { %13582 = vst [vmem:[#allocation56_spill] sm:$0xff] %v8585_v5  ;;  %v8590_v21 = vpop.permute.xlu1 %6786  ;;  %v8991_v5 = vld [vmem:[%s8022_s27 + $0x1f0] sm:$0xff] }
  0xdc   : > { %13583 = vst [vmem:[#allocation57_spill] sm:$0xff] %v8590_v21  ;;  %v8592_v24 = vpop.permute.xlu0 %6781 }
  0xdd   : > { %13584 = vst [vmem:[#allocation58_spill] sm:$0xff] %v8592_v24 }
  0xe0   : > { %7016 = vrot.lane.b32.xlu2 %v7015_v18, %s7947_s6  ;;  %v13599_v18 = vld [vmem:[#allocation11_spill] sm:$0xff] }
  0xe1   : > { %7011 = vrot.lane.b32.xlu1 %v7010_v25, %s7947_s6  ;;  %v7040_v25 = vpack.i.bf16 %v13600_v26, %v13599_v18  ;;  %v13610_v18 = vld [vmem:[#allocation19_spill] sm:$0xff]  ;;  %v13611_v26 = vld [vmem:[#allocation17_spill] sm:$0xff] }
  0xe2   : > { %7006 = vrot.lane.b32.xlu0 %v7005_v52, %s7947_s6  ;;  %v8603_v28 = vpop.permute.xlu2 %6851  ;;  %v13602_v52 = vld [vmem:[#allocation10_spill] sm:$0xff] }
  0xe3   : > { %13587 = vst [vmem:[#allocation2_spill] sm:$0xff] %v8603_v28  ;;  %v8608_v29 = vpop.permute.xlu1 %6801  ;;  %v7035_v33 = vpack.i.bf16 %v13602_v52, %v13601_v34  ;;  %v5844_v34 = vld [vmem:[%s8022_s27 + $0x130] sm:$0xff] }
  0xe4   : > { %13588 = vst [vmem:[#allocation3_spill] sm:$0xff] %v8608_v29  ;;  %v8610_v44 = vpop.permute.xlu0 %6796  ;;  %v8980_v29 = vld [vmem:[%s8022_s27 + $0x200] sm:$0xff] }
  0xe5   : > { %13589 = vst [vmem:[#allocation59_spill] sm:$0xff] %v8610_v44 }
  0xe8   : > { %7031 = vrot.lane.b32.xlu2 %v7030_v36, %s7948_s7 }
  0xe9   : > { %7026 = vrot.lane.b32.xlu1 %v7025_v39, %s7947_s6  ;;  %v13606_v39 = vld [vmem:[#allocation15_spill] sm:$0xff] }
  0xea   : > { %7021 = vrot.lane.b32.xlu0 %v7020_v50, %s7947_s6  ;;  %v8622_v56 = vpop.permute.xlu2 %6866  ;;  %v7060_v48 = vpack.i.bf16 %v13607_v45, %v13606_v39  ;;  %v13608_v50 = vld [vmem:[#allocation18_spill] sm:$0xff]  ;;  %v13615_v39 = vld [vmem:[#allocation21_spill] sm:$0xff] }
  0xeb   : > { %13595 = vst [vmem:[#allocation4_spill] sm:$0xff] %v8622_v56  ;;  %v8624_v57 = vpop.permute.xlu1 %6816  ;;  %v7055_v63 = vpack.i.bf16 %v13609_v55, %v13608_v50  ;;  %v7075_v45 = vpack.i.bf16 %v8386_v42, %v13615_v39  ;;  %v13616_v50 = vld [vmem:[#allocation23_spill] sm:$0xff]  ;;  %v13617_v55 = vld [vmem:[#allocation20_spill] sm:$0xff]  ;;  %v13622_v42 = vld [vmem:[#allocation26_spill] sm:$0xff] }
  0xec   : > { %13596 = vst [vmem:[#allocation12_spill] sm:$0xff] %v8624_v57  ;;  %v8626_v0 = vpop.permute.xlu0 %6811  ;;  %v7090_v39 = vpack.i.bf16 %v8414_v53, %v13622_v42 }
  0xed   : > { %13597 = vst [vmem:[#allocation6_spill] sm:$0xff] %v8626_v0  ;;  %v8967_v0 = vld [vmem:[%s8022_s27 + $0x150] sm:$0xff] }
  0xf0   : > { %7046 = vrot.lane.b32.xlu2 %v7045_v3, %s7948_s7  ;;  %v7050_v3 = vpack.i.bf16 %v13611_v26, %v13610_v18  ;;  %v7070_v18 = vpack.i.bf16 %v13617_v55, %v13616_v50  ;;  %v13618_v26 = vld [vmem:[#allocation25_spill] sm:$0xff] }
  0xf1   : > { %7041 = vrot.lane.b32.xlu1 %v7040_v25, %s7948_s7  ;;  %v13623_v50 = vld [vmem:[#allocation29_spill] sm:$0xff] }
  0xf2   : > { %7036 = vrot.lane.b32.xlu0 %v7035_v33, %s7948_s7  ;;  %v8636_v51 = vpop.permute.xlu2 %6881 }
  0xf3   : > { %13603 = vst [vmem:[#allocation7_spill] sm:$0xff] %v8636_v51  ;;  %v8638_v36 = vpop.permute.xlu1 %6831  ;;  %v8963_v51 = vld [vmem:[%s8022_s27 + $0x170] sm:$0xff] }
  0xf4   : > { %13604 = vst [vmem:[#allocation5_spill] sm:$0xff] %v8638_v36  ;;  %v8640_v38 = vpop.permute.xlu0 %6826 }
  0xf5   : > { %13605 = vst [vmem:[#allocation9_spill] sm:$0xff] %v8640_v38  ;;  %v8950_v38 = vld [vmem:[%s8022_s27 + $0x180] sm:$0xff] }
  0xf8   : > { %7061 = vrot.lane.b32.xlu2 %v7060_v48, %s7948_s7  ;;  %v7065_v48 = vpack.i.bf16 %v5844_v34, %v13618_v26  ;;  %v13624_v34 = vld [vmem:[#allocation30_spill] sm:$0xff]  ;;  %v13625_v26 = vld [vmem:[#allocation27_spill] sm:$0xff] }
  0xf9   : > { %7056 = vrot.lane.b32.xlu1 %v7055_v63, %s7948_s7 }
  0xfa   : > { %7051 = vrot.lane.b32.xlu0 %v7050_v3, %s7948_s7  ;;  %v8651_v25 = vpop.permute.xlu2 %6896  ;;  %v5852_v3 = vld [vmem:[%s8022_s27 + $0x1d0] sm:$0xff] }
  0xfb   : > { %13612 = vst [vmem:[#allocation11_spill] sm:$0xff] %v8651_v25  ;;  %v8654_v52 = vpop.permute.xlu1 %6846  ;;  %v7085_v55 = vpack.i.bf16 %v5852_v3, %v13623_v50  ;;  %v13629_v50 = vld [vmem:[#allocation31_spill] sm:$0xff] }
  0xfc   : > { %13613 = vst [vmem:[#allocation8_spill] sm:$0xff] %v8654_v52  ;;  %v8656_v33 = vpop.permute.xlu0 %6841 }
  0xfd   : > { %13614 = vst [vmem:[#allocation13_spill] sm:$0xff] %v8656_v33 }
 0x100   : > { %7076 = vrot.lane.b32.xlu2 %v7075_v45, %s7948_s7  ;;  %v7080_v45 = vpack.i.bf16 %v13625_v26, %v13624_v34  ;;  %v7100_v34 = vpack.i.bf16 %v13629_v50, %v8411_v40  ;;  %v13631_v26 = vld [vmem:[#allocation32_spill] sm:$0xff]  ;;  %v5861_v40 = vld [vmem:[%s8022_s27 + $0x21] sm:$0xff] }
 0x101   : > { %7071 = vrot.lane.b32.xlu1 %v7070_v18, %s7948_s7  ;;  %v5860_v18 = vld [vmem:[%s8022_s27 + $0x270] sm:$0xff] }
 0x102   : > { %7066 = vrot.lane.b32.xlu0 %v7065_v48, %s7948_s7  ;;  %v8666_v63 = vpop.permute.xlu2 %6911  ;;  %v7105_v42 = vpack.i.bf16 %v5860_v18, %v8403_v15  ;;  %v5864_v15 = vld [vmem:[%s8022_s27 + $0x51] sm:$0xff] }
 0x103   : > { %13619 = vst [vmem:[#allocation10_spill] sm:$0xff] %v8666_v63  ;;  %v8669_v56 = vpop.permute.xlu1 %6861  ;;  %v5862_v18 = vld [vmem:[%s8022_s27 + $0x31] sm:$0xff] }
 0x104   : > { %13620 = vst [vmem:[#allocation15_spill] sm:$0xff] %v8669_v56  ;;  %v8671_v21 = vpop.permute.xlu0 %6856  ;;  %v5863_v56 = vld [vmem:[%s8022_s27 + $0x41] sm:$0xff] }
 0x105   : > { %13621 = vst [vmem:[#allocation24_spill] sm:$0xff] %v8671_v21  ;;  %v5902_v21 = vld [vmem:[%s8022_s27 + $0xd2] sm:$0xff] }
 0x108   : > { %7091 = vrot.lane.b32.xlu2 %v7090_v39, %s7948_s7  ;;  %v13630_v39 = vld [vmem:[#allocation34_spill] sm:$0xff] }
 0x109   : > { %7086 = vrot.lane.b32.xlu1 %v7085_v55, %s7948_s7  ;;  %v7095_v55 = vpack.i.bf16 %v13631_v26, %v13630_v39  ;;  %v7110_v26 = vpack.i.bf16 %v5862_v18, %v5861_v40 }
 0x10a   : > { %7081 = vrot.lane.b32.xlu0 %v7080_v45, %s7948_s7  ;;  %v8682_v48 = vpop.permute.xlu2 %6926  ;;  %v5865_v45 = vld [vmem:[%s8022_s27 + $0x61] sm:$0xff] }
 0x10b   : > { %13626 = vst [vmem:[#allocation18_spill] sm:$0xff] %v8682_v48  ;;  %v8684_v53 = vpop.permute.xlu1 %6876  ;;  %v7120_v39 = vpack.i.bf16 %v5866_v6, %v5865_v45  ;;  %v5870_v6 = vld [vmem:[%s8022_s27 + $0xd1] sm:$0xff] }
 0x10c   : > { %13627 = vst [vmem:[#allocation14_spill] sm:$0xff] %v8684_v53  ;;  %v8686_v3 = vpop.permute.xlu0 %6871 }
 0x10d   : > { %13628 = vst [vmem:[#allocation19_spill] sm:$0xff] %v8686_v3 }
 0x110   : > { %7106 = vrot.lane.b32.xlu2 %v7105_v42, %s7948_s7 }
 0x111   : > { %7101 = vrot.lane.b32.xlu1 %v7100_v34, %s7948_s7  ;;  %v7115_v34 = vpack.i.bf16 %v5864_v15, %v5863_v56  ;;  %v5868_v56 = vld [vmem:[%s8022_s27 + $0x91] sm:$0xff] }
 0x112   : > { %7096 = vrot.lane.b32.xlu0 %v7095_v55, %s7948_s7  ;;  %v8699_v24 = vpop.permute.xlu2 %6941  ;;  %v5871_v55 = vld [vmem:[%s8022_s27 + $0xe1] sm:$0xff] }
 0x113   : > { %13632 = vst [vmem:[#allocation17_spill] sm:$0xff] %v8699_v24  ;;  %v8704_v50 = vpop.permute.xlu1 %6891  ;;  %v5872_v24 = vld [vmem:[%s8022_s27 + $0xf1] sm:$0xff] }
 0x114   : > { %13633 = vst [vmem:[#allocation21_spill] sm:$0xff] %v8704_v50  ;;  %v8706_v42 = vpop.permute.xlu0 %6886  ;;  %v5869_v50 = vld [vmem:[%s8022_s27 + $0xc1] sm:$0xff]  ;;  %v8722_v40 = vpack.i.bf16 %v5872_v24, %v5871_v55  ;;  %v5876_v24 = vld [vmem:[%s8022_s27 + $0x131] sm:$0xff] }
 0x115   : > { %13634 = vst [vmem:[#allocation23_spill] sm:$0xff] %v8706_v42  ;;  %v8724_v18 = vpack.i.bf16 %v5870_v6, %v5869_v50  ;;  %v5873_v50 = vld [vmem:[%s8022_s27 + $0x101] sm:$0xff] }
 0x116   : > { %v5889_v42 = vld [vmem:[%s8022_s27 + $0x241] sm:$0xff] }
 0x118   : > { %7121 = vrot.lane.b32.xlu2 %v7120_v39, %s7949_s8  ;;  %v7125_v39 = vpack.i.bf16 %v5868_v56, %v8450_v60  ;;  %v5874_v60 = vld [vmem:[%s8022_s27 + $0x111] sm:$0xff] }
 0x119   : > { %7116 = vrot.lane.b32.xlu1 %v7115_v34, %s7949_s8  ;;  %v5877_v34 = vld [vmem:[%s8022_s27 + $0x161] sm:$0xff] }
 0x11a   : > { %7111 = vrot.lane.b32.xlu0 %v7110_v26, %s7949_s8  ;;  %v8713_v54 = vpop.permute.xlu2 %6956  ;;  %v5878_v26 = vld [vmem:[%s8022_s27 + $0x171] sm:$0xff] }
 0x11b   : > { %13635 = vst [vmem:[#allocation20_spill] sm:$0xff] %v8713_v54  ;;  %v8718_v45 = vpop.permute.xlu1 %6906  ;;  %v8743_v56 = vpack.i.bf16 %v5878_v26, %v5877_v34  ;;  %v5882_v34 = vld [vmem:[%s8022_s27 + $0x1b1] sm:$0xff] }
 0x11c   : > { %13636 = vst [vmem:[#allocation25_spill] sm:$0xff] %v8718_v45  ;;  %v8720_v15 = vpop.permute.xlu0 %6901  ;;  %v7145_v45 = vpack.i.bf16 %v5876_v24, %v8468_v14  ;;  %v5879_v14 = vld [vmem:[%s8022_s27 + $0x181] sm:$0xff]  ;;  %v5880_v26 = vld [vmem:[%s8022_s27 + $0x191] sm:$0xff] }
 0x11d   : > { %13637 = vst [vmem:[#allocation26_spill] sm:$0xff] %v8720_v15  ;;  %v8767_v54 = vpack.i.bf16 %v5880_v26, %v5879_v14 }
 0x120   : > { %7136 = vrot.lane.b32.xlu2 %v8722_v40, %s7949_s8 }
 0x121   : > { %7131 = vrot.lane.b32.xlu1 %v8724_v18, %s7949_s8 }
 0x122   : > { %7126 = vrot.lane.b32.xlu0 %v7125_v39, %s7949_s8  ;;  %v8734_v15 = vpop.permute.xlu2 %6971  ;;  %v8746_v39 = vpack.i.bf16 %v5874_v60, %v5873_v50 }
 0x123   : > { %13638 = vst [vmem:[#allocation29_spill] sm:$0xff] %v8734_v15  ;;  %v8739_v55 = vpop.permute.xlu1 %6921  ;;  %v5884_v15 = vld [vmem:[%s8022_s27 + $0x1d1] sm:$0xff] }
 0x124   : > { %13639 = vst [vmem:[#allocation30_spill] sm:$0xff] %v8739_v55  ;;  %v8741_v6 = vpop.permute.xlu0 %6916  ;;  %v5881_v55 = vld [vmem:[%s8022_s27 + $0x1a1] sm:$0xff] }
 0x125   : > { %13640 = vst [vmem:[#allocation27_spill] sm:$0xff] %v8741_v6  ;;  %v8765_v60 = vpack.i.bf16 %v5882_v34, %v5881_v55  ;;  %v5886_v55 = vld [vmem:[%s8022_s27 + $0x211] sm:$0xff] }
 0x128   : > { %7151 = vrot.lane.b32.xlu2 %v8743_v56, %s7949_s8 }
 0x129   : > { %7146 = vrot.lane.b32.xlu1 %v7145_v45, %s7949_s8  ;;  %v7165_v45 = vpack.i.bf16 %v5884_v15, %v8484_v22  ;;  %v5888_v22 = vld [vmem:[%s8022_s27 + $0x231] sm:$0xff]  ;;  %v5885_v15 = vld [vmem:[%s8022_s27 + $0x201] sm:$0xff] }
 0x12a   : > { %7141 = vrot.lane.b32.xlu0 %v8746_v39, %s7949_s8  ;;  %v8755_v6 = vpop.permute.xlu2 %6986  ;;  %v8790_v3 = vpack.i.bf16 %v5886_v55, %v5885_v15 }
 0x12b   : > { %13641 = vst [vmem:[#allocation31_spill] sm:$0xff] %v8755_v6  ;;  %v8760_v24 = vpop.permute.xlu1 %6936  ;;  %v5887_v6 = vld [vmem:[%s8022_s27 + $0x221] sm:$0xff] }
 0x12c   : > { %13642 = vst [vmem:[#allocation34_spill] sm:$0xff] %v8760_v24  ;;  %v8762_v50 = vpop.permute.xlu0 %6931  ;;  %v5890_v24 = vld [vmem:[%s8022_s27 + $0x251] sm:$0xff] }
 0x12d   : > { %13643 = vst [vmem:[#allocation32_spill] sm:$0xff] %v8762_v50  ;;  %v8786_v26 = vpack.i.bf16 %v5890_v24, %v5889_v42  ;;  %v5893_v42 = vld [vmem:[%s8022_s27 + $0x22] sm:$0xff]  ;;  %v5892_v24 = vld [vmem:[%s8022_s27 + $0x271] sm:$0xff] }
 0x12e   : > { %v7185_v48 = vpack.i.bf16 %v5892_v24, %v8519_v32  ;;  %v5908_v24 = vld [vmem:[%s8022_s27 + $0x132] sm:$0xff] }
 0x130   : > { %7166 = vrot.lane.b32.xlu2 %v7165_v45, %s7949_s8  ;;  %v8788_v45 = vpack.i.bf16 %v5888_v22, %v5887_v6  ;;  %v5894_v6 = vld [vmem:[%s8022_s27 + $0x32] sm:$0xff] }
 0x131   : > { %7161 = vrot.lane.b32.xlu1 %v8765_v60, %s7949_s8  ;;  %v7190_v53 = vpack.i.bf16 %v5894_v6, %v5893_v42 }
 0x132   : > { %7156 = vrot.lane.b32.xlu0 %v8767_v54, %s7949_s8  ;;  %v8777_v50 = vpop.permute.xlu2 %7001 }
 0x133   : > { %13644 = vst [vmem:[#allocation60_spill] sm:$0xff] %v8777_v50  ;;  %v8782_v34 = vpop.permute.xlu1 %6951  ;;  %v5895_v50 = vld [vmem:[%s8022_s27 + $0x42] sm:$0xff] }
 0x134   : > { %13645 = vst [vmem:[#allocation61_spill] sm:$0xff] %v8782_v34  ;;  %v8784_v14 = vpop.permute.xlu0 %6946  ;;  %v5896_v34 = vld [vmem:[%s8022_s27 + $0x52] sm:$0xff] }
 0x135   : > { %13646 = vst [vmem:[#allocation62_spill] sm:$0xff] %v8784_v14  ;;  %v7195_v55 = vpack.i.bf16 %v5896_v34, %v5895_v50  ;;  %v5897_v50 = vld [vmem:[%s8022_s27 + $0x62] sm:$0xff]  ;;  %v5898_v34 = vld [vmem:[%s8022_s27 + $0x72] sm:$0xff] }
 0x138   : > { %7181 = vrot.lane.b32.xlu2 %v8786_v26, %s7949_s8 }
 0x139   : > { %7176 = vrot.lane.b32.xlu1 %v8788_v45, %s7949_s8 }
 0x13a   : > { %7171 = vrot.lane.b32.xlu0 %v8790_v3, %s7949_s8  ;;  %v8800_v14 = vpop.permute.xlu2 %7016 }
 0x13b   : > { %13647 = vst [vmem:[#allocation63_spill] sm:$0xff] %v8800_v14  ;;  %v8805_v22 = vpop.permute.xlu1 %6966  ;;  %v5901_v14 = vld [vmem:[%s8022_s27 + $0xc2] sm:$0xff] }
 0x13c   : > { %13648 = vst [vmem:[#allocation64_spill] sm:$0xff] %v8805_v22  ;;  %v8807_v15 = vpop.permute.xlu0 %6961  ;;  %v8824_v6 = vpack.i.bf16 %v5902_v21, %v5901_v14  ;;  %v5906_v21 = vld [vmem:[%s8022_s27 + $0x112] sm:$0xff]  ;;  %v5903_v14 = vld [vmem:[%s8022_s27 + $0xe2] sm:$0xff] }
 0x13d   : > { %13649 = vst [vmem:[#allocation65_spill] sm:$0xff] %v8807_v15  ;;  %v5900_v15 = vld [vmem:[%s8022_s27 + $0x92] sm:$0xff] }
 0x140   : > { %7196 = vrot.lane.b32.xlu2 %v7195_v55, %s7950_s9  ;;  %v5905_v55 = vld [vmem:[%s8022_s27 + $0x102] sm:$0xff] }
 0x141   : > { %7191 = vrot.lane.b32.xlu1 %v7190_v53, %s7950_s9  ;;  %v7205_v53 = vpack.i.bf16 %v5900_v15, %v8537_v49  ;;  %v5904_v49 = vld [vmem:[%s8022_s27 + $0xf2] sm:$0xff] }
 0x142   : > { %7186 = vrot.lane.b32.xlu0 %v7185_v48, %s7949_s8  ;;  %v8815_v63 = vpop.permute.xlu2 %7031  ;;  %v7200_v48 = vpack.i.bf16 %v5898_v34, %v5897_v50  ;;  %v7225_v34 = vpack.i.bf16 %v5908_v24, %v8553_v58  ;;  %v5912_v58 = vld [vmem:[%s8022_s27 + $0x192] sm:$0xff]  ;;  %v5909_v24 = vld [vmem:[%s8022_s27 + $0x162] sm:$0xff] }
 0x143   : > { %13650 = vst [vmem:[#allocation66_spill] sm:$0xff] %v8815_v63  ;;  %v8820_v32 = vpop.permute.xlu1 %6981 }
 0x144   : > { %13651 = vst [vmem:[#allocation67_spill] sm:$0xff] %v8820_v32  ;;  %v8822_v42 = vpop.permute.xlu0 %6976 }
 0x145   : > { %13652 = vst [vmem:[#allocation68_spill] sm:$0xff] %v8822_v42  ;;  %v5913_v42 = vld [vmem:[%s8022_s27 + $0x1a2] sm:$0xff] }
 0x148   : > { %7211 = vrot.lane.b32.xlu2 %v8824_v6, %s7950_s9 }
 0x149   : > { %7206 = vrot.lane.b32.xlu1 %v7205_v53, %s7950_s9  ;;  %v8843_v53 = vpack.i.bf16 %v5906_v21, %v5905_v55  ;;  %v5910_v55 = vld [vmem:[%s8022_s27 + $0x172] sm:$0xff] }
 0x14a   : > { %7201 = vrot.lane.b32.xlu0 %v7200_v48, %s7950_s9  ;;  %v8833_v32 = vpop.permute.xlu2 %7046  ;;  %v8845_v48 = vpack.i.bf16 %v5904_v49, %v5903_v14  ;;  %v8868_v63 = vpack.i.bf16 %v5910_v55, %v5909_v24 }
 0x14b   : > { %13653 = vst [vmem:[#allocation69_spill] sm:$0xff] %v8833_v32  ;;  %v8838_v15 = vpop.permute.xlu1 %6996  ;;  %v5911_v32 = vld [vmem:[%s8022_s27 + $0x182] sm:$0xff] }
 0x14c   : > { %13654 = vst [vmem:[#allocation70_spill] sm:$0xff] %v8838_v15  ;;  %v8840_v50 = vpop.permute.xlu0 %6991  ;;  %v5914_v15 = vld [vmem:[%s8022_s27 + $0x1b2] sm:$0xff] }
 0x14d   : > { %13655 = vst [vmem:[#allocation71_spill] sm:$0xff] %v8840_v50  ;;  %v8864_v49 = vpack.i.bf16 %v5914_v15, %v5913_v42  ;;  %v5918_v15 = vld [vmem:[%s8022_s27 + $0x212] sm:$0xff] }
 0x150   : > { %7226 = vrot.lane.b32.xlu2 %v7225_v34, %s7950_s9  ;;  %v8866_v34 = vpack.i.bf16 %v5912_v58, %v5911_v32  ;;  %v5917_v32 = vld [vmem:[%s8022_s27 + $0x202] sm:$0xff]  ;;  %v5916_v58 = vld [vmem:[%s8022_s27 + $0x1d2] sm:$0xff] }
 0x151   : > { %7221 = vrot.lane.b32.xlu1 %v8843_v53, %s7950_s9  ;;  %v8889_v22 = vpack.i.bf16 %v5918_v15, %v5917_v32  ;;  %v7245_v33 = vpack.i.bf16 %v5916_v58, %v8588_v8  ;;  %v5921_v32 = vld [vmem:[%s8022_s27 + $0x242] sm:$0xff]  ;;  %v5922_v8 = vld [vmem:[%s8022_s27 + $0x252] sm:$0xff] }
 0x152   : > { %7216 = vrot.lane.b32.xlu0 %v8845_v48, %s7950_s9  ;;  %v8855_v50 = vpop.permute.xlu2 %7061  ;;  %v8912_v52 = vpack.i.bf16 %v5922_v8, %v5921_v32  ;;  %v8936_v32 = vld [vmem:[%s8022_s27 + $0xd0] sm:$0xff] }
 0x153   : > { %13656 = vst [vmem:[#allocation72_spill] sm:$0xff] %v8855_v50  ;;  %v8860_v21 = vpop.permute.xlu1 %7011  ;;  %v5920_v50 = vld [vmem:[%s8022_s27 + $0x232] sm:$0xff] }
 0x154   : > { %13657 = vst [vmem:[#allocation73_spill] sm:$0xff] %v8860_v21  ;;  %v8862_v14 = vpop.permute.xlu0 %7006  ;;  %v5919_v21 = vld [vmem:[%s8022_s27 + $0x222] sm:$0xff] }
 0x155   : > { %13658 = vst [vmem:[#allocation74_spill] sm:$0xff] %v8862_v14  ;;  %v8887_v14 = vpack.i.bf16 %v5920_v50, %v5919_v21  ;;  %v5924_v21 = vld [vmem:[%s8022_s27 + $0x272] sm:$0xff] }
 0x158   : > { %7241 = vrot.lane.b32.xlu2 %v8864_v49, %s7950_s9 }
 0x159   : > { %7236 = vrot.lane.b32.xlu1 %v8866_v34, %s7950_s9 }
 0x15a   : > { %7231 = vrot.lane.b32.xlu0 %v8868_v63, %s7950_s9  ;;  %v8878_v42 = vpop.permute.xlu2 %7076 }
 0x15b   : > { %13659 = vst [vmem:[#allocation75_spill] sm:$0xff] %v8878_v42  ;;  %v8883_v24 = vpop.permute.xlu1 %7026  ;;  %v5927_v42 = vld [vmem:[%s8022_s27 + $0xa0] sm:$0xff] }
 0x15c   : > { %13660 = vst [vmem:[#allocation76_spill] sm:$0xff] %v8883_v24  ;;  %v8885_v55 = vpop.permute.xlu0 %7021  ;;  %v8899_v24 = vld [vmem:[%s8022_s27 + $0xb0] sm:$0xff] }
 0x15d   : > { %13661 = vst [vmem:[#allocation77_spill] sm:$0xff] %v8885_v55  ;;  %v7270_v55 = vpack.i.bf16 %v8899_v24, %v5927_v42  ;;  %v8925_v42 = vld [vmem:[%s8022_s27 + $0xe0] sm:$0xff] }
 0x160   : > { %7256 = vrot.lane.b32.xlu2 %v8887_v14, %s7950_s9 }
 0x161   : > { %7251 = vrot.lane.b32.xlu1 %v8889_v22, %s7950_s9 }
 0x162   : > { %7246 = vrot.lane.b32.xlu0 %v7245_v33, %s7950_s9  ;;  %v8901_v50 = vpop.permute.xlu2 %7091  ;;  %v7265_v33 = vpack.i.bf16 %v5924_v21, %v8606_v27  ;;  %v8930_v21 = vld [vmem:[%s8022_s27 + $0xf0] sm:$0xff] }
 0x163   : > { %13662 = vst [vmem:[#allocation78_spill] sm:$0xff] %v8901_v50  ;;  %v8906_v15 = vpop.permute.xlu1 %7041  ;;  %v8916_v50 = vld [vmem:[%s8022_s27 + $0x100] sm:$0xff]  ;;  %v7280_v25 = vpack.i.bf16 %v8930_v21, %v8925_v42 }
 0x164   : > { %13663 = vst [vmem:[#allocation79_spill] sm:$0xff] %v8906_v15  ;;  %v8908_v58 = vpop.permute.xlu0 %7036  ;;  %v8922_v15 = vld [vmem:[%s8022_s27 + $0x110] sm:$0xff] }
 0x165   : > { %13664 = vst [vmem:[#allocation80_spill] sm:$0xff] %v8908_v58  ;;  %v7285_v58 = vpack.i.bf16 %v8922_v15, %v8916_v50 }
 0x168   : > { %7271 = vrot.lane.b32.xlu2 %v7270_v55, %s7951_s10  ;;  %v8933_v55 = vld [vmem:[%s8022_s27 + $0xc0] sm:$0xff] }
 0x169   : > { %7266 = vrot.lane.b32.xlu1 %v7265_v33, %s7950_s9 }
 0x16a   : > { %7261 = vrot.lane.b32.xlu0 %v8912_v52, %s7950_s9  ;;  %v8927_v27 = vpop.permute.xlu2 %7106 }
 0x16b   : > { %13665 = vst [vmem:[#allocation81_spill] sm:$0xff] %v8927_v27  ;;  %v8938_v8 = vpop.permute.xlu1 %7056  ;;  %v7275_v27 = vpack.i.bf16 %v8936_v32, %v8933_v55 }
 0x16c   : > { %13666 = vst [vmem:[#allocation82_spill] sm:$0xff] %v8938_v8  ;;  %v8940_v33 = vpop.permute.xlu0 %7051  ;;  %v8958_v8 = vld [vmem:[%s8022_s27 + $0x160] sm:$0xff] }
 0x16d   : > { %13667 = vst [vmem:[#allocation83_spill] sm:$0xff] %v8940_v33  ;;  %v8955_v33 = vld [vmem:[%s8022_s27 + $0x190] sm:$0xff]  ;;  %v7295_v44 = vpack.i.bf16 %v8963_v51, %v8958_v8 }
 0x170   : > { %7286 = vrot.lane.b32.xlu2 %v7285_v58, %s7951_s10  ;;  %v5935_v58 = vld [vmem:[%s8022_s27 + $0x140] sm:$0xff] }
 0x171   : > { %7281 = vrot.lane.b32.xlu1 %v7280_v25, %s7951_s10 }
 0x172   : > { %7276 = vrot.lane.b32.xlu0 %v7275_v27, %s7951_s10  ;;  %v8960_v36 = vpop.permute.xlu2 %7121  ;;  %v7300_v27 = vpack.i.bf16 %v8955_v33, %v8950_v38 }
 0x173   : > { %13668 = vst [vmem:[#allocation84_spill] sm:$0xff] %v8960_v36  ;;  %v8969_v57 = vpop.permute.xlu1 %7071  ;;  %v7290_v36 = vpack.i.bf16 %v8967_v0, %v5935_v58  ;;  %v8994_v58 = vld [vmem:[%s8022_s27 + $0x1a0] sm:$0xff] }
 0x174   : > { %13669 = vst [vmem:[#allocation85_spill] sm:$0xff] %v8969_v57  ;;  %v8971_v25 = vpop.permute.xlu0 %7066  ;;  %v8985_v57 = vld [vmem:[%s8022_s27 + $0x210] sm:$0xff] }
 0x175   : > { %13670 = vst [vmem:[#allocation86_spill] sm:$0xff] %v8971_v25  ;;  %v5943_v25 = vld [vmem:[%s8022_s27 + $0x1e0] sm:$0xff] }
 0x176   : > { %v7310_v7 = vpack.i.bf16 %v8991_v5, %v5943_v25  ;;  %v9021_v25 = vld [vmem:[%s8022_s27 + $0x250] sm:$0xff] }
 0x178   : > { %7301 = vrot.lane.b32.xlu2 %v7300_v27, %s7951_s10  ;;  %v8997_v27 = vld [vmem:[%s8022_s27 + $0x1b0] sm:$0xff] }
 0x179   : > { %7296 = vrot.lane.b32.xlu1 %v7295_v44, %s7951_s10 }
 0x17a   : > { %7291 = vrot.lane.b32.xlu0 %v7290_v36, %s7951_s10  ;;  %v8988_v28 = vpop.permute.xlu2 %7136  ;;  %v7315_v36 = vpack.i.bf16 %v8985_v57, %v8980_v29 }
 0x17b   : > { %13671 = vst [vmem:[#allocation87_spill] sm:$0xff] %v8988_v28  ;;  %v8999_v20 = vpop.permute.xlu1 %7086  ;;  %v7305_v28 = vpack.i.bf16 %v8997_v27, %v8994_v58 }
 0x17c   : > { %13672 = vst [vmem:[#allocation88_spill] sm:$0xff] %v8999_v20  ;;  %v9001_v44 = vpop.permute.xlu0 %7081  ;;  %v9013_v20 = vld [vmem:[%s8022_s27 + $0x290] sm:$0xff] }
 0x17d   : > { %13673 = vst [vmem:[#allocation89_spill] sm:$0xff] %v9001_v44  ;;  %v9016_v44 = vld [vmem:[%s8022_s27 + $0x240] sm:$0xff]  ;;  %v7330_v9 = vpack.i.bf16 %v9013_v20, %v5951_v59 }
 0x17e   : > { %v7325_v46 = vpack.i.bf16 %v9021_v25, %v9016_v44 }
 0x180   : > { %7316 = vrot.lane.b32.xlu2 %v7315_v36, %s7951_s10  ;;  %v9027_v36 = vld [vmem:[%s8022_s27 + $0x230] sm:$0xff] }
 0x181   : > { %7311 = vrot.lane.b32.xlu1 %v7310_v7, %s7951_s10 }
 0x182   : > { %7306 = vrot.lane.b32.xlu0 %v7305_v28, %s7951_s10  ;;  %v9018_v19 = vpop.permute.xlu2 %7151 }
 0x183   : > { %13674 = vst [vmem:[#allocation90_spill] sm:$0xff] %v9018_v19  ;;  %v9029_v7 = vpop.permute.xlu1 %7101  ;;  %v7320_v19 = vpack.i.bf16 %v9027_v36, %v9024_v12 }
 0x184   : > { %13675 = vst [vmem:[#allocation91_spill] sm:$0xff] %v9029_v7  ;;  %v9031_v28 = vpop.permute.xlu0 %7096  ;;  %v9045_v7 = vld [vmem:[%s8022_s27 + $0x2f0] sm:$0xff] }
 0x185   : > { %13676 = vst [vmem:[#allocation92_spill] sm:$0xff] %v9031_v28  ;;  %v9048_v28 = vld [vmem:[%s8022_s27 + $0x2c0] sm:$0xff] }
 0x188   : > { %7331 = vrot.lane.b32.xlu2 %v7330_v9, %s7951_s10 }
 0x189   : > { %7326 = vrot.lane.b32.xlu1 %v7325_v46, %s7951_s10  ;;  %v7345_v46 = vpack.i.bf16 %v9045_v7, %v9040_v1 }
 0x18a   : > { %7321 = vrot.lane.b32.xlu0 %v7320_v19, %s7951_s10  ;;  %v9050_v59 = vpop.permute.xlu2 %7166  ;;  %v7340_v19 = vpack.i.bf16 %v9053_v41, %v9048_v28 }
 0x18b   : > { %13677 = vst [vmem:[#allocation93_spill] sm:$0xff] %v9050_v59  ;;  %v9061_v9 = vpop.permute.xlu1 %7116  ;;  %v7335_v59 = vpack.i.bf16 %v9059_v11, %v9056_v37 }
 0x18c   : > { %13678 = vst [vmem:[#allocation94_spill] sm:$0xff] %v9061_v9  ;;  %v9063_v30 = vpop.permute.xlu0 %7111 }
 0x18d   : > { %13679 = vst [vmem:[#allocation95_spill] sm:$0xff] %v9063_v30  ;;  %v5959_v30 = vld [vmem:[%s8022_s27 + $0xa1] sm:$0xff] }
 0x18e   : > { %v7350_v17 = vpack.i.bf16 %v9078_v31, %v5959_v30 }
 0x190   : > { %7346 = vrot.lane.b32.xlu2 %v7345_v46, %s7951_s10  ;;  %v5967_v46 = vld [vmem:[%s8022_s27 + $0x141] sm:$0xff] }
 0x191   : > { %7341 = vrot.lane.b32.xlu1 %v7340_v19, %s7951_s10  ;;  %v9094_v19 = vld [vmem:[%s8022_s27 + $0x151] sm:$0xff] }
 0x192   : > { %7336 = vrot.lane.b32.xlu0 %v7335_v59, %s7951_s10  ;;  %v9074_v9 = vpop.permute.xlu2 %7181  ;;  %v7370_v30 = vpack.i.bf16 %v9094_v19, %v5967_v46 }
 0x193   : > { %13680 = vst [vmem:[#allocation96_spill] sm:$0xff] %v9074_v9  ;;  %v9080_v23 = vpop.permute.xlu1 %7131 }
 0x194   : > { %13681 = vst [vmem:[#allocation97_spill] sm:$0xff] %v9080_v23  ;;  %v9082_v2 = vpop.permute.xlu0 %7126  ;;  %v9171_v23 = vld [vmem:[%s8022_s27 + $0x2e1] sm:$0xff] }
 0x195   : > { %13682 = vst [vmem:[#allocation98_spill] sm:$0xff] %v9082_v2 }
 0x198   : > { %7361 = vrot.lane.b32.xlu2 %v8722_v40, %s7952_s11  ;;  %v9108_v40 = vld [vmem:[%s8022_s27 + $0x1f1] sm:$0xff] }
 0x199   : > { %7356 = vrot.lane.b32.xlu1 %v8724_v18, %s7952_s11 }
 0x19a   : > { %7351 = vrot.lane.b32.xlu0 %v7350_v17, %s7952_s11  ;;  %v9090_v59 = vpop.permute.xlu2 %7196  ;;  %v5975_v17 = vld [vmem:[%s8022_s27 + $0x1e1] sm:$0xff] }
 0x19b   : > { %13683 = vst [vmem:[#allocation99_spill] sm:$0xff] %v9090_v59  ;;  %v9096_v9 = vpop.permute.xlu1 %7146  ;;  %v9174_v59 = vld [vmem:[%s8022_s27 + $0x2f1] sm:$0xff] }
 0x19c   : > { %13684 = vst [vmem:[#allocation100_spill] sm:$0xff] %v9096_v9  ;;  %v9098_v2 = vpop.permute.xlu0 %7141 }
 0x19d   : > { %13685 = vst [vmem:[#allocation101_spill] sm:$0xff] %v9098_v2 }
 0x1a0   : > { %7376 = vrot.lane.b32.xlu2 %v8743_v56, %s7952_s11  ;;  %v7390_v56 = vpack.i.bf16 %v9108_v40, %v5975_v17 }
 0x1a1   : > { %7371 = vrot.lane.b32.xlu1 %v7370_v30, %s7952_s11 }
 0x1a2   : > { %7366 = vrot.lane.b32.xlu0 %v8746_v39, %s7952_s11  ;;  %v9110_v18 = vpop.permute.xlu2 %7211 }
 0x1a3   : > { %13686 = vst [vmem:[#allocation102_spill] sm:$0xff] %v9110_v18  ;;  %v9112_v9 = vpop.permute.xlu1 %7161 }
 0x1a4   : > { %13687 = vst [vmem:[#allocation103_spill] sm:$0xff] %v9112_v9  ;;  %v9114_v46 = vpop.permute.xlu0 %7156 }
 0x1a5   : > { %13688 = vst [vmem:[#allocation104_spill] sm:$0xff] %v9114_v46  ;;  %v9131_v46 = vld [vmem:[%s8022_s27 + $0x2c1] sm:$0xff] }
 0x1a8   : > { %7391 = vrot.lane.b32.xlu2 %v7390_v56, %s7952_s11  ;;  %v9146_v56 = vld [vmem:[%s8022_s27 + $0x2b1] sm:$0xff] }
 0x1a9   : > { %7386 = vrot.lane.b32.xlu1 %v8765_v60, %s7952_s11  ;;  %v9138_v60 = vld [vmem:[%s8022_s27 + $0x2d1] sm:$0xff] }
 0x1aa   : > { %7381 = vrot.lane.b32.xlu0 %v8767_v54, %s7952_s11  ;;  %v9122_v39 = vpop.permute.xlu2 %7226  ;;  %v9141_v54 = vld [vmem:[%s8022_s27 + $0x2a1] sm:$0xff] }
 0x1ab   : > { %13689 = vst [vmem:[#allocation105_spill] sm:$0xff] %v9122_v39  ;;  %v9124_v30 = vpop.permute.xlu1 %7176  ;;  %v7415_v39 = vpack.i.bf16 %v9146_v56, %v9141_v54 }
 0x1ac   : > { %13690 = vst [vmem:[#allocation106_spill] sm:$0xff] %v9124_v30  ;;  %v9126_v9 = vpop.permute.xlu0 %7171 }
 0x1ad   : > { %13691 = vst [vmem:[#allocation107_spill] sm:$0xff] %v9126_v9  ;;  %v9150_v9 = vld [vmem:[%s8022_s27 + $0x291] sm:$0xff] }
 0x1b0   : > { %7406 = vrot.lane.b32.xlu2 %v8786_v26, %s7952_s11  ;;  %v5983_v26 = vld [vmem:[%s8022_s27 + $0x281] sm:$0xff] }
 0x1b1   : > { %7401 = vrot.lane.b32.xlu1 %v8788_v45, %s7952_s11  ;;  %v7410_v18 = vpack.i.bf16 %v9150_v9, %v5983_v26 }
 0x1b2   : > { %7396 = vrot.lane.b32.xlu0 %v8790_v3, %s7952_s11  ;;  %v9143_v17 = vpop.permute.xlu2 %7241  ;;  %v7420_v3 = vpack.i.bf16 %v9138_v60, %v9131_v46 }
 0x1b3   : > { %13692 = vst [vmem:[#allocation108_spill] sm:$0xff] %v9143_v17  ;;  %v9152_v30 = vpop.permute.xlu1 %7191  ;;  %v5991_v17 = vld [vmem:[%s8022_s27 + $0xa2] sm:$0xff] }
 0x1b4   : > { %13693 = vst [vmem:[#allocation109_spill] sm:$0xff] %v9152_v30  ;;  %v9154_v45 = vpop.permute.xlu0 %7186 }
 0x1b5   : > { %13694 = vst [vmem:[#allocation110_spill] sm:$0xff] %v9154_v45  ;;  %v9168_v45 = vld [vmem:[%s8022_s27 + $0xb2] sm:$0xff] }
 0x1b8   : > { %7421 = vrot.lane.b32.xlu2 %v7420_v3, %s7952_s11  ;;  %v7430_v3 = vpack.i.bf16 %v9168_v45, %v5991_v17 }
 0x1b9   : > { %7416 = vrot.lane.b32.xlu1 %v7415_v39, %s7952_s11  ;;  %v7425_v39 = vpack.i.bf16 %v9174_v59, %v9171_v23 }
 0x1ba   : > { %7411 = vrot.lane.b32.xlu0 %v7410_v18, %s7952_s11  ;;  %v9165_v2 = vpop.permute.xlu2 %7256  ;;  %v5999_v18 = vld [vmem:[%s8022_s27 + $0x142] sm:$0xff] }
 0x1bb   : > { %13695 = vst [vmem:[#allocation111_spill] sm:$0xff] %v9165_v2  ;;  %v9176_v30 = vpop.permute.xlu1 %7206  ;;  %v9189_v2 = vld [vmem:[%s8022_s27 + $0x152] sm:$0xff] }
 0x1bc   : > { %13696 = vst [vmem:[#allocation112_spill] sm:$0xff] %v9176_v30  ;;  %v9178_v26 = vpop.permute.xlu0 %7201  ;;  %v7450_v61 = vpack.i.bf16 %v9189_v2, %v5999_v18 }
 0x1bd   : > { %13697 = vst [vmem:[#allocation113_spill] sm:$0xff] %v9178_v26 }
 0x1c0   : > { %7436 = vrot.lane.b32.xlu2 %v8824_v6, %s7953_s12 }
 0x1c1   : > { %7431 = vrot.lane.b32.xlu1 %v7430_v3, %s7953_s12 }
 0x1c2   : > { %7426 = vrot.lane.b32.xlu0 %v7425_v39, %s7952_s11  ;;  %v9191_v30 = vpop.permute.xlu2 %7271 }
 0x1c3   : > { %13698 = vst [vmem:[#allocation114_spill] sm:$0xff] %v9191_v30  ;;  %v9193_v26 = vpop.permute.xlu1 %7221 }
 0x1c4   : > { %13699 = vst [vmem:[#allocation115_spill] sm:$0xff] %v9193_v26  ;;  %v9195_v17 = vpop.permute.xlu0 %7216 }
 0x1c5   : > { %13700 = vst [vmem:[#allocation116_spill] sm:$0xff] %v9195_v17 }
 0x1c8   : > { %7451 = vrot.lane.b32.xlu2 %v7450_v61, %s7953_s12 }
 0x1c9   : > { %7446 = vrot.lane.b32.xlu1 %v8843_v53, %s7953_s12  ;;  %v6007_v53 = vld [vmem:[%s8022_s27 + $0x1e2] sm:$0xff] }
 0x1ca   : > { %7441 = vrot.lane.b32.xlu0 %v8845_v48, %s7953_s12  ;;  %v9203_v6 = vpop.permute.xlu2 %7286  ;;  %v9219_v48 = vld [vmem:[%s8022_s27 + $0x1f2] sm:$0xff] }
 0x1cb   : > { %13701 = vst [vmem:[#allocation117_spill] sm:$0xff] %v9203_v6  ;;  %v9205_v3 = vpop.permute.xlu1 %7236  ;;  %v7470_v17 = vpack.i.bf16 %v9219_v48, %v6007_v53  ;;  %v9241_v53 = vld [vmem:[%s8022_s27 + $0x292] sm:$0xff] }
 0x1cc   : > { %13702 = vst [vmem:[#allocation118_spill] sm:$0xff] %v9205_v3  ;;  %v9207_v39 = vpop.permute.xlu0 %7231  ;;  %v9266_v3 = vld [vmem:[%s8022_s27 + $0x2d2] sm:$0xff] }
 0x1cd   : > { %13703 = vst [vmem:[#allocation119_spill] sm:$0xff] %v9207_v39 }
 0x1d0   : > { %7466 = vrot.lane.b32.xlu2 %v8864_v49, %s7953_s12  ;;  %v9235_v49 = vld [vmem:[%s8022_s27 + $0x2b2] sm:$0xff] }
 0x1d1   : > { %7461 = vrot.lane.b32.xlu1 %v8866_v34, %s7953_s12 }
 0x1d2   : > { %7456 = vrot.lane.b32.xlu0 %v8868_v63, %s7953_s12  ;;  %v9215_v61 = vpop.permute.xlu2 %7301  ;;  %v9232_v63 = vld [vmem:[%s8022_s27 + $0x2a2] sm:$0xff] }
 0x1d3   : > { %13704 = vst [vmem:[#allocation120_spill] sm:$0xff] %v9215_v61  ;;  %v9221_v18 = vpop.permute.xlu1 %7251 }
 0x1d4   : > { %13705 = vst [vmem:[#allocation121_spill] sm:$0xff] %v9221_v18  ;;  %v9223_v26 = vpop.permute.xlu0 %7246  ;;  %v6015_v18 = vld [vmem:[%s8022_s27 + $0x282] sm:$0xff] }
 0x1d5   : > { %13706 = vst [vmem:[#allocation122_spill] sm:$0xff] %v9223_v26  ;;  %v9255_v26 = vld [vmem:[%s8022_s27 + $0x2e2] sm:$0xff] }
 0x1d8   : > { %7481 = vrot.lane.b32.xlu2 %v8887_v14, %s7953_s12 }
 0x1d9   : > { %7476 = vrot.lane.b32.xlu1 %v8889_v22, %s7953_s12  ;;  %v7495_v22 = vpack.i.bf16 %v9235_v49, %v9232_v63 }
 0x1da   : > { %7471 = vrot.lane.b32.xlu0 %v7470_v17, %s7953_s12  ;;  %v9237_v34 = vpop.permute.xlu2 %7316  ;;  %v7490_v17 = vpack.i.bf16 %v9241_v53, %v6015_v18 }
 0x1db   : > { %13707 = vst [vmem:[#allocation123_spill] sm:$0xff] %v9237_v34  ;;  %v9243_v61 = vpop.permute.xlu1 %7266 }
 0x1dc   : > { %13708 = vst [vmem:[#allocation124_spill] sm:$0xff] %v9243_v61  ;;  %v9245_v14 = vpop.permute.xlu0 %7261  ;;  %v9260_v61 = vld [vmem:[%s8022_s27 + $0x2f2] sm:$0xff] }
 0x1dd   : > { %13709 = vst [vmem:[#allocation125_spill] sm:$0xff] %v9245_v14  ;;  %v9263_v14 = vld [vmem:[%s8022_s27 + $0x2c2] sm:$0xff] }
 0x1e0   : > { %7496 = vrot.lane.b32.xlu2 %v7495_v22, %s7953_s12  ;;  %v7510_v22 = vpack.i.bf16 %v8933_v55, %v8899_v24 }
 0x1e1   : > { %7491 = vrot.lane.b32.xlu1 %v7490_v17, %s7953_s12  ;;  %v7500_v17 = vpack.i.bf16 %v9266_v3, %v9263_v14 }
 0x1e2   : > { %7486 = vrot.lane.b32.xlu0 %v8912_v52, %s7953_s12  ;;  %v9257_v34 = vpop.permute.xlu2 %7331  ;;  %v7505_v52 = vpack.i.bf16 %v9260_v61, %v9255_v26 }
 0x1e3   : > { %13710 = vst [vmem:[#allocation126_spill] sm:$0xff] %v9257_v34  ;;  %v9268_v6 = vpop.permute.xlu1 %7281  ;;  %v9282_v34 = vld [vmem:[%s8022_s27 + $0x120] sm:$0xff] }
 0x1e4   : > { %13711 = vst [vmem:[#allocation127_spill] sm:$0xff] %v9268_v6  ;;  %v9270_v18 = vpop.permute.xlu0 %7276  ;;  %v7525_v55 = vpack.i.bf16 %v9282_v34, %v8922_v15  ;;  %v7540_v15 = vpack.i.bf16 %v8994_v58, %v8955_v33  ;;  %v9335_v58 = vld [vmem:[%s8022_s27 + $0x260] sm:$0xff] }
 0x1e5   : > { %13712 = vst [vmem:[#allocation128_spill] sm:$0xff] %v9270_v18  ;;  %v7520_v18 = vpack.i.bf16 %v8916_v50, %v8930_v21  ;;  %v7535_v50 = vpack.i.bf16 %v8950_v38, %v8963_v51  ;;  %v7555_v51 = vpack.i.bf16 %v9024_v12, %v8985_v57  ;;  %v7560_v57 = vpack.i.bf16 %v9016_v44, %v9027_v36 }
 0x1e6   : > { %v7580_v36 = vpack.i.bf16 %v9040_v1, %v9053_v41  ;;  %v6058_v41 = vld [vmem:[%s8022_s27 + $0xc1] sm:$0xff] }
 0x1e8   : > { %7511 = vrot.lane.b32.xlu2 %v7510_v22, %s7954_s13  ;;  %v7515_v22 = vpack.i.bf16 %v8925_v42, %v8936_v32  ;;  %v7530_v42 = vpack.i.bf16 %v8958_v8, %v8967_v0  ;;  %v9317_v32 = vld [vmem:[%s8022_s27 + $0x1c0] sm:$0xff]  ;;  %v7550_v0 = vpack.i.bf16 %v8980_v29, %v8991_v5  ;;  %v7570_v5 = vpack.i.bf16 %v9056_v37, %v9013_v20 }
 0x1e9   : > { %7506 = vrot.lane.b32.xlu1 %v7505_v52, %s7953_s12  ;;  %v7545_v38 = vpack.i.bf16 %v9317_v32, %v8997_v27  ;;  %v7565_v29 = vpack.i.bf16 %v9335_v58, %v9021_v25  ;;  %v9351_v27 = vld [vmem:[%s8022_s27 + $0x300] sm:$0xff] }
 0x1ea   : > { %7501 = vrot.lane.b32.xlu0 %v7500_v17, %s7953_s12  ;;  %v9284_v39 = vpop.permute.xlu2 %7346  ;;  %v7585_v44 = vpack.i.bf16 %v9351_v27, %v9045_v7  ;;  %v6059_v7 = vld [vmem:[%s8022_s27 + $0xd1] sm:$0xff]  ;;  %s5728_s12 = sshll.u32 %s7925_s15, 5  ;;  %s5729_s15 = sshll.u32 %s14376_s16, 6 }
 0x1eb   : > { %13713 = vst [vmem:[#allocation129_spill] sm:$0xff] %v9284_v39  ;;  %v9286_v6 = vpop.permute.xlu1 %7296  ;;  %p214_p6 = scmp.lt.s32.totalorder %s5728_s12, 63 }
 0x1ec   : > { %13714 = vst [vmem:[#allocation130_spill] sm:$0xff] %v9286_v6  ;;  %v9288_v24 = vpop.permute.xlu0 %7291  ;;  %v6110_v6 = vld [vmem:[%s8022_s27 + $0x242] sm:$0xff] }
 0x1ed   : > { %13715 = vst [vmem:[#allocation131_spill] sm:$0xff] %v9288_v24  ;;  %s14378_s12 = smov (!%p214_p6, %s5728_s12), 63 }
 0x1ee   : > { %s217_s16 = sadd.s32 %s5729_s15, %s14378_s12 }
 0x1f0   : > { %7526 = vrot.lane.b32.xlu2 %v7525_v55, %s7954_s13 }
 0x1f1   : > { %7521 = vrot.lane.b32.xlu1 %v7520_v18, %s7954_s13 }
 0x1f2   : > { %7516 = vrot.lane.b32.xlu0 %v7515_v22, %s7954_s13  ;;  %v9299_v52 = vpop.permute.xlu2 %7361  ;;  %v7575_v22 = vpack.i.bf16 %v9048_v28, %v9059_v11 }
 0x1f3   : > { %13716 = vst [vmem:[#allocation132_spill] sm:$0xff] %v9299_v52  ;;  %v9301_v17 = vpop.permute.xlu1 %7311 }
 0x1f4   : > { %13717 = vst [vmem:[#allocation133_spill] sm:$0xff] %v9301_v17  ;;  %v9303_v39 = vpop.permute.xlu0 %7306  ;;  %v13778_v17 = vld [vmem:[#allocation36_spill] sm:$0xff] }
 0x1f5   : > { %13718 = vst [vmem:[#allocation134_spill] sm:$0xff] %v9303_v39 }
 0x1f8   : > { %7541 = vrot.lane.b32.xlu2 %v7540_v15, %s7954_s13  ;;  %v6061_v15 = vld [vmem:[%s8022_s27 + $0xf1] sm:$0xff] }
 0x1f9   : > { %7536 = vrot.lane.b32.xlu1 %v7535_v50, %s7954_s13  ;;  %v6062_v50 = vld [vmem:[%s8022_s27 + $0x101] sm:$0xff] }
 0x1fa   : > { %7531 = vrot.lane.b32.xlu0 %v7530_v42, %s7954_s13  ;;  %v9314_v21 = vpop.permute.xlu2 %7376  ;;  %v7600_v28 = vpack.i.bf16 %v6062_v50, %v6061_v15 }
 0x1fb   : > { %13719 = vst [vmem:[#allocation135_spill] sm:$0xff] %v9314_v21  ;;  %v9319_v18 = vpop.permute.xlu1 %7326 }
 0x1fc   : > { %13720 = vst [vmem:[#allocation136_spill] sm:$0xff] %v9319_v18  ;;  %v9321_v33 = vpop.permute.xlu0 %7321 }
 0x1fd   : > { %13721 = vst [vmem:[#allocation137_spill] sm:$0xff] %v9321_v33  ;;  %v6108_v33 = vld [vmem:[%s8022_s27 + $0x222] sm:$0xff] }
 0x200   : > { %7556 = vrot.lane.b32.xlu2 %v7555_v51, %s7954_s13  ;;  %v6060_v51 = vld [vmem:[%s8022_s27 + $0xe1] sm:$0xff] }
 0x201   : > { %7551 = vrot.lane.b32.xlu1 %v7550_v0, %s7954_s13  ;;  %v7595_v0 = vpack.i.bf16 %v6060_v51, %v6059_v7 }
 0x202   : > { %7546 = vrot.lane.b32.xlu0 %v7545_v38, %s7954_s13  ;;  %v9332_v8 = vpop.permute.xlu2 %7391  ;;  %v7590_v38 = vpack.i.bf16 %v6058_v41, %v9078_v31  ;;  %v6074_v41 = vld [vmem:[%s8022_s27 + $0x201] sm:$0xff] }
 0x203   : > { %13722 = vst [vmem:[#allocation138_spill] sm:$0xff] %v9332_v8  ;;  %v9337_v55 = vpop.permute.xlu1 %7341 }
 0x204   : > { %13723 = vst [vmem:[#allocation139_spill] sm:$0xff] %v9337_v55  ;;  %v9339_v12 = vpop.permute.xlu0 %7336 }
 0x205   : > { %13724 = vst [vmem:[#allocation140_spill] sm:$0xff] %v9339_v12  ;;  %v6078_v12 = vld [vmem:[%s8022_s27 + $0x241] sm:$0xff] }
 0x208   : > { %7571 = vrot.lane.b32.xlu2 %v7570_v5, %s7954_s13  ;;  %v6067_v5 = vld [vmem:[%s8022_s27 + $0x171] sm:$0xff] }
 0x209   : > { %7566 = vrot.lane.b32.xlu1 %v7565_v29, %s7954_s13  ;;  %v6068_v29 = vld [vmem:[%s8022_s27 + $0x181] sm:$0xff] }
 0x20a   : > { %7561 = vrot.lane.b32.xlu0 %v7560_v57, %s7954_s13  ;;  %v9353_v37 = vpop.permute.xlu2 %7406  ;;  %v7615_v50 = vpack.i.bf16 %v6068_v29, %v6067_v5  ;;  %v6069_v5 = vld [vmem:[%s8022_s27 + $0x191] sm:$0xff] }
 0x20b   : > { %13725 = vst [vmem:[#allocation141_spill] sm:$0xff] %v9353_v37  ;;  %v9355_v20 = vpop.permute.xlu1 %7356  ;;  %v6076_v37 = vld [vmem:[%s8022_s27 + $0x221] sm:$0xff] }
 0x20c   : > { %13726 = vst [vmem:[#allocation142_spill] sm:$0xff] %v9355_v20  ;;  %v9357_v25 = vpop.permute.xlu0 %7351  ;;  %v7847_v20 = vld [vmem:[%s8022_s27 + $0xe0] sm:$0xff] }
 0x20d   : > { %13727 = vst [vmem:[#allocation143_spill] sm:$0xff] %v9357_v25 }
 0x210   : > { %7586 = vrot.lane.b32.xlu2 %v7585_v44, %s7954_s13  ;;  %v6066_v44 = vld [vmem:[%s8022_s27 + $0x161] sm:$0xff] }
 0x211   : > { %7581 = vrot.lane.b32.xlu1 %v7580_v36, %s7954_s13  ;;  %v6063_v36 = vld [vmem:[%s8022_s27 + $0x111] sm:$0xff]  ;;  %v7610_v7 = vpack.i.bf16 %v6066_v44, %v9094_v19  ;;  %v6070_v19 = vld [vmem:[%s8022_s27 + $0x1a1] sm:$0xff] }
 0x212   : > { %7576 = vrot.lane.b32.xlu0 %v7575_v22, %s7954_s13  ;;  %v9370_v42 = vpop.permute.xlu2 %7421  ;;  %v6064_v22 = vld [vmem:[%s8022_s27 + $0x121] sm:$0xff] }
 0x213   : > { %13728 = vst [vmem:[#allocation144_spill] sm:$0xff] %v9370_v42  ;;  %v9375_v1 = vpop.permute.xlu1 %7371  ;;  %v7605_v51 = vpack.i.bf16 %v6064_v22, %v6063_v36  ;;  %v7630_v36 = vpack.i.bf16 %v6074_v41, %v9108_v40  ;;  %v6077_v42 = vld [vmem:[%s8022_s27 + $0x231] sm:$0xff] }
 0x214   : > { %13729 = vst [vmem:[#allocation145_spill] sm:$0xff] %v9375_v1  ;;  %v9377_v11 = vpop.permute.xlu0 %7366  ;;  %v7640_v41 = vpack.i.bf16 %v6078_v12, %v6077_v42  ;;  %v7655_v12 = vpack.i.bf16 %v9131_v46, %v9146_v56  ;;  %v9444_v42 = vld [vmem:[%s8022_s27 + $0xd2] sm:$0xff]  ;;  %v9452_v46 = vld [vmem:[%s8022_s27 + $0xc2] sm:$0xff] }
 0x215   : > { %13730 = vst [vmem:[#allocation146_spill] sm:$0xff] %v9377_v11 }
 0x218   : > { %7601 = vrot.lane.b32.xlu2 %v7600_v28, %s7955_s14  ;;  %v6071_v28 = vld [vmem:[%s8022_s27 + $0x1b1] sm:$0xff] }
 0x219   : > { %7596 = vrot.lane.b32.xlu1 %v7595_v0, %s7955_s14 }
 0x21a   : > { %7591 = vrot.lane.b32.xlu0 %v7590_v38, %s7955_s14  ;;  %v9385_v57 = vpop.permute.xlu2 %7436  ;;  %v6072_v38 = vld [vmem:[%s8022_s27 + $0x1c1] sm:$0xff] }
 0x21b   : > { %13731 = vst [vmem:[#allocation147_spill] sm:$0xff] %v9385_v57  ;;  %v9390_v31 = vpop.permute.xlu1 %7386  ;;  %v7625_v22 = vpack.i.bf16 %v6072_v38, %v6071_v28  ;;  %v13782_v57 = vld [vmem:[#allocation38_spill] sm:$0xff] }
 0x21c   : > { %13732 = vst [vmem:[#allocation148_spill] sm:$0xff] %v9390_v31  ;;  %v9392_v15 = vpop.permute.xlu0 %7381 }
 0x21d   : > { %13733 = vst [vmem:[#allocation149_spill] sm:$0xff] %v9392_v15  ;;  %v6075_v15 = vld [vmem:[%s8022_s27 + $0x211] sm:$0xff] }
 0x21e   : > { %v7635_v28 = vpack.i.bf16 %v6076_v37, %v6075_v15  ;;  %v7650_v37 = vpack.i.bf16 %v9141_v54, %v9150_v9  ;;  %v9447_v15 = vld [vmem:[%s8022_s27 + $0xe2] sm:$0xff] }
 0x21f   : > { %v6088_v9 = vld [vmem:[%s8022_s27 + $0x301] sm:$0xff]  ;;  %v7675_v56 = vpack.i.bf16 %v9447_v15, %v9444_v42 }
 0x220   : > { %7616 = vrot.lane.b32.xlu2 %v7615_v50, %s7955_s14  ;;  %v7620_v50 = vpack.i.bf16 %v6070_v19, %v6069_v5 }
 0x221   : > { %7611 = vrot.lane.b32.xlu1 %v7610_v7, %s7955_s14  ;;  %v6079_v7 = vld [vmem:[%s8022_s27 + $0x251] sm:$0xff] }
 0x222   : > { %7606 = vrot.lane.b32.xlu0 %v7605_v51, %s7955_s14  ;;  %v9400_v0 = vpop.permute.xlu2 %7451  ;;  %v6080_v51 = vld [vmem:[%s8022_s27 + $0x261] sm:$0xff] }
 0x223   : > { %13734 = vst [vmem:[#allocation150_spill] sm:$0xff] %v9400_v0  ;;  %v9405_v29 = vpop.permute.xlu1 %7401  ;;  %v7645_v40 = vpack.i.bf16 %v6080_v51, %v6079_v7  ;;  %v9468_v7 = vld [vmem:[%s8022_s27 + $0x162] sm:$0xff]  ;;  %v9471_v51 = vld [vmem:[%s8022_s27 + $0x112] sm:$0xff] }
 0x224   : > { %13735 = vst [vmem:[#allocation151_spill] sm:$0xff] %v9405_v29  ;;  %v9407_v44 = vpop.permute.xlu0 %7396  ;;  %v9535_v29 = vld [vmem:[%s8022_s27 + $0x212] sm:$0xff]  ;;  %v9539_v0 = vld [vmem:[%s8022_s27 + $0x202] sm:$0xff] }
 0x225   : > { %13736 = vst [vmem:[#allocation152_spill] sm:$0xff] %v9407_v44  ;;  %v7832_v44 = vld [vmem:[%s8022_s27 + $0xb0] sm:$0xff] }
 0x226   : > { %13754 = vst [vmem:[#allocation170_spill] sm:$0xff] %v9535_v29 }
 0x227   : > { %13755 = vst [vmem:[#allocation171_spill] sm:$0xff] %v9539_v0 }
 0x228   : > { %7631 = vrot.lane.b32.xlu2 %v7630_v36, %s7955_s14  ;;  %v7660_v36 = vpack.i.bf16 %v9171_v23, %v9138_v60 }
 0x229   : > { %7626 = vrot.lane.b32.xlu1 %v7625_v22, %s7955_s14  ;;  %v7670_v22 = vpack.i.bf16 %v9452_v46, %v9168_v45  ;;  %v9476_v45 = vld [vmem:[%s8022_s27 + $0x122] sm:$0xff] }
 0x22a   : > { %7621 = vrot.lane.b32.xlu0 %v7620_v50, %s7955_s14  ;;  %v9416_v55 = vpop.permute.xlu2 %7466  ;;  %v7665_v50 = vpack.i.bf16 %v6088_v9, %v9174_v59  ;;  %v9479_v59 = vld [vmem:[%s8022_s27 + $0xf2] sm:$0xff] }
 0x22b   : > { %13737 = vst [vmem:[#allocation153_spill] sm:$0xff] %v9416_v55  ;;  %v9421_v18 = vpop.permute.xlu1 %7416  ;;  %v6638_v55 = vunpack.i.l.bf16 %v8436_v35 }
 0x22c   : > { %13738 = vst [vmem:[#allocation154_spill] sm:$0xff] %v9421_v18  ;;  %v9423_v21 = vpop.permute.xlu0 %7411 }
 0x22d   : > { %13739 = vst [vmem:[#allocation155_spill] sm:$0xff] %v9423_v21 }
 0x230   : > { %7646 = vrot.lane.b32.xlu2 %v7645_v40, %s7955_s14 }
 0x231   : > { %7641 = vrot.lane.b32.xlu1 %v7640_v41, %s7955_s14  ;;  %v9482_v41 = vld [vmem:[%s8022_s27 + $0x102] sm:$0xff] }
 0x232   : > { %7636 = vrot.lane.b32.xlu0 %v7635_v28, %s7955_s14  ;;  %v9428_v38 = vpop.permute.xlu2 %7481  ;;  %v7680_v9 = vpack.i.bf16 %v9482_v41, %v9479_v59 }
 0x233   : > { %13740 = vst [vmem:[#allocation156_spill] sm:$0xff] %v9428_v38  ;;  %v9430_v5 = vpop.permute.xlu1 %7431 }
 0x234   : > { %13741 = vst [vmem:[#allocation157_spill] sm:$0xff] %v9430_v5  ;;  %v9432_v19 = vpop.permute.xlu0 %7426 }
 0x235   : > { %13742 = vst [vmem:[#allocation158_spill] sm:$0xff] %v9432_v19  ;;  %v9509_v19 = vld [vmem:[%s8022_s27 + $0x1a2] sm:$0xff] }
 0x236   : > { %13750 = vst [vmem:[#allocation166_spill] sm:$0xff] %v9509_v19 }
 0x238   : > { %7661 = vrot.lane.b32.xlu2 %v7660_v36, %s7955_s14 }
 0x239   : > { %7656 = vrot.lane.b32.xlu1 %v7655_v12, %s7955_s14  ;;  %v7690_v12 = vpack.i.bf16 %v9468_v7, %v9189_v2 }
 0x23a   : > { %7651 = vrot.lane.b32.xlu0 %v7650_v37, %s7955_s14  ;;  %v9449_v23 = vpop.permute.xlu2 %7496  ;;  %v7685_v37 = vpack.i.bf16 %v9476_v45, %v9471_v51 }
 0x23b   : > { %13743 = vst [vmem:[#allocation159_spill] sm:$0xff] %v9449_v23  ;;  %v9455_v60 = vpop.permute.xlu1 %7446  ;;  %v9515_v23 = vld [vmem:[%s8022_s27 + $0x182] sm:$0xff] }
 0x23c   : > { %13744 = vst [vmem:[#allocation160_spill] sm:$0xff] %v9455_v60  ;;  %v9457_v54 = vpop.permute.xlu0 %7441  ;;  %v240_v60 = vld [vmem:[%s8022_s27 + $0x140] sm:$0xff] }
 0x23d   : > { %13745 = vst [vmem:[#allocation161_spill] sm:$0xff] %v9457_v54  ;;  %v6648_v54 = vunpack.i.l.bf16 %v8434_v47 }
 0x240   : > { %7676 = vrot.lane.b32.xlu2 %v7675_v56, %s7956_s22  ;;  %v9496_v56 = vld [vmem:[%s8022_s27 + $0x1b2] sm:$0xff] }
 0x241   : > { %7671 = vrot.lane.b32.xlu1 %v7670_v22, %s7956_s22  ;;  %v9501_v22 = vld [vmem:[%s8022_s27 + $0x1c2] sm:$0xff] }
 0x242   : > { %7666 = vrot.lane.b32.xlu0 %v7665_v50, %s7955_s14  ;;  %v9473_v40 = vpop.permute.xlu2 %7511  ;;  %v9504_v50 = vld [vmem:[%s8022_s27 + $0x192] sm:$0xff] }
 0x243   : > { %13746 = vst [vmem:[#allocation162_spill] sm:$0xff] %v9473_v40  ;;  %v9484_v28 = vpop.permute.xlu1 %7461  ;;  %v7700_v21 = vpack.i.bf16 %v9509_v19, %v9504_v50  ;;  %v7853_v40 = vld [vmem:[%s8022_s27 + $0x200] sm:$0xff] }
 0x244   : > { %13747 = vst [vmem:[#allocation163_spill] sm:$0xff] %v9484_v28  ;;  %v9486_v36 = vpop.permute.xlu0 %7456 }
 0x245   : > { %13748 = vst [vmem:[#allocation164_spill] sm:$0xff] %v9486_v36  ;;  %v6109_v36 = vld [vmem:[%s8022_s27 + $0x232] sm:$0xff] }
 0x248   : > { %7691 = vrot.lane.b32.xlu2 %v7690_v12, %s7956_s22  ;;  %v9512_v12 = vld [vmem:[%s8022_s27 + $0x172] sm:$0xff] }
 0x249   : > { %7686 = vrot.lane.b32.xlu1 %v7685_v37, %s7956_s22  ;;  %v7695_v28 = vpack.i.bf16 %v9515_v23, %v9512_v12 }
 0x24a   : > { %7681 = vrot.lane.b32.xlu0 %v7680_v9, %s7956_s22  ;;  %v9506_v2 = vpop.permute.xlu2 %7526  ;;  %v7705_v9 = vpack.i.bf16 %v9501_v22, %v9496_v56 }
 0x24b   : > { %13749 = vst [vmem:[#allocation165_spill] sm:$0xff] %v9506_v2  ;;  %v9517_v37 = vpop.permute.xlu1 %7476  ;;  %v6138_v2 = vld [vmem:[%s8022_s27 + $0x1d0] sm:$0xff] }
 0x24c   : > { %13751 = vst [vmem:[#allocation167_spill] sm:$0xff] %v9517_v37  ;;  %v9519_v18 = vpop.permute.xlu0 %7471  ;;  %v6112_v37 = vld [vmem:[%s8022_s27 + $0x262] sm:$0xff] }
 0x24d   : > { %13752 = vst [vmem:[#allocation168_spill] sm:$0xff] %v9519_v18 }
 0x250   : > { %7706 = vrot.lane.b32.xlu2 %v7705_v9, %s7956_s22  ;;  %v7720_v9 = vpack.i.bf16 %v6110_v6, %v6109_v36 }
 0x251   : > { %7701 = vrot.lane.b32.xlu1 %v7700_v21, %s7956_s22  ;;  %v7715_v21 = vpack.i.bf16 %v6108_v33, %v9535_v29  ;;  %v7735_v33 = vpack.i.bf16 %v9263_v14, %v9235_v49  ;;  %v6120_v49 = vld [vmem:[%s8022_s27 + $0x302] sm:$0xff] }
 0x252   : > { %7696 = vrot.lane.b32.xlu0 %v7695_v28, %s7956_s22  ;;  %v9532_v38 = vpop.permute.xlu2 %7541  ;;  %v7710_v28 = vpack.i.bf16 %v9539_v0, %v9219_v48  ;;  %v7730_v48 = vpack.i.bf16 %v9232_v63, %v9241_v53 }
 0x253   : > { %13753 = vst [vmem:[#allocation169_spill] sm:$0xff] %v9532_v38  ;;  %v9541_v1 = vpop.permute.xlu1 %7491 }
 0x254   : > { %13756 = vst [vmem:[#allocation172_spill] sm:$0xff] %v9541_v1  ;;  %v9543_v24 = vpop.permute.xlu0 %7486  ;;  %v6111_v1 = vld [vmem:[%s8022_s27 + $0x252] sm:$0xff] }
 0x255   : > { %13757 = vst [vmem:[#allocation173_spill] sm:$0xff] %v9543_v24  ;;  %v7725_v36 = vpack.i.bf16 %v6112_v37, %v6111_v1  ;;  %v7745_v1 = vpack.i.bf16 %v6120_v49, %v9260_v61  ;;  %v7740_v37 = vpack.i.bf16 %v9255_v26, %v9266_v3  ;;  %v6125_v61 = vld [vmem:[%s8022_s27 + $0xe0] sm:$0xff]  ;;  %v6126_v26 = vld [vmem:[%s8022_s27 + $0xf0] sm:$0xff] }
 0x258   : > { %7721 = vrot.lane.b32.xlu2 %v7720_v9, %s7956_s22  ;;  %v6123_v9 = vld [vmem:[%s8022_s27 + $0xc0] sm:$0xff] }
 0x259   : > { %7716 = vrot.lane.b32.xlu1 %v7715_v21, %s7956_s22  ;;  %v6124_v21 = vld [vmem:[%s8022_s27 + $0xd0] sm:$0xff] }
 0x25a   : > { %7711 = vrot.lane.b32.xlu0 %v7710_v28, %s7956_s22  ;;  %v9551_v38 = vpop.permute.xlu2 %7556  ;;  %v7750_v53 = vpack.i.bf16 %v6124_v21, %v6123_v9  ;;  %v6128_v9 = vld [vmem:[%s8022_s27 + $0x110] sm:$0xff] }
 0x25b   : > { %13758 = vst [vmem:[#allocation174_spill] sm:$0xff] %v9551_v38  ;;  %v9555_v24 = vpop.permute.xlu1 %7506 }
 0x25c   : > { %13759 = vst [vmem:[#allocation175_spill] sm:$0xff] %v9555_v24  ;;  %v9557_v6 = vpop.permute.xlu0 %7501  ;;  %v6133_v24 = vld [vmem:[%s8022_s27 + $0x180] sm:$0xff] }
 0x25d   : > { %13760 = vst [vmem:[#allocation176_spill] sm:$0xff] %v9557_v6 }
 0x260   : > { %7736 = vrot.lane.b32.xlu2 %v7735_v33, %s7956_s22  ;;  %v6130_v33 = vld [vmem:[%s8022_s27 + $0x130] sm:$0xff] }
 0x261   : > { %7731 = vrot.lane.b32.xlu1 %v7730_v48, %s7956_s22  ;;  %v6127_v48 = vld [vmem:[%s8022_s27 + $0x100] sm:$0xff]  ;;  %v7765_v49 = vpack.i.bf16 %v6130_v33, %v9282_v34 }
 0x262   : > { %7726 = vrot.lane.b32.xlu0 %v7725_v36, %s7956_s22  ;;  %v9568_v28 = vpop.permute.xlu2 %7571 }
 0x263   : > { %13761 = vst [vmem:[#allocation177_spill] sm:$0xff] %v9568_v28  ;;  %v9571_v14 = vpop.permute.xlu1 %7521  ;;  %v6134_v28 = vld [vmem:[%s8022_s27 + $0x190] sm:$0xff] }
 0x264   : > { %13762 = vst [vmem:[#allocation178_spill] sm:$0xff] %v9571_v14  ;;  %v9573_v63 = vpop.permute.xlu0 %7516 }
 0x265   : > { %13763 = vst [vmem:[#allocation179_spill] sm:$0xff] %v9573_v63 }
 0x268   : > { %7751 = vrot.lane.b32.xlu2 %v7750_v53, %s7957_s23  ;;  %v7760_v53 = vpack.i.bf16 %v6128_v9, %v6127_v48  ;;  %v13770_v48 = vld [vmem:[#allocation16_spill] sm:$0xff] }
 0x269   : > { %7746 = vrot.lane.b32.xlu1 %v7745_v1, %s7956_s22  ;;  %v7755_v1 = vpack.i.bf16 %v6126_v26, %v6125_v61  ;;  %v6654_v9 = vunpack.i.h.bf16 %v13770_v48  ;;  %v6653_v61 = vunpack.i.l.bf16 %v13770_v48  ;;  %v7775_v26 = vpack.i.bf16 %v6134_v28, %v6133_v24  ;;  %v6141_v24 = vld [vmem:[%s8022_s27 + $0x220] sm:$0xff]  ;;  %v6142_v28 = vld [vmem:[%s8022_s27 + $0x230] sm:$0xff] }
 0x26a   : > { %7741 = vrot.lane.b32.xlu0 %v7740_v37, %s7956_s22  ;;  %v9583_v36 = vpop.permute.xlu2 %7586  ;;  %v6135_v37 = vld [vmem:[%s8022_s27 + $0x1a0] sm:$0xff]  ;;  %v7795_v14 = vpack.i.bf16 %v6142_v28, %v6141_v24  ;;  %v7835_v28 = vld [vmem:[%s8022_s27 + $0x150] sm:$0xff]  ;;  %s5730_s22 = sshll.u32 %s217_s16, 3 }
 0x26b   : > { %13764 = vst [vmem:[#allocation180_spill] sm:$0xff] %v9583_v36  ;;  %v9588_v3 = vpop.permute.xlu1 %7536  ;;  %v6136_v36 = vld [vmem:[%s8022_s27 + $0x1b0] sm:$0xff] }
 0x26c   : > { %13765 = vst [vmem:[#allocation181_spill] sm:$0xff] %v9588_v3  ;;  %v9590_v21 = vpop.permute.xlu0 %7531  ;;  %v6131_v3 = vld [vmem:[%s8022_s27 + $0x160] sm:$0xff]  ;;  %v7780_v33 = vpack.i.bf16 %v6136_v36, %v6135_v37  ;;  %v9617_v36 = vsel %vm3026_vm0, %v7832_v44, %v6654_v9  ;;  %v6140_v9 = vld [vmem:[%s8022_s27 + $0x210] sm:$0xff] }
 0x26d   : > { %13766 = vst [vmem:[#allocation182_spill] sm:$0xff] %v9590_v21  ;;  %v6132_v21 = vld [vmem:[%s8022_s27 + $0x170] sm:$0xff]  ;;  %v6139_v44 = vld [vmem:[%s8022_s27 + $0x200] sm:$0xff] }
 0x270   : > { %7766 = vrot.lane.b32.xlu2 %v7765_v49, %s7957_s23  ;;  %v7770_v49 = vpack.i.bf16 %v6132_v21, %v6131_v3  ;;  %v13771_v3 = vld [vmem:[#allocation22_spill] sm:$0xff] }
 0x271   : > { %7761 = vrot.lane.b32.xlu1 %v7760_v53, %s7957_s23  ;;  %v232_v53 = vld [vmem:[%s8022_s27 + $0xa0] sm:$0xff]  ;;  %v6659_v21 = vunpack.i.h.bf16 %v13771_v3  ;;  %v6658_v37 = vunpack.i.l.bf16 %v13771_v3 }
 0x272   : > { %7756 = vrot.lane.b32.xlu0 %v7755_v1, %s7957_s23  ;;  %v9599_v6 = vpop.permute.xlu2 %7601  ;;  %v9613_v1 = vsel %vm3026_vm0, %v232_v53, %v6653_v61 }
 0x273   : > { %13767 = vst [vmem:[#allocation183_spill] sm:$0xff] %v9599_v6  ;;  %v9604_v38 = vpop.permute.xlu1 %7551  ;;  %v6633_v6 = vunpack.i.l.bf16 %v13778_v17 }
 0x274   : > { %13768 = vst [vmem:[#allocation184_spill] sm:$0xff] %v9604_v38  ;;  %v9606_v34 = vpop.permute.xlu0 %7546  ;;  %v13775_v38 = vld [vmem:[#allocation35_spill] sm:$0xff] }
 0x275   : > { %13769 = vst [vmem:[#allocation185_spill] sm:$0xff] %v9606_v34  ;;  %v6644_v18 = vunpack.i.h.bf16 %v13775_v38  ;;  %v6643_v3 = vunpack.i.l.bf16 %v13775_v38  ;;  %v6649_v34 = vunpack.i.h.bf16 %v8434_v47  ;;  %v7790_v38 = vpack.i.bf16 %v6140_v9, %v6139_v44 }
 0x276   : > { %v6639_v47 = vunpack.i.h.bf16 %v8436_v35 }
 0x278   : > { %7781 = vrot.lane.b32.xlu2 %v7780_v33, %s7957_s23  ;;  %v13772_v33 = vld [vmem:[#allocation28_spill] sm:$0xff] }
 0x279   : > { %7776 = vrot.lane.b32.xlu1 %v7775_v26, %s7957_s23  ;;  %v6674_v48 = vunpack.i.h.bf16 %v13772_v33  ;;  %v6673_v61 = vunpack.i.l.bf16 %v13772_v33  ;;  %v13774_v26 = vld [vmem:[#allocation33_spill] sm:$0xff] }
 0x27a   : > { %7771 = vrot.lane.b32.xlu0 %v7770_v49, %s7957_s23  ;;  %v9627_v53 = vpop.permute.xlu2 %7616  ;;  %v6689_v49 = vunpack.i.h.bf16 %v13774_v26  ;;  %v6688_v11 = vunpack.i.l.bf16 %v13774_v26  ;;  %v224_v26 = vld [vmem:[%s8022_s27] sm:$0xff] }
 0x27b   : > { %13773 = vst [vmem:[#allocation16_spill] sm:$0xff] %v9627_v53  ;;  %v9637_v8 = vpop.permute.xlu1 %7566  ;;  %v6634_v53 = vunpack.i.h.bf16 %v13778_v17  ;;  %v7834_v17 = vld [vmem:[%s8022_s27 + $0xd0] sm:$0xff]  ;;  %v9657_v24 = vsel %vm3026_vm0, %v240_v60, %v6673_v61  ;;  %v9662_v44 = vsel %vm3026_vm0, %v7835_v28, %v6674_v48  ;;  %v6718_v60 = vunpack.i.l.bf16 %v8447_v43  ;;  %v7838_v61 = vld [vmem:[%s8022_s27 + $0x40] sm:$0xff] }
 0x27c   : > { %13776 = vst [vmem:[#allocation22_spill] sm:$0xff] %v9637_v8  ;;  %v9639_v33 = vpop.permute.xlu0 %7561  ;;  %v7785_v8 = vpack.i.bf16 %v6138_v2, %v9317_v32  ;;  %v9654_v52 = vsel %vm3026_vm0, %v7834_v17, %v6659_v21  ;;  %v7836_v32 = vld [vmem:[%s8022_s27 + $0x1a0] sm:$0xff]  ;;  %v9675_v35 = vsel %vm3026_vm0, %v7838_v61, %v6643_v3  ;;  %v7839_v48 = vld [vmem:[%s8022_s27 + $0x50] sm:$0xff]  ;;  %v6669_v61 = vunpack.i.h.bf16 %v8452_v62 }
 0x27d   : > { %13777 = vst [vmem:[#allocation28_spill] sm:$0xff] %v9639_v33  ;;  %v7833_v33 = vld [vmem:[%s8022_s27 + $0xc0] sm:$0xff]  ;;  %v9666_v2 = vsel %vm3026_vm0, %v7836_v32, %v6688_v11  ;;  %v9679_v9 = vsel %vm3026_vm0, %v7839_v48, %v6644_v18  ;;  %v9682_v11 = vsel %vm3026_vm0, %v224_v26, %v6633_v6  ;;  %v7842_v28 = vld [vmem:[%s8022_s27 + $0x70] sm:$0xff]  ;;  %v6668_v48 = vunpack.i.l.bf16 %v8452_v62 }
 0x27e   : > { %v9650_v31 = vsel %vm3026_vm0, %v7833_v33, %v6658_v37  ;;  %v7837_v37 = vld [vmem:[%s8022_s27 + $0x1b0] sm:$0xff]  ;;  %v7841_v17 = vld [vmem:[%s8022_s27 + $0x60] sm:$0xff]  ;;  %v9695_v18 = vsel %vm3026_vm0, %v7842_v28, %v6649_v34  ;;  %v6663_v28 = vunpack.i.l.bf16 %v8454_v4  ;;  %v6734_v62 = vunpack.i.h.bf16 %v8465_v13 }
 0x27f   : > { %v9670_v21 = vsel %vm3026_vm0, %v7837_v37, %v6689_v49  ;;  %v7840_v33 = vld [vmem:[%s8022_s27 + $0x10] sm:$0xff]  ;;  %v9691_v3 = vsel %vm3026_vm0, %v7841_v17, %v6648_v54  ;;  %v7843_v32 = vld [vmem:[%s8022_s27 + $0x20] sm:$0xff]  ;;  %v6719_v54 = vunpack.i.h.bf16 %v8447_v43 }
 0x280   : > { %v9686_v49 = vsel %vm3026_vm0, %v7840_v33, %v6634_v53  ;;  %7796 = vrot.lane.b32.xlu2 %v7795_v14, %s7957_s23  ;;  %v3029_v6 = vsel %vm3026_vm0, %v7843_v32, %v6638_v55  ;;  %v6147_v53 = vld [vmem:[%s8022_s27 + $0x2a0] sm:$0xff]  ;;  %v6148_v14 = vld [vmem:[%s8022_s27 + $0x2b0] sm:$0xff] }
 0x281   : > { %7791 = vrot.lane.b32.xlu1 %v7790_v38, %s7957_s23  ;;  %v7844_v26 = vld [vmem:[%s8022_s27 + $0x30] sm:$0xff]  ;;  %v6143_v17 = vld [vmem:[%s8022_s27 + $0x240] sm:$0xff]  ;;  %v9714_v38 = vsel %vm3059_vm1, %v3029_v6, %v6718_v60  ;;  %v6683_v60 = vunpack.i.l.bf16 %v8470_v16  ;;  %v7810_v6 = vpack.i.bf16 %v6148_v14, %v6147_v53 }
 0x282   : > { %7786 = vrot.lane.b32.xlu0 %v7785_v8, %s7957_s23  ;;  %v3030_v37 = vsel %vm3026_vm0, %v7844_v26, %v6639_v47  ;;  %v9708_v34 = vpop.permute.xlu2 %7631  ;;  %v6146_v33 = vld [vmem:[%s8022_s27 + $0x270] sm:$0xff]  ;;  %v6664_v8 = vunpack.i.h.bf16 %v8454_v4  ;;  %v6733_v47 = vunpack.i.l.bf16 %v8465_v13  ;;  %v6684_v26 = vunpack.i.h.bf16 %v8470_v16  ;;  %v5136_v4 = vld [vmem:[%s13255_s1 + $0x78] sm:$0xff]  ;;  %v7845_v16 = vld [vmem:[%s8022_s27 + $0x100] sm:$0xff] }
 0x283   : > { %13779 = vst [vmem:[#allocation33_spill] sm:$0xff] %v9708_v34  ;;  %v6144_v55 = vld [vmem:[%s8022_s27 + $0x250] sm:$0xff]  ;;  %v9719_v43 = vpop.permute.xlu1 %7581  ;;  %v6679_v34 = vunpack.i.h.bf16 %v8472_v10  ;;  %v7805_v39 = vpack.i.bf16 %v6146_v33, %v9335_v58  ;;  %5244 = vmatpush.msra.mxu0 %v5136_v4  ;;  %6547 = vmatpush.msra.mxu2 %v5136_v4  ;;  %v9733_v13 = vsel %vm3059_vm1, %v3030_v37, %v6719_v54 }
 0x284   : > { %13780 = vst [vmem:[#allocation35_spill] sm:$0xff] %v9719_v43  ;;  %v9721_v32 = vpop.permute.xlu0 %7576  ;;  %v6678_v43 = vunpack.i.l.bf16 %v8472_v10  ;;  %v3041_v53 = vsel %vm3026_vm0, %v7845_v16, %v6668_v48  ;;  %v7846_v14 = vld [vmem:[%s8022_s27 + $0x110] sm:$0xff]  ;;  %v6748_v10 = vunpack.i.l.bf16 %v13782_v57  ;;  %v9742_v58 = vsel %vm3026_vm0, %v7847_v20, %v6663_v28 }
 0x285   : > { %13781 = vst [vmem:[#allocation36_spill] sm:$0xff] %v9721_v32  ;;  %v7800_v32 = vpack.i.bf16 %v6144_v55, %v6143_v17  ;;  %v3042_v63 = vsel %vm3026_vm0, %v7846_v14, %v6669_v61  ;;  %v7848_v33 = vld [vmem:[%s8022_s27 + $0xf0] sm:$0xff]  ;;  %v9750_v54 = vsel %vm3059_vm1, %v9613_v1, %v6733_v47  ;;  %v6749_v48 = vunpack.i.h.bf16 %v13782_v57  ;;  %v7849_v17 = vld [vmem:[%s8022_s27 + $0x180] sm:$0xff]  ;;  %v13783_v55 = vld [vmem:[#allocation39_spill] sm:$0xff] }
 0x286   : > { %v9746_v37 = vsel %vm3026_vm0, %v7848_v33, %v6664_v8  ;;  %v9755_v61 = vsel %vm3059_vm1, %v9617_v36, %v6734_v62  ;;  %v3047_v20 = vsel %vm3026_vm0, %v7849_v17, %v6683_v60  ;;  %v6698_v28 = vunpack.i.l.bf16 %v13783_v55  ;;  %v13784_v4 = vld [vmem:[#allocation40_spill] sm:$0xff]  ;;  %v248_v8 = vld [vmem:[%s8022_s27 + $0x1e0] sm:$0xff] }
 0x287   : > { %v6693_v16 = vunpack.i.l.bf16 %v13784_v4  ;;  %v6154_v14 = vld [vmem:[%s8022_s27 + $0x310] sm:$0xff]  ;;  %v7851_v47 = vld [vmem:[%s8022_s27 + $0x160] sm:$0xff]  ;;  %v9781_v33 = vsel %vm3059_vm1, %v3041_v53, %v6748_v10  ;;  %v6694_v17 = vunpack.i.h.bf16 %v13784_v4  ;;  %v9792_v0 = vsel %vm3059_vm1, %v3042_v63, %v6749_v48 }
 0x288   : > { %7811 = vrot.lane.b32.xlu2 %v7810_v6, %s7957_s23  ;;  %v7850_v1 = vld [vmem:[%s8022_s27 + $0x190] sm:$0xff]  ;;  %v9768_v36 = vsel %vm3026_vm0, %v7851_v47, %v6678_v43  ;;  %v6151_v6 = vld [vmem:[%s8022_s27 + $0x2e0] sm:$0xff]  ;;  %v7825_v5 = vpack.i.bf16 %v6154_v14, %v9351_v27 }
 0x289   : > { %v3048_v57 = vsel %vm3026_vm0, %v7850_v1, %v6684_v26  ;;  %v7852_v62 = vld [vmem:[%s8022_s27 + $0x170] sm:$0xff]  ;;  %7806 = vrot.lane.b32.xlu1 %v7805_v39, %s7957_s23  ;;  %v13787_v10 = vld [vmem:[#allocation42_spill] sm:$0xff]  ;;  %v9807_v63 = vsel %vm3026_vm0, %v248_v8, %v6693_v16 }
 0x28a   : > { %v9772_v60 = vsel %vm3026_vm0, %v7852_v62, %v6679_v34  ;;  %7801 = vrot.lane.b32.xlu0 %v7800_v32, %s7957_s23  ;;  %v5135_v26 = vld [vmem:[%s13255_s1 + $0x70] sm:$0xff]  ;;  %v13785_v34 = vld [vmem:[#allocation41_spill] sm:$0xff]  ;;  %v9786_v47 = vpop.permute.xlu2 %7646  ;;  %v6149_v62 = vld [vmem:[%s8022_s27 + $0x2c0] sm:$0xff]  ;;  %v6714_v29 = vunpack.i.h.bf16 %v13787_v10  ;;  %v6713_v43 = vunpack.i.l.bf16 %v13787_v10 }
 0x28b   : > { %v6763_v1 = vunpack.i.l.bf16 %v13785_v34  ;;  %13786 = vst [vmem:[#allocation38_spill] sm:$0xff] %v9786_v47  ;;  %v6152_v39 = vld [vmem:[%s8022_s27 + $0x2f0] sm:$0xff]  ;;  %5245 = vmatpush.msra.mxu0 %v5135_v26  ;;  %6548 = vmatpush.msra.mxu2 %v5135_v26  ;;  %v6764_v53 = vunpack.i.h.bf16 %v13785_v34  ;;  %v9797_v55 = vpop.permute.xlu1 %7596  ;;  %v5134_v47 = vld [vmem:[%s13255_s1 + $0x68] sm:$0xff]  ;;  %v3053_v26 = vsel %vm3026_vm0, %v7853_v40, %v6698_v28  ;;  %v5133_v10 = vld [vmem:[%s13255_s1 + $0x60] sm:$0xff] }
 0x28c   : > { %v6150_v32 = vld [vmem:[%s8022_s27 + $0x2d0] sm:$0xff]  ;;  %13788 = vst [vmem:[#allocation40_spill] sm:$0xff] %v9797_v55  ;;  %v9799_v4 = vpop.permute.xlu0 %7591  ;;  %v13791_v55 = vld [vmem:[#allocation45_spill] sm:$0xff]  ;;  %v7820_v30 = vpack.i.bf16 %v6152_v39, %v6151_v6  ;;  %v13792_v8 = vld [vmem:[#allocation46_spill] sm:$0xff]  ;;  %v3060_v6 = vsel %vm3059_vm1, %v9682_v11, %v6713_v43  ;;  %v3061_v39 = vsel %vm3059_vm1, %v9686_v49, %v6714_v29 }
 0x28d   : > { %13789 = vst [vmem:[#allocation41_spill] sm:$0xff] %v9799_v4  ;;  %v13790_v48 = vld [vmem:[#allocation44_spill] sm:$0xff]  ;;  %5246 = vmatpush.msra.mxu0 %v5134_v47  ;;  %6549 = vmatpush.msra.mxu2 %v5134_v47  ;;  %v6729_v4 = vunpack.i.h.bf16 %v13791_v55  ;;  %v6728_v25 = vunpack.i.l.bf16 %v13791_v55  ;;  %v7815_v19 = vpack.i.bf16 %v6150_v32, %v6149_v62  ;;  %v5132_v40 = vld [vmem:[%s13255_s1 + $0x58] sm:$0xff]  ;;  %v9824_v27 = vsel %vm3059_vm1, %v3047_v20, %v6763_v1 }
 0x28e   : > { %v6778_v34 = vunpack.i.l.bf16 %v13790_v48  ;;  %v7854_v28 = vld [vmem:[%s8022_s27 + $0x1f0] sm:$0xff]  ;;  %v6724_v14 = vunpack.i.h.bf16 %v13792_v8  ;;  %v6723_v47 = vunpack.i.l.bf16 %v13792_v8  ;;  %v9829_v55 = vsel %vm3059_vm1, %v3048_v57, %v6764_v53  ;;  %v13795_v57 = vld [vmem:[#allocation49_spill] sm:$0xff] }
 0x28f   : > { %v9821_v16 = vsel %vm3026_vm0, %v7854_v28, %v6694_v17  ;;  %5247 = vmatpush.msra.mxu0 %v5133_v10  ;;  %6550 = vmatpush.msra.mxu2 %v5133_v10  ;;  %v13793_v17 = vld [vmem:[#allocation47_spill] sm:$0xff]  ;;  %v13794_v28 = vld [vmem:[#allocation48_spill] sm:$0xff]  ;;  %v3066_v11 = vsel %vm3059_vm1, %v9691_v3, %v6728_v25  ;;  %v3067_v29 = vsel %vm3059_vm1, %v9695_v18, %v6729_v4  ;;  %v6738_v43 = vunpack.i.l.bf16 %v13795_v57  ;;  %v13796_v18 = vld [vmem:[#allocation50_spill] sm:$0xff] }
 0x290   : > { %v6793_v62 = vunpack.i.l.bf16 %v13793_v17  ;;  %v9838_v1 = vsel %vm3059_vm1, %v3053_v26, %v6778_v34  ;;  %v6794_v32 = vunpack.i.h.bf16 %v13793_v17  ;;  %v6743_v10 = vunpack.i.l.bf16 %v13794_v28  ;;  %7826 = vrot.lane.b32.xlu2 %v7825_v5, %s7957_s23  ;;  %v5131_v53 = vld [vmem:[%s13255_s1 + $0x50] sm:$0xff]  ;;  %v13798_v34 = vld [vmem:[#allocation51_spill] sm:$0xff] }
 0x291   : > { %5248 = vmatpush.msra.mxu0 %v5132_v40  ;;  %v6744_v49 = vunpack.i.h.bf16 %v13794_v28  ;;  %7821 = vrot.lane.b32.xlu1 %v7820_v30, %s7957_s23  ;;  %v9856_v5 = vsel %vm3059_vm1, %v9675_v35, %v6723_v47  ;;  %v9860_v25 = vsel %vm3059_vm1, %v9679_v9, %v6724_v14  ;;  %v6739_v3 = vunpack.i.h.bf16 %v13795_v57  ;;  %v5130_v14 = vld [vmem:[%s13255_s1 + $0x48] sm:$0xff]  ;;  %v5129_v57 = vld [vmem:[%s13255_s1 + $0x40] sm:$0xff] }
 0x292   : > { %7816 = vrot.lane.b32.xlu0 %v7815_v19, %s7957_s23  ;;  %v6808_v4 = vunpack.i.l.bf16 %v13796_v18  ;;  %v9864_v26 = vpop.permute.xlu2 %7661  ;;  %6551 = vmatpush.msra.mxu2 %v5132_v40  ;;  %v9867_v30 = vsel %vm3092_vm2, %v3060_v6, %v6793_v62  ;;  %v6809_v19 = vunpack.i.h.bf16 %v13796_v18  ;;  %v6759_v35 = vunpack.i.h.bf16 %v13798_v34  ;;  %v13799_v6 = vld [vmem:[#allocation52_spill] sm:$0xff] }
 0x293   : > { %13797 = vst [vmem:[#allocation42_spill] sm:$0xff] %v9864_v26  ;;  %5249 = vmatpush.msra.mxu0 %v5131_v53  ;;  %v6758_v8 = vunpack.i.l.bf16 %v13798_v34  ;;  %v9872_v47 = vpop.permute.xlu1 %7611  ;;  %v9880_v17 = vsel %vm3092_vm2, %v3061_v39, %v6794_v32  ;;  %v3072_v40 = vsel %vm3059_vm1, %v9742_v58, %v6743_v10  ;;  %v6754_v62 = vunpack.i.h.bf16 %v13799_v6  ;;  %v13800_v32 = vld [vmem:[#allocation53_spill] sm:$0xff] }
 0x294   : > { %v9874_v9 = vpop.permute.xlu0 %7606  ;;  %v6753_v28 = vunpack.i.l.bf16 %v13799_v6  ;;  %6552 = vmatpush.msra.mxu2 %v5131_v53  ;;  %v3073_v18 = vsel %vm3059_vm1, %v9746_v37, %v6744_v49  ;;  %v9893_v39 = vsel %vm3059_vm1, %v9650_v31, %v6738_v43  ;;  %v6824_v34 = vunpack.i.h.bf16 %v13800_v32  ;;  %v5128_v10 = vld [vmem:[%s13255_s1 + $0x38] sm:$0xff]  ;;  %v13801_v37 = vld [vmem:[#allocation54_spill] sm:$0xff] }
 0x295   : > { %5250 = vmatpush.msra.mxu0 %v5130_v14  ;;  %v6823_v58 = vunpack.i.l.bf16 %v13800_v32  ;;  %v9902_v6 = vsel %vm3059_vm1, %v9654_v52, %v6739_v3  ;;  %v9905_v53 = vsel %vm3092_vm2, %v3066_v11, %v6808_v4  ;;  %v6774_v49 = vunpack.i.h.bf16 %v13801_v37  ;;  %v13802_v52 = vld [vmem:[#allocation55_spill] sm:$0xff] }
 0x296   : > { %v6773_v31 = vunpack.i.l.bf16 %v13801_v37  ;;  %6553 = vmatpush.msra.mxu2 %v5130_v14  ;;  %v9910_v43 = vsel %vm3092_vm2, %v3067_v29, %v6809_v19  ;;  %v3078_v32 = vsel %vm3059_vm1, %v9768_v36, %v6758_v8  ;;  %v3079_v20 = vsel %vm3059_vm1, %v9772_v60, %v6759_v35  ;;  %v13803_v29 = vld [vmem:[#allocation56_spill] sm:$0xff]  ;;  %v13804_v8 = vld [vmem:[#allocation2_spill] sm:$0xff] }
 0x297   : > { %5251 = vmatpush.msra.mxu0 %v5129_v57  ;;  %v6768_v3 = vunpack.i.l.bf16 %v13802_v52  ;;  %v9919_v11 = vsel %vm3059_vm1, %v9657_v24, %v6753_v28  ;;  %v9923_v4 = vsel %vm3059_vm1, %v9662_v44, %v6754_v62  ;;  %v6769_v14 = vunpack.i.h.bf16 %v13802_v52  ;;  %v13809_v52 = vld [vmem:[#allocation12_spill] sm:$0xff] }
 0x298   : > { %v6838_v19 = vunpack.i.l.bf16 %v13803_v29  ;;  %3557 = vrot.lane.b32.xlu2 %v9447_v15, %s7943_s28  ;;  %v9930_v36 = vsel %vm3092_vm2, %v3072_v40, %v6823_v58  ;;  %v9933_v60 = vsel %vm3092_vm2, %v3073_v18, %v6824_v34  ;;  %v6839_v24 = vunpack.i.h.bf16 %v13803_v29  ;;  %v5127_v15 = vld [vmem:[%s13255_s1 + $0x30] sm:$0xff]  ;;  %6554 = vmatpush.msra.mxu2 %v5129_v57  ;;  %v5125_v29 = vld [vmem:[%s13255_s1 + $0x20] sm:$0xff] }
 0x299   : > { %5252 = vmatpush.msra.mxu0 %v5128_v10  ;;  %3555 = vrot.lane.b32.xlu1 %v9444_v42, %s7943_s28  ;;  %v3084_v44 = vsel %vm3059_vm1, %v9807_v63, %v6773_v31  ;;  %v3085_v35 = vsel %vm3059_vm1, %v9821_v16, %v6774_v49  ;;  %v6854_v40 = vunpack.i.h.bf16 %v13804_v8  ;;  %v6853_v62 = vunpack.i.l.bf16 %v13804_v8  ;;  %v13806_v63 = vld [vmem:[#allocation59_spill] sm:$0xff] }
 0x29a   : > { %3553 = vrot.lane.b32.xlu0 %v9452_v46, %s7943_s28  ;;  %v9949_v28 = vpop.permute.xlu2 %7676  ;;  %v9953_v42 = vsel %vm3059_vm1, %v9666_v2, %v6768_v3  ;;  %v13805_v46 = vld [vmem:[#allocation3_spill] sm:$0xff]  ;;  %v6798_v58 = vunpack.i.l.bf16 %v13806_v63  ;;  %v9967_v57 = vsel %vm3059_vm1, %v9670_v21, %v6769_v14  ;;  %v9970_v2 = vsel %vm3092_vm2, %v3078_v32, %v6838_v19  ;;  %6555 = vmatpush.msra.mxu2 %v5128_v10  ;;  %v13810_v21 = vld [vmem:[#allocation6_spill] sm:$0xff]  ;;  %v5124_v19 = vld [vmem:[%s13255_s1 + $0x18] sm:$0xff] }
 0x29b   : > { %5253 = vmatpush.msra.mxu0 %v5127_v15  ;;  %v6804_v18 = vunpack.i.h.bf16 %v13805_v46  ;;  %v6803_v34 = vunpack.i.l.bf16 %v13805_v46  ;;  %v9958_v37 = vpop.permute.xlu1 %7626  ;;  %v5126_v49 = vld [vmem:[%s13255_s1 + $0x28] sm:$0xff]  ;;  %v6799_v31 = vunpack.i.h.bf16 %v13806_v63  ;;  %v6818_v3 = vunpack.i.l.bf16 %v13809_v52 }
 0x29c   : > { %13807 = vst [vmem:[#allocation45_spill] sm:$0xff] %v9958_v37  ;;  %v9960_v16 = vpop.permute.xlu0 %7621  ;;  %v9978_v8 = vsel %vm3092_vm2, %v3079_v20, %v6839_v24  ;;  %v6819_v46 = vunpack.i.h.bf16 %v13809_v52  ;;  %v6814_v14 = vunpack.i.h.bf16 %v13810_v21  ;;  %v6813_v32 = vunpack.i.l.bf16 %v13810_v21  ;;  %v13811_v10 = vld [vmem:[#allocation7_spill] sm:$0xff]  ;;  %6556 = vmatpush.msra.mxu2 %v5127_v15 }
 0x29d   : > { %13808 = vst [vmem:[#allocation46_spill] sm:$0xff] %v9960_v16  ;;  %5254 = vmatpush.msra.mxu0 %v5126_v49  ;;  %v9987_v63 = vsel %vm3092_vm2, %v3084_v44, %v6853_v62  ;;  %v9990_v26 = vsel %vm3092_vm2, %v3085_v35, %v6854_v40  ;;  %v6884_v48 = vunpack.i.h.bf16 %v13811_v10  ;;  %v6883_v20 = vunpack.i.l.bf16 %v13811_v10  ;;  %v13812_v44 = vld [vmem:[#allocation5_spill] sm:$0xff] }
 0x29e   : > { %v3097_v24 = vsel %vm3092_vm2, %v9856_v5, %v6803_v34  ;;  %v3098_v52 = vsel %vm3092_vm2, %v9860_v25, %v6804_v18  ;;  %v10000_v21 = vsel %vm3092_vm2, %v9714_v38, %v6798_v58  ;;  %v6833_v62 = vunpack.i.l.bf16 %v13812_v44  ;;  %v13813_v10 = vld [vmem:[#allocation9_spill] sm:$0xff]  ;;  %6557 = vmatpush.msra.mxu2 %v5126_v49 }
 0x29f   : > { %5255 = vmatpush.msra.mxu0 %v5125_v29  ;;  %v10005_v35 = vsel %vm3092_vm2, %v9733_v13, %v6799_v31  ;;  %v3103_v40 = vsel %vm3092_vm2, %v9893_v39, %v6818_v3  ;;  %v6834_v15 = vunpack.i.h.bf16 %v13812_v44  ;;  %v6828_v5 = vunpack.i.l.bf16 %v13813_v10 }
 0x2a0   : > { %3563 = vrot.lane.b32.xlu2 %v9471_v51, %s7943_s28  ;;  %v3104_v38 = vsel %vm3092_vm2, %v9902_v6, %v6819_v46  ;;  %v10017_v25 = vsel %vm3092_vm2, %v9750_v54, %v6813_v32  ;;  %v10021_v13 = vsel %vm3092_vm2, %v9755_v61, %v6814_v14  ;;  %v6829_v39 = vunpack.i.h.bf16 %v13813_v10  ;;  %v5123_v51 = vld [vmem:[%s13255_s1 + $0x10] sm:$0xff]  ;;  %v13814_v61 = vld [vmem:[#allocation11_spill] sm:$0xff]  ;;  %v13816_v46 = vld [vmem:[#allocation13_spill] sm:$0xff]  ;;  %6558 = vmatpush.msra.mxu2 %v5125_v29 }
 0x2a1   : > { %5256 = vmatpush.msra.mxu0 %v5124_v19  ;;  %3561 = vrot.lane.b32.xlu1 %v9482_v41, %s7943_s28  ;;  %v10032_v6 = vsel %vm3125_vm3, %v3097_v24, %v6883_v20  ;;  %v10035_v54 = vsel %vm3125_vm3, %v3098_v52, %v6884_v48  ;;  %v6899_v18 = vunpack.i.h.bf16 %v13814_v61  ;;  %v6898_v34 = vunpack.i.l.bf16 %v13814_v61  ;;  %v13815_v41 = vld [vmem:[#allocation8_spill] sm:$0xff]  ;;  %v5122_v20 = vld [vmem:[%s13255_s1 + $0x8] sm:$0xff]  ;;  %v13818_v52 = vld [vmem:[#allocation10_spill] sm:$0xff] }
 0x2a2   : > { %3559 = vrot.lane.b32.xlu0 %v9479_v59, %s7943_s28  ;;  %v10039_v58 = vpop.permute.xlu2 %7691  ;;  %v3109_v59 = vsel %vm3092_vm2, %v9919_v11, %v6833_v62  ;;  %v6849_v31 = vunpack.i.h.bf16 %v13815_v41  ;;  %v6848_v3 = vunpack.i.l.bf16 %v13815_v41  ;;  %v6843_v14 = vunpack.i.l.bf16 %v13816_v46  ;;  %v5121_v62 = vld [vmem:[%s13255_s1] sm:$0xff]  ;;  %6559 = vmatpush.msra.mxu2 %v5124_v19  ;;  %v13852_v19 = vld [vmem:[#allocation68_spill] sm:$0xff] }
 0x2a3   : > { %5257 = vmatpush.msra.mxu0 %v5123_v51  ;;  %v10046_v32 = vpop.permute.xlu1 %7641  ;;  %v3110_v49 = vsel %vm3092_vm2, %v9923_v4, %v6834_v15  ;;  %v10057_v11 = vsel %vm3092_vm2, %v9781_v33, %v6828_v5  ;;  %v6844_v24 = vunpack.i.h.bf16 %v13816_v46  ;;  %v6913_v44 = vunpack.i.l.bf16 %v13818_v52  ;;  %v13819_v4 = vld [vmem:[#allocation24_spill] sm:$0xff]  ;;  %v13820_v41 = vld [vmem:[#allocation18_spill] sm:$0xff] }
 0x2a4   : > { %13817 = vst [vmem:[#allocation47_spill] sm:$0xff] %v10046_v32  ;;  %v10048_v48 = vpop.permute.xlu0 %7636  ;;  %v3108_v10 = vsel %vm3092_vm2, %v9792_v0, %v6829_v39  ;;  %v6914_v61 = vunpack.i.h.bf16 %v13818_v52  ;;  %v6858_v15 = vunpack.i.l.bf16 %v13819_v4  ;;  %v10069_v33 = vsel %vm3125_vm3, %v3103_v40, %v6898_v34  ;;  %v6194_v32 = vld [vmem:[%s8022_s27 + $0x132] sm:$0xff]  ;;  %v13821_v39 = vld [vmem:[#allocation14_spill] sm:$0xff]  ;;  %6560 = vmatpush.msra.mxu2 %v5123_v51 }
 0x2a5   : > { %5258 = vmatpush.msra.mxu0 %v5122_v20  ;;  %v10072_v5 = vsel %vm3125_vm3, %v3104_v38, %v6899_v18  ;;  %v6929_v46 = vunpack.i.h.bf16 %v13820_v41  ;;  %v6928_v16 = vunpack.i.l.bf16 %v13820_v41  ;;  %v3115_v0 = vsel %vm3092_vm2, %v9953_v42, %v6848_v3  ;;  %v13824_v51 = vld [vmem:[#allocation21_spill] sm:$0xff] }
 0x2a6   : > { %v3116_v29 = vsel %vm3092_vm2, %v9967_v57, %v6849_v31  ;;  %v3113_v40 = vsel %vm3092_vm2, %v9824_v27, %v6843_v14  ;;  %v6878_v34 = vunpack.i.l.bf16 %v13821_v39  ;;  %v10086_v38 = vsel %vm3092_vm2, %v9829_v55, %v6844_v24  ;;  %v13823_v55 = vld [vmem:[#allocation19_spill] sm:$0xff]  ;;  %6561 = vmatpush.msra.mxu2 %v5122_v20 }
 0x2a7   : > { %5259 = vmatpush.msra.mxu0 %v5121_v62  ;;  %v10089_v18 = vsel %vm3125_vm3, %v3109_v59, %v6913_v44  ;;  %v6879_v52 = vunpack.i.h.bf16 %v13821_v39  ;;  %v10096_v42 = vsel %vm3125_vm3, %v3110_v49, %v6914_v61  ;;  %v10100_v27 = vsel %vm3092_vm2, %v9838_v1, %v6858_v15  ;;  %v13827_v44 = vld [vmem:[#allocation20_spill] sm:$0xff] }
 0x2a8   : > { %3569 = vrot.lane.b32.xlu2 %v9468_v7, %s7943_s28  ;;  %13822 = vst [vmem:[#allocation48_spill] sm:$0xff] %v10100_v27  ;;  %v6874_v57 = vunpack.i.h.bf16 %v13823_v55  ;;  %v6873_v59 = vunpack.i.l.bf16 %v13823_v55  ;;  %v10108_v31 = vsel %vm3125_vm3, %v3115_v0, %v6928_v16  ;;  %v10111_v7 = vsel %vm3125_vm3, %v3116_v29, %v6929_v46  ;;  %v13830_v0 = vld [vmem:[#allocation25_spill] sm:$0xff]  ;;  %6562 = vmatpush.msra.mxu2 %v5121_v62 }
 0x2a9   : > { %3567 = vrot.lane.b32.xlu1 %v6194_v32, %s7943_s28  ;;  %v6894_v3 = vunpack.i.h.bf16 %v13824_v51  ;;  %v6893_v1 = vunpack.i.l.bf16 %v13824_v51  ;;  %v3128_v49 = vsel %vm3125_vm3, %v10000_v21, %v6878_v34  ;;  %v13826_v32 = vld [vmem:[#allocation23_spill] sm:$0xff]  ;;  %v6958_v16 = vunpack.i.l.bf16 %v13827_v44  ;;  %v13831_v34 = vld [vmem:[#allocation26_spill] sm:$0xff] }
 0x2aa   : > { %3565 = vrot.lane.b32.xlu0 %v9476_v45, %s7943_s28  ;;  %v10115_v14 = vpop.permute.xlu2 %7706  ;;  %v6889_v24 = vunpack.i.h.bf16 %v13826_v32  ;;  %v6888_v45 = vunpack.i.l.bf16 %v13826_v32  ;;  %v3129_v41 = vsel %vm3125_vm3, %v10005_v35, %v6879_v52  ;;  %v6959_v46 = vunpack.i.h.bf16 %v13827_v44  ;;  %v13832_v32 = vld [vmem:[#allocation29_spill] sm:$0xff] }
 0x2ab   : > { %13825 = vst [vmem:[#allocation49_spill] sm:$0xff] %v10115_v14  ;;  %v10122_v61 = vpop.permute.xlu1 %7656  ;;  %v6909_v20 = vunpack.i.h.bf16 %v13830_v0  ;;  %v6908_v29 = vunpack.i.l.bf16 %v13830_v0  ;;  %v3126_v21 = vsel %vm3125_vm3, %v9867_v30, %v6873_v59  ;;  %v3127_v39 = vsel %vm3125_vm3, %v9880_v17, %v6874_v57  ;;  %v13833_v59 = vld [vmem:[#allocation30_spill] sm:$0xff] }
 0x2ac   : > { %13828 = vst [vmem:[#allocation50_spill] sm:$0xff] %v10122_v61  ;;  %v10124_v15 = vpop.permute.xlu0 %7651  ;;  %v6904_v55 = vunpack.i.h.bf16 %v13831_v34  ;;  %v6903_v51 = vunpack.i.l.bf16 %v13831_v34  ;;  %v3134_v35 = vsel %vm3125_vm3, %v10017_v25, %v6893_v1  ;;  %v3135_v52 = vsel %vm3125_vm3, %v10021_v13, %v6894_v3 }
 0x2ad   : > { %13829 = vst [vmem:[#allocation51_spill] sm:$0xff] %v10124_v15  ;;  %v6974_v44 = vunpack.i.h.bf16 %v13832_v32  ;;  %v6973_v62 = vunpack.i.l.bf16 %v13832_v32  ;;  %v3132_v30 = vsel %vm3125_vm3, %v9905_v53, %v6888_v45  ;;  %v3133_v17 = vsel %vm3125_vm3, %v9910_v43, %v6889_v24 }
 0x2ae   : > { %v10148_v57 = vsel %vm3158_vm4, %v3128_v49, %v6958_v16  ;;  %v6923_v0 = vunpack.i.l.bf16 %v13833_v59  ;;  %v10152_v25 = vsel %vm3158_vm4, %v3129_v41, %v6959_v46  ;;  %v3140_v13 = vsel %vm3125_vm3, %v10057_v11, %v6908_v29  ;;  %v13834_v49 = vld [vmem:[#allocation27_spill] sm:$0xff]  ;;  %v13836_v46 = vld [vmem:[#allocation32_spill] sm:$0xff] }
 0x2af   : > { %v3141_v3 = vsel %vm3125_vm3, %v3108_v10, %v6909_v20  ;;  %v6924_v1 = vunpack.i.h.bf16 %v13833_v59  ;;  %v10162_v53 = vsel %vm3125_vm3, %v9930_v36, %v6903_v51  ;;  %v10166_v43 = vsel %vm3125_vm3, %v9933_v60, %v6904_v55  ;;  %v13835_v11 = vld [vmem:[#allocation31_spill] sm:$0xff]  ;;  %v13838_v55 = vld [vmem:[#allocation60_spill] sm:$0xff] }
 0x2b0   : > { %3575 = vrot.lane.b32.xlu2 %v9504_v50, %s7943_s28  ;;  %v6919_v24 = vunpack.i.h.bf16 %v13834_v49  ;;  %v6918_v45 = vunpack.i.l.bf16 %v13834_v49  ;;  %v10175_v50 = vsel %vm3158_vm4, %v3134_v35, %v6973_v62  ;;  %v10178_v36 = vsel %vm3158_vm4, %v3135_v52, %v6974_v44  ;;  %v13839_v52 = vld [vmem:[#allocation61_spill] sm:$0xff]  ;;  %v13840_v59 = vld [vmem:[#allocation64_spill] sm:$0xff] }
 0x2b1   : > { %3573 = vrot.lane.b32.xlu1 %v9515_v23, %s7943_s28  ;;  %v6988_v10 = vunpack.i.l.bf16 %v13835_v11  ;;  %v3146_v16 = vsel %vm3125_vm3, %v3113_v40, %v6923_v0  ;;  %v6989_v41 = vunpack.i.h.bf16 %v13835_v11  ;;  %v6934_v23 = vunpack.i.h.bf16 %v13836_v46 }
 0x2b2   : > { %3571 = vrot.lane.b32.xlu0 %v9512_v12, %s7943_s28  ;;  %v10181_v60 = vpop.permute.xlu2 %7721  ;;  %v6933_v20 = vunpack.i.l.bf16 %v13836_v46  ;;  %v3147_v34 = vsel %vm3125_vm3, %v10086_v38, %v6924_v1  ;;  %v7004_v51 = vunpack.i.h.bf16 %v13838_v55  ;;  %v7003_v35 = vunpack.i.l.bf16 %v13838_v55  ;;  %v13842_v46 = vld [vmem:[#allocation65_spill] sm:$0xff] }
 0x2b3   : > { %v10187_v12 = vpop.permute.xlu1 %7671  ;;  %v6953_v32 = vunpack.i.l.bf16 %v13839_v52  ;;  %v10198_v40 = vsel %vm3125_vm3, %v9970_v2, %v6918_v45  ;;  %v10202_v44 = vsel %vm3125_vm3, %v9978_v8, %v6919_v24  ;;  %v6954_v62 = vunpack.i.h.bf16 %v13839_v52 }
 0x2b4   : > { %v10189_v29 = vpop.permute.xlu0 %7666  ;;  %v6968_v0 = vunpack.i.l.bf16 %v13840_v59  ;;  %v10207_v38 = vsel %vm3158_vm4, %v3140_v13, %v6988_v10  ;;  %v6969_v11 = vunpack.i.h.bf16 %v13840_v59  ;;  %v6963_v55 = vunpack.i.l.bf16 %v13842_v46  ;;  %v13845_v59 = vld [vmem:[#allocation95_spill] sm:$0xff] }
 0x2b5   : > { %13837 = vst [vmem:[#allocation52_spill] sm:$0xff] %v10189_v29  ;;  %v10213_v2 = vsel %vm3158_vm4, %v3141_v3, %v6989_v41  ;;  %v10217_v8 = vsel %vm3125_vm3, %v9987_v63, %v6933_v20  ;;  %v10221_v24 = vsel %vm3125_vm3, %v9990_v26, %v6934_v23  ;;  %v6964_v13 = vunpack.i.h.bf16 %v13842_v46  ;;  %v13843_v3 = vld [vmem:[#allocation66_spill] sm:$0xff]  ;;  %v13853_v26 = vld [vmem:[#allocation157_spill] sm:$0xff] }
 0x2b6   : > { %v10225_v45 = vsel %vm3158_vm4, %v3146_v16, %v7003_v35  ;;  %v10228_v10 = vsel %vm3158_vm4, %v3147_v34, %v7004_v51  ;;  %v3159_v52 = vsel %vm3158_vm4, %v3126_v21, %v6953_v32  ;;  %v7033_v41 = vunpack.i.l.bf16 %v13843_v3  ;;  %v13846_v34 = vld [vmem:[#allocation166_spill] sm:$0xff]  ;;  %v13847_v51 = vld [vmem:[#allocation109_spill] sm:$0xff] }
 0x2b7   : > { %v3160_v63 = vsel %vm3158_vm4, %v3127_v39, %v6954_v62  ;;  %v10237_v23 = vsel %vm3158_vm4, %v3132_v30, %v6968_v0  ;;  %v7113_v16 = vunpack.i.l.bf16 %v13845_v59  ;;  %v10245_v21 = vsel %vm3158_vm4, %v3133_v17, %v6969_v11  ;;  %v13850_v17 = vld [vmem:[#allocation114_spill] sm:$0xff]  ;;  %v13855_v20 = vld [vmem:[#allocation41_spill] sm:$0xff] }
 0x2b8   : > { %3581 = vrot.lane.b32.xlu2 %v9501_v22, %s7943_s28  ;;  %v10249_v22 = vsel %vm3158_vm4, %v10032_v6, %v6963_v55  ;;  %v7034_v39 = vunpack.i.h.bf16 %v13843_v3  ;;  %v7193_v30 = vunpack.i.l.bf16 %v13847_v51  ;;  %v10257_v32 = vsel %vm3158_vm4, %v10035_v54, %v6964_v13  ;;  %v13851_v3 = vld [vmem:[#allocation143_spill] sm:$0xff] }
 0x2b9   : > { %3579 = vrot.lane.b32.xlu1 %v9496_v56, %s7943_s28  ;;  %v13849_v56 = vld [vmem:[#allocation67_spill] sm:$0xff]  ;;  %v7273_v11 = vunpack.i.l.bf16 %v13850_v17  ;;  %v3192_v55 = vsel %vm3191_vm5, %v3159_v52, %v7033_v41  ;;  %v6979_v54 = vunpack.i.h.bf16 %v13852_v19  ;;  %v6978_v29 = vunpack.i.l.bf16 %v13852_v19  ;;  %v6202_v52 = vld [vmem:[%s8022_s27 + $0x1d2] sm:$0xff] }
 0x2ba   : > { %3577 = vrot.lane.b32.xlu0 %v13846_v34, %s7943_s28  ;;  %v10253_v35 = vpop.permute.xlu2 %7736  ;;  %v6984_v62 = vunpack.i.h.bf16 %v13849_v56  ;;  %v6983_v0 = vunpack.i.l.bf16 %v13849_v56  ;;  %v7353_v34 = vunpack.i.l.bf16 %v13851_v3  ;;  %v3225_v13 = vsel %vm3224_vm6, %v3192_v55, %v7113_v16 }
 0x2bb   : > { %13848 = vst [vmem:[#allocation53_spill] sm:$0xff] %v10253_v35  ;;  %v10262_v46 = vpop.permute.xlu1 %7686  ;;  %v7433_v56 = vunpack.i.l.bf16 %v13853_v26  ;;  %v3193_v49 = vsel %vm3191_vm5, %v3160_v63, %v7034_v39  ;;  %v3258_v4 = vsel %vm3257_vm8, %v3225_v13, %v7193_v30  ;;  %v13854_v35 = vld [vmem:[#allocation162_spill] sm:$0xff]  ;;  %v7593_v27 = vunpack.i.l.bf16 %v13855_v20 }
 0x2bc   : > { %v10264_v6 = vpop.permute.xlu0 %7681  ;;  %v7513_v61 = vunpack.i.l.bf16 %v13854_v35  ;;  %v3291_v41 = vsel %vm3290_vm7, %v3258_v4, %v7273_v11  ;;  %v10280_v16 = vsel %vm3158_vm4, %v10162_v53, %v6983_v0  ;;  %v7673_v19 = vunpack.i.l.bf16 %v10187_v12  ;;  %v13856_v63 = vld [vmem:[#allocation170_spill] sm:$0xff]  ;;  %v13857_v4 = vld [vmem:[#allocation69_spill] sm:$0xff]  ;;  %v13858_v53 = vld [vmem:[#allocation171_spill] sm:$0xff] }
 0x2bd   : > { %v3324_v55 = vsel %vm3323_vm9, %v3291_v41, %v7353_v34  ;;  %v10288_v39 = vsel %vm3158_vm4, %v10166_v43, %v6984_v62  ;;  %v7049_v30 = vunpack.i.h.bf16 %v13857_v4  ;;  %v7114_v11 = vunpack.i.h.bf16 %v13845_v59 }
 0x2be   : > { %v3357_v13 = vsel %vm3356_vm11, %v3324_v55, %v7433_v56  ;;  %v7194_v0 = vunpack.i.h.bf16 %v13847_v51  ;;  %v7274_v43 = vunpack.i.h.bf16 %v13850_v17  ;;  %v7048_v55 = vunpack.i.l.bf16 %v13857_v4 }
 0x2bf   : > { %v3390_v41 = vsel %vm3389_vm10, %v3357_v13, %v7513_v61  ;;  %v7354_v51 = vunpack.i.h.bf16 %v13851_v3  ;;  %v3226_v17 = vsel %vm3224_vm6, %v3193_v49, %v7114_v11  ;;  %v7434_v1 = vunpack.i.h.bf16 %v13853_v26 }
 0x2c0   : > { %3587 = vrot.lane.b32.xlu2 %v13856_v63, %s7943_s28  ;;  %v3423_v56 = vsel %vm3422_vm12, %v3390_v41, %v7593_v27  ;;  %v3259_v4 = vsel %vm3257_vm8, %v3226_v17, %v7194_v0  ;;  %v10318_v3 = vsel %vm3158_vm4, %v10069_v33, %v6978_v29  ;;  %v10322_v49 = vsel %vm3158_vm4, %v10072_v5, %v6979_v54  ;;  %v13863_v54 = vld [vmem:[#allocation72_spill] sm:$0xff] }
 0x2c1   : > { %3585 = vrot.lane.b32.xlu1 %v13858_v53, %s7943_s28  ;;  %v3456_v61 = vsel %vm3455_vm14, %v3423_v56, %v7673_v19  ;;  %v3292_v26 = vsel %vm3290_vm7, %v3259_v4, %v7274_v43  ;;  %v7594_v19 = vunpack.i.h.bf16 %v13855_v20  ;;  %v10328_v11 = vsel %vm3191_vm5, %v10237_v23, %v7048_v55  ;;  %v7856_v43 = vld [vmem:[%s8022_s27 + $0x232] sm:$0xff] }
 0x2c2   : > { %3583 = vrot.lane.b32.xlu0 %v6202_v52, %s7943_s28  ;;  %v7752_v34 = vpop.permute.xlu2 %7751  ;;  %v13861_v52 = vld [vmem:[#allocation70_spill] sm:$0xff]  ;;  %v3325_v33 = vsel %vm3323_vm9, %v3292_v26, %v7354_v51  ;;  %v7674_v29 = vunpack.i.h.bf16 %v10187_v12  ;;  %v7063_v20 = vunpack.i.l.bf16 %v13863_v54 }
 0x2c3   : > { %v7753_v62 = vunpack.i.l.bf16 %v7752_v34  ;;  %v10299_v63 = vpop.permute.xlu1 %7701  ;;  %v6999_v53 = vunpack.i.h.bf16 %v13861_v52  ;;  %v6998_v13 = vunpack.i.l.bf16 %v13861_v52  ;;  %v3358_v0 = vsel %vm3356_vm11, %v3325_v33, %v7434_v1  ;;  %v6210_v33 = vld [vmem:[%s8022_s27 + $0x272] sm:$0xff] }
 0x2c4   : > { %13859 = vst [vmem:[#allocation54_spill] sm:$0xff] %v10299_v63  ;;  %v10301_v59 = vpop.permute.xlu0 %7696  ;;  %v13862_v63 = vld [vmem:[#allocation71_spill] sm:$0xff]  ;;  %v7754_v23 = vunpack.i.h.bf16 %v7752_v34  ;;  %v7064_v34 = vunpack.i.h.bf16 %v13863_v54  ;;  %v10373_v17 = vsel %vm3191_vm5, %v10280_v16, %v7063_v20 }
 0x2c5   : > { %13860 = vst [vmem:[#allocation55_spill] sm:$0xff] %v10301_v59  ;;  %v3489_v15 = vsel %vm3488_vm13, %v3456_v61, %v7753_v62  ;;  %v6994_v27 = vunpack.i.h.bf16 %v13862_v63  ;;  %v6993_v41 = vunpack.i.l.bf16 %v13862_v63  ;;  %v7514_v59 = vunpack.i.h.bf16 %v13854_v35  ;;  %v7855_v35 = vld [vmem:[%s8022_s27 + $0x242] sm:$0xff]  ;;  %v13864_v63 = vld [vmem:[#allocation73_spill] sm:$0xff] }
 0x2c6   : > { %5260 = vmatmul.f32.vlgmr.msra.gmra.mxu0 %v3489_v15  ;;  %v10332_v15 = vsel %vm3191_vm5, %v10245_v21, %v7049_v30  ;;  %v3177_v5 = vsel %vm3158_vm4, %v10198_v40, %v6998_v13  ;;  %v7857_v21 = vld [vmem:[%s8022_s27 + $0x222] sm:$0xff]  ;;  %v3178_v12 = vsel %vm3158_vm4, %v10202_v44, %v6999_v53  ;;  %v7014_v56 = vunpack.i.h.bf16 %v13864_v63 }
 0x2c7   : > { %v10350_v30 = vsel %vm3158_vm4, %v10089_v18, %v6993_v41  ;;  %v10354_v40 = vsel %vm3158_vm4, %v10096_v42, %v6994_v27  ;;  %v3391_v1 = vsel %vm3389_vm10, %v3358_v0, %v7514_v59  ;;  %v7013_v55 = vunpack.i.l.bf16 %v13864_v63  ;;  %v13865_v53 = vld [vmem:[#allocation74_spill] sm:$0xff]  ;;  %v13866_v61 = vld [vmem:[#allocation75_spill] sm:$0xff] }
 0x2c8   : > { %3593 = vrot.lane.b32.xlu2 %v7855_v35, %s7943_s28  ;;  %v3424_v18 = vsel %vm3422_vm12, %v3391_v1, %v7594_v19  ;;  %v7009_v42 = vunpack.i.h.bf16 %v13865_v53  ;;  %v7008_v51 = vunpack.i.l.bf16 %v13865_v53  ;;  %v7078_v13 = vunpack.i.l.bf16 %v13866_v61  ;;  %v13867_v41 = vld [vmem:[#allocation78_spill] sm:$0xff]  ;;  %v13868_v35 = vld [vmem:[#allocation79_spill] sm:$0xff] }
 0x2c9   : > { %3591 = vrot.lane.b32.xlu1 %v7856_v43, %s7943_s28  ;;  %v3457_v59 = vsel %vm3455_vm14, %v3424_v18, %v7674_v29  ;;  %v7079_v27 = vunpack.i.h.bf16 %v13866_v61  ;;  %v7093_v4 = vunpack.i.l.bf16 %v13867_v41  ;;  %v7094_v19 = vunpack.i.h.bf16 %v13867_v41  ;;  %v13869_v43 = vld [vmem:[#allocation80_spill] sm:$0xff]  ;;  %v13870_v53 = vld [vmem:[#allocation82_spill] sm:$0xff] }
 0x2ca   : > { %3589 = vrot.lane.b32.xlu0 %v7857_v21, %s7943_s28  ;;  %v10356_v62 = vpop.permute.xlu2 %7766  ;;  %v3490_v26 = vsel %vm3488_vm13, %v3457_v59, %v7754_v23  ;;  %v7044_v54 = vunpack.i.h.bf16 %v13868_v35  ;;  %v7043_v0 = vunpack.i.l.bf16 %v13868_v35  ;;  %v7038_v29 = vunpack.i.l.bf16 %v13869_v43 }
 0x2cb   : > { %v10362_v44 = vpop.permute.xlu1 %7716  ;;  %v10385_v16 = vsel %vm3191_vm5, %v10288_v39, %v7064_v34  ;;  %v3183_v20 = vsel %vm3158_vm4, %v10217_v8, %v7013_v55  ;;  %v3184_v23 = vsel %vm3158_vm4, %v10221_v24, %v7014_v56  ;;  %v7039_v21 = vunpack.i.h.bf16 %v13869_v43  ;;  %v13871_v56 = vld [vmem:[#allocation83_spill] sm:$0xff] }
 0x2cc   : > { %v10364_v52 = vpop.permute.xlu0 %7711  ;;  %v3181_v1 = vsel %vm3158_vm4, %v10108_v31, %v7008_v51  ;;  %v3182_v63 = vsel %vm3158_vm4, %v10111_v7, %v7009_v42  ;;  %v10397_v18 = vsel %vm3191_vm5, %v3177_v5, %v7078_v13  ;;  %v7058_v39 = vunpack.i.l.bf16 %v13870_v53  ;;  %v7858_v55 = vld [vmem:[%s8022_s27 + $0x262] sm:$0xff]  ;;  %v7859_v7 = vld [vmem:[%s8022_s27 + $0x252] sm:$0xff] }
 0x2cd   : > { %v10402_v8 = vsel %vm3191_vm5, %v3178_v12, %v7079_v27  ;;  %v10405_v24 = vsel %vm3191_vm5, %v3183_v20, %v7093_v4  ;;  %v7059_v34 = vunpack.i.h.bf16 %v13870_v53  ;;  %v7053_v31 = vunpack.i.l.bf16 %v13871_v56  ;;  %v13874_v27 = vld [vmem:[#allocation84_spill] sm:$0xff] }
 0x2ce   : > { %5263 = vmatmul.f32.gmra.mxu0 %v3490_v26  ;;  %v10414_v5 = vsel %vm3191_vm5, %v3184_v23, %v7094_v19  ;;  %v3196_v12 = vsel %vm3191_vm5, %v10249_v22, %v7043_v0  ;;  %v3197_v42 = vsel %vm3191_vm5, %v10257_v32, %v7044_v54  ;;  %v3194_v51 = vsel %vm3191_vm5, %v10148_v57, %v7038_v29  ;;  %v13877_v26 = vld [vmem:[#allocation85_spill] sm:$0xff]  ;;  %v13878_v19 = vld [vmem:[#allocation86_spill] sm:$0xff]  ;;  %v13879_v29 = vld [vmem:[#allocation87_spill] sm:$0xff] }
 0x2cf   : > { %13872 = vst [vmem:[#allocation56_spill] sm:$0xff] %v10414_v5  ;;  %v10426_v13 = vsel %vm3191_vm5, %v10152_v25, %v7039_v21  ;;  %v7054_v59 = vunpack.i.h.bf16 %v13871_v56  ;;  %v7124_v41 = vunpack.i.h.bf16 %v13874_v27  ;;  %v7123_v4 = vunpack.i.l.bf16 %v13874_v27  ;;  %v6213_v23 = vld [vmem:[%s8022_s27 + $0x2c2] sm:$0xff]  ;;  %v13881_v56 = vld [vmem:[#allocation89_spill] sm:$0xff] }
 0x2d0   : > { %3599 = vrot.lane.b32.xlu2 %v6210_v33, %s7943_s28  ;;  %v3202_v57 = vsel %vm3191_vm5, %v10318_v3, %v7058_v39  ;;  %v7074_v33 = vunpack.i.h.bf16 %v13877_v26  ;;  %v7073_v25 = vunpack.i.l.bf16 %v13877_v26  ;;  %v7068_v35 = vunpack.i.l.bf16 %v13878_v19  ;;  %v13880_v3 = vld [vmem:[#allocation88_spill] sm:$0xff]  ;;  %v6211_v27 = vld [vmem:[%s8022_s27 + $0x2a2] sm:$0xff] }
 0x2d1   : > { %3597 = vrot.lane.b32.xlu1 %v7858_v55, %s7943_s28  ;;  %v3203_v54 = vsel %vm3191_vm5, %v10322_v49, %v7059_v34  ;;  %v3200_v0 = vsel %vm3191_vm5, %v10175_v50, %v7053_v31  ;;  %v7069_v43 = vunpack.i.h.bf16 %v13878_v19  ;;  %v7138_v20 = vunpack.i.l.bf16 %v13879_v29  ;;  %v6214_v5 = vld [vmem:[%s8022_s27 + $0x2d2] sm:$0xff] }
 0x2d2   : > { %3595 = vrot.lane.b32.xlu0 %v7859_v7, %s7943_s28  ;;  %v10422_v61 = vpop.permute.xlu2 %7781  ;;  %v7139_v21 = vunpack.i.h.bf16 %v13879_v29  ;;  %v7089_v53 = vunpack.i.h.bf16 %v13880_v3  ;;  %v7088_v39 = vunpack.i.l.bf16 %v13880_v3  ;;  %v7083_v55 = vunpack.i.l.bf16 %v13881_v56  ;;  %v6212_v7 = vld [vmem:[%s8022_s27 + $0x2b2] sm:$0xff]  ;;  %v13882_v3 = vld [vmem:[#allocation90_spill] sm:$0xff] }
 0x2d3   : > { %13873 = vst [vmem:[#allocation2_spill] sm:$0xff] %v10422_v61  ;;  %v10431_v22 = vpop.permute.xlu1 %7731  ;;  %v3201_v49 = vsel %vm3191_vm5, %v10178_v36, %v7054_v59  ;;  %v10456_v50 = vsel %vm3224_vm6, %v3196_v12, %v7123_v4  ;;  %v10459_v34 = vsel %vm3224_vm6, %v3197_v42, %v7124_v41  ;;  %v7084_v31 = vunpack.i.h.bf16 %v13881_v56  ;;  %v13883_v59 = vld [vmem:[#allocation94_spill] sm:$0xff] }
 0x2d4   : > { %13875 = vst [vmem:[#allocation3_spill] sm:$0xff] %v10431_v22  ;;  %v10433_v32 = vpop.permute.xlu0 %7726  ;;  %v3208_v26 = vsel %vm3191_vm5, %v10350_v30, %v7073_v25  ;;  %v3209_v19 = vsel %vm3191_vm5, %v10354_v40, %v7074_v33  ;;  %v10468_v29 = vsel %vm3191_vm5, %v10207_v38, %v7068_v35  ;;  %v7153_v36 = vunpack.i.l.bf16 %v13882_v3  ;;  %v13885_v25 = vld [vmem:[#allocation93_spill] sm:$0xff] }
 0x2d5   : > { %13876 = vst [vmem:[#allocation59_spill] sm:$0xff] %v10433_v32  ;;  %v10474_v12 = vsel %vm3191_vm5, %v10213_v2, %v7069_v43  ;;  %v10477_v42 = vsel %vm3224_vm6, %v3202_v57, %v7138_v20  ;;  %v7154_v30 = vunpack.i.h.bf16 %v13882_v3  ;;  %v7118_v41 = vunpack.i.l.bf16 %v13883_v59  ;;  %v13886_v43 = vld [vmem:[#allocation99_spill] sm:$0xff]  ;;  %v13896_v32 = vld [vmem:[#allocation40_spill] sm:$0xff] }
 0x2d6   : > { %v10484_v38 = vsel %vm3224_vm6, %v3203_v54, %v7139_v21  ;;  %v3214_v40 = vsel %vm3191_vm5, %v3181_v1, %v7088_v39  ;;  %v3215_v4 = vsel %vm3191_vm5, %v3182_v63, %v7089_v53  ;;  %v10490_v2 = vsel %vm3191_vm5, %v10225_v45, %v7083_v55  ;;  %v13890_v53 = vld [vmem:[#allocation128_spill] sm:$0xff] }
 0x2d7   : > { %13884 = vst [vmem:[#allocation12_spill] sm:$0xff] %v10484_v38  ;;  %v10496_v33 = vsel %vm3191_vm5, %v10228_v10, %v7084_v31  ;;  %v7169_v35 = vunpack.i.h.bf16 %v13885_v25  ;;  %v7168_v54 = vunpack.i.l.bf16 %v13885_v25  ;;  %v7198_v20 = vunpack.i.l.bf16 %v13886_v43  ;;  %v13892_v31 = vld [vmem:[#allocation142_spill] sm:$0xff]  ;;  %v6216_v25 = vld [vmem:[%s8022_s27 + $0x2f2] sm:$0xff] }
 0x2d8   : > { %3605 = vrot.lane.b32.xlu2 %v6213_v23, %s7943_s28  ;;  %v10506_v45 = vsel %vm3224_vm6, %v3208_v26, %v7153_v36  ;;  %v7119_v10 = vunpack.i.h.bf16 %v13883_v59  ;;  %v7278_v39 = vunpack.i.l.bf16 %v13890_v53  ;;  %v10512_v56 = vsel %vm3224_vm6, %v3209_v19, %v7154_v30  ;;  %v13893_v26 = vld [vmem:[#allocation98_spill] sm:$0xff] }
 0x2d9   : > { %3603 = vrot.lane.b32.xlu1 %v6212_v7, %s7943_s28  ;;  %v3227_v55 = vsel %vm3224_vm6, %v3194_v51, %v7118_v41  ;;  %v13891_v7 = vld [vmem:[#allocation97_spill] sm:$0xff]  ;;  %v7358_v3 = vunpack.i.l.bf16 %v13892_v31  ;;  %v7129_v36 = vunpack.i.h.bf16 %v13893_v26  ;;  %v7128_v21 = vunpack.i.l.bf16 %v13893_v26  ;;  %v6215_v23 = vld [vmem:[%s8022_s27 + $0x2e2] sm:$0xff] }
 0x2da   : > { %3601 = vrot.lane.b32.xlu0 %v6211_v27, %s7943_s28  ;;  %v10492_v57 = vpop.permute.xlu2 %7796  ;;  %v7133_v27 = vunpack.i.l.bf16 %v13891_v7  ;;  %v10525_v19 = vsel %vm3224_vm6, %v3214_v40, %v7168_v54  ;;  %v10528_v51 = vsel %vm3224_vm6, %v3215_v4, %v7169_v35  ;;  %v3260_v30 = vsel %vm3257_vm8, %v3227_v55, %v7198_v20  ;;  %v13895_v41 = vld [vmem:[#allocation179_spill] sm:$0xff]  ;;  %v13897_v54 = vld [vmem:[#allocation100_spill] sm:$0xff] }
 0x2db   : > { %v10501_v1 = vpop.permute.xlu1 %7746  ;;  %v7518_v22 = vunpack.i.l.bf16 %v13895_v41  ;;  %v7199_v61 = vunpack.i.h.bf16 %v13886_v43  ;;  %v3293_v26 = vsel %vm3290_vm7, %v3260_v30, %v7278_v39  ;;  %v7598_v38 = vunpack.i.l.bf16 %v13896_v32 }
 0x2dc   : > { %13887 = vst [vmem:[#allocation6_spill] sm:$0xff] %v10501_v1  ;;  %v10503_v63 = vpop.permute.xlu0 %7741  ;;  %v7134_v1 = vunpack.i.h.bf16 %v13891_v7  ;;  %v3228_v7 = vsel %vm3224_vm6, %v10426_v13, %v7119_v10  ;;  %v3233_v40 = vsel %vm3224_vm6, %v3200_v0, %v7133_v27  ;;  %v7148_v4 = vunpack.i.l.bf16 %v13897_v54 }
 0x2dd   : > { %13888 = vst [vmem:[#allocation7_spill] sm:$0xff] %v10503_v63  ;;  %v13894_v63 = vld [vmem:[#allocation147_spill] sm:$0xff]  ;;  %v3326_v35 = vsel %vm3323_vm9, %v3293_v26, %v7358_v3  ;;  %v7678_v20 = vunpack.i.l.bf16 %v9949_v28  ;;  %v10547_v43 = vsel %vm3224_vm6, %v10328_v11, %v7128_v21  ;;  %v10551_v10 = vsel %vm3224_vm6, %v10332_v15, %v7129_v36 }
 0x2de   : > { %v7438_v59 = vunpack.i.l.bf16 %v13894_v63  ;;  %v3234_v13 = vsel %vm3224_vm6, %v3201_v49, %v7134_v1  ;;  %v7149_v55 = vunpack.i.h.bf16 %v13897_v54  ;;  %v3261_v15 = vsel %vm3257_vm8, %v3228_v7, %v7199_v61 }
 0x2df   : > { %v7279_v21 = vunpack.i.h.bf16 %v13890_v53  ;;  %v10567_v36 = vsel %vm3224_vm6, %v10468_v29, %v7148_v4  ;;  %v7359_v26 = vunpack.i.h.bf16 %v13892_v31  ;;  %v7439_v53 = vunpack.i.h.bf16 %v13894_v63  ;;  %v13902_v63 = vld [vmem:[#allocation104_spill] sm:$0xff] }
 0x2e0   : > { %3611 = vrot.lane.b32.xlu2 %v6216_v25, %s7943_s28  ;;  %v3359_v0 = vsel %vm3356_vm11, %v3326_v35, %v7438_v59  ;;  %13899 = vst [vmem:[#allocation5_spill] sm:$0xff] %v10567_v36  ;;  %v13900_v59 = vld [vmem:[#allocation102_spill] sm:$0xff]  ;;  %v3240_v29 = vsel %vm3224_vm6, %v10474_v12, %v7149_v55  ;;  %v7159_v12 = vunpack.i.h.bf16 %v13902_v63  ;;  %v7679_v55 = vunpack.i.h.bf16 %v9949_v28  ;;  %v13913_v36 = vld [vmem:[#allocation185_spill] sm:$0xff] }
 0x2e1   : > { %3609 = vrot.lane.b32.xlu1 %v6215_v23, %s7943_s28  ;;  %v13898_v23 = vld [vmem:[#allocation101_spill] sm:$0xff]  ;;  %v3392_v1 = vsel %vm3389_vm10, %v3359_v0, %v7518_v22  ;;  %v7213_v30 = vunpack.i.l.bf16 %v13900_v59  ;;  %v6221_v35 = vld [vmem:[%s8022_s27 + $0x140] sm:$0xff]  ;;  %v7214_v22 = vunpack.i.h.bf16 %v13900_v59  ;;  %v13901_v0 = vld [vmem:[#allocation103_spill] sm:$0xff] }
 0x2e2   : > { %3607 = vrot.lane.b32.xlu0 %v6214_v5, %s7943_s28  ;;  %v10554_v39 = vpop.permute.xlu2 %7811  ;;  %v7144_v27 = vunpack.i.h.bf16 %v13898_v23  ;;  %v7143_v5 = vunpack.i.l.bf16 %v13898_v23  ;;  %v3425_v25 = vsel %vm3422_vm12, %v3392_v1, %v7598_v38  ;;  %v7163_v61 = vunpack.i.l.bf16 %v13901_v0  ;;  %v6218_v38 = vld [vmem:[%s8022_s27 + $0x312] sm:$0xff] }
 0x2e3   : > { %v10559_v49 = vpop.permute.xlu1 %7761  ;;  %v3458_v54 = vsel %vm3455_vm14, %v3425_v25, %v7678_v20  ;;  %v7164_v31 = vunpack.i.h.bf16 %v13901_v0  ;;  %v7519_v20 = vunpack.i.h.bf16 %v13895_v41  ;;  %v7158_v1 = vunpack.i.l.bf16 %v13902_v63  ;;  %v13907_v0 = vld [vmem:[#allocation134_spill] sm:$0xff] }
 0x2e4   : > { %v7757_v11 = vpop.permute.xlu0 %7756  ;;  %v10582_v4 = vsel %vm3224_vm6, %v10373_v17, %v7143_v5  ;;  %v10588_v23 = vsel %vm3224_vm6, %v10385_v16, %v7144_v27  ;;  %v7599_v25 = vunpack.i.h.bf16 %v13896_v32  ;;  %v10595_v17 = vsel %vm3257_vm8, %v3233_v40, %v7213_v30  ;;  %v7860_v16 = vld [vmem:[%s8022_s27 + $0x302] sm:$0xff]  ;;  %v13905_v30 = vld [vmem:[#allocation113_spill] sm:$0xff] }
 0x2e5   : > { %v7758_v3 = vunpack.i.l.bf16 %v7757_v11  ;;  %v10604_v27 = vsel %vm3257_vm8, %v3234_v13, %v7214_v22  ;;  %v10608_v32 = vsel %vm3224_vm6, %v10490_v2, %v7163_v61  ;;  %v7759_v5 = vunpack.i.h.bf16 %v7757_v11 }
 0x2e6   : > { %v10615_v28 = vsel %vm3224_vm6, %v10496_v33, %v7164_v31  ;;  %v10626_v11 = vsel %vm3224_vm6, %v10397_v18, %v7158_v1  ;;  %v7309_v33 = vunpack.i.h.bf16 %v13907_v0  ;;  %v13909_v31 = vld [vmem:[#allocation148_spill] sm:$0xff]  ;;  %v13910_v1 = vld [vmem:[#allocation153_spill] sm:$0xff]  ;;  %v13914_v18 = vld [vmem:[#allocation183_spill] sm:$0xff] }
 0x2e7   : > { %v3491_v7 = vsel %vm3488_vm13, %v3458_v54, %v7758_v3  ;;  %v3294_v3 = vsel %vm3290_vm7, %v3261_v15, %v7279_v21  ;;  %v13904_v21 = vld [vmem:[#allocation105_spill] sm:$0xff]  ;;  %v7389_v63 = vunpack.i.h.bf16 %v13909_v31  ;;  %v7549_v31 = vunpack.i.h.bf16 %v13913_v36 }
 0x2e8   : > { %5266 = vmatmul.f32.gmra.mxu0 %v3491_v7  ;;  %3681 = vrot.lane.b32.xlu2 %v6221_v35, %s7944_s29  ;;  %v3327_v41 = vsel %vm3323_vm9, %v3294_v3, %v7359_v26  ;;  %v7229_v59 = vunpack.i.h.bf16 %v13904_v21  ;;  %v7203_v26 = vunpack.i.l.bf16 %v13905_v30  ;;  %v13906_v35 = vld [vmem:[#allocation127_spill] sm:$0xff]  ;;  %v13908_v7 = vld [vmem:[#allocation132_spill] sm:$0xff]  ;;  %v7469_v3 = vunpack.i.h.bf16 %v13910_v1 }
 0x2e9   : > { %3615 = vrot.lane.b32.xlu1 %v6218_v38, %s7943_s28  ;;  %v3360_v40 = vsel %vm3356_vm11, %v3327_v41, %v7439_v53  ;;  %v7283_v22 = vunpack.i.l.bf16 %v13906_v35  ;;  %v10633_v53 = vsel %vm3224_vm6, %v10402_v8, %v7159_v12  ;;  %v7363_v38 = vunpack.i.l.bf16 %v13908_v7  ;;  %v13911_v41 = vld [vmem:[#allocation161_spill] sm:$0xff] }
 0x2ea   : > { %3613 = vrot.lane.b32.xlu0 %v7860_v16, %s7943_s28  ;;  %v10611_v15 = vpop.permute.xlu2 %7826  ;;  %v3393_v2 = vsel %vm3389_vm10, %v3360_v40, %v7519_v20  ;;  %v7443_v16 = vunpack.i.l.bf16 %v13911_v41  ;;  %v3273_v8 = vsel %vm3257_vm8, %v3240_v29, %v7229_v59  ;;  %v3262_v12 = vsel %vm3257_vm8, %v10456_v50, %v7203_v26 }
 0x2eb   : > { %13903 = vst [vmem:[#allocation9_spill] sm:$0xff] %v10611_v15  ;;  %v10619_v13 = vpop.permute.xlu1 %7776  ;;  %v3426_v61 = vsel %vm3422_vm12, %v3393_v2, %v7599_v25  ;;  %v6222_v25 = vld [vmem:[%s8022_s27 + $0x150] sm:$0xff]  ;;  %v13912_v2 = vld [vmem:[#allocation178_spill] sm:$0xff]  ;;  %v7603_v21 = vunpack.i.l.bf16 %v13914_v18  ;;  %v7709_v59 = vunpack.i.h.bf16 %v10115_v14  ;;  %v7683_v26 = vunpack.i.l.bf16 %v10264_v6 }
 0x2ec   : > { %v10621_v54 = vpop.permute.xlu0 %7771  ;;  %v3459_v20 = vsel %vm3455_vm14, %v3426_v61, %v7679_v55  ;;  %v7523_v15 = vunpack.i.l.bf16 %v13912_v2  ;;  %v3295_v55 = vsel %vm3290_vm7, %v3262_v12, %v7283_v22  ;;  %v3306_v61 = vsel %vm3290_vm7, %v3273_v8, %v7309_v33 }
 0x2ed   : > { %v3492_v40 = vsel %vm3488_vm13, %v3459_v20, %v7759_v5  ;;  %v7629_v5 = vunpack.i.h.bf16 %v9958_v37  ;;  %v7861_v20 = vld [vmem:[%s8022_s27 + $0x170] sm:$0xff]  ;;  %v3328_v29 = vsel %vm3323_vm9, %v3295_v55, %v7363_v38  ;;  %v3339_v50 = vsel %vm3323_vm9, %v3306_v61, %v7389_v63  ;;  %v13916_v63 = vld [vmem:[#allocation119_spill] sm:$0xff]  ;;  %v13919_v37 = vld [vmem:[#allocation138_spill] sm:$0xff] }
 0x2ee   : > { %v7204_v22 = vunpack.i.h.bf16 %v13905_v30  ;;  %v3372_v33 = vsel %vm3356_vm11, %v3339_v50, %v7469_v3  ;;  %v3361_v8 = vsel %vm3356_vm11, %v3328_v29, %v7443_v16  ;;  %v7763_v12 = vunpack.i.l.bf16 %v10559_v49 }
 0x2ef   : > { %v7233_v55 = vunpack.i.l.bf16 %v13916_v63  ;;  %v7284_v61 = vunpack.i.h.bf16 %v13906_v35  ;;  %v3405_v30 = vsel %vm3389_vm10, %v3372_v33, %v7549_v31  ;;  %v7393_v35 = vunpack.i.l.bf16 %v13919_v37  ;;  %v13920_v31 = vld [vmem:[#allocation168_spill] sm:$0xff] }
 0x2f0   : > { %5269 = vmatmul.f32.gmra.mxu0 %v3492_v40  ;;  %3687 = vrot.lane.b32.xlu2 %v7861_v20, %s7944_s29  ;;  %v7862_v40 = vld [vmem:[%s8022_s27 + $0x160] sm:$0xff]  ;;  %v3438_v50 = vsel %vm3422_vm12, %v3405_v30, %v7629_v5  ;;  %v7473_v33 = vunpack.i.l.bf16 %v13920_v31  ;;  %v7524_v5 = vunpack.i.h.bf16 %v13912_v2 }
 0x2f1   : > { %3685 = vrot.lane.b32.xlu1 %v7862_v40, %s7944_s29  ;;  %v13918_v40 = vld [vmem:[#allocation133_spill] sm:$0xff]  ;;  %v3471_v1 = vsel %vm3455_vm14, %v3438_v50, %v7709_v59  ;;  %v7234_v50 = vunpack.i.h.bf16 %v13916_v63  ;;  %v13926_v63 = vld [vmem:[#allocation146_spill] sm:$0xff] }
 0x2f2   : > { %3683 = vrot.lane.b32.xlu0 %v6222_v25, %s7944_s29  ;;  %v10665_v38 = vpop.permute.xlu2 %3557  ;;  %v3394_v25 = vsel %vm3389_vm10, %v3361_v8, %v7523_v15  ;;  %v7313_v3 = vunpack.i.l.bf16 %v13918_v40  ;;  %v7444_v15 = vunpack.i.h.bf16 %v13911_v41 }
 0x2f3   : > { %13915 = vst [vmem:[#allocation11_spill] sm:$0xff] %v10665_v38  ;;  %v10669_v20 = vpop.permute.xlu1 %7791  ;;  %v3427_v29 = vsel %vm3422_vm12, %v3394_v25, %v7603_v21  ;;  %v7364_v38 = vunpack.i.h.bf16 %v13908_v7  ;;  %v3263_v21 = vsel %vm3257_vm8, %v10459_v34, %v7204_v22  ;;  %v3274_v7 = vsel %vm3257_vm8, %v10506_v45, %v7233_v55  ;;  %v7863_v34 = vld [vmem:[%s8022_s27 + $0x1a0] sm:$0xff] }
 0x2f4   : > { %v10671_v14 = vpop.permute.xlu0 %7786  ;;  %v3460_v36 = vsel %vm3455_vm14, %v3427_v29, %v7683_v26  ;;  %v13921_v26 = vld [vmem:[#allocation184_spill] sm:$0xff]  ;;  %v3296_v41 = vsel %vm3290_vm7, %v3263_v21, %v7284_v61  ;;  %v7684_v22 = vunpack.i.h.bf16 %v10264_v6  ;;  %v7713_v55 = vunpack.i.l.bf16 %v10364_v52  ;;  %v7865_v61 = vld [vmem:[%s8022_s27 + $0x180] sm:$0xff]  ;;  %v13925_v21 = vld [vmem:[#allocation117_spill] sm:$0xff] }
 0x2f5   : > { %13917 = vst [vmem:[#allocation8_spill] sm:$0xff] %v10671_v14  ;;  %v7789_v16 = vunpack.i.h.bf16 %v10671_v14  ;;  %v3493_v8 = vsel %vm3488_vm13, %v3460_v36, %v7763_v12  ;;  %v7553_v59 = vunpack.i.l.bf16 %v13921_v26  ;;  %v3307_v36 = vsel %vm3290_vm7, %v3274_v7, %v7313_v3  ;;  %v13922_v12 = vld [vmem:[#allocation33_spill] sm:$0xff]  ;;  %v13924_v6 = vld [vmem:[#allocation112_spill] sm:$0xff] }
 0x2f6   : > { %v7633_v25 = vunpack.i.l.bf16 %v13922_v12  ;;  %v3329_v45 = vsel %vm3323_vm9, %v3296_v41, %v7364_v38  ;;  %v3340_v2 = vsel %vm3323_vm9, %v3307_v36, %v7393_v35  ;;  %v7764_v3 = vunpack.i.h.bf16 %v10559_v49 }
 0x2f7   : > { %v3504_v14 = vsel %vm3488_vm13, %v3471_v1, %v7789_v16  ;;  %v7604_v1 = vunpack.i.h.bf16 %v13914_v18  ;;  %v3362_v18 = vsel %vm3356_vm11, %v3329_v45, %v7444_v15  ;;  %v3373_v30 = vsel %vm3356_vm11, %v3340_v2, %v7473_v33 }
 0x2f8   : > { %5272 = vmatmul.f32.gmra.mxu0 %v3493_v8  ;;  %5305 = vmatmul.f32.vlgmr.msra.gmra.mxu2 %v3504_v14  ;;  %v7864_v14 = vld [vmem:[%s8022_s27 + $0x190] sm:$0xff]  ;;  %v7793_v38 = vunpack.i.l.bf16 %v10669_v20  ;;  %v7208_v29 = vunpack.i.l.bf16 %v13924_v6  ;;  %v3395_v15 = vsel %vm3389_vm10, %v3362_v18, %v7524_v5  ;;  %v3406_v33 = vsel %vm3389_vm10, %v3373_v30, %v7553_v59 }
 0x2f9   : > { %3693 = vrot.lane.b32.xlu2 %v7863_v34, %s7944_s29  ;;  %3691 = vrot.lane.b32.xlu1 %v7864_v14, %s7944_s29  ;;  %v7288_v49 = vunpack.i.l.bf16 %v13925_v21  ;;  %v7314_v7 = vunpack.i.h.bf16 %v13918_v40  ;;  %v3428_v41 = vsel %vm3422_vm12, %v3395_v15, %v7604_v1  ;;  %v3439_v36 = vsel %vm3422_vm12, %v3406_v33, %v7633_v25  ;;  %v13927_v5 = vld [vmem:[#allocation160_spill] sm:$0xff]  ;;  %v6229_v1 = vld [vmem:[%s8022_s27 + $0x1e0] sm:$0xff] }
 0x2fa   : > { %3689 = vrot.lane.b32.xlu0 %v7865_v61, %s7944_s29  ;;  %v10711_v16 = vpop.permute.xlu2 %3563  ;;  %v7394_v34 = vunpack.i.h.bf16 %v13919_v37  ;;  %v7368_v45 = vunpack.i.l.bf16 %v13926_v63  ;;  %v3461_v2 = vsel %vm3455_vm14, %v3428_v41, %v7684_v22  ;;  %v3472_v14 = vsel %vm3455_vm14, %v3439_v36, %v7713_v55  ;;  %v6230_v61 = vld [vmem:[%s8022_s27 + $0x1f0] sm:$0xff]  ;;  %v13928_v22 = vld [vmem:[#allocation165_spill] sm:$0xff] }
 0x2fb   : > { %13923 = vst [vmem:[#allocation13_spill] sm:$0xff] %v10711_v16  ;;  %v10715_v35 = vpop.permute.xlu1 %7806  ;;  %v7448_v18 = vunpack.i.l.bf16 %v13927_v5  ;;  %v7474_v59 = vunpack.i.h.bf16 %v13920_v31  ;;  %v3494_v30 = vsel %vm3488_vm13, %v3461_v2, %v7764_v3  ;;  %v3505_v40 = vsel %vm3488_vm13, %v3472_v14, %v7793_v38 }
 0x2fc   : > { %v10717_v8 = vpop.permute.xlu0 %7801  ;;  %v3264_v25 = vsel %vm3257_vm8, %v10547_v43, %v7208_v29  ;;  %v3275_v37 = vsel %vm3257_vm8, %v10512_v56, %v7234_v50  ;;  %v7528_v15 = vunpack.i.l.bf16 %v13928_v22  ;;  %v7554_v55 = vunpack.i.h.bf16 %v13921_v26  ;;  %v7866_v50 = vld [vmem:[%s8022_s27 + $0x1b0] sm:$0xff] }
 0x2fd   : > { %v3297_v31 = vsel %vm3290_vm7, %v3264_v25, %v7288_v49  ;;  %v3308_v3 = vsel %vm3290_vm7, %v3275_v37, %v7314_v7  ;;  %v7634_v38 = vunpack.i.h.bf16 %v13922_v12  ;;  %v7608_v33 = vunpack.i.l.bf16 %v9874_v9  ;;  %v13932_v25 = vld [vmem:[#allocation152_spill] sm:$0xff] }
 0x2fe   : > { %v3341_v43 = vsel %vm3323_vm9, %v3308_v3, %v7394_v34  ;;  %v3330_v56 = vsel %vm3323_vm9, %v3297_v31, %v7368_v45  ;;  %v7688_v29 = vunpack.i.l.bf16 %v10262_v46  ;;  %v7714_v26 = vunpack.i.h.bf16 %v10364_v52  ;;  %v13930_v45 = vld [vmem:[#allocation118_spill] sm:$0xff] }
 0x2ff   : > { %v3363_v49 = vsel %vm3356_vm11, %v3330_v56, %v7448_v18  ;;  %v3374_v12 = vsel %vm3356_vm11, %v3341_v43, %v7474_v59  ;;  %v7768_v7 = vunpack.i.l.bf16 %v10356_v62  ;;  %v7794_v41 = vunpack.i.h.bf16 %v10669_v20 }
 0x300   : > { %5275 = vmatmul.f32.gmra.mxu0 %v3494_v30  ;;  %5308 = vmatmul.f32.gmra.mxu2 %v3505_v40  ;;  %v7209_v34 = vunpack.i.h.bf16 %v13924_v6  ;;  %v7238_v2 = vunpack.i.l.bf16 %v13930_v45  ;;  %v3407_v18 = vsel %vm3389_vm10, %v3374_v12, %v7554_v55  ;;  %v7289_v59 = vunpack.i.h.bf16 %v13925_v21  ;;  %v13931_v30 = vld [vmem:[#allocation123_spill] sm:$0xff] }
 0x301   : > { %3699 = vrot.lane.b32.xlu2 %v6230_v61, %s7944_s29  ;;  %3697 = vrot.lane.b32.xlu1 %v6229_v1, %s7944_s29  ;;  %v3396_v61 = vsel %vm3389_vm10, %v3363_v49, %v7528_v15  ;;  %v7318_v40 = vunpack.i.l.bf16 %v13931_v30  ;;  %v3440_v1 = vsel %vm3422_vm12, %v3407_v18, %v7634_v38  ;;  %v7369_v6 = vunpack.i.h.bf16 %v13926_v63  ;;  %v13933_v55 = vld [vmem:[#allocation167_spill] sm:$0xff] }
 0x302   : > { %3695 = vrot.lane.b32.xlu0 %v7866_v50, %s7944_s29  ;;  %v10757_v36 = vpop.permute.xlu2 %3569  ;;  %v3429_v20 = vsel %vm3422_vm12, %v3396_v61, %v7608_v33  ;;  %v7398_v37 = vunpack.i.l.bf16 %v13932_v25  ;;  %v3473_v3 = vsel %vm3455_vm14, %v3440_v1, %v7714_v26  ;;  %v7449_v15 = vunpack.i.h.bf16 %v13927_v5 }
 0x303   : > { %13929 = vst [vmem:[#allocation10_spill] sm:$0xff] %v10757_v36  ;;  %v10761_v52 = vpop.permute.xlu1 %7821  ;;  %v3462_v31 = vsel %vm3455_vm14, %v3429_v20, %v7688_v29  ;;  %v7478_v43 = vunpack.i.l.bf16 %v13933_v55  ;;  %v3506_v56 = vsel %vm3488_vm13, %v3473_v3, %v7794_v41  ;;  %v3265_v38 = vsel %vm3257_vm8, %v10551_v10, %v7209_v34  ;;  %v13934_v29 = vld [vmem:[#allocation174_spill] sm:$0xff]  ;;  %v7868_v34 = vld [vmem:[%s8022_s27 + $0x210] sm:$0xff] }
 0x304   : > { %v10763_v14 = vpop.permute.xlu0 %7816  ;;  %v3495_v21 = vsel %vm3488_vm13, %v3462_v31, %v7768_v7  ;;  %v3276_v63 = vsel %vm3257_vm8, %v10626_v11, %v7238_v2  ;;  %v7529_v33 = vunpack.i.h.bf16 %v13928_v22  ;;  %v7558_v26 = vunpack.i.l.bf16 %v13934_v29  ;;  %v7867_v10 = vld [vmem:[%s8022_s27 + $0x220] sm:$0xff] }
 0x305   : > { %v3298_v5 = vsel %vm3290_vm7, %v3265_v38, %v7289_v59  ;;  %v3309_v50 = vsel %vm3290_vm7, %v3276_v63, %v7318_v40  ;;  %v7609_v49 = vunpack.i.h.bf16 %v9874_v9  ;;  %v7638_v12 = vunpack.i.l.bf16 %v10048_v48  ;;  %v7869_v2 = vld [vmem:[%s8022_s27 + $0x200] sm:$0xff]  ;;  %v13940_v38 = vld [vmem:[#allocation145_spill] sm:$0xff] }
 0x306   : > { %v3331_v11 = vsel %vm3323_vm9, %v3298_v5, %v7369_v6  ;;  %v3342_v22 = vsel %vm3323_vm9, %v3309_v50, %v7398_v37  ;;  %v7689_v7 = vunpack.i.h.bf16 %v10262_v46  ;;  %v7718_v41 = vunpack.i.l.bf16 %v10362_v44  ;;  %v13936_v20 = vld [vmem:[#allocation106_spill] sm:$0xff] }
 0x307   : > { %v3364_v9 = vsel %vm3356_vm11, %v3331_v11, %v7449_v15  ;;  %v3375_v61 = vsel %vm3356_vm11, %v3342_v22, %v7478_v43  ;;  %v7769_v18 = vunpack.i.h.bf16 %v10356_v62  ;;  %v7798_v59 = vunpack.i.l.bf16 %v10492_v57  ;;  %v13939_v43 = vld [vmem:[#allocation131_spill] sm:$0xff] }
 0x308   : > { %5278 = vmatmul.f32.gmra.mxu0 %v3495_v21  ;;  %5311 = vmatmul.f32.gmra.mxu2 %v3506_v56  ;;  %v7178_v46 = vunpack.i.l.bf16 %v13936_v20  ;;  %v7239_v1 = vunpack.i.h.bf16 %v13930_v45  ;;  %v3397_v31 = vsel %vm3389_vm10, %v3364_v9, %v7529_v33  ;;  %v3408_v3 = vsel %vm3389_vm10, %v3375_v61, %v7558_v26  ;;  %v13941_v33 = vld [vmem:[#allocation150_spill] sm:$0xff]  ;;  %v7870_v61 = vld [vmem:[%s8022_s27 + $0x250] sm:$0xff] }
 0x309   : > { %3705 = vrot.lane.b32.xlu2 %v7867_v10, %s7944_s29  ;;  %3703 = vrot.lane.b32.xlu1 %v7868_v34, %s7944_s29  ;;  %v7319_v15 = vunpack.i.h.bf16 %v13931_v30  ;;  %v7293_v62 = vunpack.i.l.bf16 %v13939_v43  ;;  %v3430_v21 = vsel %vm3422_vm12, %v3397_v31, %v7609_v49  ;;  %v3441_v56 = vsel %vm3422_vm12, %v3408_v3, %v7638_v12  ;;  %v13942_v49 = vld [vmem:[#allocation107_spill] sm:$0xff]  ;;  %v7872_v31 = vld [vmem:[%s8022_s27 + $0x230] sm:$0xff] }
 0x30a   : > { %3701 = vrot.lane.b32.xlu0 %v7869_v2, %s7944_s29  ;;  %v10803_v40 = vpop.permute.xlu2 %3575  ;;  %v7373_v63 = vunpack.i.l.bf16 %v13940_v38  ;;  %v7399_v45 = vunpack.i.h.bf16 %v13932_v25  ;;  %v3463_v5 = vsel %vm3455_vm14, %v3430_v21, %v7689_v7  ;;  %v3474_v50 = vsel %vm3455_vm14, %v3441_v56, %v7718_v41  ;;  %v13943_v7 = vld [vmem:[#allocation182_spill] sm:$0xff]  ;;  %v13945_v56 = vld [vmem:[#allocation108_spill] sm:$0xff] }
 0x30b   : > { %13935 = vst [vmem:[#allocation18_spill] sm:$0xff] %v10803_v40  ;;  %v10807_v6 = vpop.permute.xlu1 %3555  ;;  %v7453_v10 = vunpack.i.l.bf16 %v13941_v33  ;;  %v7479_v26 = vunpack.i.h.bf16 %v13933_v55  ;;  %v3496_v30 = vsel %vm3488_vm13, %v3463_v5, %v7769_v18  ;;  %v3507_v11 = vsel %vm3488_vm13, %v3474_v50, %v7798_v59  ;;  %v11275_v40 = vld [vmem:[%s8022_s27 + $0x201] sm:$0xff] }
 0x30c   : > { %13937 = vst [vmem:[#allocation14_spill] sm:$0xff] %v10807_v6  ;;  %v10809_v37 = vpop.permute.xlu0 %3553  ;;  %v7174_v22 = vunpack.i.h.bf16 %v13942_v49  ;;  %v3277_v12 = vsel %vm3257_vm8, %v10633_v53, %v7239_v1  ;;  %v7559_v25 = vunpack.i.h.bf16 %v13934_v29  ;;  %v7533_v34 = vunpack.i.l.bf16 %v13943_v7  ;;  %v7871_v1 = vld [vmem:[%s8022_s27 + $0x240] sm:$0xff]  ;;  %v11560_v6 = vld [vmem:[%s8022_s27 + $0x1b2] sm:$0xff] }
 0x30d   : > { %13938 = vst [vmem:[#allocation19_spill] sm:$0xff] %v10809_v37  ;;  %v3310_v41 = vsel %vm3290_vm7, %v3277_v12, %v7319_v15  ;;  %v3299_v55 = vsel %vm3290_vm7, %v10595_v17, %v7293_v62  ;;  %v7613_v2 = vunpack.i.l.bf16 %v9872_v47  ;;  %v7639_v9 = vunpack.i.h.bf16 %v10048_v48 }
 0x30e   : > { %v3332_v53 = vsel %vm3323_vm9, %v3299_v55, %v7373_v63  ;;  %v3343_v29 = vsel %vm3323_vm9, %v3310_v41, %v7399_v45  ;;  %v7693_v18 = vunpack.i.l.bf16 %v10039_v58  ;;  %v7719_v59 = vunpack.i.h.bf16 %v10362_v44  ;;  %v13949_v41 = vld [vmem:[#allocation151_spill] sm:$0xff] }
 0x30f   : > { %v3365_v17 = vsel %vm3356_vm11, %v3332_v53, %v7453_v10  ;;  %v3376_v48 = vsel %vm3356_vm11, %v3343_v29, %v7479_v26  ;;  %v7799_v3 = vunpack.i.h.bf16 %v10492_v57  ;;  %v7773_v15 = vunpack.i.l.bf16 %v10621_v54  ;;  %v13948_v10 = vld [vmem:[#allocation137_spill] sm:$0xff]  ;;  %v13950_v29 = vld [vmem:[#allocation156_spill] sm:$0xff] }
 0x310   : > { %5281 = vmatmul.f32.gmra.mxu0 %v3496_v30  ;;  %5314 = vmatmul.f32.gmra.mxu2 %v3507_v11  ;;  %v7173_v21 = vunpack.i.l.bf16 %v13942_v49  ;;  %v7243_v44 = vunpack.i.l.bf16 %v13945_v56  ;;  %v3398_v5 = vsel %vm3389_vm10, %v3365_v17, %v7533_v34  ;;  %v3409_v50 = vsel %vm3389_vm10, %v3376_v48, %v7559_v25 }
 0x311   : > { %3711 = vrot.lane.b32.xlu2 %v7870_v61, %s7944_s29  ;;  %3709 = vrot.lane.b32.xlu1 %v7871_v1, %s7944_s29  ;;  %v7294_v57 = vunpack.i.h.bf16 %v13939_v43  ;;  %v7323_v26 = vunpack.i.l.bf16 %v13948_v10  ;;  %v3431_v30 = vsel %vm3422_vm12, %v3398_v5, %v7613_v2  ;;  %v3442_v11 = vsel %vm3422_vm12, %v3409_v50, %v7639_v9  ;;  %v6238_v2 = vld [vmem:[%s8022_s27 + $0x290] sm:$0xff] }
 0x312   : > { %3707 = vrot.lane.b32.xlu0 %v7872_v31, %s7944_s29  ;;  %v10849_v62 = vpop.permute.xlu2 %3581  ;;  %v7374_v12 = vunpack.i.h.bf16 %v13940_v38  ;;  %v7403_v55 = vunpack.i.l.bf16 %v13949_v41  ;;  %v3464_v61 = vsel %vm3455_vm14, %v3431_v30, %v7693_v18  ;;  %v3475_v53 = vsel %vm3455_vm14, %v3442_v11, %v7719_v59  ;;  %v6237_v31 = vld [vmem:[%s8022_s27 + $0x280] sm:$0xff]  ;;  %v13951_v59 = vld [vmem:[#allocation28_spill] sm:$0xff] }
 0x313   : > { %13944 = vst [vmem:[#allocation21_spill] sm:$0xff] %v10849_v62  ;;  %v10853_v63 = vpop.permute.xlu1 %3561  ;;  %v7454_v34 = vunpack.i.h.bf16 %v13941_v33  ;;  %v7483_v25 = vunpack.i.l.bf16 %v13950_v29  ;;  %v3497_v43 = vsel %vm3488_vm13, %v3464_v61, %v7773_v15  ;;  %v3508_v1 = vsel %vm3488_vm13, %v3475_v53, %v7799_v3  ;;  %v13952_v15 = vld [vmem:[#allocation47_spill] sm:$0xff]  ;;  %v13954_v11 = vld [vmem:[#allocation116_spill] sm:$0xff] }
 0x314   : > { %13946 = vst [vmem:[#allocation23_spill] sm:$0xff] %v10853_v63  ;;  %v10855_v45 = vpop.permute.xlu0 %3559  ;;  %v10875_v38 = vsel %vm3224_vm6, %v10405_v24, %v7173_v21  ;;  %v3278_v9 = vsel %vm3257_vm8, %v10608_v32, %v7243_v44  ;;  %v7534_v18 = vunpack.i.h.bf16 %v13943_v7  ;;  %v7563_v33 = vunpack.i.l.bf16 %v13951_v59  ;;  %v7873_v24 = vld [vmem:[%s8022_s27 + $0x2a0] sm:$0xff]  ;;  %v11699_v62 = vld [vmem:[%s8022_s27 + $0x352] sm:$0xff] }
 0x315   : > { %13947 = vst [vmem:[#allocation20_spill] sm:$0xff] %v10855_v45  ;;  %v3300_v17 = vsel %vm3290_vm7, %v10604_v27, %v7294_v57  ;;  %v3311_v48 = vsel %vm3290_vm7, %v3278_v9, %v7323_v26  ;;  %v7614_v3 = vunpack.i.h.bf16 %v9872_v47  ;;  %v7643_v5 = vunpack.i.l.bf16 %v13952_v15  ;;  %v11378_v45 = vld [vmem:[%s8022_s27 + $0x251] sm:$0xff] }
 0x316   : > { %v3333_v32 = vsel %vm3323_vm9, %v3300_v17, %v7374_v12  ;;  %v3344_v7 = vsel %vm3323_vm9, %v3311_v48, %v7403_v55  ;;  %v7694_v21 = vunpack.i.h.bf16 %v10039_v58  ;;  %v7723_v44 = vunpack.i.l.bf16 %v10181_v60  ;;  %14067 = vst [vmem:[#allocation72_spill] sm:$0xff] %v11378_v45 }
 0x317   : > { %v3366_v27 = vsel %vm3356_vm11, %v3333_v32, %v7454_v34  ;;  %v3377_v47 = vsel %vm3356_vm11, %v3344_v7, %v7483_v25  ;;  %v7774_v50 = vunpack.i.h.bf16 %v10621_v54  ;;  %v7803_v57 = vunpack.i.l.bf16 %v10717_v8  ;;  %v13957_v34 = vld [vmem:[#allocation130_spill] sm:$0xff] }
 0x318   : > { %5284 = vmatmul.f32.gmra.mxu0 %v3497_v43  ;;  %5317 = vmatmul.f32.gmra.mxu2 %v3508_v1  ;;  %v7244_v30 = vunpack.i.h.bf16 %v13945_v56  ;;  %v7218_v58 = vunpack.i.l.bf16 %v13954_v11  ;;  %v3399_v61 = vsel %vm3389_vm10, %v3366_v27, %v7534_v18  ;;  %v3410_v53 = vsel %vm3389_vm10, %v3377_v47, %v7563_v33  ;;  %v13959_v33 = vld [vmem:[#allocation164_spill] sm:$0xff] }
 0x319   : > { %3717 = vrot.lane.b32.xlu2 %v7873_v24, %s7944_s29  ;;  %3715 = vrot.lane.b32.xlu1 %v6238_v2, %s7944_s29  ;;  %v7298_v25 = vunpack.i.l.bf16 %v13957_v34  ;;  %v7324_v54 = vunpack.i.h.bf16 %v13948_v10  ;;  %v3432_v43 = vsel %vm3422_vm12, %v3399_v61, %v7614_v3  ;;  %v3443_v1 = vsel %vm3422_vm12, %v3410_v53, %v7643_v5  ;;  %v13958_v2 = vld [vmem:[#allocation135_spill] sm:$0xff]  ;;  %v13960_v5 = vld [vmem:[#allocation181_spill] sm:$0xff]  ;;  %v7876_v61 = vld [vmem:[%s8022_s27 + $0x2b0] sm:$0xff] }
 0x31a   : > { %3713 = vrot.lane.b32.xlu0 %v6237_v31, %s7944_s29  ;;  %v10898_v26 = vpop.permute.xlu2 %3587  ;;  %v7378_v56 = vunpack.i.l.bf16 %v13958_v2  ;;  %v7404_v31 = vunpack.i.h.bf16 %v13949_v41  ;;  %v3465_v9 = vsel %vm3455_vm14, %v3432_v43, %v7694_v21  ;;  %v3476_v17 = vsel %vm3455_vm14, %v3443_v1, %v7723_v44  ;;  %v13961_v44 = vld [vmem:[#allocation16_spill] sm:$0xff]  ;;  %v13964_v1 = vld [vmem:[#allocation122_spill] sm:$0xff] }
 0x31b   : > { %13953 = vst [vmem:[#allocation25_spill] sm:$0xff] %v10898_v26  ;;  %v10902_v12 = vpop.permute.xlu1 %3567  ;;  %v7484_v18 = vunpack.i.h.bf16 %v13950_v29  ;;  %v7458_v48 = vunpack.i.l.bf16 %v13959_v33  ;;  %v3498_v24 = vsel %vm3488_vm13, %v3465_v9, %v7774_v50  ;;  %v3509_v10 = vsel %vm3488_vm13, %v3476_v17, %v7803_v57 }
 0x31c   : > { %13955 = vst [vmem:[#allocation26_spill] sm:$0xff] %v10902_v12  ;;  %v10904_v55 = vpop.permute.xlu0 %3565  ;;  %v3279_v3 = vsel %vm3257_vm8, %v10615_v28, %v7244_v30  ;;  %v3268_v41 = vsel %vm3257_vm8, %v10477_v42, %v7218_v58  ;;  %v7538_v32 = vunpack.i.l.bf16 %v13960_v5  ;;  %v7564_v7 = vunpack.i.h.bf16 %v13951_v59  ;;  %v7874_v28 = vld [vmem:[%s8022_s27 + $0x2d0] sm:$0xff]  ;;  %v13962_v59 = vld [vmem:[#allocation55_spill] sm:$0xff]  ;;  %v7875_v58 = vld [vmem:[%s8022_s27 + $0x2c0] sm:$0xff] }
 0x31d   : > { %13956 = vst [vmem:[#allocation29_spill] sm:$0xff] %v10904_v55  ;;  %v3301_v29 = vsel %vm3290_vm7, %v3268_v41, %v7298_v25  ;;  %v3312_v21 = vsel %vm3290_vm7, %v3279_v3, %v7324_v54  ;;  %v7618_v27 = vunpack.i.l.bf16 %v13961_v44  ;;  %v7644_v47 = vunpack.i.h.bf16 %v13952_v15  ;;  %v13968_v41 = vld [vmem:[#allocation141_spill] sm:$0xff] }
 0x31e   : > { %v3334_v42 = vsel %vm3323_vm9, %v3301_v29, %v7378_v56  ;;  %v3345_v50 = vsel %vm3323_vm9, %v3312_v21, %v7404_v31  ;;  %v7724_v57 = vunpack.i.h.bf16 %v10181_v60  ;;  %v7698_v30 = vunpack.i.l.bf16 %v13962_v59 }
 0x31f   : > { %v3378_v53 = vsel %vm3356_vm11, %v3345_v50, %v7484_v18  ;;  %v3367_v15 = vsel %vm3356_vm11, %v3334_v42, %v7458_v48  ;;  %v7778_v25 = vunpack.i.l.bf16 %v10619_v13  ;;  %v7804_v54 = vunpack.i.h.bf16 %v10717_v8  ;;  %v6245_v42 = vld [vmem:[%s8022_s27 + $0x320] sm:$0xff] }
 0x320   : > { %5287 = vmatmul.f32.gmra.mxu0 %v3498_v24  ;;  %5320 = vmatmul.f32.gmra.mxu2 %v3509_v10  ;;  %v7219_v60 = vunpack.i.h.bf16 %v13954_v11  ;;  %v7248_v56 = vunpack.i.l.bf16 %v13964_v1  ;;  %v3400_v17 = vsel %vm3389_vm10, %v3367_v15, %v7538_v32  ;;  %v3411_v18 = vsel %vm3389_vm10, %v3378_v53, %v7564_v7  ;;  %v13967_v24 = vld [vmem:[#allocation136_spill] sm:$0xff]  ;;  %v13969_v7 = vld [vmem:[#allocation173_spill] sm:$0xff] }
 0x321   : > { %3723 = vrot.lane.b32.xlu2 %v7874_v28, %s7944_s29  ;;  %3721 = vrot.lane.b32.xlu1 %v7875_v58, %s7944_s29  ;;  %v7299_v48 = vunpack.i.h.bf16 %v13957_v34  ;;  %v7328_v10 = vunpack.i.l.bf16 %v13967_v24  ;;  %v3433_v8 = vsel %vm3422_vm12, %v3400_v17, %v7618_v27  ;;  %v3444_v3 = vsel %vm3422_vm12, %v3411_v18, %v7644_v47  ;;  %v13970_v27 = vld [vmem:[#allocation12_spill] sm:$0xff] }
 0x322   : > { %3719 = vrot.lane.b32.xlu0 %v7876_v61, %s7944_s29  ;;  %v10944_v43 = vpop.permute.xlu2 %3593  ;;  %v7379_v11 = vunpack.i.h.bf16 %v13958_v2  ;;  %v7408_v29 = vunpack.i.l.bf16 %v13968_v41  ;;  %v3466_v21 = vsel %vm3455_vm14, %v3433_v8, %v7698_v30  ;;  %v3477_v28 = vsel %vm3455_vm14, %v3444_v3, %v7724_v57  ;;  %v13971_v57 = vld [vmem:[#allocation22_spill] sm:$0xff]  ;;  %v7877_v18 = vld [vmem:[%s8022_s27 + $0x2f0] sm:$0xff] }
 0x323   : > { %13963 = vst [vmem:[#allocation30_spill] sm:$0xff] %v10944_v43  ;;  %v10948_v31 = vpop.permute.xlu1 %3573  ;;  %v7459_v32 = vunpack.i.h.bf16 %v13959_v33  ;;  %v7488_v50 = vunpack.i.l.bf16 %v13969_v7  ;;  %v3499_v34 = vsel %vm3488_vm13, %v3466_v21, %v7778_v25  ;;  %v3510_v58 = vsel %vm3488_vm13, %v3477_v28, %v7804_v54  ;;  %v13972_v25 = vld [vmem:[#allocation38_spill] sm:$0xff]  ;;  %v6314_v43 = vld [vmem:[%s8022_s27 + $0x372] sm:$0xff] }
 0x324   : > { %13965 = vst [vmem:[#allocation27_spill] sm:$0xff] %v10948_v31  ;;  %v10950_v9 = vpop.permute.xlu0 %3571  ;;  %v3269_v47 = vsel %vm3257_vm8, %v13970_v27, %v7219_v60  ;;  %v3280_v2 = vsel %vm3257_vm8, %v10525_v19, %v7248_v56  ;;  %v7539_v30 = vunpack.i.h.bf16 %v13960_v5  ;;  %v7568_v61 = vunpack.i.l.bf16 %v13971_v57  ;;  %v13973_v56 = vld [vmem:[#allocation59_spill] sm:$0xff]  ;;  %v11682_v31 = vld [vmem:[%s8022_s27 + $0x332] sm:$0xff] }
 0x325   : > { %13966 = vst [vmem:[#allocation31_spill] sm:$0xff] %v10950_v9  ;;  %v3302_v33 = vsel %vm3290_vm7, %v3269_v47, %v7299_v48  ;;  %v3313_v53 = vsel %vm3290_vm7, %v3280_v2, %v7328_v10  ;;  %v7619_v15 = vunpack.i.h.bf16 %v13961_v44  ;;  %v7648_v54 = vunpack.i.l.bf16 %v13972_v25  ;;  %v7878_v48 = vld [vmem:[%s8022_s27 + $0x2e0] sm:$0xff]  ;;  %v13978_v2 = vld [vmem:[#allocation149_spill] sm:$0xff] }
 0x326   : > { %v3335_v60 = vsel %vm3323_vm9, %v3302_v33, %v7379_v11  ;;  %v3346_v19 = vsel %vm3323_vm9, %v3313_v53, %v7408_v29  ;;  %v7699_v5 = vunpack.i.h.bf16 %v13962_v59  ;;  %v7728_v17 = vunpack.i.l.bf16 %v13973_v56  ;;  %v13975_v59 = vld [vmem:[#allocation115_spill] sm:$0xff] }
 0x327   : > { %v3368_v44 = vsel %vm3356_vm11, %v3335_v60, %v7459_v32  ;;  %v3379_v10 = vsel %vm3356_vm11, %v3346_v19, %v7488_v50  ;;  %v7779_v8 = vunpack.i.h.bf16 %v10619_v13  ;;  %v7808_v3 = vunpack.i.l.bf16 %v10715_v35  ;;  %v13977_v13 = vld [vmem:[#allocation120_spill] sm:$0xff]  ;;  %v13979_v19 = vld [vmem:[#allocation163_spill] sm:$0xff] }
 0x328   : > { %5290 = vmatmul.f32.gmra.mxu0 %v3499_v34  ;;  %5323 = vmatmul.f32.gmra.mxu2 %v3510_v58  ;;  %v7223_v29 = vunpack.i.l.bf16 %v13975_v59  ;;  %v7249_v21 = vunpack.i.h.bf16 %v13964_v1  ;;  %v3401_v32 = vsel %vm3389_vm10, %v3368_v44, %v7539_v30  ;;  %v3412_v50 = vsel %vm3389_vm10, %v3379_v10, %v7568_v61  ;;  %v6248_v30 = vld [vmem:[%s8022_s27 + $0x350] sm:$0xff]  ;;  %v11679_v9 = vld [vmem:[%s8022_s27 + $0x342] sm:$0xff] }
 0x329   : > { %3729 = vrot.lane.b32.xlu2 %v6245_v42, %s7944_s29  ;;  %3727 = vrot.lane.b32.xlu1 %v7877_v18, %s7944_s29  ;;  %v7303_v34 = vunpack.i.l.bf16 %v13977_v13  ;;  %v7329_v58 = vunpack.i.h.bf16 %v13967_v24  ;;  %v3434_v27 = vsel %vm3422_vm12, %v3401_v32, %v7619_v15  ;;  %v3445_v47 = vsel %vm3422_vm12, %v3412_v50, %v7648_v54  ;;  %v6247_v15 = vld [vmem:[%s8022_s27 + $0x340] sm:$0xff]  ;;  %v6246_v44 = vld [vmem:[%s8022_s27 + $0x330] sm:$0xff] }
 0x32a   : > { %3725 = vrot.lane.b32.xlu0 %v7878_v48, %s7944_s29  ;;  %v10990_v11 = vpop.permute.xlu2 %3599  ;;  %v7409_v1 = vunpack.i.h.bf16 %v13968_v41  ;;  %v7383_v33 = vunpack.i.l.bf16 %v13978_v2  ;;  %v3467_v53 = vsel %vm3455_vm14, %v3434_v27, %v7699_v5  ;;  %v3478_v60 = vsel %vm3455_vm14, %v3445_v47, %v7728_v17  ;;  %v13980_v5 = vld [vmem:[#allocation169_spill] sm:$0xff]  ;;  %v13981_v32 = vld [vmem:[#allocation46_spill] sm:$0xff] }
 0x32b   : > { %13974 = vst [vmem:[#allocation32_spill] sm:$0xff] %v10990_v11  ;;  %v10994_v28 = vpop.permute.xlu1 %3579  ;;  %v7463_v18 = vunpack.i.l.bf16 %v13979_v19  ;;  %v7489_v61 = vunpack.i.h.bf16 %v13969_v7  ;;  %v3500_v48 = vsel %vm3488_vm13, %v3467_v53, %v7779_v8  ;;  %v3511_v24 = vsel %vm3488_vm13, %v3478_v60, %v7808_v3  ;;  %v13985_v53 = vld [vmem:[#allocation121_spill] sm:$0xff]  ;;  %v11643_v11 = vld [vmem:[%s8022_s27 + $0x2a2] sm:$0xff] }
 0x32c   : > { %v10996_v42 = vpop.permute.xlu0 %3577  ;;  %v3270_v41 = vsel %vm3257_vm8, %v10582_v4, %v7223_v29  ;;  %v3281_v54 = vsel %vm3257_vm8, %v10528_v51, %v7249_v21  ;;  %v7543_v10 = vunpack.i.l.bf16 %v13980_v5  ;;  %v7569_v17 = vunpack.i.h.bf16 %v13971_v57  ;;  %v13982_v29 = vld [vmem:[#allocation54_spill] sm:$0xff] }
 0x32d   : > { %13976 = vst [vmem:[#allocation60_spill] sm:$0xff] %v10996_v42  ;;  %v3303_v7 = vsel %vm3290_vm7, %v3270_v41, %v7303_v34  ;;  %v3314_v8 = vsel %vm3290_vm7, %v3281_v54, %v7329_v58  ;;  %v7649_v3 = vunpack.i.h.bf16 %v13972_v25  ;;  %v7623_v50 = vunpack.i.l.bf16 %v13981_v32  ;;  %v13983_v58 = vld [vmem:[#allocation2_spill] sm:$0xff]  ;;  %v13988_v41 = vld [vmem:[#allocation155_spill] sm:$0xff]  ;;  %v11640_v42 = vld [vmem:[%s8022_s27 + $0x2b2] sm:$0xff] }
 0x32e   : > { %v3347_v4 = vsel %vm3323_vm9, %v3314_v8, %v7409_v1  ;;  %v3336_v51 = vsel %vm3323_vm9, %v3303_v7, %v7383_v33  ;;  %v7703_v21 = vunpack.i.l.bf16 %v13982_v29  ;;  %v7729_v57 = vunpack.i.h.bf16 %v13973_v56 }
 0x32f   : > { %v3369_v34 = vsel %vm3356_vm11, %v3336_v51, %v7463_v18  ;;  %v3380_v25 = vsel %vm3356_vm11, %v3347_v4, %v7489_v61  ;;  %v7783_v27 = vunpack.i.l.bf16 %v13983_v58  ;;  %v7809_v47 = vunpack.i.h.bf16 %v10715_v35  ;;  %v13987_v35 = vld [vmem:[#allocation126_spill] sm:$0xff] }
 0x330   : > { %5293 = vmatmul.f32.gmra.mxu0 %v3500_v48  ;;  %5326 = vmatmul.f32.gmra.mxu2 %v3511_v24  ;;  %v7224_v33 = vunpack.i.h.bf16 %v13975_v59  ;;  %v7253_v60 = vunpack.i.l.bf16 %v13985_v53  ;;  %v3402_v18 = vsel %vm3389_vm10, %v3369_v34, %v7543_v10  ;;  %v3413_v61 = vsel %vm3389_vm10, %v3380_v25, %v7569_v17  ;;  %v6251_v10 = vld [vmem:[%s8022_s27 + $0x380] sm:$0xff]  ;;  %v13989_v17 = vld [vmem:[#allocation172_spill] sm:$0xff] }
 0x331   : > { %3735 = vrot.lane.b32.xlu2 %v6248_v30, %s7944_s29  ;;  %3733 = vrot.lane.b32.xlu1 %v6247_v15, %s7944_s29  ;;  %v7304_v48 = vunpack.i.h.bf16 %v13977_v13  ;;  %v7333_v24 = vunpack.i.l.bf16 %v13987_v35  ;;  %v3435_v15 = vsel %vm3422_vm12, %v3402_v18, %v7623_v50  ;;  %v3446_v59 = vsel %vm3422_vm12, %v3413_v61, %v7649_v3  ;;  %v6250_v50 = vld [vmem:[%s8022_s27 + $0x370] sm:$0xff]  ;;  %v11061_v25 = vld [vmem:[%s8022_s27 + $0x360] sm:$0xff]  ;;  %v13991_v61 = vld [vmem:[#allocation51_spill] sm:$0xff] }
 0x332   : > { %3731 = vrot.lane.b32.xlu0 %v6246_v44, %s7944_s29  ;;  %v11036_v1 = vpop.permute.xlu2 %3605  ;;  %v7384_v44 = vunpack.i.h.bf16 %v13978_v2  ;;  %v7413_v54 = vunpack.i.l.bf16 %v13988_v41  ;;  %v3468_v7 = vsel %vm3455_vm14, %v3435_v15, %v7703_v21  ;;  %v3479_v8 = vsel %vm3455_vm14, %v3446_v59, %v7729_v57  ;;  %v13990_v57 = vld [vmem:[#allocation177_spill] sm:$0xff] }
 0x333   : > { %13984 = vst [vmem:[#allocation61_spill] sm:$0xff] %v11036_v1  ;;  %v11040_v56 = vpop.permute.xlu1 %3585  ;;  %v7464_v4 = vunpack.i.h.bf16 %v13979_v19  ;;  %v7493_v51 = vunpack.i.l.bf16 %v13989_v17  ;;  %v3501_v13 = vsel %vm3488_vm13, %v3468_v7, %v7783_v27  ;;  %v3512_v34 = vsel %vm3488_vm13, %v3479_v8, %v7809_v47  ;;  %v11623_v1 = vld [vmem:[%s8022_s27 + $0x252] sm:$0xff] }
 0x334   : > { %v11042_v30 = vpop.permute.xlu0 %3583  ;;  %v3271_v2 = vsel %vm3257_vm8, %v10588_v23, %v7224_v33  ;;  %v3282_v3 = vsel %vm3257_vm8, %v10875_v38, %v7253_v60  ;;  %v7544_v21 = vunpack.i.h.bf16 %v13980_v5  ;;  %v7573_v18 = vunpack.i.l.bf16 %v13990_v57  ;;  %v13992_v33 = vld [vmem:[#allocation3_spill] sm:$0xff] }
 0x335   : > { %13986 = vst [vmem:[#allocation64_spill] sm:$0xff] %v11042_v30  ;;  %v3304_v19 = vsel %vm3290_vm7, %v3271_v2, %v7304_v48  ;;  %v3315_v27 = vsel %vm3290_vm7, %v3282_v3, %v7333_v24  ;;  %v7624_v47 = vunpack.i.h.bf16 %v13981_v32  ;;  %v7653_v15 = vunpack.i.l.bf16 %v13991_v61  ;;  %v6301_v30 = vld [vmem:[%s8022_s27 + $0x282] sm:$0xff] }
 0x336   : > { %v3337_v23 = vsel %vm3323_vm9, %v3304_v19, %v7384_v44  ;;  %v3348_v38 = vsel %vm3323_vm9, %v3315_v27, %v7413_v54  ;;  %v7704_v5 = vunpack.i.h.bf16 %v13982_v29  ;;  %v7733_v60 = vunpack.i.l.bf16 %v13992_v33  ;;  %v13994_v29 = vld [vmem:[#allocation56_spill] sm:$0xff]  ;;  %v13996_v19 = vld [vmem:[#allocation153_spill] sm:$0xff] }
 0x337   : > { %v3370_v48 = vsel %vm3356_vm11, %v3337_v23, %v7464_v4  ;;  %v3381_v32 = vsel %vm3356_vm11, %v3348_v38, %v7493_v51  ;;  %v7784_v24 = vunpack.i.h.bf16 %v13983_v58  ;;  %v7813_v59 = vunpack.i.l.bf16 %v10554_v39  ;;  %v13997_v23 = vld [vmem:[#allocation105_spill] sm:$0xff] }
 0x338   : > { %5296 = vmatmul.f32.gmra.mxu0 %v3501_v13  ;;  %5329 = vmatmul.f32.gmra.mxu2 %v3512_v34  ;;  %v3250_v54 = vsel %vm3224_vm6, %v13994_v29, %v7174_v22  ;;  %v7254_v7 = vunpack.i.h.bf16 %v13985_v53  ;;  %v3403_v4 = vsel %vm3389_vm10, %v3370_v48, %v7544_v21  ;;  %v3414_v58 = vsel %vm3389_vm10, %v3381_v32, %v7573_v18  ;;  %v13995_v34 = vld [vmem:[#allocation148_spill] sm:$0xff]  ;;  %v14000_v32 = vld [vmem:[#allocation185_spill] sm:$0xff] }
 0x339   : > { %3741 = vrot.lane.b32.xlu2 %v6251_v10, %s7944_s29  ;;  %3739 = vrot.lane.b32.xlu1 %v6250_v50, %s7944_s29  ;;  %v7334_v51 = vunpack.i.h.bf16 %v13987_v35  ;;  %v7308_v13 = vunpack.i.l.bf16 %v13907_v0  ;;  %v3436_v49 = vsel %vm3422_vm12, %v3403_v4, %v7624_v47  ;;  %v3447_v22 = vsel %vm3422_vm12, %v3414_v58, %v7653_v15  ;;  %v11107_v21 = vld [vmem:[%s8022_s27 + $0x151] sm:$0xff]  ;;  %v6253_v47 = vld [vmem:[%s8022_s27 + $0x141] sm:$0xff] }
 0x33a   : > { %3737 = vrot.lane.b32.xlu0 %v11061_v25, %s7944_s29  ;;  %v11085_v44 = vpop.permute.xlu2 %3611  ;;  %v7388_v53 = vunpack.i.l.bf16 %v13995_v34  ;;  %v7414_v50 = vunpack.i.h.bf16 %v13988_v41  ;;  %v3469_v2 = vsel %vm3455_vm14, %v3436_v49, %v7704_v5  ;;  %v3480_v3 = vsel %vm3455_vm14, %v3447_v22, %v7733_v60  ;;  %v11115_v15 = vld [vmem:[%s8022_s27 + $0x390] sm:$0xff]  ;;  %v13999_v41 = vld [vmem:[#allocation5_spill] sm:$0xff] }
 0x33b   : > { %13993 = vst [vmem:[#allocation65_spill] sm:$0xff] %v11085_v44  ;;  %v11092_v8 = vpop.permute.xlu1 %3591  ;;  %v7468_v18 = vunpack.i.l.bf16 %v13996_v19  ;;  %v7494_v35 = vunpack.i.h.bf16 %v13989_v17  ;;  %v3502_v0 = vsel %vm3488_vm13, %v3469_v2, %v7784_v24  ;;  %v3513_v27 = vsel %vm3488_vm13, %v3480_v3, %v7813_v59  ;;  %v14001_v59 = vld [vmem:[#allocation45_spill] sm:$0xff]  ;;  %v14003_v34 = vld [vmem:[#allocation8_spill] sm:$0xff] }
 0x33c   : > { %v11094_v10 = vpop.permute.xlu0 %3589  ;;  %v13998_v38 = vunpack.i.l.bf16 %v13997_v23  ;;  %v3283_v60 = vsel %vm3257_vm8, %v3250_v54, %v7254_v7  ;;  %v7574_v48 = vunpack.i.h.bf16 %v13990_v57  ;;  %v7548_v29 = vunpack.i.l.bf16 %v14000_v32  ;;  %v14002_v57 = vld [vmem:[#allocation49_spill] sm:$0xff]  ;;  %v14007_v19 = vld [vmem:[#allocation48_spill] sm:$0xff] }
 0x33d   : > { %v3316_v17 = vsel %vm3290_vm7, %v3283_v60, %v7334_v51  ;;  %v7628_v4 = vunpack.i.l.bf16 %v14001_v59  ;;  %v7654_v58 = vunpack.i.h.bf16 %v13991_v61  ;;  %v7708_v7 = vunpack.i.l.bf16 %v14002_v57 }
 0x33e   : > { %v3272_v5 = vsel %vm3257_vm8, %v13999_v41, %v13998_v38  ;;  %v3349_v54 = vsel %vm3323_vm9, %v3316_v17, %v7414_v50  ;;  %v7734_v22 = vunpack.i.h.bf16 %v13992_v33  ;;  %v7788_v2 = vunpack.i.l.bf16 %v14003_v34  ;;  %v14005_v50 = vld [vmem:[#allocation34_spill] sm:$0xff] }
 0x33f   : > { %v3305_v24 = vsel %vm3290_vm7, %v3272_v5, %v7308_v13  ;;  %v3382_v61 = vsel %vm3356_vm11, %v3349_v54, %v7494_v35  ;;  %v7814_v13 = vunpack.i.h.bf16 %v10554_v39  ;;  %v14006_v3 = vunpack.i.l.bf16 %v14005_v50  ;;  %v14011_v39 = vld [vmem:[#allocation63_spill] sm:$0xff]  ;;  %v14013_v5 = vld [vmem:[#allocation140_spill] sm:$0xff]  ;;  %v14016_v54 = vld [vmem:[#allocation154_spill] sm:$0xff] }
 0x340   : > { %5299 = vmatmul.f32.gmra.mxu0 %v3502_v0  ;;  %5332 = vmatmul.f32.gmra.mxu2 %v3513_v27  ;;  %v3338_v49 = vsel %vm3323_vm9, %v3305_v24, %v7388_v53  ;;  %v14008_v0 = vld [vmem:[#allocation111_spill] sm:$0xff]  ;;  %v3415_v35 = vsel %vm3389_vm10, %v3382_v61, %v7574_v48  ;;  %v14012_v38 = vunpack.i.l.bf16 %v14011_v39  ;;  %v7338_v60 = vunpack.i.l.bf16 %v14013_v5  ;;  %v14014_v24 = vld [vmem:[#allocation92_spill] sm:$0xff] }
 0x341   : > { %3811 = vrot.lane.b32.xlu2 %v11107_v21, %s7945_s30  ;;  %3809 = vrot.lane.b32.xlu1 %v6253_v47, %s7945_s30  ;;  %v3371_v51 = vsel %vm3356_vm11, %v3338_v49, %v7468_v18  ;;  %v3152_v33 = vsel %vm3125_vm3, %v14007_v19, %v14006_v3  ;;  %v7258_v27 = vunpack.i.l.bf16 %v14008_v0  ;;  %v3448_v17 = vsel %vm3422_vm12, %v3415_v35, %v7654_v58  ;;  %v14017_v61 = vld [vmem:[#allocation159_spill] sm:$0xff] }
 0x342   : > { %3743 = vrot.lane.b32.xlu0 %v11115_v15, %s7944_s29  ;;  %v11141_v53 = vpop.permute.xlu2 %3681  ;;  %v3404_v18 = vsel %vm3389_vm10, %v3371_v51, %v7548_v29  ;;  %v3185_v41 = vsel %vm3158_vm4, %v3152_v33, %v14012_v38  ;;  %v14015_v59 = vunpack.i.l.bf16 %v14014_v24  ;;  %v7418_v29 = vunpack.i.l.bf16 %v14016_v54  ;;  %v14018_v33 = vld [vmem:[#allocation36_spill] sm:$0xff]  ;;  %v14019_v35 = vld [vmem:[#allocation39_spill] sm:$0xff]  ;;  %s12966_s29 = scalar_lea.vmem %s13258_s4, %s5730_s22 }
 0x343   : > { %14004 = vst [vmem:[#allocation66_spill] sm:$0xff] %v11141_v53  ;;  %v11148_v47 = vpop.permute.xlu1 %3597  ;;  %v3437_v32 = vsel %vm3422_vm12, %v3404_v18, %v7628_v4  ;;  %v3481_v57 = vsel %vm3455_vm14, %v3448_v17, %v7734_v22  ;;  %v7498_v4 = vunpack.i.l.bf16 %v14017_v61  ;;  %v6939_v3 = vunpack.i.h.bf16 %v14005_v50  ;;  %v6165_v18 = vld [vmem:[%s8022_s27 + $0x181] sm:$0xff]  ;;  %v7879_v22 = vld [vmem:[%s8022_s27 + $0x210] sm:$0xff] }
 0x344   : > { %14009 = vst [vmem:[#allocation95_spill] sm:$0xff] %v11148_v47  ;;  %v11150_v23 = vpop.permute.xlu0 %3595  ;;  %v3218_v49 = vsel %vm3191_vm5, %v3185_v41, %v14015_v59  ;;  %v3470_v48 = vsel %vm3455_vm14, %v3437_v32, %v7708_v7  ;;  %v3514_v34 = vsel %vm3488_vm13, %v3481_v57, %v7814_v13  ;;  %v7578_v7 = vunpack.i.l.bf16 %v14018_v33  ;;  %v14021_v32 = vld [vmem:[#allocation50_spill] sm:$0xff]  ;;  %v6164_v50 = vld [vmem:[%s8022_s27 + $0x171] sm:$0xff] }
 0x345   : > { %14010 = vst [vmem:[#allocation166_spill] sm:$0xff] %v11150_v23  ;;  %v3251_v51 = vsel %vm3224_vm6, %v3218_v49, %v7178_v46  ;;  %v3503_v58 = vsel %vm3488_vm13, %v3470_v48, %v7788_v2  ;;  %v14020_v38 = vunpack.i.h.bf16 %v14019_v35  ;;  %v7019_v41 = vunpack.i.h.bf16 %v14011_v39  ;;  %v6163_v17 = vld [vmem:[%s8022_s27 + $0x161] sm:$0xff]  ;;  %v14025_v39 = vld [vmem:[#allocation24_spill] sm:$0xff] }
 0x346   : > { %v3284_v19 = vsel %vm3257_vm8, %v3251_v51, %v7258_v27  ;;  %v7658_v13 = vunpack.i.l.bf16 %v14021_v32  ;;  %v14022_v27 = vld [vmem:[#allocation44_spill] sm:$0xff]  ;;  %v7099_v48 = vunpack.i.h.bf16 %v14014_v24  ;;  %v14024_v51 = vld [vmem:[#allocation53_spill] sm:$0xff]  ;;  %v11563_v53 = vld [vmem:[%s8022_s27 + $0x1a2] sm:$0xff] }
 0x347   : > { %v3054_v46 = vsel %vm3026_vm0, %v7879_v22, %v14020_v38  ;;  %v3317_v2 = vsel %vm3290_vm7, %v3284_v19, %v7338_v60  ;;  %v14023_v59 = vunpack.i.h.bf16 %v14022_v27  ;;  %v14026_v60 = vunpack.i.h.bf16 %v14025_v39  ;;  %v11604_v47 = vld [vmem:[%s8022_s27 + $0x222] sm:$0xff] }
 0x348   : > { %5302 = vmatmul.f32.gmra.mxu0 %v3503_v58  ;;  %5335 = vmatmul.f32.gmra.mxu2 %v3514_v34  ;;  %v3350_v57 = vsel %vm3323_vm9, %v3317_v2, %v7418_v29  ;;  %v7738_v58 = vunpack.i.l.bf16 %v14024_v51  ;;  %v7179_v19 = vunpack.i.h.bf16 %v13936_v20  ;;  %v7818_v22 = vunpack.i.l.bf16 %v10763_v14  ;;  %v11724_v23 = vld [vmem:[%s8022_s27 + $0x180] sm:$0xff] }
 0x349   : > { %3817 = vrot.lane.b32.xlu2 %v6165_v18, %s7945_s30  ;;  %v3087_v49 = vsel %vm3059_vm1, %v3054_v46, %v14023_v59  ;;  %3815 = vrot.lane.b32.xlu1 %v6164_v50, %s7945_s30  ;;  %v3383_v18 = vsel %vm3356_vm11, %v3350_v57, %v7498_v4  ;;  %v7259_v29 = vunpack.i.h.bf16 %v14008_v0  ;;  %v7339_v4 = vunpack.i.h.bf16 %v14013_v5  ;;  %v14031_v59 = vld [vmem:[#allocation58_spill] sm:$0xff]  ;;  %14114 = vst [vmem:[#allocation117_spill] sm:$0xff] %v11724_v23 }
 0x34a   : > { %3813 = vrot.lane.b32.xlu0 %v6163_v17, %s7945_s30  ;;  %v3120_v34 = vsel %vm3092_vm2, %v3087_v49, %v14026_v60  ;;  %v11200_v35 = vpop.permute.xlu2 %3687  ;;  %v3416_v2 = vsel %vm3389_vm10, %v3383_v18, %v7578_v7  ;;  %v14030_v17 = vld [vmem:[#allocation37_spill] sm:$0xff]  ;;  %v7419_v49 = vunpack.i.h.bf16 %v14016_v54  ;;  %v14032_v7 = vld [vmem:[#allocation15_spill] sm:$0xff]  ;;  %v7880_v54 = vld [vmem:[%s8022_s27 + $0x220] sm:$0xff] }
 0x34b   : > { %14027 = vst [vmem:[#allocation109_spill] sm:$0xff] %v11200_v35  ;;  %v3153_v24 = vsel %vm3125_vm3, %v3120_v34, %v6939_v3  ;;  %v11204_v38 = vpop.permute.xlu1 %3603  ;;  %v6703_v50 = vunpack.i.l.bf16 %v14030_v17  ;;  %v3449_v27 = vsel %vm3422_vm12, %v3416_v2, %v7658_v13  ;;  %v6783_v3 = vunpack.i.l.bf16 %v14031_v59  ;;  %v14033_v34 = vld [vmem:[#allocation17_spill] sm:$0xff]  ;;  %v14065_v35 = vld [vmem:[#allocation52_spill] sm:$0xff] }
 0x34c   : > { %14028 = vst [vmem:[#allocation67_spill] sm:$0xff] %v11204_v38  ;;  %v11206_v46 = vpop.permute.xlu0 %3601  ;;  %v3186_v20 = vsel %vm3158_vm4, %v3153_v24, %v7019_v41  ;;  %v3482_v57 = vsel %vm3455_vm14, %v3449_v27, %v7738_v58  ;;  %v6863_v39 = vunpack.i.l.bf16 %v14032_v7  ;;  %v7499_v41 = vunpack.i.h.bf16 %v14017_v61  ;;  %v11225_v24 = vld [vmem:[%s8022_s27 + $0x1b1] sm:$0xff] }
 0x34d   : > { %14029 = vst [vmem:[#allocation114_spill] sm:$0xff] %v11206_v46  ;;  %v3219_v0 = vsel %vm3191_vm5, %v3186_v20, %v7099_v48  ;;  %v3515_v5 = vsel %vm3488_vm13, %v3482_v57, %v7818_v22  ;;  %v6943_v13 = vunpack.i.l.bf16 %v14033_v34  ;;  %v7579_v48 = vunpack.i.h.bf16 %v14018_v33  ;;  %v14034_v2 = vld [vmem:[#allocation77_spill] sm:$0xff]  ;;  %v6167_v22 = vld [vmem:[%s8022_s27 + $0x1a1] sm:$0xff] }
 0x34e   : > { %v3252_v60 = vsel %vm3224_vm6, %v3219_v0, %v7179_v19  ;;  %v3055_v58 = vsel %vm3026_vm0, %v7880_v54, %v6703_v50  ;;  %v7023_v20 = vunpack.i.l.bf16 %v14034_v2  ;;  %v7659_v61 = vunpack.i.h.bf16 %v14021_v32  ;;  %v6166_v27 = vld [vmem:[%s8022_s27 + $0x191] sm:$0xff]  ;;  %v14035_v33 = vld [vmem:[#allocation91_spill] sm:$0xff] }
 0x34f   : > { %v3285_v18 = vsel %vm3257_vm8, %v3252_v60, %v7259_v29  ;;  %v3088_v29 = vsel %vm3059_vm1, %v3055_v58, %v6783_v3  ;;  %v7103_v0 = vunpack.i.l.bf16 %v14035_v33  ;;  %v7739_v60 = vunpack.i.h.bf16 %v14024_v51  ;;  %v14036_v32 = vld [vmem:[#allocation96_spill] sm:$0xff]  ;;  %v14038_v58 = vld [vmem:[#allocation125_spill] sm:$0xff]  ;;  %v11580_v46 = vld [vmem:[%s8022_s27 + $0x202] sm:$0xff] }
 0x350   : > { %5338 = vmatmul.f32.gmra.mxu2 %v3515_v5  ;;  %v3318_v19 = vsel %vm3290_vm7, %v3285_v18, %v7339_v4  ;;  %v3121_v50 = vsel %vm3092_vm2, %v3088_v29, %v6863_v39  ;;  %v7183_v4 = vunpack.i.l.bf16 %v14036_v32  ;;  %v7819_v18 = vunpack.i.h.bf16 %v10763_v14  ;;  %v11583_v38 = vld [vmem:[%s8022_s27 + $0x1f2] sm:$0xff] }
 0x351   : > { %3823 = vrot.lane.b32.xlu2 %v11225_v24, %s7945_s30  ;;  %v3351_v57 = vsel %vm3323_vm9, %v3318_v19, %v7419_v49  ;;  %3821 = vrot.lane.b32.xlu1 %v6167_v22, %s7945_s30  ;;  %v3154_v3 = vsel %vm3125_vm3, %v3121_v50, %v6943_v13  ;;  %v7263_v49 = vunpack.i.l.bf16 %v14038_v58  ;;  %v14041_v22 = vld [vmem:[#allocation139_spill] sm:$0xff]  ;;  %v6784_v13 = vunpack.i.h.bf16 %v14031_v59  ;;  %v14042_v50 = vld [vmem:[#allocation144_spill] sm:$0xff] }
 0x352   : > { %3819 = vrot.lane.b32.xlu0 %v6166_v27, %s7945_s30  ;;  %v3384_v5 = vsel %vm3356_vm11, %v3351_v57, %v7499_v41  ;;  %v6704_v27 = vunpack.i.h.bf16 %v14030_v17  ;;  %v3187_v41 = vsel %vm3158_vm4, %v3154_v3, %v7023_v20  ;;  %v7343_v14 = vunpack.i.l.bf16 %v14041_v22 }
 0x353   : > { %v11246_v54 = vpop.permute.xlu2 %3693  ;;  %v11250_v51 = vpop.permute.xlu1 %3609  ;;  %v3417_v39 = vsel %vm3389_vm10, %v3384_v5, %v7579_v48  ;;  %v3220_v57 = vsel %vm3191_vm5, %v3187_v41, %v7103_v0  ;;  %v7423_v44 = vunpack.i.l.bf16 %v14042_v50  ;;  %v6864_v48 = vunpack.i.h.bf16 %v14032_v7  ;;  %v14043_v5 = vld [vmem:[#allocation176_spill] sm:$0xff]  ;;  %v14044_v0 = vld [vmem:[#allocation35_spill] sm:$0xff] }
 0x354   : > { %14037 = vst [vmem:[#allocation143_spill] sm:$0xff] %v11246_v54  ;;  %v11252_v19 = vpop.permute.xlu0 %3607  ;;  %v3450_v29 = vsel %vm3422_vm12, %v3417_v39, %v7659_v61  ;;  %v3253_v17 = vsel %vm3224_vm6, %v3220_v57, %v7183_v4  ;;  %v7503_v20 = vunpack.i.l.bf16 %v14043_v5  ;;  %v6261_v61 = vld [vmem:[%s8022_s27 + $0x1e1] sm:$0xff]  ;;  %v6944_v39 = vunpack.i.h.bf16 %v14033_v34 }
 0x355   : > { %14039 = vst [vmem:[#allocation68_spill] sm:$0xff] %v11250_v51  ;;  %v3483_v51 = vsel %vm3455_vm14, %v3450_v29, %v7739_v60  ;;  %v3286_v59 = vsel %vm3257_vm8, %v3253_v17, %v7263_v49  ;;  %v7583_v41 = vunpack.i.l.bf16 %v14044_v0  ;;  %v7881_v60 = vld [vmem:[%s8022_s27 + $0x230] sm:$0xff]  ;;  %v7024_v4 = vunpack.i.h.bf16 %v14034_v2  ;;  %v14046_v17 = vld [vmem:[#allocation7_spill] sm:$0xff] }
 0x356   : > { %14040 = vst [vmem:[#allocation157_spill] sm:$0xff] %v11252_v19  ;;  %v3516_v3 = vsel %vm3488_vm13, %v3483_v51, %v7819_v18  ;;  %v11268_v19 = vld [vmem:[%s8022_s27 + $0x1f1] sm:$0xff]  ;;  %v3056_v7 = vsel %vm3026_vm0, %v7881_v60, %v6704_v27  ;;  %v3319_v29 = vsel %vm3290_vm7, %v3286_v59, %v7343_v14  ;;  %v14045_v18 = vld [vmem:[#allocation42_spill] sm:$0xff]  ;;  %v7104_v49 = vunpack.i.h.bf16 %v14035_v33 }
 0x357   : > { %v7663_v51 = vunpack.i.l.bf16 %v14045_v18  ;;  %v3089_v34 = vsel %vm3059_vm1, %v3056_v7, %v6784_v13  ;;  %v3352_v57 = vsel %vm3323_vm9, %v3319_v29, %v7423_v44  ;;  %v7184_v27 = vunpack.i.h.bf16 %v14036_v32  ;;  %v14050_v29 = vld [vmem:[#allocation43_spill] sm:$0xff] }
 0x358   : > { %5341 = vmatmul.f32.gmra.mxu2 %v3516_v3  ;;  %v7743_v3 = vunpack.i.l.bf16 %v14046_v17  ;;  %v3122_v2 = vsel %vm3092_vm2, %v3089_v34, %v6864_v48  ;;  %v3385_v14 = vsel %vm3356_vm11, %v3352_v57, %v7503_v20  ;;  %v7823_v59 = vunpack.i.l.bf16 %v10761_v52  ;;  %v14051_v57 = vld [vmem:[#allocation57_spill] sm:$0xff] }
 0x359   : > { %3829 = vrot.lane.b32.xlu2 %v11275_v40, %s7945_s30  ;;  %3827 = vrot.lane.b32.xlu1 %v11268_v19, %s7945_s30  ;;  %v3155_v33 = vsel %vm3125_vm3, %v3122_v2, %v6944_v39  ;;  %v7264_v44 = vunpack.i.h.bf16 %v14038_v58  ;;  %v6708_v48 = vunpack.i.l.bf16 %v14050_v29  ;;  %v7344_v20 = vunpack.i.h.bf16 %v14041_v22 }
 0x35a   : > { %3825 = vrot.lane.b32.xlu0 %v6261_v61, %s7945_s30  ;;  %v3418_v61 = vsel %vm3389_vm10, %v3385_v14, %v7583_v41  ;;  %v3188_v32 = vsel %vm3158_vm4, %v3155_v33, %v7024_v4  ;;  %v6788_v39 = vunpack.i.l.bf16 %v14051_v57  ;;  %v7424_v2 = vunpack.i.h.bf16 %v14042_v50  ;;  %v14052_v41 = vld [vmem:[#allocation4_spill] sm:$0xff]  ;;  %v14053_v33 = vld [vmem:[#allocation62_spill] sm:$0xff] }
 0x35b   : > { %v11295_v13 = vpop.permute.xlu2 %3699  ;;  %v11299_v60 = vpop.permute.xlu1 %3615  ;;  %v3451_v34 = vsel %vm3422_vm12, %v3418_v61, %v7663_v51  ;;  %v3221_v58 = vsel %vm3191_vm5, %v3188_v32, %v7104_v49  ;;  %v6868_v14 = vunpack.i.l.bf16 %v14052_v41  ;;  %v7504_v4 = vunpack.i.h.bf16 %v14043_v5  ;;  %v11320_v32 = vld [vmem:[%s8022_s27 + $0x231] sm:$0xff]  ;;  %v7882_v50 = vld [vmem:[%s8022_s27 + $0x240] sm:$0xff] }
 0x35c   : > { %14047 = vst [vmem:[#allocation162_spill] sm:$0xff] %v11295_v13  ;;  %v11301_v7 = vpop.permute.xlu0 %3613  ;;  %v6948_v51 = vunpack.i.l.bf16 %v14053_v33  ;;  %v7584_v49 = vunpack.i.h.bf16 %v14044_v0  ;;  %v7664_v5 = vunpack.i.h.bf16 %v14045_v18  ;;  %v6789_v54 = vunpack.i.h.bf16 %v14051_v57  ;;  %v11664_v13 = vld [vmem:[%s8022_s27 + $0x2d2] sm:$0xff] }
 0x35d   : > { %14048 = vst [vmem:[#allocation41_spill] sm:$0xff] %v11299_v60  ;;  %v3484_v60 = vsel %vm3455_vm14, %v3451_v34, %v7743_v3  ;;  %v3057_v3 = vsel %vm3026_vm0, %v7882_v50, %v6708_v48  ;;  %v14054_v34 = vld [vmem:[#allocation76_spill] sm:$0xff]  ;;  %v7744_v48 = vunpack.i.h.bf16 %v14046_v17 }
 0x35e   : > { %14049 = vst [vmem:[#allocation170_spill] sm:$0xff] %v11301_v7  ;;  %v3254_v7 = vsel %vm3224_vm6, %v3221_v58, %v7184_v27  ;;  %v3517_v22 = vsel %vm3488_vm13, %v3484_v60, %v7823_v59  ;;  %v7028_v36 = vunpack.i.l.bf16 %v14054_v34  ;;  %v6172_v58 = vld [vmem:[%s8022_s27 + $0x211] sm:$0xff]  ;;  %v11329_v59 = vld [vmem:[%s8022_s27 + $0x221] sm:$0xff]  ;;  %v3090_v0 = vsel %vm3059_vm1, %v3057_v3, %v6788_v39 }
 0x35f   : > { %v3287_v61 = vsel %vm3257_vm8, %v3254_v7, %v7264_v44  ;;  %v14055_v44 = vld [vmem:[#allocation81_spill] sm:$0xff]  ;;  %v3123_v18 = vsel %vm3092_vm2, %v3090_v0, %v6868_v14  ;;  %v7824_v39 = vunpack.i.h.bf16 %v10761_v52  ;;  %v14058_v3 = vld [vmem:[#allocation124_spill] sm:$0xff]  ;;  %v6709_v14 = vunpack.i.h.bf16 %v14050_v29 }
 0x360   : > { %5344 = vmatmul.f32.gmra.mxu2 %v3517_v22  ;;  %v3320_v27 = vsel %vm3290_vm7, %v3287_v61, %v7344_v20  ;;  %v7108_v60 = vunpack.i.l.bf16 %v14055_v44  ;;  %v14056_v20 = vld [vmem:[#allocation110_spill] sm:$0xff]  ;;  %v7268_v17 = vunpack.i.l.bf16 %v14058_v3  ;;  %v6869_v29 = vunpack.i.h.bf16 %v14052_v41 }
 0x361   : > { %3835 = vrot.lane.b32.xlu2 %v11320_v32, %s7945_s30  ;;  %v3353_v7 = vsel %vm3323_vm9, %v3320_v27, %v7424_v2  ;;  %3833 = vrot.lane.b32.xlu1 %v11329_v59, %s7945_s30  ;;  %v7188_v22 = vunpack.i.l.bf16 %v14056_v20  ;;  %v3156_v2 = vsel %vm3125_vm3, %v3123_v18, %v6948_v51  ;;  %v14062_v18 = vld [vmem:[#allocation158_spill] sm:$0xff] }
 0x362   : > { %3831 = vrot.lane.b32.xlu0 %v6172_v58, %s7945_s30  ;;  %v3386_v61 = vsel %vm3356_vm11, %v3353_v7, %v7504_v4  ;;  %v3189_v0 = vsel %vm3158_vm4, %v3156_v2, %v7028_v36  ;;  %v14061_v4 = vld [vmem:[#allocation129_spill] sm:$0xff]  ;;  %v7428_v55 = vunpack.i.l.bf16 %v14062_v18 }
 0x363   : > { %v11344_v50 = vpop.permute.xlu2 %3705  ;;  %v11348_v27 = vpop.permute.xlu1 %3685  ;;  %v3419_v58 = vsel %vm3389_vm10, %v3386_v61, %v7584_v49  ;;  %v7348_v7 = vunpack.i.l.bf16 %v14061_v4  ;;  %v3222_v51 = vsel %vm3191_vm5, %v3189_v0, %v7108_v60  ;;  %v6269_v49 = vld [vmem:[%s8022_s27 + $0x281] sm:$0xff]  ;;  %v14064_v60 = vld [vmem:[#allocation180_spill] sm:$0xff] }
 0x364   : > { %14057 = vst [vmem:[#allocation69_spill] sm:$0xff] %v11344_v50  ;;  %v11350_v12 = vpop.permute.xlu0 %3683  ;;  %v3452_v52 = vsel %vm3422_vm12, %v3419_v58, %v7664_v5  ;;  %v3255_v36 = vsel %vm3224_vm6, %v3222_v51, %v7188_v22  ;;  %v14063_v61 = vld [vmem:[#allocation175_spill] sm:$0xff]  ;;  %v6949_v5 = vunpack.i.h.bf16 %v14053_v33  ;;  %v7588_v58 = vunpack.i.l.bf16 %v14064_v60  ;;  %v7883_v0 = vld [vmem:[%s8022_s27 + $0x250] sm:$0xff] }
 0x365   : > { %14059 = vst [vmem:[#allocation171_spill] sm:$0xff] %v11348_v27  ;;  %v3485_v16 = vsel %vm3455_vm14, %v3452_v52, %v7744_v48  ;;  %v7508_v2 = vunpack.i.l.bf16 %v14063_v61  ;;  %v3288_v57 = vsel %vm3257_vm8, %v3255_v36, %v7268_v17  ;;  %v3058_v48 = vsel %vm3026_vm0, %v7883_v0, %v6709_v14  ;;  %v11375_v51 = vld [vmem:[%s8022_s27 + $0x241] sm:$0xff] }
 0x366   : > { %14060 = vst [vmem:[#allocation70_spill] sm:$0xff] %v11350_v12  ;;  %v3518_v63 = vsel %vm3488_vm13, %v3485_v16, %v7824_v39  ;;  %v7029_v52 = vunpack.i.h.bf16 %v14054_v34  ;;  %v3321_v41 = vsel %vm3290_vm7, %v3288_v57, %v7348_v7  ;;  %v7668_v22 = vunpack.i.l.bf16 %v14065_v35  ;;  %v14068_v39 = vld [vmem:[#allocation6_spill] sm:$0xff] }
 0x367   : > { %14066 = vst [vmem:[#allocation71_spill] sm:$0xff] %v11375_v51  ;;  %v3091_v16 = vsel %vm3059_vm1, %v3058_v48, %v6789_v54  ;;  %v7109_v33 = vunpack.i.h.bf16 %v14055_v44  ;;  %v7748_v17 = vunpack.i.l.bf16 %v14068_v39  ;;  %v7189_v14 = vunpack.i.h.bf16 %v14056_v20  ;;  %v11541_v27 = vld [vmem:[%s8022_s27 + $0x182] sm:$0xff] }
 0x368   : > { %5347 = vmatmul.f32.gmra.mxu2 %v3518_v63  ;;  %v3354_v63 = vsel %vm3323_vm9, %v3321_v41, %v7428_v55  ;;  %v3124_v34 = vsel %vm3092_vm2, %v3091_v16, %v6869_v29  ;;  %v7269_v36 = vunpack.i.h.bf16 %v14058_v3  ;;  %v6293_v12 = vld [vmem:[%s8022_s27 + $0x1e2] sm:$0xff] }
 0x369   : > { %3841 = vrot.lane.b32.xlu2 %v6269_v49, %s7945_s30  ;;  %3839 = vrot.lane.b32.xlu1 %v11378_v45, %s7945_s30  ;;  %v3387_v7 = vsel %vm3356_vm11, %v3354_v63, %v7508_v2  ;;  %v14069_v49 = vld [vmem:[#allocation9_spill] sm:$0xff]  ;;  %v3157_v55 = vsel %vm3125_vm3, %v3124_v34, %v6949_v5  ;;  %v7349_v2 = vunpack.i.h.bf16 %v14061_v4  ;;  %v7429_v5 = vunpack.i.h.bf16 %v14062_v18  ;;  %v6315_v45 = vld [vmem:[%s8022_s27 + $0x382] sm:$0xff] }
 0x36a   : > { %3837 = vrot.lane.b32.xlu0 %v11375_v51, %s7945_s30  ;;  %v7828_v54 = vunpack.i.l.bf16 %v14069_v49  ;;  %v3420_v29 = vsel %vm3389_vm10, %v3387_v7, %v7588_v58  ;;  %v3190_v20 = vsel %vm3158_vm4, %v3157_v55, %v7029_v52  ;;  %v7509_v63 = vunpack.i.h.bf16 %v14063_v61  ;;  %v11412_v58 = vld [vmem:[%s8022_s27 + $0x291] sm:$0xff]  ;;  %v6309_v51 = vld [vmem:[%s8022_s27 + $0x322] sm:$0xff] }
 0x36b   : > { %v11393_v44 = vpop.permute.xlu2 %3711  ;;  %v11397_v57 = vpop.permute.xlu1 %3691  ;;  %v3453_v48 = vsel %vm3422_vm12, %v3420_v29, %v7668_v22  ;;  %v3223_v41 = vsel %vm3191_vm5, %v3190_v20, %v7109_v33  ;;  %v7589_v4 = vunpack.i.h.bf16 %v14064_v60  ;;  %v11417_v7 = vld [vmem:[%s8022_s27 + $0x2b1] sm:$0xff]  ;;  %v7669_v18 = vunpack.i.h.bf16 %v14065_v35  ;;  %v11422_v33 = vld [vmem:[%s8022_s27 + $0x2a1] sm:$0xff] }
 0x36c   : > { %14070 = vst [vmem:[#allocation73_spill] sm:$0xff] %v11393_v44  ;;  %v11399_v0 = vpop.permute.xlu0 %3689  ;;  %v3486_v3 = vsel %vm3455_vm14, %v3453_v48, %v7748_v17  ;;  %v3256_v16 = vsel %vm3224_vm6, %v3223_v41, %v7189_v14  ;;  %v7749_v17 = vunpack.i.h.bf16 %v14068_v39  ;;  %v7829_v60 = vunpack.i.h.bf16 %v14069_v49  ;;  %v6181_v49 = vld [vmem:[%s8022_s27 + $0x2c1] sm:$0xff]  ;;  %v11449_v48 = vld [vmem:[%s8022_s27 + $0x2d1] sm:$0xff] }
 0x36d   : > { %14071 = vst [vmem:[#allocation74_spill] sm:$0xff] %v11397_v57  ;;  %v3519_v34 = vsel %vm3488_vm13, %v3486_v3, %v7828_v54  ;;  %v3289_v52 = vsel %vm3257_vm8, %v3256_v16, %v7269_v36  ;;  %v11463_v16 = vld [vmem:[%s8022_s27 + $0x331] sm:$0xff] }
 0x36e   : > { %14072 = vst [vmem:[#allocation75_spill] sm:$0xff] %v11399_v0  ;;  %v3322_v22 = vsel %vm3290_vm7, %v3289_v52, %v7349_v2  ;;  %v11445_v2 = vld [vmem:[%s8022_s27 + $0x2e1] sm:$0xff]  ;;  %v11538_v0 = vld [vmem:[%s8022_s27 + $0x192] sm:$0xff] }
 0x36f   : > { %v3355_v61 = vsel %vm3323_vm9, %v3322_v22, %v7429_v5 }
 0x370   : > { %5350 = vmatmul.f32.gmra.mxu2 %v3519_v34  ;;  %v3388_v35 = vsel %vm3356_vm11, %v3355_v61, %v7509_v63  ;;  %v6277_v63 = vld [vmem:[%s8022_s27 + $0x321] sm:$0xff]  ;;  %v6184_v34 = vld [vmem:[%s8022_s27 + $0x2f1] sm:$0xff] }
 0x371   : > { %3847 = vrot.lane.b32.xlu2 %v11417_v7, %s7945_s30  ;;  %3845 = vrot.lane.b32.xlu1 %v11422_v33, %s7945_s30  ;;  %v3421_v39 = vsel %vm3389_vm10, %v3388_v35, %v7589_v4  ;;  %v11481_v61 = vld [vmem:[%s8022_s27 + $0x351] sm:$0xff] }
 0x372   : > { %3843 = vrot.lane.b32.xlu0 %v11412_v58, %s7945_s30  ;;  %v3454_v36 = vsel %vm3422_vm12, %v3421_v39, %v7669_v18  ;;  %v11478_v18 = vld [vmem:[%s8022_s27 + $0x361] sm:$0xff] }
 0x373   : > { %v11434_v14 = vpop.permute.xlu2 %3717  ;;  %v11436_v54 = vpop.permute.xlu1 %3697  ;;  %v3487_v29 = vsel %vm3455_vm14, %v3454_v36, %v7749_v17  ;;  %v11484_v17 = vld [vmem:[%s8022_s27 + $0x341] sm:$0xff]  ;;  %v11499_v36 = vld [vmem:[%s8022_s27 + $0x391] sm:$0xff] }
 0x374   : > { %14073 = vst [vmem:[#allocation78_spill] sm:$0xff] %v11436_v54  ;;  %v11438_v55 = vpop.permute.xlu0 %3695  ;;  %v3520_v20 = vsel %vm3488_vm13, %v3487_v29, %v7829_v60  ;;  %v11502_v29 = vld [vmem:[%s8022_s27 + $0x381] sm:$0xff] }
 0x375   : > { %14074 = vst [vmem:[#allocation79_spill] sm:$0xff] %v11438_v55  ;;  %v6285_v54 = vld [vmem:[%s8022_s27 + $0x142] sm:$0xff] }
 0x378   : > { %5353 = vmatmul.f32.gmra.mxu2 %v3520_v20  ;;  %v11505_v20 = vld [vmem:[%s8022_s27 + $0x371] sm:$0xff] }
 0x379   : > { %3853 = vrot.lane.b32.xlu2 %v11445_v2, %s7945_s30  ;;  %3851 = vrot.lane.b32.xlu1 %v11449_v48, %s7945_s30 }
 0x37a   : > { %3849 = vrot.lane.b32.xlu0 %v6181_v49, %s7945_s30 }
 0x37b   : > { %v11456_v41 = vpop.permute.xlu2 %3723  ;;  %v11458_v5 = vpop.permute.xlu1 %3703 }
 0x37c   : > { %14075 = vst [vmem:[#allocation80_spill] sm:$0xff] %v11456_v41  ;;  %v11460_v3 = vpop.permute.xlu0 %3701  ;;  %v6316_v41 = vld [vmem:[%s8022_s27 + $0x392] sm:$0xff] }
 0x37d   : > { %14076 = vst [vmem:[#allocation82_spill] sm:$0xff] %v11458_v5  ;;  %v11523_v5 = vld [vmem:[%s8022_s27 + $0x152] sm:$0xff] }
 0x37e   : > { %14077 = vst [vmem:[#allocation83_spill] sm:$0xff] %v11460_v3  ;;  %v11661_v3 = vld [vmem:[%s8022_s27 + $0x2e2] sm:$0xff] }
 0x381   : > { %3859 = vrot.lane.b32.xlu2 %v11463_v16, %s7945_s30  ;;  %3857 = vrot.lane.b32.xlu1 %v6277_v63, %s7945_s30 }
 0x382   : > { %3855 = vrot.lane.b32.xlu0 %v6184_v34, %s7945_s30 }
 0x383   : > { %v11471_v52 = vpop.permute.xlu2 %3729  ;;  %v11473_v4 = vpop.permute.xlu1 %3709 }
 0x384   : > { %14078 = vst [vmem:[#allocation84_spill] sm:$0xff] %v11471_v52  ;;  %v11475_v22 = vpop.permute.xlu0 %3707  ;;  %v11577_v52 = vld [vmem:[%s8022_s27 + $0x212] sm:$0xff] }
 0x385   : > { %14079 = vst [vmem:[#allocation85_spill] sm:$0xff] %v11473_v4  ;;  %v6313_v4 = vld [vmem:[%s8022_s27 + $0x362] sm:$0xff] }
 0x389   : > { %3865 = vrot.lane.b32.xlu2 %v11478_v18, %s7945_s30  ;;  %3863 = vrot.lane.b32.xlu1 %v11481_v61, %s7945_s30 }
 0x38a   : > { %3861 = vrot.lane.b32.xlu0 %v11484_v17, %s7945_s30 }
 0x38b   : > { %v11492_v35 = vpop.permute.xlu2 %3735  ;;  %v11494_v60 = vpop.permute.xlu1 %3715 }
 0x38c   : > { %14080 = vst [vmem:[#allocation86_spill] sm:$0xff] %v11492_v35  ;;  %v11496_v39 = vpop.permute.xlu0 %3713  ;;  %v11520_v35 = vld [vmem:[%s8022_s27 + $0x162] sm:$0xff] }
 0x38d   : > { %14081 = vst [vmem:[#allocation87_spill] sm:$0xff] %v11494_v60  ;;  %v11544_v60 = vld [vmem:[%s8022_s27 + $0x172] sm:$0xff] }
 0x391   : > { %3871 = vrot.lane.b32.xlu2 %v11499_v36, %s7945_s30  ;;  %3869 = vrot.lane.b32.xlu1 %v11502_v29, %s7945_s30 }
 0x392   : > { %3867 = vrot.lane.b32.xlu0 %v11505_v20, %s7945_s30 }
 0x393   : > { %v11513_v49 = vpop.permute.xlu2 %3741  ;;  %v11515_v63 = vpop.permute.xlu1 %3721 }
 0x394   : > { %14082 = vst [vmem:[#allocation88_spill] sm:$0xff] %v11513_v49  ;;  %v11517_v34 = vpop.permute.xlu0 %3719 }
 0x395   : > { %14083 = vst [vmem:[#allocation89_spill] sm:$0xff] %v11515_v63 }
 0x399   : > { %3941 = vrot.lane.b32.xlu2 %v11520_v35, %s7946_s5  ;;  %3939 = vrot.lane.b32.xlu1 %v11523_v5, %s7946_s5 }
 0x39a   : > { %3937 = vrot.lane.b32.xlu0 %v6285_v54, %s7946_s5 }
 0x39b   : > { %v11531_v49 = vpop.permute.xlu2 %3811  ;;  %v11533_v55 = vpop.permute.xlu1 %3727 }
 0x39c   : > { %14084 = vst [vmem:[#allocation90_spill] sm:$0xff] %v11531_v49  ;;  %v11535_v57 = vpop.permute.xlu0 %3725 }
 0x39d   : > { %14085 = vst [vmem:[#allocation94_spill] sm:$0xff] %v11533_v55  ;;  %v11637_v55 = vld [vmem:[%s8022_s27 + $0x2c2] sm:$0xff] }
 0x39e   : > { %14086 = vst [vmem:[#allocation93_spill] sm:$0xff] %v11535_v57  ;;  %v11601_v57 = vld [vmem:[%s8022_s27 + $0x232] sm:$0xff] }
 0x3a1   : > { %3947 = vrot.lane.b32.xlu2 %v11538_v0, %s7946_s5  ;;  %3945 = vrot.lane.b32.xlu1 %v11541_v27, %s7946_s5 }
 0x3a2   : > { %3943 = vrot.lane.b32.xlu0 %v11544_v60, %s7946_s5 }
 0x3a3   : > { %v11552_v54 = vpop.permute.xlu2 %3817  ;;  %v11554_v26 = vpop.permute.xlu1 %3733 }
 0x3a4   : > { %14087 = vst [vmem:[#allocation99_spill] sm:$0xff] %v11552_v54  ;;  %v11556_v49 = vpop.permute.xlu0 %3731 }
 0x3a5   : > { %14088 = vst [vmem:[#allocation128_spill] sm:$0xff] %v11554_v26  ;;  %v11619_v26 = vld [vmem:[%s8022_s27 + $0x292] sm:$0xff] }
 0x3a6   : > { %14089 = vst [vmem:[#allocation97_spill] sm:$0xff] %v11556_v49 }
 0x3a9   : > { %3953 = vrot.lane.b32.xlu2 %v6293_v12, %s7946_s5  ;;  %3951 = vrot.lane.b32.xlu1 %v11560_v6, %s7946_s5 }
 0x3aa   : > { %3949 = vrot.lane.b32.xlu0 %v11563_v53, %s7946_s5 }
 0x3ab   : > { %v11570_v54 = vpop.permute.xlu2 %3823  ;;  %v11572_v37 = vpop.permute.xlu1 %3739 }
 0x3ac   : > { %14090 = vst [vmem:[#allocation142_spill] sm:$0xff] %v11570_v54  ;;  %v11574_v49 = vpop.permute.xlu0 %3737  ;;  %v11598_v54 = vld [vmem:[%s8022_s27 + $0x242] sm:$0xff] }
 0x3ad   : > { %14091 = vst [vmem:[#allocation98_spill] sm:$0xff] %v11572_v37 }
 0x3ae   : > { %14092 = vst [vmem:[#allocation147_spill] sm:$0xff] %v11574_v49 }
 0x3b1   : > { %3959 = vrot.lane.b32.xlu2 %v11577_v52, %s7946_s5  ;;  %3957 = vrot.lane.b32.xlu1 %v11580_v46, %s7946_s5 }
 0x3b2   : > { %3955 = vrot.lane.b32.xlu0 %v11583_v38, %s7946_s5 }
 0x3b3   : > { %v11591_v12 = vpop.permute.xlu2 %3829  ;;  %v11593_v37 = vpop.permute.xlu1 %3809 }
 0x3b4   : > { %14093 = vst [vmem:[#allocation179_spill] sm:$0xff] %v11591_v12  ;;  %v11595_v49 = vpop.permute.xlu0 %3743  ;;  %v11658_v12 = vld [vmem:[%s8022_s27 + $0x2f2] sm:$0xff] }
 0x3b5   : > { %14094 = vst [vmem:[#allocation40_spill] sm:$0xff] %v11593_v37 }
 0x3b6   : > { %14095 = vst [vmem:[#allocation100_spill] sm:$0xff] %v11595_v49 }
 0x3b9   : > { %3965 = vrot.lane.b32.xlu2 %v11598_v54, %s7946_s5  ;;  %3963 = vrot.lane.b32.xlu1 %v11601_v57, %s7946_s5 }
 0x3ba   : > { %3961 = vrot.lane.b32.xlu0 %v11604_v47, %s7946_s5 }
 0x3bb   : > { %v11612_v37 = vpop.permute.xlu2 %3835  ;;  %v11614_v49 = vpop.permute.xlu1 %3815 }
 0x3bc   : > { %14096 = vst [vmem:[#allocation101_spill] sm:$0xff] %v11614_v49  ;;  %v11616_v44 = vpop.permute.xlu0 %3813 }
 0x3bd   : > { %14097 = vst [vmem:[#allocation102_spill] sm:$0xff] %v11616_v44 }
 0x3c1   : > { %3971 = vrot.lane.b32.xlu2 %v11619_v26, %s7946_s5  ;;  %3969 = vrot.lane.b32.xlu1 %v6301_v30, %s7946_s5 }
 0x3c2   : > { %3967 = vrot.lane.b32.xlu0 %v11623_v1, %s7946_s5 }
 0x3c3   : > { %v11630_v50 = vpop.permute.xlu2 %3841  ;;  %v11632_v49 = vpop.permute.xlu1 %3821 }
 0x3c4   : > { %14098 = vst [vmem:[#allocation103_spill] sm:$0xff] %v11632_v49  ;;  %v11634_v44 = vpop.permute.xlu0 %3819 }
 0x3c5   : > { %14099 = vst [vmem:[#allocation104_spill] sm:$0xff] %v11634_v44 }
 0x3c9   : > { %3977 = vrot.lane.b32.xlu2 %v11637_v55, %s7946_s5  ;;  %3975 = vrot.lane.b32.xlu1 %v11640_v42, %s7946_s5 }
 0x3ca   : > { %3973 = vrot.lane.b32.xlu0 %v11643_v11, %s7946_s5 }
 0x3cb   : > { %v11651_v30 = vpop.permute.xlu2 %3847  ;;  %v11653_v49 = vpop.permute.xlu1 %3827 }
 0x3cc   : > { %14100 = vst [vmem:[#allocation113_spill] sm:$0xff] %v11653_v49  ;;  %v11655_v44 = vpop.permute.xlu0 %3825 }
 0x3cd   : > { %14101 = vst [vmem:[#allocation127_spill] sm:$0xff] %v11655_v44 }
 0x3d1   : > { %3983 = vrot.lane.b32.xlu2 %v11658_v12, %s7946_s5  ;;  %3981 = vrot.lane.b32.xlu1 %v11661_v3, %s7946_s5 }
 0x3d2   : > { %3979 = vrot.lane.b32.xlu0 %v11664_v13, %s7946_s5 }
 0x3d3   : > { %v11672_v49 = vpop.permute.xlu2 %3853  ;;  %v11674_v44 = vpop.permute.xlu1 %3833 }
 0x3d4   : > { %14102 = vst [vmem:[#allocation134_spill] sm:$0xff] %v11672_v49  ;;  %v11676_v63 = vpop.permute.xlu0 %3831 }
 0x3d5   : > { %14103 = vst [vmem:[#allocation132_spill] sm:$0xff] %v11674_v44 }
 0x3d6   : > { %14104 = vst [vmem:[#allocation161_spill] sm:$0xff] %v11676_v63 }
 0x3d9   : > { %3989 = vrot.lane.b32.xlu2 %v11679_v9, %s7946_s5  ;;  %3987 = vrot.lane.b32.xlu1 %v11682_v31, %s7946_s5 }
 0x3da   : > { %3985 = vrot.lane.b32.xlu0 %v6309_v51, %s7946_s5 }
 0x3db   : > { %v11690_v49 = vpop.permute.xlu2 %3859  ;;  %v11692_v44 = vpop.permute.xlu1 %3839 }
 0x3dc   : > { %14105 = vst [vmem:[#allocation178_spill] sm:$0xff] %v11690_v49  ;;  %v11694_v63 = vpop.permute.xlu0 %3837 }
 0x3dd   : > { %14106 = vst [vmem:[#allocation183_spill] sm:$0xff] %v11692_v44 }
 0x3de   : > { %14107 = vst [vmem:[#allocation119_spill] sm:$0xff] %v11694_v63  ;;  %v6319_v63 = vld [vmem:[%s8022_s27 + $0x150] sm:$0xff] }
 0x3e1   : > { %3995 = vrot.lane.b32.xlu2 %v6314_v43, %s7946_s5  ;;  %3993 = vrot.lane.b32.xlu1 %v6313_v4, %s7946_s5 }
 0x3e2   : > { %3991 = vrot.lane.b32.xlu0 %v11699_v62, %s7946_s5 }
 0x3e3   : > { %v11705_v51 = vpop.permute.xlu2 %3865  ;;  %v11707_v49 = vpop.permute.xlu1 %3845 }
 0x3e4   : > { %14108 = vst [vmem:[#allocation133_spill] sm:$0xff] %v11705_v51  ;;  %v11709_v44 = vpop.permute.xlu0 %3843 }
 0x3e5   : > { %14109 = vst [vmem:[#allocation138_spill] sm:$0xff] %v11707_v49  ;;  %v11730_v49 = vld [vmem:[%s8022_s27 + $0x160] sm:$0xff] }
 0x3e6   : > { %14110 = vst [vmem:[#allocation168_spill] sm:$0xff] %v11709_v44  ;;  %v11727_v44 = vld [vmem:[%s8022_s27 + $0x170] sm:$0xff] }
 0x3e7   : > { %14115 = vst [vmem:[#allocation146_spill] sm:$0xff] %v11727_v44 }
 0x3e8   : > { %14116 = vst [vmem:[#allocation160_spill] sm:$0xff] %v11730_v49 }
 0x3e9   : > { %4065 = vrot.lane.b32.xlu2 %v6319_v63, %s7947_s6  ;;  %3999 = vrot.lane.b32.xlu1 %v6316_v41, %s7946_s5 }
 0x3ea   : > { %3997 = vrot.lane.b32.xlu0 %v6315_v45, %s7946_s5 }
 0x3eb   : > { %v11717_v43 = vpop.permute.xlu2 %3871  ;;  %v11719_v4 = vpop.permute.xlu1 %3851 }
 0x3ec   : > { %14111 = vst [vmem:[#allocation184_spill] sm:$0xff] %v11717_v43  ;;  %v11721_v51 = vpop.permute.xlu0 %3849  ;;  %v11745_v43 = vld [vmem:[%s8022_s27 + $0x1b0] sm:$0xff] }
 0x3ed   : > { %14112 = vst [vmem:[#allocation33_spill] sm:$0xff] %v11719_v4  ;;  %v11751_v4 = vld [vmem:[%s8022_s27 + $0x190] sm:$0xff] }
 0x3ee   : > { %14113 = vst [vmem:[#allocation112_spill] sm:$0xff] %v11721_v51  ;;  %v11748_v51 = vld [vmem:[%s8022_s27 + $0x1a0] sm:$0xff] }
 0x3ef   : > { %14120 = vst [vmem:[#allocation152_spill] sm:$0xff] %v11745_v43 }
 0x3f0   : > { %14121 = vst [vmem:[#allocation167_spill] sm:$0xff] %v11748_v51 }
 0x3f1   : > { %4071 = vrot.lane.b32.xlu2 %v11724_v23, %s7947_s6  ;;  %4069 = vrot.lane.b32.xlu1 %v11727_v44, %s7947_s6  ;;  %14122 = vst [vmem:[#allocation174_spill] sm:$0xff] %v11751_v4  ;;  %v6328_v23 = vld [vmem:[%s8022_s27 + $0x200] sm:$0xff]  ;;  %v6327_v44 = vld [vmem:[%s8022_s27 + $0x1f0] sm:$0xff] }
 0x3f2   : > { %4067 = vrot.lane.b32.xlu0 %v11730_v49, %s7947_s6  ;;  %v11768_v49 = vld [vmem:[%s8022_s27 + $0x1c0] sm:$0xff] }
 0x3f3   : > { %v11738_v45 = vpop.permute.xlu2 %3941  ;;  %v11740_v41 = vpop.permute.xlu1 %3857  ;;  %14126 = vst [vmem:[#allocation150_spill] sm:$0xff] %v11768_v49 }
 0x3f4   : > { %14117 = vst [vmem:[#allocation165_spill] sm:$0xff] %v11738_v45  ;;  %v11742_v63 = vpop.permute.xlu0 %3855 }
 0x3f5   : > { %14118 = vst [vmem:[#allocation118_spill] sm:$0xff] %v11740_v41 }
 0x3f6   : > { %14119 = vst [vmem:[#allocation123_spill] sm:$0xff] %v11742_v63 }
 0x3f9   : > { %4077 = vrot.lane.b32.xlu2 %v11745_v43, %s7947_s6  ;;  %4075 = vrot.lane.b32.xlu1 %v11748_v51, %s7947_s6  ;;  %v6330_v51 = vld [vmem:[%s8022_s27 + $0x220] sm:$0xff] }
 0x3fa   : > { %4073 = vrot.lane.b32.xlu0 %v11751_v4, %s7947_s6  ;;  %v6329_v4 = vld [vmem:[%s8022_s27 + $0x210] sm:$0xff] }
 0x3fb   : > { %v11759_v45 = vpop.permute.xlu2 %3947  ;;  %v11761_v41 = vpop.permute.xlu1 %3863 }
 0x3fc   : > { %14123 = vst [vmem:[#allocation106_spill] sm:$0xff] %v11759_v45  ;;  %v11763_v63 = vpop.permute.xlu0 %3861 }
 0x3fd   : > { %14124 = vst [vmem:[#allocation131_spill] sm:$0xff] %v11761_v41 }
 0x3fe   : > { %14125 = vst [vmem:[#allocation145_spill] sm:$0xff] %v11763_v63  ;;  %v6331_v63 = vld [vmem:[%s8022_s27 + $0x230] sm:$0xff] }
 0x401   : > { %4083 = vrot.lane.b32.xlu2 %v6328_v23, %s7947_s6  ;;  %4081 = vrot.lane.b32.xlu1 %v6327_v44, %s7947_s6 }
 0x402   : > { %4079 = vrot.lane.b32.xlu0 %v11768_v49, %s7947_s6  ;;  %v6332_v49 = vld [vmem:[%s8022_s27 + $0x240] sm:$0xff] }
 0x403   : > { %v11774_v43 = vpop.permute.xlu2 %3953  ;;  %v11776_v45 = vpop.permute.xlu1 %3869 }
 0x404   : > { %14127 = vst [vmem:[#allocation107_spill] sm:$0xff] %v11774_v43  ;;  %v11778_v41 = vpop.permute.xlu0 %3867 }
 0x405   : > { %14128 = vst [vmem:[#allocation182_spill] sm:$0xff] %v11776_v45  ;;  %v6334_v45 = vld [vmem:[%s8022_s27 + $0x260] sm:$0xff] }
 0x406   : > { %14129 = vst [vmem:[#allocation108_spill] sm:$0xff] %v11778_v41  ;;  %v6333_v41 = vld [vmem:[%s8022_s27 + $0x250] sm:$0xff] }
 0x409   : > { %4089 = vrot.lane.b32.xlu2 %v6331_v63, %s7947_s6  ;;  %4087 = vrot.lane.b32.xlu1 %v6330_v51, %s7947_s6 }
 0x40a   : > { %4085 = vrot.lane.b32.xlu0 %v6329_v4, %s7947_s6 }
 0x40b   : > { %v11786_v23 = vpop.permute.xlu2 %3959  ;;  %v11788_v44 = vpop.permute.xlu1 %3939 }
 0x40c   : > { %14130 = vst [vmem:[#allocation137_spill] sm:$0xff] %v11786_v23  ;;  %v11790_v43 = vpop.permute.xlu0 %3937  ;;  %v11805_v23 = vld [vmem:[%s8022_s27 + $0x2b0] sm:$0xff] }
 0x40d   : > { %14131 = vst [vmem:[#allocation151_spill] sm:$0xff] %v11788_v44  ;;  %v6336_v44 = vld [vmem:[%s8022_s27 + $0x2a0] sm:$0xff] }
 0x40e   : > { %14132 = vst [vmem:[#allocation156_spill] sm:$0xff] %v11790_v43  ;;  %v6335_v43 = vld [vmem:[%s8022_s27 + $0x290] sm:$0xff] }
 0x40f   : > { %14136 = vst [vmem:[#allocation130_spill] sm:$0xff] %v11805_v23 }
 0x411   : > { %4095 = vrot.lane.b32.xlu2 %v6334_v45, %s7947_s6  ;;  %4093 = vrot.lane.b32.xlu1 %v6333_v41, %s7947_s6 }
 0x412   : > { %4091 = vrot.lane.b32.xlu0 %v6332_v49, %s7947_s6 }
 0x413   : > { %v11798_v51 = vpop.permute.xlu2 %3965  ;;  %v11800_v4 = vpop.permute.xlu1 %3945 }
 0x414   : > { %14133 = vst [vmem:[#allocation28_spill] sm:$0xff] %v11798_v51  ;;  %v11802_v63 = vpop.permute.xlu0 %3943  ;;  %v11826_v51 = vld [vmem:[%s8022_s27 + $0x2c0] sm:$0xff] }
 0x415   : > { %14134 = vst [vmem:[#allocation47_spill] sm:$0xff] %v11800_v4  ;;  %v11820_v4 = vld [vmem:[%s8022_s27 + $0x2e0] sm:$0xff] }
 0x416   : > { %14135 = vst [vmem:[#allocation116_spill] sm:$0xff] %v11802_v63  ;;  %v11823_v63 = vld [vmem:[%s8022_s27 + $0x2d0] sm:$0xff] }
 0x417   : > { %14140 = vst [vmem:[#allocation16_spill] sm:$0xff] %v11820_v4 }
 0x418   : > { %14141 = vst [vmem:[#allocation55_spill] sm:$0xff] %v11823_v63 }
 0x419   : > { %4101 = vrot.lane.b32.xlu2 %v11805_v23, %s7947_s6  ;;  %4099 = vrot.lane.b32.xlu1 %v6336_v44, %s7947_s6  ;;  %14142 = vst [vmem:[#allocation122_spill] sm:$0xff] %v11826_v51  ;;  %v7884_v23 = vld [vmem:[%s8022_s27 + $0x330] sm:$0xff] }
 0x41a   : > { %4097 = vrot.lane.b32.xlu0 %v6335_v43, %s7947_s6 }
 0x41b   : > { %v11813_v49 = vpop.permute.xlu2 %3971  ;;  %v11815_v45 = vpop.permute.xlu1 %3951 }
 0x41c   : > { %14137 = vst [vmem:[#allocation135_spill] sm:$0xff] %v11813_v49  ;;  %v11817_v41 = vpop.permute.xlu0 %3949  ;;  %v11844_v49 = vld [vmem:[%s8022_s27 + $0x2f0] sm:$0xff] }
 0x41d   : > { %14138 = vst [vmem:[#allocation164_spill] sm:$0xff] %v11815_v45 }
 0x41e   : > { %14139 = vst [vmem:[#allocation181_spill] sm:$0xff] %v11817_v41  ;;  %v11841_v41 = vld [vmem:[%s8022_s27 + $0x300] sm:$0xff] }
 0x41f   : > { %14146 = vst [vmem:[#allocation12_spill] sm:$0xff] %v11841_v41 }
 0x420   : > { %14147 = vst [vmem:[#allocation22_spill] sm:$0xff] %v11844_v49 }
 0x421   : > { %4107 = vrot.lane.b32.xlu2 %v11820_v4, %s7947_s6  ;;  %4105 = vrot.lane.b32.xlu1 %v11823_v63, %s7947_s6  ;;  %v7885_v4 = vld [vmem:[%s8022_s27 + $0x350] sm:$0xff]  ;;  %v11883_v63 = vld [vmem:[%s8022_s27 + $0x161] sm:$0xff] }
 0x422   : > { %4103 = vrot.lane.b32.xlu0 %v11826_v51, %s7947_s6  ;;  %14154 = vst [vmem:[#allocation169_spill] sm:$0xff] %v11883_v63  ;;  %v11901_v51 = vld [vmem:[%s8022_s27 + $0x181] sm:$0xff] }
 0x423   : > { %v11834_v43 = vpop.permute.xlu2 %3977  ;;  %v11836_v44 = vpop.permute.xlu1 %3957  ;;  %14159 = vst [vmem:[#allocation126_spill] sm:$0xff] %v11901_v51 }
 0x424   : > { %14143 = vst [vmem:[#allocation136_spill] sm:$0xff] %v11834_v43  ;;  %v11838_v45 = vpop.permute.xlu0 %3955 }
 0x425   : > { %14144 = vst [vmem:[#allocation141_spill] sm:$0xff] %v11836_v44 }
 0x426   : > { %14145 = vst [vmem:[#allocation173_spill] sm:$0xff] %v11838_v45 }
 0x429   : > { %4113 = vrot.lane.b32.xlu2 %v7884_v23, %s7947_s6  ;;  %4111 = vrot.lane.b32.xlu1 %v11841_v41, %s7947_s6  ;;  %v7886_v23 = vld [vmem:[%s8022_s27 + $0x340] sm:$0xff] }
 0x42a   : > { %4109 = vrot.lane.b32.xlu0 %v11844_v49, %s7947_s6 }
 0x42b   : > { %v11852_v43 = vpop.permute.xlu2 %3983  ;;  %v11854_v44 = vpop.permute.xlu1 %3963 }
 0x42c   : > { %14148 = vst [vmem:[#allocation38_spill] sm:$0xff] %v11852_v43  ;;  %v11856_v45 = vpop.permute.xlu0 %3961 }
 0x42d   : > { %14149 = vst [vmem:[#allocation59_spill] sm:$0xff] %v11856_v45  ;;  %v7887_v45 = vld [vmem:[%s8022_s27 + $0x380] sm:$0xff] }
 0x431   : > { %4119 = vrot.lane.b32.xlu2 %v11061_v25, %s7947_s6  ;;  %4117 = vrot.lane.b32.xlu1 %v7885_v4, %s7947_s6  ;;  %v7888_v25 = vld [vmem:[%s8022_s27 + $0x370] sm:$0xff] }
 0x432   : > { %4115 = vrot.lane.b32.xlu0 %v7886_v23, %s7947_s6 }
 0x433   : > { %v11864_v41 = vpop.permute.xlu2 %3989  ;;  %v11866_v49 = vpop.permute.xlu1 %3969 }
 0x434   : > { %14150 = vst [vmem:[#allocation115_spill] sm:$0xff] %v11864_v41  ;;  %v11868_v43 = vpop.permute.xlu0 %3967 }
 0x435   : > { %14151 = vst [vmem:[#allocation120_spill] sm:$0xff] %v11868_v43  ;;  %v6350_v43 = vld [vmem:[%s8022_s27 + $0x3a0] sm:$0xff] }
 0x439   : > { %4125 = vrot.lane.b32.xlu2 %v11115_v15, %s7947_s6  ;;  %4123 = vrot.lane.b32.xlu1 %v7887_v45, %s7947_s6 }
 0x43a   : > { %4121 = vrot.lane.b32.xlu0 %v7888_v25, %s7947_s6 }
 0x43b   : > { %v11876_v4 = vpop.permute.xlu2 %3995  ;;  %v11878_v23 = vpop.permute.xlu1 %3975 }
 0x43c   : > { %14152 = vst [vmem:[#allocation149_spill] sm:$0xff] %v11876_v4  ;;  %v11880_v41 = vpop.permute.xlu0 %3973  ;;  %v11898_v4 = vld [vmem:[%s8022_s27 + $0x191] sm:$0xff] }
 0x43d   : > { %14153 = vst [vmem:[#allocation163_spill] sm:$0xff] %v11880_v41  ;;  %v11904_v41 = vld [vmem:[%s8022_s27 + $0x171] sm:$0xff] }
 0x43e   : > { %14158 = vst [vmem:[#allocation121_spill] sm:$0xff] %v11898_v4 }
 0x441   : > { %4195 = vrot.lane.b32.xlu2 %v11883_v63, %s7948_s7  ;;  %4193 = vrot.lane.b32.xlu1 %v11107_v21, %s7948_s7  ;;  %v11925_v63 = vld [vmem:[%s8022_s27 + $0x1a1] sm:$0xff] }
 0x442   : > { %4127 = vrot.lane.b32.xlu0 %v6350_v43, %s7947_s6  ;;  %14165 = vst [vmem:[#allocation56_spill] sm:$0xff] %v11925_v63 }
 0x443   : > { %v11891_v15 = vpop.permute.xlu2 %4065  ;;  %v11893_v45 = vpop.permute.xlu1 %3981 }
 0x444   : > { %14155 = vst [vmem:[#allocation46_spill] sm:$0xff] %v11891_v15  ;;  %v11895_v25 = vpop.permute.xlu0 %3979 }
 0x445   : > { %14156 = vst [vmem:[#allocation54_spill] sm:$0xff] %v11893_v45  ;;  %v11919_v45 = vld [vmem:[%s8022_s27 + $0x1c1] sm:$0xff] }
 0x446   : > { %14157 = vst [vmem:[#allocation2_spill] sm:$0xff] %v11895_v25  ;;  %v11922_v25 = vld [vmem:[%s8022_s27 + $0x1b1] sm:$0xff] }
 0x447   : > { %14163 = vst [vmem:[#allocation51_spill] sm:$0xff] %v11919_v45 }
 0x448   : > { %14164 = vst [vmem:[#allocation3_spill] sm:$0xff] %v11922_v25 }
 0x449   : > { %4201 = vrot.lane.b32.xlu2 %v11898_v4, %s7948_s7  ;;  %4199 = vrot.lane.b32.xlu1 %v11901_v51, %s7948_s7  ;;  %v11940_v4 = vld [vmem:[%s8022_s27 + $0x211] sm:$0xff]  ;;  %v11943_v51 = vld [vmem:[%s8022_s27 + $0x201] sm:$0xff] }
 0x44a   : > { %4197 = vrot.lane.b32.xlu0 %v11904_v41, %s7948_s7  ;;  %14169 = vst [vmem:[#allocation5_spill] sm:$0xff] %v11940_v4 }
 0x44b   : > { %v11912_v21 = vpop.permute.xlu2 %4071  ;;  %v11914_v43 = vpop.permute.xlu1 %3987  ;;  %14170 = vst [vmem:[#allocation185_spill] sm:$0xff] %v11943_v51 }
 0x44c   : > { %14160 = vst [vmem:[#allocation155_spill] sm:$0xff] %v11912_v21  ;;  %v11916_v15 = vpop.permute.xlu0 %3985 }
 0x44d   : > { %14161 = vst [vmem:[#allocation172_spill] sm:$0xff] %v11914_v43 }
 0x44e   : > { %14162 = vst [vmem:[#allocation177_spill] sm:$0xff] %v11916_v15 }
 0x451   : > { %4207 = vrot.lane.b32.xlu2 %v11919_v45, %s7948_s7  ;;  %4205 = vrot.lane.b32.xlu1 %v11922_v25, %s7948_s7  ;;  %v6364_v45 = vld [vmem:[%s8022_s27 + $0x241] sm:$0xff]  ;;  %v11959_v25 = vld [vmem:[%s8022_s27 + $0x231] sm:$0xff] }
 0x452   : > { %4203 = vrot.lane.b32.xlu0 %v11925_v63, %s7948_s7  ;;  %14173 = vst [vmem:[#allocation8_spill] sm:$0xff] %v11959_v25  ;;  %v11962_v63 = vld [vmem:[%s8022_s27 + $0x221] sm:$0xff] }
 0x453   : > { %v11933_v21 = vpop.permute.xlu2 %4077  ;;  %v11935_v15 = vpop.permute.xlu1 %3993  ;;  %14174 = vst [vmem:[#allocation34_spill] sm:$0xff] %v11962_v63 }
 0x454   : > { %14166 = vst [vmem:[#allocation148_spill] sm:$0xff] %v11933_v21  ;;  %v11937_v43 = vpop.permute.xlu0 %3991 }
 0x455   : > { %14167 = vst [vmem:[#allocation153_spill] sm:$0xff] %v11935_v15 }
 0x456   : > { %14168 = vst [vmem:[#allocation105_spill] sm:$0xff] %v11937_v43 }
 0x459   : > { %4213 = vrot.lane.b32.xlu2 %v11940_v4, %s7948_s7  ;;  %4211 = vrot.lane.b32.xlu1 %v11943_v51, %s7948_s7  ;;  %v6365_v51 = vld [vmem:[%s8022_s27 + $0x251] sm:$0xff] }
 0x45a   : > { %4209 = vrot.lane.b32.xlu0 %v11268_v19, %s7948_s7 }
 0x45b   : > { %v11951_v21 = vpop.permute.xlu2 %4083  ;;  %v11953_v15 = vpop.permute.xlu1 %3999 }
 0x45c   : > { %14171 = vst [vmem:[#allocation45_spill] sm:$0xff] %v11953_v15  ;;  %v11955_v43 = vpop.permute.xlu0 %3997 }
 0x45d   : > { %14172 = vst [vmem:[#allocation49_spill] sm:$0xff] %v11955_v43  ;;  %v6366_v43 = vld [vmem:[%s8022_s27 + $0x261] sm:$0xff] }
 0x461   : > { %4219 = vrot.lane.b32.xlu2 %v6364_v45, %s7948_s7  ;;  %4217 = vrot.lane.b32.xlu1 %v11959_v25, %s7948_s7 }
 0x462   : > { %4215 = vrot.lane.b32.xlu0 %v11962_v63, %s7948_s7 }
 0x463   : > { %v11969_v19 = vpop.permute.xlu2 %4089  ;;  %v11971_v4 = vpop.permute.xlu1 %4069 }
 0x464   : > { %14175 = vst [vmem:[#allocation48_spill] sm:$0xff] %v11971_v4  ;;  %v11973_v15 = vpop.permute.xlu0 %4067  ;;  %v11988_v4 = vld [vmem:[%s8022_s27 + $0x2c1] sm:$0xff] }
 0x469   : > { %4225 = vrot.lane.b32.xlu2 %v11412_v58, %s7948_s7  ;;  %4223 = vrot.lane.b32.xlu1 %v6366_v43, %s7948_s7 }
 0x46a   : > { %4221 = vrot.lane.b32.xlu0 %v6365_v51, %s7948_s7 }
 0x46b   : > { %v11981_v45 = vpop.permute.xlu2 %4095  ;;  %v11983_v25 = vpop.permute.xlu1 %4075 }
 0x46c   : > { %14176 = vst [vmem:[#allocation111_spill] sm:$0xff] %v11983_v25  ;;  %v11985_v63 = vpop.permute.xlu0 %4073  ;;  %v12003_v25 = vld [vmem:[%s8022_s27 + $0x2f1] sm:$0xff] }
 0x46d   : > { %14177 = vst [vmem:[#allocation63_spill] sm:$0xff] %v11985_v63 }
 0x471   : > { %4231 = vrot.lane.b32.xlu2 %v11988_v4, %s7948_s7  ;;  %4229 = vrot.lane.b32.xlu1 %v11417_v7, %s7948_s7 }
 0x472   : > { %4227 = vrot.lane.b32.xlu0 %v11422_v33, %s7948_s7 }
 0x473   : > { %v11996_v58 = vpop.permute.xlu2 %4101  ;;  %v11998_v51 = vpop.permute.xlu1 %4081 }
 0x474   : > { %14178 = vst [vmem:[#allocation140_spill] sm:$0xff] %v11998_v51  ;;  %v12000_v43 = vpop.permute.xlu0 %4079  ;;  %v6185_v51 = vld [vmem:[%s8022_s27 + $0x301] sm:$0xff] }
 0x475   : > { %14179 = vst [vmem:[#allocation92_spill] sm:$0xff] %v12000_v43 }
 0x479   : > { %4237 = vrot.lane.b32.xlu2 %v12003_v25, %s7948_s7  ;;  %4235 = vrot.lane.b32.xlu1 %v11445_v2, %s7948_s7 }
 0x47a   : > { %4233 = vrot.lane.b32.xlu0 %v11449_v48, %s7948_s7 }
 0x47b   : > { %v12011_v7 = vpop.permute.xlu2 %4107  ;;  %v12013_v33 = vpop.permute.xlu1 %4087 }
 0x47c   : > { %14180 = vst [vmem:[#allocation154_spill] sm:$0xff] %v12013_v33  ;;  %v12015_v63 = vpop.permute.xlu0 %4085 }
 0x481   : > { %4243 = vrot.lane.b32.xlu2 %v11484_v17, %s7948_s7  ;;  %4241 = vrot.lane.b32.xlu1 %v11463_v16, %s7948_s7 }
 0x482   : > { %4239 = vrot.lane.b32.xlu0 %v6185_v51, %s7948_s7  ;;  %v6382_v51 = vld [vmem:[%s8022_s27 + $0x3a1] sm:$0xff] }
 0x483   : > { %v12023_v2 = vpop.permute.xlu2 %4113  ;;  %v12025_v43 = vpop.permute.xlu1 %4093 }
 0x484   : > { %v4092_v48 = vpop.permute.xlu0 %4091 }
 0x489   : > { %4249 = vrot.lane.b32.xlu2 %v11505_v20, %s7948_s7  ;;  %4247 = vrot.lane.b32.xlu1 %v11478_v18, %s7948_s7 }
 0x48a   : > { %4245 = vrot.lane.b32.xlu0 %v11481_v61, %s7948_s7 }
 0x48b   : > { %v12033_v17 = vpop.permute.xlu2 %4119  ;;  %v12035_v33 = vpop.permute.xlu1 %4099 }
 0x48c   : > { %14181 = vst [vmem:[#allocation159_spill] sm:$0xff] %v12033_v17  ;;  %v4098_v16 = vpop.permute.xlu0 %4097  ;;  %v12072_v17 = vld [vmem:[%s8022_s27 + $0x1c2] sm:$0xff] }
 0x491   : > { %4255 = vrot.lane.b32.xlu2 %v6382_v51, %s7948_s7  ;;  %4253 = vrot.lane.b32.xlu1 %v11499_v36, %s7948_s7 }
 0x492   : > { %4251 = vrot.lane.b32.xlu0 %v11502_v29, %s7948_s7 }
 0x493   : > { %v12043_v20 = vpop.permute.xlu2 %4125  ;;  %v12045_v18 = vpop.permute.xlu1 %4105 }
 0x494   : > { %14182 = vst [vmem:[#allocation36_spill] sm:$0xff] %v12043_v20  ;;  %v4104_v61 = vpop.permute.xlu0 %4103 }
 0x499   : > { %4325 = vrot.lane.b32.xlu2 %v11544_v60, %s7949_s8  ;;  %4323 = vrot.lane.b32.xlu1 %v11520_v35, %s7949_s8 }
 0x49a   : > { %4321 = vrot.lane.b32.xlu0 %v11523_v5, %s7949_s8 }
 0x49b   : > { %v12053_v51 = vpop.permute.xlu2 %4195  ;;  %v12055_v36 = vpop.permute.xlu1 %4111 }
 0x49c   : > { %v12057_v29 = vpop.permute.xlu0 %4109 }
 0x4a1   : > { %4331 = vrot.lane.b32.xlu2 %v11563_v53, %s7949_s8  ;;  %4329 = vrot.lane.b32.xlu1 %v11538_v0, %s7949_s8 }
 0x4a2   : > { %4327 = vrot.lane.b32.xlu0 %v11541_v27, %s7949_s8 }
 0x4a3   : > { %v12065_v60 = vpop.permute.xlu2 %4201  ;;  %v12067_v20 = vpop.permute.xlu1 %4117 }
 0x4a4   : > { %14183 = vst [vmem:[#allocation39_spill] sm:$0xff] %v12065_v60  ;;  %v12069_v5 = vpop.permute.xlu0 %4115 }
 0x4a9   : > { %4337 = vrot.lane.b32.xlu2 %v11583_v38, %s7949_s8  ;;  %4335 = vrot.lane.b32.xlu1 %v12072_v17, %s7949_s8 }
 0x4aa   : > { %4333 = vrot.lane.b32.xlu0 %v11560_v6, %s7949_s8 }
 0x4ab   : > { %v12080_v53 = vpop.permute.xlu2 %4207  ;;  %v12082_v27 = vpop.permute.xlu1 %4123 }
 0x4ac   : > { %14184 = vst [vmem:[#allocation50_spill] sm:$0xff] %v12080_v53  ;;  %v12084_v0 = vpop.permute.xlu0 %4121  ;;  %v14232_v53 = vld [vmem:[#allocation113_spill] sm:$0xff] }
 0x4ad   : > { %14185 = vst [vmem:[#allocation44_spill] sm:$0xff] %v12082_v27  ;;  %v4814_v27 = vsel %vm3026_vm0, %v11225_v24, %v10994_v28 }
 0x4ae   : > { %14186 = vst [vmem:[#allocation53_spill] sm:$0xff] %v12084_v0  ;;  %v14227_v0 = vld [vmem:[#allocation89_spill] sm:$0xff] }
 0x4b1   : > { %4343 = vrot.lane.b32.xlu2 %v11604_v47, %s7949_s8  ;;  %4341 = vrot.lane.b32.xlu1 %v11577_v52, %s7949_s8  ;;  %v4846_v47 = vsel %vm3059_vm1, %v4814_v27, %v11475_v22 }
 0x4b2   : > { %4339 = vrot.lane.b32.xlu0 %v11580_v46, %s7949_s8  ;;  %v4878_v52 = vsel %vm3092_vm2, %v4846_v47, %v11612_v37 }
 0x4b3   : > { %v12092_v38 = vpop.permute.xlu2 %4213  ;;  %v12094_v60 = vpop.permute.xlu1 %4193  ;;  %v4910_v46 = vsel %vm3125_vm3, %v4878_v52, %v11854_v44  ;;  %v6398_v44 = vld [vmem:[%s8022_s27 + $0x262] sm:$0xff] }
 0x4b4   : > { %v12096_v6 = vpop.permute.xlu0 %4127  ;;  %v4942_v28 = vsel %vm3158_vm4, %v4910_v46, %v4092_v48  ;;  %v12168_v46 = vld [vmem:[%s8022_s27 + $0x302] sm:$0xff] }
 0x4b5   : > { %14187 = vst [vmem:[#allocation24_spill] sm:$0xff] %v12096_v6  ;;  %v6484_v6 = vld [vmem:[%s8022_s27 + $0x192] sm:$0xff] }
 0x4b9   : > { %4349 = vrot.lane.b32.xlu2 %v11623_v1, %s7949_s8  ;;  %4347 = vrot.lane.b32.xlu1 %v11598_v54, %s7949_s8  ;;  %v4817_v1 = vsel %vm3026_vm0, %v11275_v40, %v11040_v56 }
 0x4ba   : > { %4345 = vrot.lane.b32.xlu0 %v11601_v57, %s7949_s8  ;;  %v4849_v54 = vsel %vm3059_vm1, %v4817_v1, %v11496_v39 }
 0x4bb   : > { %v4220_v24 = vpop.permute.xlu2 %4219  ;;  %v12117_v27 = vpop.permute.xlu1 %4199  ;;  %v4881_v57 = vsel %vm3092_vm2, %v4849_v54, %v11630_v50 }
 0x4bc   : > { %v12115_v22 = vsel %vm3191_vm5, %v4942_v28, %v4220_v24  ;;  %v12119_v37 = vpop.permute.xlu0 %4197  ;;  %v4913_v48 = vsel %vm3125_vm3, %v4881_v57, %v11866_v49  ;;  %v14192_v57 = vld [vmem:[#allocation160_spill] sm:$0xff] }
 0x4bd   : > { %v4945_v40 = vsel %vm3158_vm4, %v4913_v48, %v4098_v16  ;;  %v14193_v48 = vld [vmem:[#allocation163_spill] sm:$0xff] }
 0x4c1   : > { %4355 = vrot.lane.b32.xlu2 %v11643_v11, %s7949_s8  ;;  %4353 = vrot.lane.b32.xlu1 %v11619_v26, %s7949_s8  ;;  %v4820_v11 = vsel %vm3026_vm0, %v11320_v32, %v11092_v8 }
 0x4c2   : > { %4351 = vrot.lane.b32.xlu0 %v6398_v44, %s7949_s8  ;;  %v4852_v26 = vsel %vm3059_vm1, %v4820_v11, %v11517_v34  ;;  %v4819_v44 = vsel %vm3026_vm0, %v11329_v59, %v11094_v10  ;;  %v14195_v11 = vld [vmem:[#allocation166_spill] sm:$0xff] }
 0x4c3   : > { %v4226_v56 = vpop.permute.xlu2 %4225  ;;  %v12140_v47 = vpop.permute.xlu1 %4205  ;;  %v4884_v49 = vsel %vm3092_vm2, %v4852_v26, %v11651_v30  ;;  %v4851_v54 = vsel %vm3059_vm1, %v4819_v44, %v11434_v14  ;;  %v14196_v26 = vld [vmem:[#allocation72_spill] sm:$0xff]  ;;  %v14199_v44 = vld [vmem:[#allocation33_spill] sm:$0xff] }
 0x4c4   : > { %v12138_v39 = vsel %vm3191_vm5, %v4945_v40, %v4226_v56  ;;  %v12142_v50 = vpop.permute.xlu0 %4203  ;;  %v4916_v16 = vsel %vm3125_vm3, %v4884_v49, %v11878_v23  ;;  %v4822_v49 = vsel %vm3026_vm0, %v14196_v26, %v14195_v11 }
 0x4c5   : > { %v4948_v8 = vsel %vm3158_vm4, %v4916_v16, %v4104_v61  ;;  %v14197_v16 = vld [vmem:[#allocation80_spill] sm:$0xff] }
 0x4c9   : > { %4361 = vrot.lane.b32.xlu2 %v11664_v13, %s7949_s8  ;;  %4359 = vrot.lane.b32.xlu1 %v11637_v55, %s7949_s8 }
 0x4ca   : > { %4357 = vrot.lane.b32.xlu0 %v11640_v42, %s7949_s8 }
 0x4cb   : > { %v4232_v32 = vpop.permute.xlu2 %4231  ;;  %v12163_v52 = vpop.permute.xlu1 %4211 }
 0x4cc   : > { %v12161_v34 = vsel %vm3191_vm5, %v4948_v8, %v4232_v32  ;;  %v12165_v30 = vpop.permute.xlu0 %4209  ;;  %v4854_v8 = vsel %vm3059_vm1, %v4822_v49, %v14197_v16  ;;  %v14198_v32 = vld [vmem:[#allocation130_spill] sm:$0xff] }
 0x4cd   : > { %14188 = vst [vmem:[#allocation37_spill] sm:$0xff] %v12165_v30  ;;  %v14203_v49 = vld [vmem:[#allocation122_spill] sm:$0xff]  ;;  %v14229_v30 = vld [vmem:[#allocation83_spill] sm:$0xff] }
 0x4ce   : > { %v14204_v16 = vld [vmem:[#allocation126_spill] sm:$0xff] }
 0x4d1   : > { %4367 = vrot.lane.b32.xlu2 %v12168_v46, %s7949_s8  ;;  %4365 = vrot.lane.b32.xlu1 %v11658_v12, %s7949_s8 }
 0x4d2   : > { %4363 = vrot.lane.b32.xlu0 %v11661_v3, %s7949_s8 }
 0x4d3   : > { %v12176_v23 = vpop.permute.xlu2 %4237  ;;  %v12178_v61 = vpop.permute.xlu1 %4217 }
 0x4d4   : > { %v12180_v28 = vpop.permute.xlu0 %4215 }
 0x4d5   : > { %14189 = vst [vmem:[#allocation58_spill] sm:$0xff] %v12180_v28  ;;  %v14228_v28 = vld [vmem:[#allocation162_spill] sm:$0xff] }
 0x4d9   : > { %4373 = vrot.lane.b32.xlu2 %v11699_v62, %s7949_s8  ;;  %4371 = vrot.lane.b32.xlu1 %v11679_v9, %s7949_s8  ;;  %v14190_v62 = vld [vmem:[#allocation138_spill] sm:$0xff] }
 0x4da   : > { %4369 = vrot.lane.b32.xlu0 %v11682_v31, %s7949_s8  ;;  %v4883_v9 = vsel %vm3092_vm2, %v4851_v54, %v14190_v62  ;;  %v14191_v31 = vld [vmem:[#allocation169_spill] sm:$0xff]  ;;  %v14200_v54 = vld [vmem:[#allocation146_spill] sm:$0xff] }
 0x4db   : > { %v12188_v24 = vpop.permute.xlu2 %4243  ;;  %v12190_v12 = vpop.permute.xlu1 %4223  ;;  %v4915_v40 = vsel %vm3125_vm3, %v4883_v9, %v14193_v48  ;;  %v14201_v62 = vld [vmem:[#allocation2_spill] sm:$0xff] }
 0x4dc   : > { %v12192_v1 = vpop.permute.xlu0 %4221  ;;  %v4947_v10 = vsel %vm3158_vm4, %v4915_v40, %v11996_v58  ;;  %v4886_v58 = vsel %vm3092_vm2, %v4854_v8, %v14199_v44  ;;  %v14205_v8 = vld [vmem:[#allocation117_spill] sm:$0xff] }
 0x4dd   : > { %v4918_v9 = vsel %vm3125_vm3, %v4886_v58, %v14201_v62  ;;  %v6483_v58 = vld [vmem:[%s8022_s27 + $0x182] sm:$0xff] }
 0x4e1   : > { %4705 = vrot.lane.b32.xlu2 %v11520_v35, %s7952_s11  ;;  %4577 = vrot.lane.b32.xlu1 %v14191_v31, %s7951_s10 }
 0x4e2   : > { %4449 = vrot.lane.b32.xlu0 %v14192_v57, %s7950_s9  ;;  %v4950_v57 = vsel %vm3158_vm4, %v4918_v9, %v12011_v7 }
 0x4e3   : > { %v12209_v56 = vpop.permute.xlu2 %4249  ;;  %v4230_v59 = vpop.permute.xlu1 %4229 }
 0x4e4   : > { %14194 = vst [vmem:[#allocation15_spill] sm:$0xff] %v12209_v56  ;;  %v12213_v14 = vpop.permute.xlu0 %4227  ;;  %v12216_v35 = vsel %vm3191_vm5, %v4947_v10, %v4230_v59  ;;  %v6466_v59 = vld [vmem:[%s8022_s27 + $0x2b1] sm:$0xff] }
 0x4e9   : > { %4483 = vrot.lane.b32.xlu2 %v14198_v32, %s7950_s9  ;;  %4579 = vrot.lane.b32.xlu1 %v11904_v41, %s7951_s10  ;;  %v6482_v41 = vld [vmem:[%s8022_s27 + $0x172] sm:$0xff] }
 0x4ea   : > { %4451 = vrot.lane.b32.xlu0 %v14200_v54, %s7950_s9 }
 0x4eb   : > { %v12233_v31 = vpop.permute.xlu2 %4255  ;;  %v4236_v48 = vpop.permute.xlu1 %4235 }
 0x4ec   : > { %14202 = vst [vmem:[#allocation17_spill] sm:$0xff] %v12233_v31  ;;  %v12237_v40 = vpop.permute.xlu0 %4233  ;;  %v12240_v10 = vsel %vm3191_vm5, %v4950_v57, %v4236_v48  ;;  %v14210_v57 = vld [vmem:[#allocation55_spill] sm:$0xff]  ;;  %v14211_v48 = vld [vmem:[#allocation121_spill] sm:$0xff] }
 0x4f1   : > { %4739 = vrot.lane.b32.xlu2 %v11640_v42, %s7952_s11  ;;  %4611 = vrot.lane.b32.xlu1 %v6466_v59, %s7951_s10  ;;  %v6169_v59 = vld [vmem:[%s8022_s27 + $0x1c1] sm:$0xff] }
 0x4f2   : > { %4707 = vrot.lane.b32.xlu0 %v6482_v41, %s7952_s11 }
 0x4f3   : > { %v12248_v11 = vpop.permute.xlu2 %4325  ;;  %v12250_v26 = vpop.permute.xlu1 %4241 }
 0x4f4   : > { %v12252_v7 = vpop.permute.xlu0 %4239 }
 0x4f9   : > { %4485 = vrot.lane.b32.xlu2 %v14203_v49, %s7950_s9  ;;  %4581 = vrot.lane.b32.xlu1 %v14204_v16, %s7951_s10  ;;  %v14214_v16 = vld [vmem:[#allocation21_spill] sm:$0xff] }
 0x4fa   : > { %4453 = vrot.lane.b32.xlu0 %v14205_v8, %s7950_s9  ;;  %v4815_v8 = vsel %vm3026_vm0, %v6169_v59, %v14214_v16 }
 0x4fb   : > { %v12260_v42 = vpop.permute.xlu2 %4331  ;;  %v12262_v32 = vpop.permute.xlu1 %4247 }
 0x4fc   : > { %14206 = vst [vmem:[#allocation77_spill] sm:$0xff] %v12262_v32  ;;  %v12264_v44 = vpop.permute.xlu0 %4245  ;;  %v6469_v32 = vld [vmem:[%s8022_s27 + $0x2e1] sm:$0xff] }
 0x501   : > { %4741 = vrot.lane.b32.xlu2 %v11637_v55, %s7952_s11  ;;  %4613 = vrot.lane.b32.xlu1 %v11988_v4, %s7951_s10  ;;  %v14212_v55 = vld [vmem:[#allocation174_spill] sm:$0xff] }
 0x502   : > { %4709 = vrot.lane.b32.xlu0 %v6483_v58, %s7952_s11  ;;  %v14215_v58 = vld [vmem:[#allocation85_spill] sm:$0xff] }
 0x503   : > { %v12272_v54 = vpop.permute.xlu2 %4337  ;;  %v12274_v62 = vpop.permute.xlu1 %4253  ;;  %v4847_v31 = vsel %vm3059_vm1, %v4815_v8, %v14215_v58  ;;  %v14223_v58 = vld [vmem:[#allocation30_spill] sm:$0xff] }
 0x504   : > { %14207 = vst [vmem:[#allocation91_spill] sm:$0xff] %v12272_v54  ;;  %v12276_v9 = vpop.permute.xlu0 %4251 }
 0x505   : > { %14208 = vst [vmem:[#allocation96_spill] sm:$0xff] %v12274_v62  ;;  %v14216_v62 = vld [vmem:[#allocation119_spill] sm:$0xff] }
 0x506   : > { %14209 = vst [vmem:[#allocation125_spill] sm:$0xff] %v12276_v9  ;;  %v14217_v9 = vld [vmem:[#allocation28_spill] sm:$0xff] }
 0x509   : > { %4487 = vrot.lane.b32.xlu2 %v14210_v57, %s7950_s9  ;;  %4583 = vrot.lane.b32.xlu1 %v14211_v48, %s7951_s10  ;;  %v6468_v57 = vld [vmem:[%s8022_s27 + $0x2d1] sm:$0xff]  ;;  %v4879_v48 = vsel %vm3092_vm2, %v4847_v31, %v14216_v62 }
 0x50a   : > { %4455 = vrot.lane.b32.xlu0 %v14212_v55, %s7950_s9  ;;  %v4911_v55 = vsel %vm3125_vm3, %v4879_v48, %v14217_v9  ;;  %v14220_v9 = vld [vmem:[#allocation56_spill] sm:$0xff] }
 0x50b   : > { %v12285_v41 = vpop.permute.xlu2 %4343  ;;  %v12287_v4 = vpop.permute.xlu1 %4323  ;;  %v4943_v56 = vsel %vm3158_vm4, %v4911_v55, %v12025_v43  ;;  %v14219_v43 = vld [vmem:[#allocation16_spill] sm:$0xff]  ;;  %v7889_v55 = vld [vmem:[%s8022_s27 + $0x181] sm:$0xff] }
 0x50c   : > { %14213 = vst [vmem:[#allocation139_spill] sm:$0xff] %v12285_v41  ;;  %v12289_v49 = vpop.permute.xlu0 %4321  ;;  %v4975_v59 = vsel %vm3191_vm5, %v4943_v56, %v12192_v1  ;;  %v6485_v41 = vld [vmem:[%s8022_s27 + $0x1a2] sm:$0xff] }
 0x511   : > { %4743 = vrot.lane.b32.xlu2 %v11664_v13, %s7952_s11  ;;  %4615 = vrot.lane.b32.xlu1 %v6468_v57, %s7951_s10  ;;  %v14224_v57 = vld [vmem:[#allocation71_spill] sm:$0xff] }
 0x512   : > { %4711 = vrot.lane.b32.xlu0 %v6484_v6, %s7952_s11  ;;  %v14221_v6 = vld [vmem:[#allocation167_spill] sm:$0xff]  ;;  %v4821_v48 = vsel %vm3026_vm0, %v14224_v57, %v14223_v58  ;;  %v14230_v57 = vld [vmem:[#allocation112_spill] sm:$0xff] }
 0x513   : > { %v4350_v16 = vpop.permute.xlu2 %4349  ;;  %v12312_v62 = vpop.permute.xlu1 %4329 }
 0x514   : > { %v12310_v31 = vsel %vm3224_vm6, %v4975_v59, %v4350_v16  ;;  %v12314_v13 = vpop.permute.xlu0 %4327  ;;  %v14225_v59 = vld [vmem:[#allocation27_spill] sm:$0xff] }
 0x515   : > { %14218 = vst [vmem:[#allocation144_spill] sm:$0xff] %v12310_v31  ;;  %v4811_v16 = vsel %vm3026_vm0, %v7889_v55, %v14225_v59  ;;  %v14226_v31 = vld [vmem:[#allocation31_spill] sm:$0xff] }
 0x516   : > { %v4843_v58 = vsel %vm3059_vm1, %v4811_v16, %v14229_v30  ;;  %v14231_v55 = vld [vmem:[#allocation179_spill] sm:$0xff] }
 0x517   : > { %v4875_v59 = vsel %vm3092_vm2, %v4843_v58, %v14231_v55  ;;  %v5146_v55 = vld [vmem:[%s13255_s1 + $0xc8] sm:$0xff] }
 0x519   : > { %4489 = vrot.lane.b32.xlu2 %v14219_v43, %s7950_s9  ;;  %4585 = vrot.lane.b32.xlu1 %v14220_v9, %s7951_s10  ;;  %v7890_v43 = vld [vmem:[%s8022_s27 + $0x171] sm:$0xff] }
 0x51a   : > { %4457 = vrot.lane.b32.xlu0 %v14221_v6, %s7950_s9  ;;  %v4810_v9 = vsel %vm3026_vm0, %v7890_v43, %v14226_v31  ;;  %v4853_v6 = vsel %vm3059_vm1, %v4821_v48, %v14227_v0  ;;  %v14233_v43 = vld [vmem:[#allocation136_spill] sm:$0xff]  ;;  %v14234_v48 = vld [vmem:[#allocation141_spill] sm:$0xff] }
 0x51b   : > { %v12322_v1 = vpop.permute.xlu2 %4355  ;;  %v12324_v56 = vpop.permute.xlu1 %4335  ;;  %v4842_v54 = vsel %vm3059_vm1, %v4810_v9, %v14228_v28  ;;  %v4907_v28 = vsel %vm3125_vm3, %v4875_v59, %v14234_v48  ;;  %v14235_v9 = vld [vmem:[#allocation173_spill] sm:$0xff]  ;;  %v14238_v48 = vld [vmem:[#allocation94_spill] sm:$0xff] }
 0x51c   : > { %14222 = vst [vmem:[#allocation176_spill] sm:$0xff] %v12324_v56  ;;  %v12326_v8 = vpop.permute.xlu0 %4333  ;;  %v4885_v56 = vsel %vm3092_vm2, %v4853_v6, %v14230_v57  ;;  %v4874_v31 = vsel %vm3092_vm2, %v4842_v54, %v14232_v53  ;;  %v5147_v53 = vld [vmem:[%s13255_s1 + $0xd0] sm:$0xff] }
 0x51d   : > { %v4917_v0 = vsel %vm3125_vm3, %v4885_v56, %v14233_v43  ;;  %v4906_v30 = vsel %vm3125_vm3, %v4874_v31, %v14235_v9  ;;  %v6178_v54 = vld [vmem:[%s8022_s27 + $0x271] sm:$0xff]  ;;  %v4939_v56 = vsel %vm3158_vm4, %v4907_v28, %v12015_v63  ;;  %5362 = vmatpush.msra.mxu1 %v5147_v53  ;;  %6563 = vmatpush.msra.mxu3 %v5147_v53  ;;  %v7891_v31 = vld [vmem:[%s8022_s27 + $0x1a1] sm:$0xff] }
 0x51e   : > { %v4949_v16 = vsel %vm3158_vm4, %v4917_v0, %v12045_v18  ;;  %v14237_v43 = vld [vmem:[#allocation60_spill] sm:$0xff]  ;;  %v14239_v9 = vld [vmem:[#allocation69_spill] sm:$0xff] }
 0x51f   : > { %v4981_v6 = vsel %vm3191_vm5, %v4949_v16, %v12237_v40  ;;  %5363 = vmatpush.msra.mxu1 %v5146_v55  ;;  %6564 = vmatpush.msra.mxu3 %v5146_v55  ;;  %v4813_v0 = vsel %vm3026_vm0, %v7891_v31, %v14237_v43  ;;  %v14240_v16 = vld [vmem:[#allocation123_spill] sm:$0xff] }
 0x520   : > { %v14245_v55 = vld [vmem:[#allocation3_spill] sm:$0xff] }
 0x521   : > { %4745 = vrot.lane.b32.xlu2 %v11661_v3, %s7952_s11  ;;  %4617 = vrot.lane.b32.xlu1 %v6469_v32, %s7951_s10  ;;  %v4938_v3 = vsel %vm3158_vm4, %v4906_v30, %v11951_v21  ;;  %v4971_v32 = vsel %vm3191_vm5, %v4939_v56, %v12092_v38  ;;  %v5145_v38 = vld [vmem:[%s13255_s1 + $0xc0] sm:$0xff]  ;;  %v4845_v30 = vsel %vm3059_vm1, %v4813_v0, %v14239_v9 }
 0x522   : > { %4713 = vrot.lane.b32.xlu0 %v6485_v41, %s7952_s11  ;;  %v4970_v41 = vsel %vm3191_vm5, %v4938_v3, %v12163_v52  ;;  %v14236_v52 = vld [vmem:[#allocation32_spill] sm:$0xff]  ;;  %5364 = vmatpush.msra.mxu1 %v5145_v38 }
 0x523   : > { %v4362_v18 = vpop.permute.xlu2 %4361  ;;  %v4342_v21 = vpop.permute.xlu1 %4341  ;;  %v4824_v59 = vsel %vm3026_vm0, %v6178_v54, %v14236_v52  ;;  %v5144_v54 = vld [vmem:[%s13255_s1 + $0xb8] sm:$0xff]  ;;  %6565 = vmatpush.msra.mxu3 %v5145_v38  ;;  %v14241_v3 = vld [vmem:[#allocation132_spill] sm:$0xff] }
 0x524   : > { %v12378_v58 = vsel %vm3224_vm6, %v4981_v6, %v4362_v18  ;;  %v4340_v57 = vpop.permute.xlu0 %4339  ;;  %v12381_v63 = vsel %vm3224_vm6, %v4971_v32, %v4342_v21  ;;  %v4856_v28 = vsel %vm3059_vm1, %v4824_v59, %v14238_v48  ;;  %v4877_v56 = vsel %vm3092_vm2, %v4845_v30, %v14241_v3  ;;  %v14242_v6 = vld [vmem:[#allocation38_spill] sm:$0xff]  ;;  %v14246_v38 = vld [vmem:[#allocation152_spill] sm:$0xff]  ;;  %5365 = vmatpush.msra.mxu1 %v5144_v54  ;;  %v5142_v30 = vld [vmem:[%s13255_s1 + $0xa8] sm:$0xff] }
 0x525   : > { %v12384_v40 = vsel %vm3224_vm6, %v4970_v41, %v4340_v57  ;;  %v4888_v53 = vsel %vm3092_vm2, %v4856_v28, %v14240_v16  ;;  %v14243_v32 = vld [vmem:[#allocation22_spill] sm:$0xff]  ;;  %v14244_v41 = vld [vmem:[#allocation59_spill] sm:$0xff]  ;;  %v5143_v52 = vld [vmem:[%s13255_s1 + $0xb0] sm:$0xff]  ;;  %6566 = vmatpush.msra.mxu3 %v5144_v54 }
 0x526   : > { %v4920_v18 = vsel %vm3125_vm3, %v4888_v53, %v14242_v6  ;;  %v4909_v21 = vsel %vm3125_vm3, %v4877_v56, %v14244_v41  ;;  %5366 = vmatpush.msra.mxu1 %v5143_v52  ;;  %v7892_v16 = vld [vmem:[%s8022_s27 + $0x2c1] sm:$0xff]  ;;  %v6502_v54 = vld [vmem:[%s8022_s27 + $0x2f2] sm:$0xff] }
 0x527   : > { %v4952_v57 = vsel %vm3158_vm4, %v4920_v18, %v12055_v36  ;;  %v4941_v59 = vsel %vm3158_vm4, %v4909_v21, %v11969_v19  ;;  %v6170_v36 = vld [vmem:[%s8022_s27 + $0x1d1] sm:$0xff]  ;;  %6567 = vmatpush.msra.mxu3 %v5143_v52  ;;  %v5141_v3 = vld [vmem:[%s13255_s1 + $0xa0] sm:$0xff]  ;;  %v14252_v52 = vld [vmem:[#allocation183_spill] sm:$0xff] }
 0x528   : > { %v4984_v31 = vsel %vm3191_vm5, %v4952_v57, %v12252_v7  ;;  %v4973_v0 = vsel %vm3191_vm5, %v4941_v59, %v12178_v61  ;;  %v14247_v61 = vld [vmem:[#allocation61_spill] sm:$0xff]  ;;  %v14249_v6 = vld [vmem:[#allocation128_spill] sm:$0xff]  ;;  %5367 = vmatpush.msra.mxu1 %v5142_v30 }
 0x529   : > { %4491 = vrot.lane.b32.xlu2 %v14243_v32, %s7950_s9  ;;  %4587 = vrot.lane.b32.xlu1 %v14245_v55, %s7951_s10  ;;  %v4827_v53 = vsel %vm3026_vm0, %v7892_v16, %v14247_v61  ;;  %v6486_v32 = vld [vmem:[%s8022_s27 + $0x1b2] sm:$0xff] }
 0x52a   : > { %4459 = vrot.lane.b32.xlu0 %v14246_v38, %s7950_s9  ;;  %v4859_v18 = vsel %vm3059_vm1, %v4827_v53, %v14249_v6  ;;  %6568 = vmatpush.msra.mxu3 %v5142_v30  ;;  %v14250_v41 = vld [vmem:[#allocation73_spill] sm:$0xff] }
 0x52b   : > { %v4368_v43 = vpop.permute.xlu2 %4367  ;;  %v4348_v28 = vpop.permute.xlu1 %4347  ;;  %v14251_v57 = vld [vmem:[#allocation145_spill] sm:$0xff]  ;;  %5368 = vmatpush.msra.mxu1 %v5141_v3 }
 0x52c   : > { %v12431_v48 = vsel %vm3224_vm6, %v4984_v31, %v4368_v43  ;;  %v4346_v9 = vpop.permute.xlu0 %4345  ;;  %v12435_v19 = vsel %vm3224_vm6, %v12115_v22, %v4348_v28  ;;  %v14248_v22 = vld [vmem:[#allocation64_spill] sm:$0xff]  ;;  %v4891_v55 = vsel %vm3092_vm2, %v4859_v18, %v14251_v57  ;;  %v5140_v38 = vld [vmem:[%s13255_s1 + $0x98] sm:$0xff]  ;;  %v14253_v31 = vld [vmem:[#allocation115_spill] sm:$0xff]  ;;  %6569 = vmatpush.msra.mxu3 %v5141_v3 }
 0x52d   : > { %v12438_v7 = vsel %vm3224_vm6, %v4973_v0, %v4346_v9  ;;  %v4816_v56 = vsel %vm3026_vm0, %v6170_v36, %v14248_v22  ;;  %v4923_v43 = vsel %vm3125_vm3, %v4891_v55, %v14253_v31  ;;  %v14254_v36 = vld [vmem:[#allocation120_spill] sm:$0xff]  ;;  %5369 = vmatpush.msra.mxu1 %v5140_v38  ;;  %v6177_v18 = vld [vmem:[%s8022_s27 + $0x261] sm:$0xff] }
 0x52e   : > { %v4848_v21 = vsel %vm3059_vm1, %v4816_v56, %v14250_v41  ;;  %v4955_v28 = vsel %vm3158_vm4, %v4923_v43, %v12067_v20  ;;  %v5139_v9 = vld [vmem:[%s13255_s1 + $0x90] sm:$0xff]  ;;  %6570 = vmatpush.msra.mxu3 %v5140_v38  ;;  %v14257_v56 = vld [vmem:[#allocation150_spill] sm:$0xff]  ;;  %v14258_v57 = vld [vmem:[#allocation95_spill] sm:$0xff] }
 0x52f   : > { %v4880_v59 = vsel %vm3092_vm2, %v4848_v21, %v14252_v52  ;;  %v4987_v16 = vsel %vm3191_vm5, %v4955_v28, %v12264_v44  ;;  %5370 = vmatpush.msra.mxu1 %v5139_v9  ;;  %v5138_v44 = vld [vmem:[%s13255_s1 + $0x88] sm:$0xff]  ;;  %v14255_v3 = vld [vmem:[#allocation12_spill] sm:$0xff]  ;;  %v4823_v55 = vsel %vm3026_vm0, %v6177_v18, %v14258_v57  ;;  %v14259_v52 = vld [vmem:[#allocation93_spill] sm:$0xff] }
 0x530   : > { %v4912_v0 = vsel %vm3125_vm3, %v4880_v59, %v14254_v36  ;;  %6571 = vmatpush.msra.mxu3 %v5139_v9  ;;  %v6471_v38 = vld [vmem:[%s8022_s27 + $0x301] sm:$0xff]  ;;  %v4855_v59 = vsel %vm3059_vm1, %v4823_v55, %v14259_v52  ;;  %v14265_v18 = vld [vmem:[#allocation97_spill] sm:$0xff]  ;;  %v14268_v52 = vld [vmem:[#allocation172_spill] sm:$0xff] }
 0x531   : > { %4747 = vrot.lane.b32.xlu2 %v6502_v54, %s7952_s11  ;;  %4619 = vrot.lane.b32.xlu1 %v12003_v25, %s7951_s10  ;;  %v4944_v30 = vsel %vm3158_vm4, %v4912_v0, %v11981_v45  ;;  %v14260_v31 = vld [vmem:[#allocation134_spill] sm:$0xff] }
 0x532   : > { %4715 = vrot.lane.b32.xlu0 %v6486_v32, %s7952_s11  ;;  %v4976_v20 = vsel %vm3191_vm5, %v4944_v30, %v12190_v12  ;;  %v5137_v12 = vld [vmem:[%s13255_s1 + $0x80] sm:$0xff]  ;;  %5371 = vmatpush.msra.mxu1 %v5138_v44  ;;  %v4887_v43 = vsel %vm3092_vm2, %v4855_v59, %v14260_v31  ;;  %v14269_v31 = vld [vmem:[#allocation177_spill] sm:$0xff] }
 0x533   : > { %v4374_v61 = vpop.permute.xlu2 %4373  ;;  %v4354_v53 = vpop.permute.xlu1 %4353  ;;  %6572 = vmatpush.msra.mxu3 %v5138_v44  ;;  %v14261_v36 = vld [vmem:[#allocation54_spill] sm:$0xff] }
 0x534   : > { %v12484_v25 = vsel %vm3224_vm6, %v4987_v16, %v4374_v61  ;;  %v4352_v54 = vpop.permute.xlu0 %4351  ;;  %v12488_v22 = vsel %vm3224_vm6, %v12138_v39, %v4354_v53  ;;  %5372 = vmatpush.msra.mxu1 %v5137_v12  ;;  %v14256_v39 = vld [vmem:[#allocation51_spill] sm:$0xff]  ;;  %v14263_v44 = vld [vmem:[#allocation114_spill] sm:$0xff] }
 0x535   : > { %v12491_v45 = vsel %vm3224_vm6, %v4976_v20, %v4352_v54  ;;  %6573 = vmatpush.msra.mxu3 %v5137_v12  ;;  %v6440_v20 = vld [vmem:[%s8022_s27 + $0x310] sm:$0xff]  ;;  %v14262_v53 = vld [vmem:[#allocation67_spill] sm:$0xff]  ;;  %v14267_v55 = vld [vmem:[#allocation118_spill] sm:$0xff] }
 0x536   : > { %v7894_v54 = vld [vmem:[%s8022_s27 + $0x2a1] sm:$0xff] }
 0x537   : > { %v4825_v12 = vsel %vm3026_vm0, %v7894_v54, %v14263_v44  ;;  %v14271_v44 = vld [vmem:[#allocation66_spill] sm:$0xff] }
 0x539   : > { %4493 = vrot.lane.b32.xlu2 %v14255_v3, %s7950_s9  ;;  %4589 = vrot.lane.b32.xlu1 %v14256_v39, %s7951_s10  ;;  %v6424_v3 = vld [vmem:[%s8022_s27 + $0x1d0] sm:$0xff] }
 0x53a   : > { %4461 = vrot.lane.b32.xlu0 %v14257_v56, %s7950_s9  ;;  %v14264_v39 = vld [vmem:[#allocation84_spill] sm:$0xff] }
 0x53b   : > { %v12505_v6 = vpop.permute.xlu2 %4705  ;;  %v4360_v32 = vpop.permute.xlu1 %4359  ;;  %v4857_v56 = vsel %vm3059_vm1, %v4825_v12, %v14264_v39  ;;  %v14273_v39 = vld [vmem:[#allocation156_spill] sm:$0xff] }
 0x53c   : > { %v12508_v41 = vpop.permute.xlu0 %4357  ;;  %v12512_v21 = vsel %vm3224_vm6, %v12161_v34, %v4360_v32  ;;  %v4919_v34 = vsel %vm3125_vm3, %v4887_v43, %v14261_v36  ;;  %v6155_v36 = vld [vmem:[%s8022_s27 + $0xc1] sm:$0xff] }
 0x53d   : > { %v4951_v0 = vsel %vm3158_vm4, %v4919_v34, %v12057_v29 }
 0x53e   : > { %v4983_v9 = vsel %vm3191_vm5, %v4951_v0, %v12176_v23  ;;  %v6456_v23 = vld [vmem:[%s8022_s27 + $0x1d1] sm:$0xff] }
 0x541   : > { %4749 = vrot.lane.b32.xlu2 %v12168_v46, %s7952_s11  ;;  %4621 = vrot.lane.b32.xlu1 %v6471_v38, %s7951_s10  ;;  %v4889_v38 = vsel %vm3092_vm2, %v4857_v56, %v14267_v55 }
 0x542   : > { %4717 = vrot.lane.b32.xlu0 %v12072_v17, %s7952_s11  ;;  %v7893_v17 = vld [vmem:[%s8022_s27 + $0x2b1] sm:$0xff]  ;;  %v4921_v43 = vsel %vm3125_vm3, %v4889_v38, %v14269_v31 }
 0x543   : > { %v12530_v28 = vpop.permute.xlu2 %4483  ;;  %v4366_v30 = vpop.permute.xlu1 %4365  ;;  %v4826_v29 = vsel %vm3026_vm0, %v7893_v17, %v14262_v53  ;;  %v4953_v34 = vsel %vm3158_vm4, %v4921_v43, %v12023_v2  ;;  %v14270_v2 = vld [vmem:[#allocation19_spill] sm:$0xff]  ;;  %v6441_v43 = vld [vmem:[%s8022_s27 + $0x340] sm:$0xff] }
 0x544   : > { %v4364_v46 = vpop.permute.xlu0 %4363  ;;  %v12535_v16 = vsel %vm3224_vm6, %v4983_v9, %v4366_v30  ;;  %v4858_v32 = vsel %vm3059_vm1, %v4826_v29, %v14265_v18  ;;  %v4801_v54 = vsel %vm3026_vm0, %v6155_v36, %v14270_v2  ;;  %v14274_v18 = vld [vmem:[#allocation46_spill] sm:$0xff]  ;;  %v6156_v36 = vld [vmem:[%s8022_s27 + $0xd1] sm:$0xff] }
 0x545   : > { %v12539_v61 = vsel %vm3224_vm6, %v12240_v10, %v4364_v46  ;;  %v14266_v10 = vld [vmem:[#allocation178_spill] sm:$0xff]  ;;  %v4985_v46 = vsel %vm3191_vm5, %v4953_v34, %v12250_v26  ;;  %v4833_v12 = vsel %vm3059_vm1, %v4801_v54, %v14271_v44  ;;  %v14272_v26 = vld [vmem:[#allocation40_spill] sm:$0xff] }
 0x546   : > { %v4890_v57 = vsel %vm3092_vm2, %v4858_v32, %v14266_v10  ;;  %v7895_v44 = vld [vmem:[%s8022_s27 + $0x211] sm:$0xff] }
 0x547   : > { %v4922_v59 = vsel %vm3125_vm3, %v4890_v57, %v14268_v52 }
 0x548   : > { %v4954_v0 = vsel %vm3158_vm4, %v4922_v59, %v12069_v5  ;;  %v6504_v5 = vld [vmem:[%s8022_s27 + $0x312] sm:$0xff] }
 0x549   : > { %4495 = vrot.lane.b32.xlu2 %v6440_v20, %s7950_s9  ;;  %4591 = vrot.lane.b32.xlu1 %v6456_v23, %s7951_s10  ;;  %v4986_v30 = vsel %vm3191_vm5, %v4954_v0, %v12188_v24  ;;  %v6472_v24 = vld [vmem:[%s8022_s27 + $0x311] sm:$0xff]  ;;  %v6425_v0 = vld [vmem:[%s8022_s27 + $0x200] sm:$0xff] }
 0x54a   : > { %4463 = vrot.lane.b32.xlu0 %v6424_v3, %s7950_s9  ;;  %v6488_v23 = vld [vmem:[%s8022_s27 + $0x1d2] sm:$0xff]  ;;  %v4865_v3 = vsel %vm3092_vm2, %v4833_v12, %v14272_v26 }
 0x54b   : > { %v12570_v9 = vpop.permute.xlu2 %4739  ;;  %v4372_v20 = vpop.permute.xlu1 %4371  ;;  %v4897_v56 = vsel %vm3125_vm3, %v4865_v3, %v14273_v39  ;;  %v14279_v12 = vld [vmem:[#allocation25_spill] sm:$0xff]  ;;  %v14281_v3 = vld [vmem:[#allocation87_spill] sm:$0xff] }
 0x54c   : > { %v4370_v17 = vpop.permute.xlu0 %4369  ;;  %v12577_v53 = vsel %vm3224_vm6, %v4986_v30, %v4372_v20  ;;  %v4929_v32 = vsel %vm3158_vm4, %v4897_v56, %v14274_v18  ;;  %v14276_v30 = vld [vmem:[#allocation185_spill] sm:$0xff]  ;;  %v6505_v18 = vld [vmem:[%s8022_s27 + $0x342] sm:$0xff] }
 0x54d   : > { %v12580_v29 = vsel %vm3224_vm6, %v4985_v46, %v4370_v17  ;;  %v4961_v10 = vsel %vm3191_vm5, %v4929_v32, %v12094_v60  ;;  %v14275_v60 = vld [vmem:[#allocation14_spill] sm:$0xff]  ;;  %v14282_v32 = vld [vmem:[#allocation168_spill] sm:$0xff] }
 0x54e   : > { %v4993_v55 = vsel %vm3224_vm6, %v4961_v10, %v12289_v49  ;;  %v4802_v49 = vsel %vm3026_vm0, %v6156_v36, %v14275_v60  ;;  %v14277_v46 = vld [vmem:[#allocation70_spill] sm:$0xff] }
 0x54f   : > { %v4834_v20 = vsel %vm3059_vm1, %v4802_v49, %v14277_v46  ;;  %v14278_v17 = vld [vmem:[#allocation90_spill] sm:$0xff] }
 0x550   : > { %v4866_v2 = vsel %vm3092_vm2, %v4834_v20, %v14278_v17  ;;  %v6157_v20 = vld [vmem:[%s8022_s27 + $0xe1] sm:$0xff] }
 0x551   : > { %4751 = vrot.lane.b32.xlu2 %v6504_v5, %s7952_s11  ;;  %4623 = vrot.lane.b32.xlu1 %v6472_v24, %s7951_s10  ;;  %v4818_v24 = vsel %vm3026_vm0, %v7895_v44, %v14279_v12  ;;  %v14284_v17 = vld [vmem:[#allocation11_spill] sm:$0xff]  ;;  %v14287_v12 = vld [vmem:[#allocation102_spill] sm:$0xff] }
 0x552   : > { %4719 = vrot.lane.b32.xlu0 %v6488_v23, %s7952_s11  ;;  %v14280_v23 = vld [vmem:[#allocation151_spill] sm:$0xff]  ;;  %v4850_v39 = vsel %vm3059_vm1, %v4818_v24, %v14281_v3  ;;  %v14288_v3 = vld [vmem:[#allocation165_spill] sm:$0xff] }
 0x553   : > { %v12600_v57 = vpop.permute.xlu2 %4485  ;;  %v4578_v38 = vpop.permute.xlu1 %4577  ;;  %v4898_v26 = vsel %vm3125_vm3, %v4866_v2, %v14280_v23  ;;  %v4882_v10 = vsel %vm3092_vm2, %v4850_v39, %v14282_v32  ;;  %v4803_v2 = vsel %vm3026_vm0, %v6157_v20, %v14284_v17  ;;  %v6506_v32 = vld [vmem:[%s8022_s27 + $0x352] sm:$0xff] }
 0x554   : > { %v4450_v52 = vpop.permute.xlu0 %4449  ;;  %v4930_v56 = vsel %vm3158_vm4, %v4898_v26, %v11973_v15  ;;  %v14294_v17 = vld [vmem:[#allocation116_spill] sm:$0xff] }
 0x555   : > { %v5025_v59 = vsel %vm3257_vm8, %v4993_v55, %v4450_v52  ;;  %v4962_v55 = vsel %vm3191_vm5, %v4930_v56, %v12053_v51  ;;  %v6489_v52 = vld [vmem:[%s8022_s27 + $0x202] sm:$0xff]  ;;  %v14289_v56 = vld [vmem:[#allocation48_spill] sm:$0xff] }
 0x556   : > { %v5057_v31 = vsel %vm3290_vm7, %v5025_v59, %v4578_v38  ;;  %v6473_v38 = vld [vmem:[%s8022_s27 + $0x341] sm:$0xff] }
 0x557   : > { %v5089_v34 = vsel %vm3323_vm9, %v5057_v31, %v12505_v6  ;;  %v14283_v59 = vld [vmem:[#allocation135_spill] sm:$0xff] }
 0x558   : > { %6513 = vmatmul.msk.f32.vlgmr.msra.gmra.mxu1 %vm3356_vm11, %v5089_v34  ;;  %v4914_v31 = vsel %vm3125_vm3, %v4882_v10, %v14283_v59 }
 0x559   : > { %4497 = vrot.lane.b32.xlu2 %v6441_v43, %s7950_s9  ;;  %4593 = vrot.lane.b32.xlu1 %v14276_v30, %s7951_s10  ;;  %v4994_v43 = vsel %vm3224_vm6, %v4962_v55, %v12287_v4  ;;  %v4946_v36 = vsel %vm3158_vm4, %v4914_v31, %v12035_v33  ;;  %v6474_v55 = vld [vmem:[%s8022_s27 + $0x351] sm:$0xff] }
 0x55a   : > { %4465 = vrot.lane.b32.xlu0 %v6425_v0, %s7950_s9  ;;  %v4978_v51 = vsel %vm3191_vm5, %v4946_v36, %v12213_v14 }
 0x55b   : > { %v12620_v6 = vpop.permute.xlu2 %4741  ;;  %v4580_v54 = vpop.permute.xlu1 %4579  ;;  %v5010_v4 = vsel %vm3224_vm6, %v4978_v51, %v12322_v1  ;;  %v6442_v1 = vld [vmem:[%s8022_s27 + $0x350] sm:$0xff] }
 0x55c   : > { %v4452_v5 = vpop.permute.xlu0 %4451  ;;  %v5042_v33 = vsel %vm3257_vm8, %v5010_v4, %v12530_v28  ;;  %v6426_v28 = vld [vmem:[%s8022_s27 + $0x210] sm:$0xff] }
 0x55d   : > { %v5026_v15 = vsel %vm3257_vm8, %v4994_v43, %v4452_v5  ;;  %v14286_v5 = vld [vmem:[#allocation171_spill] sm:$0xff] }
 0x55e   : > { %v5058_v49 = vsel %vm3290_vm7, %v5026_v15, %v4580_v54  ;;  %v14285_v54 = vld [vmem:[#allocation5_spill] sm:$0xff] }
 0x561   : > { %4753 = vrot.lane.b32.xlu2 %v6505_v18, %s7952_s11  ;;  %4625 = vrot.lane.b32.xlu1 %v6473_v38, %s7951_s10  ;;  %v6490_v38 = vld [vmem:[%s8022_s27 + $0x212] sm:$0xff] }
 0x562   : > { %4721 = vrot.lane.b32.xlu0 %v6489_v52, %s7952_s11 }
 0x563   : > { %v12654_v34 = vpop.permute.xlu2 %4487  ;;  %v4612_v0 = vpop.permute.xlu1 %4611 }
 0x564   : > { %v4708_v60 = vpop.permute.xlu0 %4707  ;;  %v5074_v30 = vsel %vm3290_vm7, %v5042_v33, %v4612_v0  ;;  %v14290_v0 = vld [vmem:[#allocation20_spill] sm:$0xff] }
 0x565   : > { %v5090_v14 = vsel %vm3323_vm9, %v5058_v49, %v4708_v60  ;;  %v5106_v46 = vsel %vm3323_vm9, %v5074_v30, %v12570_v9  ;;  %v4835_v9 = vsel %vm3059_vm1, %v4803_v2, %v14286_v5  ;;  %v14291_v49 = vld [vmem:[#allocation34_spill] sm:$0xff]  ;;  %v14292_v30 = vld [vmem:[#allocation109_spill] sm:$0xff] }
 0x566   : > { %6514 = vmatmul.msk.f32.gmra.mxu1 %vm3356_vm11, %v5090_v14  ;;  %6530 = vmatmul.msk.f32.vlgmr.msra.gmra.mxu3 %vm3356_vm11, %v5106_v46  ;;  %v4867_v24 = vsel %vm3092_vm2, %v4835_v9, %v14287_v12  ;;  %v14293_v46 = vld [vmem:[#allocation101_spill] sm:$0xff]  ;;  %v6507_v9 = vld [vmem:[%s8022_s27 + $0x362] sm:$0xff] }
 0x567   : > { %v4899_v39 = vsel %vm3125_vm3, %v4867_v24, %v14288_v3  ;;  %v6475_v24 = vld [vmem:[%s8022_s27 + $0x361] sm:$0xff] }
 0x568   : > { %v4931_v18 = vsel %vm3158_vm4, %v4899_v39, %v14289_v56 }
 0x569   : > { %4499 = vrot.lane.b32.xlu2 %v6442_v1, %s7950_s9  ;;  %4595 = vrot.lane.b32.xlu1 %v14285_v54, %s7951_s10  ;;  %v4963_v10 = vsel %vm3191_vm5, %v4931_v18, %v12119_v37  ;;  %v5011_v37 = vsel %vm3224_vm6, %v12216_v35, %v12508_v41  ;;  %v6443_v35 = vld [vmem:[%s8022_s27 + $0x360] sm:$0xff]  ;;  %v6158_v41 = vld [vmem:[%s8022_s27 + $0xf1] sm:$0xff]  ;;  %v14295_v54 = vld [vmem:[#allocation155_spill] sm:$0xff] }
 0x56a   : > { %4467 = vrot.lane.b32.xlu0 %v6426_v28, %s7950_s9  ;;  %v4995_v52 = vsel %vm3224_vm6, %v4963_v10, %v12248_v11  ;;  %v5043_v43 = vsel %vm3257_vm8, %v5011_v37, %v12600_v57  ;;  %v6427_v57 = vld [vmem:[%s8022_s27 + $0x220] sm:$0xff]  ;;  %v4804_v60 = vsel %vm3026_vm0, %v6158_v41, %v14290_v0  ;;  %v14298_v37 = vld [vmem:[#allocation75_spill] sm:$0xff] }
 0x56b   : > { %v4744_v44 = vpop.permute.xlu2 %4743  ;;  %v4582_v23 = vpop.permute.xlu1 %4581  ;;  %v14302_v0 = vld [vmem:[#allocation39_spill] sm:$0xff] }
 0x56c   : > { %v4454_v26 = vpop.permute.xlu0 %4453 }
 0x56d   : > { %v5027_v59 = vsel %vm3257_vm8, %v4995_v52, %v4454_v26  ;;  %v6428_v52 = vld [vmem:[%s8022_s27 + $0x230] sm:$0xff] }
 0x56e   : > { %v5059_v15 = vsel %vm3290_vm7, %v5027_v59, %v4582_v23  ;;  %v6491_v23 = vld [vmem:[%s8022_s27 + $0x222] sm:$0xff] }
 0x571   : > { %4755 = vrot.lane.b32.xlu2 %v6506_v32, %s7952_s11  ;;  %4627 = vrot.lane.b32.xlu1 %v6474_v55, %s7951_s10 }
 0x572   : > { %4723 = vrot.lane.b32.xlu0 %v6490_v38, %s7952_s11  ;;  %v6159_v38 = vld [vmem:[%s8022_s27 + $0x101] sm:$0xff] }
 0x573   : > { %v12696_v31 = vpop.permute.xlu2 %4489  ;;  %v4614_v11 = vpop.permute.xlu1 %4613 }
 0x574   : > { %v4710_v36 = vpop.permute.xlu0 %4709  ;;  %v5075_v51 = vsel %vm3290_vm7, %v5043_v43, %v4614_v11  ;;  %v14299_v11 = vld [vmem:[#allocation99_spill] sm:$0xff] }
 0x575   : > { %v5091_v4 = vsel %vm3323_vm9, %v5059_v15, %v4710_v36  ;;  %v5107_v33 = vsel %vm3323_vm9, %v5075_v51, %v12620_v6  ;;  %v4836_v6 = vsel %vm3059_vm1, %v4804_v60, %v14292_v30  ;;  %v6444_v30 = vld [vmem:[%s8022_s27 + $0x370] sm:$0xff] }
 0x576   : > { %6515 = vmatmul.msk.f32.gmra.mxu1 %vm3356_vm11, %v5091_v4  ;;  %6531 = vmatmul.msk.f32.gmra.mxu3 %vm3356_vm11, %v5107_v33  ;;  %v4868_v1 = vsel %vm3092_vm2, %v4836_v6, %v14293_v46  ;;  %v14300_v4 = vld [vmem:[#allocation47_spill] sm:$0xff] }
 0x577   : > { %v4900_v2 = vsel %vm3125_vm3, %v4868_v1, %v14294_v17 }
 0x578   : > { %v4932_v5 = vsel %vm3158_vm4, %v4900_v2, %v14295_v54 }
 0x579   : > { %4501 = vrot.lane.b32.xlu2 %v6443_v35, %s7950_s9  ;;  %4597 = vrot.lane.b32.xlu1 %v14291_v49, %s7951_s10  ;;  %v4964_v12 = vsel %vm3191_vm5, %v4932_v5, %v12117_v27  ;;  %v5044_v27 = vsel %vm3257_vm8, %v12512_v21, %v12654_v34  ;;  %v14296_v21 = vld [vmem:[#allocation8_spill] sm:$0xff]  ;;  %v14297_v34 = vld [vmem:[#allocation23_spill] sm:$0xff] }
 0x57a   : > { %4469 = vrot.lane.b32.xlu0 %v6427_v57, %s7950_s9  ;;  %v4996_v26 = vsel %vm3224_vm6, %v4964_v12, %v12314_v13  ;;  %v4805_v59 = vsel %vm3026_vm0, %v6159_v38, %v14297_v34  ;;  %v14301_v35 = vld [vmem:[#allocation63_spill] sm:$0xff]  ;;  %v6476_v57 = vld [vmem:[%s8022_s27 + $0x371] sm:$0xff] }
 0x57b   : > { %v4746_v14 = vpop.permute.xlu2 %4745  ;;  %v4584_v20 = vpop.permute.xlu1 %4583  ;;  %v4837_v43 = vsel %vm3059_vm1, %v4805_v59, %v14298_v37  ;;  %v6492_v49 = vld [vmem:[%s8022_s27 + $0x232] sm:$0xff]  ;;  %v6493_v38 = vld [vmem:[%s8022_s27 + $0x242] sm:$0xff] }
 0x57c   : > { %v4456_v28 = vpop.permute.xlu0 %4455  ;;  %v4869_v36 = vsel %vm3092_vm2, %v4837_v43, %v14299_v11  ;;  %v6160_v12 = vld [vmem:[%s8022_s27 + $0x111] sm:$0xff]  ;;  %v6461_v34 = vld [vmem:[%s8022_s27 + $0x241] sm:$0xff] }
 0x57d   : > { %v5028_v3 = vsel %vm3257_vm8, %v4996_v26, %v4456_v28  ;;  %v4901_v33 = vsel %vm3125_vm3, %v4869_v36, %v14300_v4 }
 0x57e   : > { %v5060_v32 = vsel %vm3290_vm7, %v5028_v3, %v4584_v20  ;;  %v4933_v41 = vsel %vm3158_vm4, %v4901_v33, %v14301_v35  ;;  %v5045_v20 = vsel %vm3257_vm8, %v12378_v58, %v12696_v31  ;;  %v6429_v58 = vld [vmem:[%s8022_s27 + $0x240] sm:$0xff]  ;;  %v14303_v31 = vld [vmem:[#allocation13_spill] sm:$0xff]  ;;  %v14305_v3 = vld [vmem:[#allocation104_spill] sm:$0xff] }
 0x57f   : > { %v4965_v60 = vsel %vm3191_vm5, %v4933_v41, %v14302_v0  ;;  %v6430_v33 = vld [vmem:[%s8022_s27 + $0x250] sm:$0xff]  ;;  %v6161_v35 = vld [vmem:[%s8022_s27 + $0x121] sm:$0xff] }
 0x580   : > { %v4997_v6 = vsel %vm3224_vm6, %v4965_v60, %v12312_v62  ;;  %v6509_v41 = vld [vmem:[%s8022_s27 + $0x382] sm:$0xff] }
 0x581   : > { %4757 = vrot.lane.b32.xlu2 %v6507_v9, %s7952_s11  ;;  %4629 = vrot.lane.b32.xlu1 %v6475_v24, %s7951_s10  ;;  %v4806_v24 = vsel %vm3026_vm0, %v6160_v12, %v14303_v31  ;;  %v14309_v0 = vld [vmem:[#allocation143_spill] sm:$0xff] }
 0x582   : > { %4725 = vrot.lane.b32.xlu0 %v6491_v23, %s7952_s11  ;;  %v14304_v23 = vld [vmem:[#allocation74_spill] sm:$0xff] }
 0x583   : > { %v12735_v39 = vpop.permute.xlu2 %4491  ;;  %v4616_v56 = vpop.permute.xlu1 %4615 }
 0x584   : > { %v4712_v18 = vpop.permute.xlu0 %4711  ;;  %v5076_v13 = vsel %vm3290_vm7, %v5044_v27, %v4616_v56 }
 0x585   : > { %v5092_v10 = vsel %vm3323_vm9, %v5060_v32, %v4712_v18  ;;  %v5108_v55 = vsel %vm3323_vm9, %v5076_v13, %v4744_v44  ;;  %v14306_v32 = vld [vmem:[#allocation106_spill] sm:$0xff] }
 0x586   : > { %6516 = vmatmul.msk.f32.gmra.mxu1 %vm3356_vm11, %v5092_v10  ;;  %6532 = vmatmul.msk.f32.gmra.mxu3 %vm3356_vm11, %v5108_v55  ;;  %v14307_v10 = vld [vmem:[#allocation111_spill] sm:$0xff] }
 0x589   : > { %4599 = vrot.lane.b32.xlu2 %v14296_v21, %s7951_s10  ;;  %4375 = vrot.lane.b32.xlu1 %v6507_v9, %s7949_s8  ;;  %v6411_v9 = vld [vmem:[%s8022_s27 + $0x372] sm:$0xff]  ;;  %v6445_v21 = vld [vmem:[%s8022_s27 + $0x380] sm:$0xff] }
 0x58a   : > { %4471 = vrot.lane.b32.xlu0 %v6428_v52, %s7950_s9 }
 0x58b   : > { %v4748_v44 = vpop.permute.xlu2 %4747  ;;  %v4586_v15 = vpop.permute.xlu1 %4585 }
 0x58c   : > { %v4458_v51 = vpop.permute.xlu0 %4457 }
 0x58d   : > { %v5029_v46 = vsel %vm3257_vm8, %v4997_v6, %v4458_v51 }
 0x58e   : > { %v5061_v2 = vsel %vm3290_vm7, %v5029_v46, %v4586_v15 }
 0x591   : > { %4631 = vrot.lane.b32.xlu2 %v6476_v57, %s7951_s10  ;;  %4727 = vrot.lane.b32.xlu1 %v6492_v49, %s7952_s11  ;;  %v14310_v49 = vld [vmem:[#allocation103_spill] sm:$0xff] }
 0x592   : > { %4503 = vrot.lane.b32.xlu0 %v6444_v30, %s7950_s9 }
 0x593   : > { %v12773_v1 = vpop.permute.xlu2 %4493  ;;  %v4618_v28 = vpop.permute.xlu1 %4617 }
 0x594   : > { %v4714_v17 = vpop.permute.xlu0 %4713  ;;  %v5077_v62 = vsel %vm3290_vm7, %v5045_v20, %v4618_v28  ;;  %v14311_v20 = vld [vmem:[#allocation181_spill] sm:$0xff] }
 0x595   : > { %v5093_v54 = vsel %vm3323_vm9, %v5061_v2, %v4714_v17  ;;  %v5109_v5 = vsel %vm3323_vm9, %v5077_v62, %v4746_v14  ;;  %v4838_v14 = vsel %vm3059_vm1, %v4806_v24, %v14304_v23  ;;  %v14312_v17 = vld [vmem:[#allocation148_spill] sm:$0xff] }
 0x596   : > { %6517 = vmatmul.msk.f32.gmra.mxu1 %vm3356_vm11, %v5093_v54  ;;  %6533 = vmatmul.msk.f32.gmra.mxu3 %vm3356_vm11, %v5109_v5  ;;  %v4870_v27 = vsel %vm3092_vm2, %v4838_v14, %v14305_v3  ;;  %v6446_v62 = vld [vmem:[%s8022_s27 + $0x390] sm:$0xff] }
 0x597   : > { %v4902_v13 = vsel %vm3125_vm3, %v4870_v27, %v14306_v32  ;;  %v6462_v5 = vld [vmem:[%s8022_s27 + $0x251] sm:$0xff] }
 0x598   : > { %v4934_v55 = vsel %vm3158_vm4, %v4902_v13, %v14307_v10  ;;  %v6510_v27 = vld [vmem:[%s8022_s27 + $0x392] sm:$0xff]  ;;  %v14314_v13 = vld [vmem:[#allocation79_spill] sm:$0xff] }
 0x599   : > { %4377 = vrot.lane.b32.xlu2 %v6411_v9, %s7949_s8  ;;  %4473 = vrot.lane.b32.xlu1 %v6429_v58, %s7950_s9  ;;  %v4966_v52 = vsel %vm3191_vm5, %v4934_v55, %v12142_v50  ;;  %v5046_v50 = vsel %vm3257_vm8, %v12539_v61, %v12735_v39  ;;  %v6477_v61 = vld [vmem:[%s8022_s27 + $0x381] sm:$0xff]  ;;  %v14308_v39 = vld [vmem:[#allocation29_spill] sm:$0xff] }
 0x59a   : > { %4759 = vrot.lane.b32.xlu0 %v6411_v9, %s7952_s11  ;;  %v4998_v59 = vsel %vm3224_vm6, %v4966_v52, %v12260_v42  ;;  %v4807_v57 = vsel %vm3026_vm0, %v6161_v35, %v14308_v39  ;;  %v14315_v55 = vld [vmem:[#allocation142_spill] sm:$0xff] }
 0x59b   : > { %v4750_v26 = vpop.permute.xlu2 %4749  ;;  %v4588_v56 = vpop.permute.xlu1 %4587 }
 0x59c   : > { %v4460_v18 = vpop.permute.xlu0 %4459 }
 0x59d   : > { %v5030_v37 = vsel %vm3257_vm8, %v4998_v59, %v4460_v18  ;;  %v6478_v18 = vld [vmem:[%s8022_s27 + $0x391] sm:$0xff] }
 0x59e   : > { %v5062_v42 = vsel %vm3290_vm7, %v5030_v37, %v4588_v56  ;;  %v6162_v56 = vld [vmem:[%s8022_s27 + $0x131] sm:$0xff] }
 0x59f   : > { %v14317_v37 = vld [vmem:[#allocation92_spill] sm:$0xff] }
 0x5a1   : > { %4729 = vrot.lane.b32.xlu2 %v6493_v38, %s7952_s11  ;;  %4505 = vrot.lane.b32.xlu1 %v6445_v21, %s7950_s9 }
 0x5a2   : > { %4601 = vrot.lane.b32.xlu0 %v6461_v34, %s7951_s10  ;;  %v14316_v34 = vld [vmem:[#allocation164_spill] sm:$0xff] }
 0x5a3   : > { %v12811_v43 = vpop.permute.xlu2 %4495  ;;  %v4620_v11 = vpop.permute.xlu1 %4619 }
 0x5a4   : > { %v4716_v36 = vpop.permute.xlu0 %4715  ;;  %v5078_v15 = vsel %vm3290_vm7, %v5046_v50, %v4620_v11  ;;  %v6463_v11 = vld [vmem:[%s8022_s27 + $0x261] sm:$0xff] }
 0x5a5   : > { %v5094_v51 = vsel %vm3323_vm9, %v5062_v42, %v4716_v36  ;;  %v5110_v4 = vsel %vm3323_vm9, %v5078_v15, %v4748_v44  ;;  %v4839_v44 = vsel %vm3059_vm1, %v4807_v57, %v14309_v0  ;;  %v14318_v36 = vld [vmem:[#allocation50_spill] sm:$0xff] }
 0x5a6   : > { %6518 = vmatmul.msk.f32.gmra.mxu1 %vm3356_vm11, %v5094_v51  ;;  %6534 = vmatmul.msk.f32.gmra.mxu3 %vm3356_vm11, %v5110_v4  ;;  %v4871_v30 = vsel %vm3092_vm2, %v4839_v44, %v14310_v49  ;;  %v6431_v15 = vld [vmem:[%s8022_s27 + $0x260] sm:$0xff]  ;;  %v14319_v51 = vld [vmem:[#allocation176_spill] sm:$0xff] }
 0x5a7   : > { %v4903_v28 = vsel %vm3125_vm3, %v4871_v30, %v14311_v20  ;;  %v6479_v30 = vld [vmem:[%s8022_s27 + $0x3a1] sm:$0xff] }
 0x5a8   : > { %v4935_v2 = vsel %vm3158_vm4, %v4903_v28, %v14312_v17  ;;  %v7897_v20 = vld [vmem:[%s8022_s27 + $0x262] sm:$0xff] }
 0x5a9   : > { %4475 = vrot.lane.b32.xlu2 %v6430_v33, %s7950_s9  ;;  %4761 = vrot.lane.b32.xlu1 %v6509_v41, %s7952_s11  ;;  %v4967_v54 = vsel %vm3191_vm5, %v4935_v2, %v12140_v47  ;;  %v5047_v47 = vsel %vm3257_vm8, %v12535_v16, %v12773_v1  ;;  %v6494_v16 = vld [vmem:[%s8022_s27 + $0x252] sm:$0xff]  ;;  %v14313_v1 = vld [vmem:[#allocation26_spill] sm:$0xff]  ;;  %v14322_v2 = vld [vmem:[#allocation127_spill] sm:$0xff] }
 0x5aa   : > { %4633 = vrot.lane.b32.xlu0 %v6477_v61, %s7951_s10  ;;  %v4999_v9 = vsel %vm3224_vm6, %v4967_v54, %v12326_v8  ;;  %v4808_v32 = vsel %vm3026_vm0, %v6162_v56, %v14313_v1  ;;  %v14321_v28 = vld [vmem:[#allocation78_spill] sm:$0xff] }
 0x5ab   : > { %v4752_v60 = vpop.permute.xlu2 %4751  ;;  %v4590_v6 = vpop.permute.xlu1 %4589 }
 0x5ac   : > { %v4462_v46 = vpop.permute.xlu0 %4461 }
 0x5ad   : > { %v5031_v12 = vsel %vm3257_vm8, %v4999_v9, %v4462_v46  ;;  %v14323_v9 = vld [vmem:[#allocation107_spill] sm:$0xff] }
 0x5ae   : > { %v5063_v8 = vsel %vm3290_vm7, %v5031_v12, %v4590_v6  ;;  %v6447_v6 = vld [vmem:[%s8022_s27 + $0x3a0] sm:$0xff] }
 0x5b1   : > { %4507 = vrot.lane.b32.xlu2 %v6446_v62, %s7950_s9  ;;  %4603 = vrot.lane.b32.xlu1 %v6462_v5, %s7951_s10 }
 0x5b2   : > { %4379 = vrot.lane.b32.xlu0 %v6509_v41, %s7949_s8  ;;  %v5048_v41 = vsel %vm3257_vm8, %v12431_v48, %v12811_v43  ;;  %v7896_v48 = vld [vmem:[%s8022_s27 + $0x161] sm:$0xff] }
 0x5b3   : > { %v12849_v58 = vpop.permute.xlu2 %4497  ;;  %v4622_v31 = vpop.permute.xlu1 %4621  ;;  %v14320_v43 = vld [vmem:[#allocation10_spill] sm:$0xff] }
 0x5b4   : > { %v4718_v24 = vpop.permute.xlu0 %4717  ;;  %v5079_v23 = vsel %vm3290_vm7, %v5047_v47, %v4622_v31  ;;  %v4809_v46 = vsel %vm3026_vm0, %v7896_v48, %v14320_v43  ;;  %v14324_v47 = vld [vmem:[#allocation140_spill] sm:$0xff] }
 0x5b5   : > { %v5095_v14 = vsel %vm3323_vm9, %v5063_v8, %v4718_v24  ;;  %v5111_v3 = vsel %vm3323_vm9, %v5079_v23, %v4750_v26  ;;  %v4840_v26 = vsel %vm3059_vm1, %v4808_v32, %v14314_v13  ;;  %v6414_v24 = vld [vmem:[%s8022_s27 + $0x3a2] sm:$0xff]  ;;  %v14325_v8 = vld [vmem:[#allocation37_spill] sm:$0xff]  ;;  %v12937_v13 = vld [vmem:[%s13256_s2] ss:$0 sm:$0xff] }
 0x5b6   : > { %6519 = vmatmul.msk.f32.gmra.mxu1 %vm3356_vm11, %v5095_v14  ;;  %6535 = vmatmul.msk.f32.gmra.mxu3 %vm3356_vm11, %v5111_v3  ;;  %v4872_v38 = vsel %vm3092_vm2, %v4840_v26, %v14315_v55  ;;  %v6432_v14 = vld [vmem:[%s8022_s27 + $0x270] sm:$0xff]  ;;  %v14326_v3 = vld [vmem:[#allocation91_spill] sm:$0xff] }
 0x5b7   : > { %v4904_v59 = vsel %vm3125_vm3, %v4872_v38, %v14316_v34  ;;  %v12949_v34 = vld [vmem:[%s13257_s3] ss:$0 sm:$0xff] }
 0x5b8   : > { %v4936_v50 = vsel %vm3158_vm4, %v4904_v59, %v14317_v37  ;;  %v6496_v37 = vld [vmem:[%s8022_s27 + $0x272] sm:$0xff] }
 0x5b9   : > { %4763 = vrot.lane.b32.xlu2 %v6510_v27, %s7952_s11  ;;  %4635 = vrot.lane.b32.xlu1 %v6478_v18, %s7951_s10  ;;  %v4968_v42 = vsel %vm3191_vm5, %v4936_v50, %v14318_v36  ;;  %v5261_v18 = vpop.f32.mrf.mxu0  ;;  %v6448_v50 = vld [vmem:[%s8022_s27 + $0x3b0] sm:$0xff] }
 0x5ba   : > { %4731 = vrot.lane.b32.xlu0 %v6494_v16, %s7952_s11  ;;  %v5000_v4 = vsel %vm3224_vm6, %v4968_v42, %v14319_v51  ;;  %v5049_v16 = vsel %vm3257_vm8, %v12580_v29, %v12849_v58  ;;  %v12944_v29 = vpop.f32.mrf.mxu2 }
 0x5bb   : > { %v12871_v10 = vpop.permute.xlu2 %4753  ;;  %v4592_v52 = vpop.permute.xlu1 %4591 }
 0x5bc   : > { %v4464_v21 = vpop.permute.xlu0 %4463 }
 0x5bd   : > { %v5032_v33 = vsel %vm3257_vm8, %v5000_v4, %v4464_v21  ;;  %v6433_v4 = vld [vmem:[%s8022_s27 + $0x2a0] sm:$0xff] }
 0x5be   : > { %v5064_v57 = vsel %vm3290_vm7, %v5032_v33, %v4592_v52 }
 0x5c1   : > { %4605 = vrot.lane.b32.xlu2 %v6463_v11, %s7951_s10  ;;  %4381 = vrot.lane.b32.xlu1 %v6510_v27, %s7949_s8  ;;  %v6464_v11 = vld [vmem:[%s8022_s27 + $0x271] sm:$0xff] }
 0x5c2   : > { %4477 = vrot.lane.b32.xlu0 %v6431_v15, %s7950_s9 }
 0x5c3   : > { %v12889_v35 = vpop.permute.xlu2 %4499  ;;  %v4624_v61 = vpop.permute.xlu1 %4623 }
 0x5c4   : > { %v4720_v39 = vpop.permute.xlu0 %4719  ;;  %v5080_v0 = vsel %vm3290_vm7, %v5048_v41, %v4624_v61  ;;  %v6480_v41 = vld [vmem:[%s8022_s27 + $0x3b1] sm:$0xff] }
 0x5c5   : > { %v5096_v44 = vsel %vm3323_vm9, %v5064_v57, %v4720_v39  ;;  %v5112_v49 = vsel %vm3323_vm9, %v5080_v0, %v4752_v60  ;;  %v4841_v60 = vsel %vm3059_vm1, %v4809_v46, %v14321_v28  ;;  %v6512_v61 = vld [vmem:[%s8022_s27 + $0x3b2] sm:$0xff]  ;;  %v12972_v39 = vpop.f32.mrf.mxu2  ;;  %v5264_v0 = vpop.f32.mrf.mxu0 }
 0x5c6   : > { %6520 = vmatmul.msk.f32.gmra.mxu1 %vm3356_vm11, %v5096_v44  ;;  %6536 = vmatmul.msk.f32.gmra.mxu3 %vm3356_vm11, %v5112_v49  ;;  %v4873_v62 = vsel %vm3092_vm2, %v4841_v60, %v14322_v2  ;;  %v5050_v49 = vsel %vm3257_vm8, %v12577_v53, %v12889_v35  ;;  %v6465_v53 = vld [vmem:[%s8022_s27 + $0x2a1] sm:$0xff] }
 0x5c7   : > { %v4905_v12 = vsel %vm3125_vm3, %v4873_v62, %v14323_v9  ;;  %v6497_v35 = vld [vmem:[%s8022_s27 + $0x2a2] sm:$0xff] }
 0x5c8   : > { %v4937_v31 = vsel %vm3158_vm4, %v4905_v12, %v14324_v47 }
 0x5c9   : > { %4637 = vrot.lane.b32.xlu2 %v6479_v30, %s7951_s10  ;;  %4733 = vrot.lane.b32.xlu1 %v7897_v20, %s7952_s11  ;;  %v4969_v23 = vsel %vm3191_vm5, %v4937_v31, %v14325_v8 }
 0x5ca   : > { %4509 = vrot.lane.b32.xlu0 %v6447_v6, %s7950_s9  ;;  %v5001_v27 = vsel %vm3224_vm6, %v4969_v23, %v14326_v3 }
 0x5cb   : > { %v12912_v17 = vpop.permute.xlu2 %4755  ;;  %v4594_v54 = vpop.permute.xlu1 %4593 }
 0x5cc   : > { %v4466_v5 = vpop.permute.xlu0 %4465 }
 0x5cd   : > { %v5033_v56 = vsel %vm3257_vm8, %v5001_v27, %v4466_v5  ;;  %v5312_v62 = vpop.f32.mrf.mxu2  ;;  %v5267_v23 = vpop.f32.mrf.mxu0 }
 0x5ce   : > { %v5065_v26 = vsel %vm3290_vm7, %v5033_v56, %v4594_v54 }
 0x5d1   : > { %4383 = vrot.lane.b32.xlu2 %v6414_v24, %s7949_s8  ;;  %4479 = vrot.lane.b32.xlu1 %v6432_v14, %s7950_s9 }
 0x5d2   : > { %4765 = vrot.lane.b32.xlu0 %v6414_v24, %s7952_s11 }
 0x5d3   : > { %v4626_v1 = vpop.permute.xlu1 %4625  ;;  %v12940_v55 = vpop.permute.xlu2 %4501 }
 0x5d4   : > { %v4722_v32 = vpop.permute.xlu0 %4721  ;;  %v5081_v38 = vsel %vm3290_vm7, %v5049_v16, %v4626_v1  ;;  %v5051_v27 = vsel %vm3257_vm8, %v12484_v25, %v12940_v55  ;;  %v7898_v55 = vld [vmem:[%s8022_s27 + $0x191] sm:$0xff] }
 0x5d5   : > { %v5374_v52 = vpop.f32.mrf.mxu1  ;;  %v5097_v21 = vsel %vm3323_vm9, %v5065_v26, %v4722_v32  ;;  %v5113_v59 = vsel %vm3323_vm9, %v5081_v38, %v12871_v10 }
 0x5d6   : > { %v5375_v58 = vadd.f32 %v5374_v52, %v5261_v18  ;;  %6521 = vmatmul.msk.f32.gmra.mxu1 %vm3356_vm11, %v5097_v21  ;;  %6537 = vmatmul.msk.f32.gmra.mxu3 %vm3356_vm11, %v5113_v59  ;;  %v14327_v52 = vld [vmem:[#allocation18_spill] sm:$0xff] }
 0x5d7   : > { %v4812_v21 = vsel %vm3026_vm0, %v7898_v55, %v14327_v52 }
 0x5d8   : > { %v5474_v36 = vmul.f32 %v12937_v13, %v5375_v58  ;;  %v5315_v58 = vpop.f32.mrf.mxu2 }
 0x5d9   : > { %4735 = vrot.lane.b32.xlu2 %v6496_v37, %s7952_s11  ;;  %4511 = vrot.lane.b32.xlu1 %v6448_v50, %s7950_s9  ;;  %v14328_v50 = vld [vmem:[#allocation82_spill] sm:$0xff] }
 0x5da   : > { %v5510_v42 = vadd.f32 %v12949_v34, %v5474_v36  ;;  %4607 = vrot.lane.b32.xlu0 %v6464_v11, %s7951_s10  ;;  %v4844_v11 = vsel %vm3059_vm1, %v4812_v21, %v14328_v50 }
 0x5db   : > { %v4596_v15 = vpop.permute.xlu1 %4595  ;;  %v4758_v33 = vpop.permute.xlu2 %4757 }
 0x5dc   : > { %v5542_v10 = vmax.f32 %v5510_v42, 0.0  ;;  %v4468_v51 = vpop.permute.xlu0 %4467  ;;  %v14329_v42 = vld [vmem:[#allocation161_spill] sm:$0xff] }
 0x5dd   : > { %v5034_v57 = vsel %vm3257_vm8, %v12384_v40, %v4468_v51 }
 0x5de   : > { %5574 = vst [vmem:[%s12966_s29] sm:$0xff] %v5542_v10  ;;  %v5066_v43 = vsel %vm3290_vm7, %v5034_v57, %v4596_v15  ;;  %v4876_v10 = vsel %vm3092_vm2, %v4844_v11, %v14329_v42  ;;  %v14331_v57 = vld [vmem:[#allocation154_spill] sm:$0xff] }
 0x5e1   : > { %4481 = vrot.lane.b32.xlu2 %v6433_v4, %s7950_s9  ;;  %4767 = vrot.lane.b32.xlu1 %v6512_v61, %s7952_s11  ;;  %v14330_v4 = vld [vmem:[#allocation137_spill] sm:$0xff] }
 0x5e2   : > { %4639 = vrot.lane.b32.xlu0 %v6480_v41, %s7951_s10 }
 0x5e3   : > { %v5377_v44 = vpop.f32.mrf.mxu1  ;;  %v4628_v6 = vpop.permute.xlu1 %4627 }
 0x5e4   : > { %v5378_v30 = vadd.f32 %v5377_v44, %v5264_v0  ;;  %v4724_v48 = vpop.permute.xlu0 %4723  ;;  %v5082_v40 = vsel %vm3290_vm7, %v5050_v49, %v4628_v6  ;;  %v4600_v2 = vpop.permute.xlu2 %4599  ;;  %v14332_v44 = vld [vmem:[#allocation58_spill] sm:$0xff]  ;;  %v14333_v6 = vld [vmem:[#allocation139_spill] sm:$0xff] }
 0x5e5   : > { %v5098_v46 = vsel %vm3323_vm9, %v5066_v43, %v4724_v48  ;;  %v5114_v28 = vsel %vm3323_vm9, %v5082_v40, %v12912_v17 }
 0x5e6   : > { %v5475_v20 = vmul.f32 %v12937_v13, %v5378_v30  ;;  %6522 = vmatmul.msk.f32.gmra.mxu1 %vm3356_vm11, %v5098_v46  ;;  %6538 = vmatmul.msk.f32.gmra.mxu3 %vm3356_vm11, %v5114_v28  ;;  %v7899_v46 = vld [vmem:[%s8022_s27 + $0x2d1] sm:$0xff] }
 0x5e8   : > { %v5511_v60 = vadd.f32 %v12949_v34, %v5475_v20  ;;  %v14334_v20 = vld [vmem:[#allocation157_spill] sm:$0xff] }
 0x5e9   : > { %v5425_v5 = vpop.f32.mrf.mxu3  ;;  %4737 = vrot.lane.b32.xlu1 %v6497_v35, %s7952_s11  ;;  %v4828_v28 = vsel %vm3026_vm0, %v7899_v46, %v14334_v20  ;;  %v14335_v35 = vld [vmem:[#allocation86_spill] sm:$0xff]  ;;  %v14344_v46 = vld [vmem:[#allocation53_spill] sm:$0xff] }
 0x5ea   : > { %v5543_v54 = vmax.f32 %v5511_v60, 0.0  ;;  %4609 = vrot.lane.b32.xlu0 %v6465_v53, %s7951_s10  ;;  %v5426_v9 = vadd.f32 %v5425_v5, %v5312_v62  ;;  %v5270_v53 = vpop.f32.mrf.mxu0  ;;  %v4860_v60 = vsel %vm3059_vm1, %v4828_v28, %v14335_v35 }
 0x5eb   : > { %v4598_v12 = vpop.permute.xlu1 %4597 }
 0x5ec   : > { %5575 = vst [vmem:[%s12966_s29 + $0x8] sm:$0xff] %v5543_v54  ;;  %v4470_v47 = vpop.permute.xlu0 %4469  ;;  %v5491_v17 = vmul.f32 %v12937_v13, %v5426_v9  ;;  %v13001_v14 = vpop.permute.xlu2 %4631  ;;  %v14336_v54 = vld [vmem:[#allocation131_spill] sm:$0xff] }
 0x5ed   : > { %v5035_v8 = vsel %vm3257_vm8, %v12381_v63, %v4470_v47  ;;  %v4892_v5 = vsel %vm3092_vm2, %v4860_v60, %v14336_v54 }
 0x5ee   : > { %v5527_v31 = vadd.f32 %v12949_v34, %v5491_v17  ;;  %v5067_v1 = vsel %vm3290_vm7, %v5035_v8, %v4598_v12 }
 0x5f0   : > { %v5559_v24 = vmax.f32 %v5527_v31, 0.0  ;;  %v14337_v31 = vld [vmem:[#allocation105_spill] sm:$0xff] }
 0x5f2   : > { %5591 = vst [vmem:[%s12966_s29 + $0x88] sm:$0xff] %v5559_v24  ;;  %v4924_v24 = vsel %vm3125_vm3, %v4892_v5, %v14337_v31 }
 0x5f3   : > { %v5380_v3 = vpop.f32.mrf.mxu1  ;;  %v4630_v18 = vpop.permute.xlu1 %4629 }
 0x5f4   : > { %v5381_v56 = vadd.f32 %v5380_v3, %v5267_v23  ;;  %v4726_v16 = vpop.permute.xlu0 %4725  ;;  %v5083_v32 = vsel %vm3290_vm7, %v5051_v27, %v4630_v18  ;;  %v13024_v41 = vpop.permute.xlu2 %4377  ;;  %v14338_v23 = vld [vmem:[#allocation159_spill] sm:$0xff] }
 0x5f5   : > { %v5099_v63 = vsel %vm3323_vm9, %v5067_v1, %v4726_v16  ;;  %v5115_v38 = vsel %vm3323_vm9, %v5083_v32, %v4758_v33  ;;  %v4908_v33 = vsel %vm3125_vm3, %v4876_v10, %v14330_v4  ;;  %v4956_v3 = vsel %vm3158_vm4, %v4924_v24, %v14338_v23 }
 0x5f6   : > { %v5476_v26 = vmul.f32 %v12937_v13, %v5381_v56  ;;  %6523 = vmatmul.msk.f32.gmra.mxu1 %vm3356_vm11, %v5099_v63  ;;  %6539 = vmatmul.msk.f32.gmra.mxu3 %vm3356_vm11, %v5115_v38  ;;  %v4940_v0 = vsel %vm3158_vm4, %v4908_v33, %v14331_v57  ;;  %v14339_v56 = vld [vmem:[#allocation77_spill] sm:$0xff]  ;;  %v5318_v63 = vpop.f32.mrf.mxu2  ;;  %v14340_v33 = vld [vmem:[#allocation68_spill] sm:$0xff] }
 0x5f7   : > { %v4972_v49 = vsel %vm3191_vm5, %v4940_v0, %v14332_v44  ;;  %v4988_v18 = vsel %vm3191_vm5, %v4956_v3, %v14339_v56  ;;  %v14341_v0 = vld [vmem:[#allocation147_spill] sm:$0xff] }
 0x5f8   : > { %v5512_v25 = vadd.f32 %v12949_v34, %v5476_v26  ;;  %v5004_v48 = vsel %vm3224_vm6, %v4972_v49, %v14333_v6  ;;  %v14342_v6 = vld [vmem:[#allocation133_spill] sm:$0xff] }
 0x5f9   : > { %v5428_v37 = vpop.f32.mrf.mxu3 }
 0x5fa   : > { %v5544_v59 = vmax.f32 %v5512_v25, 0.0  ;;  %v5429_v36 = vadd.f32 %v5428_v37, %v5315_v58 }
 0x5fb   : > { %v4376_v15 = vpop.permute.xlu1 %4375 }
 0x5fc   : > { %5576 = vst [vmem:[%s12966_s29 + $0x10] sm:$0xff] %v5544_v59  ;;  %v4472_v51 = vpop.permute.xlu0 %4471  ;;  %v5492_v61 = vmul.f32 %v12937_v13, %v5429_v36  ;;  %v4730_v16 = vpop.permute.xlu2 %4729  ;;  %v5020_v1 = vsel %vm3224_vm6, %v4988_v18, %v4376_v15 }
 0x5fd   : > { %v5036_v40 = vsel %vm3257_vm8, %v5004_v48, %v4472_v51  ;;  %v5273_v36 = vpop.f32.mrf.mxu0  ;;  %v14343_v48 = vld [vmem:[#allocation153_spill] sm:$0xff] }
 0x5fe   : > { %v5528_v30 = vadd.f32 %v12949_v34, %v5492_v61  ;;  %v5068_v17 = vsel %vm3290_vm7, %v5036_v40, %v4600_v2  ;;  %v5321_v28 = vpop.f32.mrf.mxu2 }
 0x600   : > { %v5560_v43 = vmax.f32 %v5528_v30, 0.0 }
 0x602   : > { %5592 = vst [vmem:[%s12966_s29 + $0x90] sm:$0xff] %v5560_v43 }
 0x603   : > { %v5383_v62 = vpop.f32.mrf.mxu1  ;;  %v4728_v12 = vpop.permute.xlu1 %4727 }
 0x604   : > { %v5384_v9 = vadd.f32 %v5383_v62, %v5270_v53  ;;  %v4504_v47 = vpop.permute.xlu0 %4503  ;;  %v5100_v8 = vsel %vm3323_vm9, %v5068_v17, %v4728_v12  ;;  %v4476_v50 = vpop.permute.xlu2 %4475  ;;  %v14345_v53 = vld [vmem:[#allocation15_spill] sm:$0xff] }
 0x605   : > { %6524 = vmatmul.msk.f32.gmra.mxu1 %vm3356_vm11, %v5100_v8  ;;  %v5052_v32 = vsel %vm3257_vm8, %v5020_v1, %v4504_v47  ;;  %v5276_v18 = vpop.f32.mrf.mxu0  ;;  %v14347_v1 = vld [vmem:[#allocation98_spill] sm:$0xff] }
 0x606   : > { %v5477_v27 = vmul.f32 %v12937_v13, %v5384_v9  ;;  %v5084_v21 = vsel %vm3290_vm7, %v5052_v32, %v13001_v14  ;;  %v7900_v14 = vld [vmem:[%s8022_s27 + $0x2e1] sm:$0xff] }
 0x607   : > { %v4829_v61 = vsel %vm3026_vm0, %v7900_v14, %v14340_v33  ;;  %v5038_v14 = vsel %vm3257_vm8, %v12435_v19, %v4476_v50 }
 0x608   : > { %v5513_v2 = vadd.f32 %v12949_v34, %v5477_v27  ;;  %v4861_v44 = vsel %vm3059_vm1, %v4829_v61, %v14341_v0  ;;  %v14346_v27 = vld [vmem:[#allocation65_spill] sm:$0xff] }
 0x609   : > { %v5431_v38 = vpop.f32.mrf.mxu3 }
 0x60a   : > { %v5545_v26 = vmax.f32 %v5513_v2, 0.0  ;;  %v5432_v25 = vadd.f32 %v5431_v38, %v5318_v63  ;;  %v14348_v38 = vld [vmem:[#allocation108_spill] sm:$0xff] }
 0x60b   : > { %v4474_v55 = vpop.permute.xlu1 %4473 }
 0x60c   : > { %5577 = vst [vmem:[%s12966_s29 + $0x18] sm:$0xff] %v5545_v26  ;;  %v4760_v52 = vpop.permute.xlu0 %4759  ;;  %v5493_v58 = vmul.f32 %v12937_v13, %v5432_v25  ;;  %v5037_v10 = vsel %vm3257_vm8, %v12438_v7, %v4474_v55  ;;  %v4893_v7 = vsel %vm3092_vm2, %v4861_v44, %v14342_v6  ;;  %v4508_v5 = vpop.permute.xlu2 %4507 }
 0x60d   : > { %v5116_v59 = vsel %vm3323_vm9, %v5084_v21, %v4760_v52  ;;  %v4925_v43 = vsel %vm3125_vm3, %v4893_v7, %v14343_v48  ;;  %v14349_v52 = vld [vmem:[#allocation149_spill] sm:$0xff] }
 0x60e   : > { %6540 = vmatmul.msk.f32.gmra.mxu3 %vm3356_vm11, %v5116_v59  ;;  %v5529_v37 = vadd.f32 %v12949_v34, %v5493_v58  ;;  %v4957_v20 = vsel %vm3158_vm4, %v4925_v43, %v14344_v46  ;;  %v14350_v59 = vld [vmem:[#allocation44_spill] sm:$0xff]  ;;  %v5279_v43 = vpop.f32.mrf.mxu0 }
 0x60f   : > { %v4989_v35 = vsel %vm3191_vm5, %v4957_v20, %v14345_v53 }
 0x610   : > { %v5561_v11 = vmax.f32 %v5529_v37, 0.0  ;;  %v5021_v54 = vsel %vm3224_vm6, %v4989_v35, %v13024_v41  ;;  %v7901_v41 = vld [vmem:[%s8022_s27 + $0x2f1] sm:$0xff] }
 0x611   : > { %v4830_v56 = vsel %vm3026_vm0, %v7901_v41, %v14346_v27 }
 0x612   : > { %5593 = vst [vmem:[%s12966_s29 + $0x98] sm:$0xff] %v5561_v11  ;;  %v4862_v2 = vsel %vm3059_vm1, %v4830_v56, %v14347_v1  ;;  %v14351_v11 = vld [vmem:[#allocation125_spill] sm:$0xff] }
 0x613   : > { %v5386_v42 = vpop.f32.mrf.mxu1  ;;  %v4506_v51 = vpop.permute.xlu1 %4505  ;;  %v4894_v25 = vsel %vm3092_vm2, %v4862_v2, %v14348_v38  ;;  %v14358_v38 = vld [vmem:[#allocation96_spill] sm:$0xff] }
 0x614   : > { %v5387_v15 = vadd.f32 %v5386_v42, %v5273_v36  ;;  %v4602_v4 = vpop.permute.xlu0 %4601  ;;  %v5053_v12 = vsel %vm3257_vm8, %v5021_v54, %v4506_v51  ;;  %v4764_v55 = vpop.permute.xlu2 %4763  ;;  %v4926_v21 = vsel %vm3125_vm3, %v4894_v25, %v14349_v52 }
 0x615   : > { %v5069_v57 = vsel %vm3290_vm7, %v5037_v10, %v4602_v4  ;;  %v4958_v37 = vsel %vm3158_vm4, %v4926_v21, %v14350_v59 }
 0x616   : > { %v5478_v49 = vmul.f32 %v12937_v13, %v5387_v15  ;;  %v5101_v30 = vsel %vm3323_vm9, %v5069_v57, %v4730_v16  ;;  %v4990_v36 = vsel %vm3191_vm5, %v4958_v37, %v14351_v11  ;;  %v5324_v15 = vpop.f32.mrf.mxu2  ;;  %v5282_v59 = vpop.f32.mrf.mxu0 }
 0x617   : > { %6525 = vmatmul.msk.f32.gmra.mxu1 %vm3356_vm11, %v5101_v30 }
 0x618   : > { %v5514_v40 = vadd.f32 %v12949_v34, %v5478_v49 }
 0x619   : > { %v5434_v62 = vpop.f32.mrf.mxu3 }
 0x61a   : > { %v5546_v60 = vmax.f32 %v5514_v40, 0.0  ;;  %v5435_v9 = vadd.f32 %v5434_v62, %v5321_v28  ;;  %v14352_v62 = vld [vmem:[#allocation144_spill] sm:$0xff] }
 0x61b   : > { %v4762_v47 = vpop.permute.xlu1 %4761 }
 0x61c   : > { %5578 = vst [vmem:[%s12966_s29 + $0x20] sm:$0xff] %v5546_v60  ;;  %v4634_v17 = vpop.permute.xlu0 %4633  ;;  %v5494_v31 = vmul.f32 %v12937_v13, %v5435_v9  ;;  %v4606_v50 = vpop.permute.xlu2 %4605  ;;  %v14353_v9 = vld [vmem:[#allocation170_spill] sm:$0xff] }
 0x61d   : > { %v5085_v24 = vsel %vm3290_vm7, %v5053_v12, %v4634_v17 }
 0x61e   : > { %v5117_v8 = vsel %vm3323_vm9, %v5085_v24, %v4762_v47  ;;  %v5530_v23 = vadd.f32 %v12949_v34, %v5494_v31  ;;  %v5327_v47 = vpop.f32.mrf.mxu2  ;;  %v14354_v24 = vld [vmem:[#allocation88_spill] sm:$0xff] }
 0x61f   : > { %6541 = vmatmul.msk.f32.gmra.mxu3 %vm3356_vm11, %v5117_v8 }
 0x620   : > { %v5562_v3 = vmax.f32 %v5530_v23, 0.0 }
 0x622   : > { %5594 = vst [vmem:[%s12966_s29 + $0xa0] sm:$0xff] %v5562_v3  ;;  %v14355_v3 = vld [vmem:[#allocation182_spill] sm:$0xff] }
 0x623   : > { %v5389_v16 = vpop.f32.mrf.mxu1  ;;  %v4604_v63 = vpop.permute.xlu1 %4603 }
 0x624   : > { %v5390_v32 = vadd.f32 %v5389_v16, %v5276_v18  ;;  %v4380_v26 = vpop.permute.xlu0 %4379  ;;  %v5070_v61 = vsel %vm3290_vm7, %v5038_v14, %v4604_v63  ;;  %v4638_v60 = vpop.permute.xlu2 %4637  ;;  %v14356_v16 = vld [vmem:[#allocation49_spill] sm:$0xff]  ;;  %v14357_v63 = vld [vmem:[#allocation36_spill] sm:$0xff] }
 0x625   : > { %v5022_v10 = vsel %vm3224_vm6, %v4990_v36, %v4380_v26 }
 0x626   : > { %v5479_v58 = vmul.f32 %v12937_v13, %v5390_v32  ;;  %v5054_v0 = vsel %vm3257_vm8, %v5022_v10, %v4508_v5  ;;  %v7902_v5 = vld [vmem:[%s8022_s27 + $0x301] sm:$0xff] }
 0x627   : > { %v4831_v12 = vsel %vm3026_vm0, %v7902_v5, %v14353_v9  ;;  %v14364_v9 = vld [vmem:[#allocation17_spill] sm:$0xff] }
 0x628   : > { %v5515_v42 = vadd.f32 %v12949_v34, %v5479_v58  ;;  %v4863_v8 = vsel %vm3059_vm1, %v4831_v12, %v14354_v24 }
 0x629   : > { %v5437_v4 = vpop.f32.mrf.mxu3  ;;  %v4895_v41 = vsel %vm3092_vm2, %v4863_v8, %v14355_v3 }
 0x62a   : > { %v5547_v51 = vmax.f32 %v5515_v42, 0.0  ;;  %v5438_v33 = vadd.f32 %v5437_v4, %v5324_v15  ;;  %v4927_v1 = vsel %vm3125_vm3, %v4895_v41, %v14356_v16 }
 0x62b   : > { %v4636_v57 = vpop.permute.xlu1 %4635  ;;  %v4959_v26 = vsel %vm3158_vm4, %v4927_v1, %v14357_v63 }
 0x62c   : > { %5579 = vst [vmem:[%s12966_s29 + $0x28] sm:$0xff] %v5547_v51  ;;  %v4732_v44 = vpop.permute.xlu0 %4731  ;;  %v5495_v49 = vmul.f32 %v12937_v13, %v5438_v33  ;;  %v5086_v30 = vsel %vm3290_vm7, %v5054_v0, %v4636_v57  ;;  %v4991_v25 = vsel %vm3191_vm5, %v4959_v26, %v14358_v38  ;;  %v4384_v37 = vpop.permute.xlu2 %4383  ;;  %v6186_v33 = vld [vmem:[%s8022_s27 + $0x311] sm:$0xff] }
 0x62d   : > { %v5102_v6 = vsel %vm3323_vm9, %v5070_v61, %v4732_v44  ;;  %v5118_v19 = vsel %vm3323_vm9, %v5086_v30, %v4764_v55  ;;  %v5330_v61 = vpop.f32.mrf.mxu2 }
 0x62e   : > { %6526 = vmatmul.msk.f32.gmra.mxu1 %vm3356_vm11, %v5102_v6  ;;  %v5531_v7 = vadd.f32 %v12949_v34, %v5495_v49  ;;  %6542 = vmatmul.msk.f32.gmra.mxu3 %vm3356_vm11, %v5118_v19  ;;  %v14359_v19 = vld [vmem:[#allocation41_spill] sm:$0xff] }
 0x630   : > { %v5563_v48 = vmax.f32 %v5531_v7, 0.0 }
 0x632   : > { %5595 = vst [vmem:[%s12966_s29 + $0xa8] sm:$0xff] %v5563_v48 }
 0x633   : > { %v5392_v40 = vpop.f32.mrf.mxu1  ;;  %v4382_v20 = vpop.permute.xlu1 %4381 }
 0x634   : > { %v5393_v46 = vadd.f32 %v5392_v40, %v5279_v43  ;;  %v4478_v28 = vpop.permute.xlu0 %4477  ;;  %v5023_v52 = vsel %vm3224_vm6, %v4991_v25, %v4382_v20  ;;  %v4736_v7 = vpop.permute.xlu2 %4735  ;;  %v14360_v40 = vld [vmem:[#allocation100_spill] sm:$0xff] }
 0x635   : > { %v5039_v54 = vsel %vm3257_vm8, %v14352_v62, %v4478_v28  ;;  %v14361_v28 = vld [vmem:[#allocation184_spill] sm:$0xff]  ;;  %v5333_v1 = vpop.f32.mrf.mxu2 }
 0x636   : > { %v5480_v53 = vmul.f32 %v12937_v13, %v5393_v46  ;;  %v5071_v18 = vsel %vm3290_vm7, %v5039_v54, %v4606_v50  ;;  %v4832_v50 = vsel %vm3026_vm0, %v6186_v33, %v14359_v19  ;;  %v14363_v62 = vld [vmem:[#allocation24_spill] sm:$0xff] }
 0x637   : > { %v4864_v46 = vsel %vm3059_vm1, %v4832_v50, %v14360_v40 }
 0x638   : > { %v5516_v35 = vadd.f32 %v12949_v34, %v5480_v53  ;;  %v4896_v53 = vsel %vm3092_vm2, %v4864_v46, %v14361_v28 }
 0x639   : > { %v5440_v31 = vpop.f32.mrf.mxu3 }
 0x63a   : > { %v5548_v17 = vmax.f32 %v5516_v35, 0.0  ;;  %v5441_v23 = vadd.f32 %v5440_v31, %v5327_v47  ;;  %v14362_v35 = vld [vmem:[#allocation45_spill] sm:$0xff]  ;;  %v5285_v47 = vpop.f32.mrf.mxu0 }
 0x63b   : > { %v4734_v27 = vpop.permute.xlu1 %4733 }
 0x63c   : > { %5580 = vst [vmem:[%s12966_s29 + $0x30] sm:$0xff] %v5548_v17  ;;  %v4510_v56 = vpop.permute.xlu0 %4509  ;;  %v5496_v2 = vmul.f32 %v12937_v13, %v5441_v23  ;;  %v5103_v32 = vsel %vm3323_vm9, %v5071_v18, %v4734_v27  ;;  %v4482_v16 = vpop.permute.xlu2 %4481 }
 0x63d   : > { %6527 = vmatmul.msk.f32.gmra.mxu1 %vm3356_vm11, %v5103_v32  ;;  %v5055_v58 = vsel %vm3257_vm8, %v5023_v52, %v4510_v56  ;;  %v5041_v26 = vsel %vm3257_vm8, %v12488_v22, %v4482_v16 }
 0x63e   : > { %v5532_v55 = vadd.f32 %v12949_v34, %v5496_v2  ;;  %v5087_v15 = vsel %vm3290_vm7, %v5055_v58, %v4638_v60  ;;  %v4928_v60 = vsel %vm3125_vm3, %v4896_v53, %v14362_v35 }
 0x63f   : > { %v4960_v54 = vsel %vm3158_vm4, %v4928_v60, %v14363_v62 }
 0x640   : > { %v5564_v21 = vmax.f32 %v5532_v55, 0.0  ;;  %v4992_v12 = vsel %vm3191_vm5, %v4960_v54, %v14364_v9 }
 0x641   : > { %v5024_v17 = vsel %vm3224_vm6, %v4992_v12, %v4384_v37 }
 0x642   : > { %5596 = vst [vmem:[%s12966_s29 + $0xb0] sm:$0xff] %v5564_v21  ;;  %v5288_v37 = vpop.f32.mrf.mxu0 }
 0x643   : > { %v5395_v11 = vpop.f32.mrf.mxu1  ;;  %v4480_v42 = vpop.permute.xlu1 %4479 }
 0x644   : > { %v5396_v36 = vadd.f32 %v5395_v11, %v5282_v59  ;;  %v4766_v10 = vpop.permute.xlu0 %4765  ;;  %v5040_v49 = vsel %vm3257_vm8, %v12491_v45, %v4480_v42 }
 0x645   : > { %v5119_v51 = vsel %vm3323_vm9, %v5087_v15, %v4766_v10  ;;  %v5336_v10 = vpop.f32.mrf.mxu2 }
 0x646   : > { %v5481_v4 = vmul.f32 %v12937_v13, %v5396_v36  ;;  %6543 = vmatmul.msk.f32.gmra.mxu3 %vm3356_vm11, %v5119_v51 }
 0x648   : > { %v5517_v14 = vadd.f32 %v12949_v34, %v5481_v4 }
 0x649   : > { %v5443_v0 = vpop.f32.mrf.mxu3 }
 0x64a   : > { %v5549_v57 = vmax.f32 %v5517_v14, 0.0  ;;  %v5444_v44 = vadd.f32 %v5443_v0, %v5330_v61 }
 0x64b   : > { %v4512_v30 = vpop.permute.xlu1 %4511 }
 0x64c   : > { %5581 = vst [vmem:[%s12966_s29 + $0x38] sm:$0xff] %v5549_v57  ;;  %v4608_v6 = vpop.permute.xlu0 %4607  ;;  %v5497_v48 = vmul.f32 %v12937_v13, %v5444_v44  ;;  %v5056_v24 = vsel %vm3257_vm8, %v5024_v17, %v4512_v30  ;;  %v5291_v57 = vpop.f32.mrf.mxu0 }
 0x64d   : > { %v5072_v43 = vsel %vm3290_vm7, %v5040_v49, %v4608_v6  ;;  %v5339_v6 = vpop.f32.mrf.mxu2 }
 0x64e   : > { %v5104_v20 = vsel %vm3323_vm9, %v5072_v43, %v4736_v7  ;;  %v5533_v45 = vadd.f32 %v12949_v34, %v5497_v48 }
 0x64f   : > { %6528 = vmatmul.msk.f32.gmra.mxu1 %vm3356_vm11, %v5104_v20 }
 0x650   : > { %v5565_v5 = vmax.f32 %v5533_v45, 0.0 }
 0x652   : > { %5597 = vst [vmem:[%s12966_s29 + $0xb8] sm:$0xff] %v5565_v5 }
 0x653   : > { %v5398_v31 = vpop.f32.mrf.mxu1  ;;  %v4768_v3 = vpop.permute.xlu1 %4767 }
 0x654   : > { %v5399_v8 = vadd.f32 %v5398_v31, %v5285_v47  ;;  %v4640_v23 = vpop.permute.xlu0 %4639  ;;  %v5294_v46 = vpop.f32.mrf.mxu0 }
 0x655   : > { %v5088_v41 = vsel %vm3290_vm7, %v5056_v24, %v4640_v23  ;;  %v5342_v60 = vpop.f32.mrf.mxu2 }
 0x656   : > { %v5482_v27 = vmul.f32 %v12937_v13, %v5399_v8  ;;  %v5120_v56 = vsel %vm3323_vm9, %v5088_v41, %v4768_v3 }
 0x657   : > { %6544 = vmatmul.msk.f32.gmra.mxu3 %vm3356_vm11, %v5120_v56 }
 0x658   : > { %v5518_v18 = vadd.f32 %v12949_v34, %v5482_v27 }
 0x659   : > { %v5446_v32 = vpop.f32.mrf.mxu3 }
 0x65a   : > { %v5550_v2 = vmax.f32 %v5518_v18, 0.0  ;;  %v5447_v63 = vadd.f32 %v5446_v32, %v5333_v1 }
 0x65b   : > { %v4738_v25 = vpop.permute.xlu1 %4737 }
 0x65c   : > { %5582 = vst [vmem:[%s12966_s29 + $0x40] sm:$0xff] %v5550_v2  ;;  %v4610_v38 = vpop.permute.xlu0 %4609  ;;  %v5498_v55 = vmul.f32 %v12937_v13, %v5447_v63  ;;  %v5297_v5 = vpop.f32.mrf.mxu0 }
 0x65d   : > { %v5073_v52 = vsel %vm3290_vm7, %v5041_v26, %v4610_v38  ;;  %v5345_v3 = vpop.f32.mrf.mxu2 }
 0x65e   : > { %v5105_v21 = vsel %vm3323_vm9, %v5073_v52, %v4738_v25  ;;  %v5534_v58 = vadd.f32 %v12949_v34, %v5498_v55 }
 0x65f   : > { %6529 = vmatmul.msk.f32.gmra.mxu1 %vm3356_vm11, %v5105_v21 }
 0x660   : > { %v5566_v59 = vmax.f32 %v5534_v58, 0.0 }
 0x662   : > { %5598 = vst [vmem:[%s12966_s29 + $0xc0] sm:$0xff] %v5566_v59 }
 0x663   : > { %v5401_v11 = vpop.f32.mrf.mxu1 }
 0x664   : > { %v5402_v22 = vadd.f32 %v5401_v11, %v5288_v37  ;;  %v5300_v1 = vpop.f32.mrf.mxu0 }
 0x665   : > { %v5348_v38 = vpop.f32.mrf.mxu2 }
 0x666   : > { %v5483_v36 = vmul.f32 %v12937_v13, %v5402_v22 }
 0x668   : > { %v5519_v42 = vadd.f32 %v12949_v34, %v5483_v36 }
 0x669   : > { %v5449_v51 = vpop.f32.mrf.mxu3 }
 0x66a   : > { %v5551_v15 = vmax.f32 %v5519_v42, 0.0  ;;  %v5450_v4 = vadd.f32 %v5449_v51, %v5336_v10 }
 0x66c   : > { %5583 = vst [vmem:[%s12966_s29 + $0x48] sm:$0xff] %v5551_v15  ;;  %v5499_v14 = vmul.f32 %v12937_v13, %v5450_v4  ;;  %v5303_v37 = vpop.f32.mrf.mxu0 }
 0x66d   : > { %v5351_v15 = vpop.f32.mrf.mxu2 }
 0x66e   : > { %v5535_v33 = vadd.f32 %v12949_v34, %v5499_v14 }
 0x670   : > { %v5567_v61 = vmax.f32 %v5535_v33, 0.0 }
 0x672   : > { %5599 = vst [vmem:[%s12966_s29 + $0xc8] sm:$0xff] %v5567_v61 }
 0x673   : > { %v5404_v0 = vpop.f32.mrf.mxu1 }
 0x674   : > { %v5405_v44 = vadd.f32 %v5404_v0, %v5291_v57 }
 0x676   : > { %v5484_v49 = vmul.f32 %v12937_v13, %v5405_v44 }
 0x678   : > { %v5520_v30 = vadd.f32 %v12949_v34, %v5484_v49 }
 0x679   : > { %v5452_v50 = vpop.f32.mrf.mxu3 }
 0x67a   : > { %v5552_v19 = vmax.f32 %v5520_v30, 0.0  ;;  %v5453_v7 = vadd.f32 %v5452_v50, %v5339_v6  ;;  %v5354_v6 = vpop.f32.mrf.mxu2 }
 0x67c   : > { %5584 = vst [vmem:[%s12966_s29 + $0x50] sm:$0xff] %v5552_v19  ;;  %v5500_v48 = vmul.f32 %v12937_v13, %v5453_v7 }
 0x67e   : > { %v5536_v43 = vadd.f32 %v12949_v34, %v5500_v48 }
 0x680   : > { %v5568_v40 = vmax.f32 %v5536_v43, 0.0 }
 0x682   : > { %5600 = vst [vmem:[%s12966_s29 + $0xd0] sm:$0xff] %v5568_v40  ;;  %v5407_v20 = vpop.f32.mrf.mxu1 }
 0x683   : > { %v5408_v28 = vadd.f32 %v5407_v20, %v5294_v46 }
 0x685   : > { %v5485_v53 = vmul.f32 %v12937_v13, %v5408_v28 }
 0x687   : > { %v5521_v45 = vadd.f32 %v12949_v34, %v5485_v53 }
 0x689   : > { %v5553_v35 = vmax.f32 %v5521_v45, 0.0 }
 0x68b   : > { %5585 = vst [vmem:[%s12966_s29 + $0x58] sm:$0xff] %v5553_v35 }
 0x691   : > { %v5455_v62 = vpop.f32.mrf.mxu3 }
 0x692   : > { %v5456_v54 = vadd.f32 %v5455_v62, %v5342_v60 }
 0x694   : > { %v5501_v9 = vmul.f32 %v12937_v13, %v5456_v54  ;;  %v5410_v12 = vpop.f32.mrf.mxu1 }
 0x695   : > { %v5411_v47 = vadd.f32 %v5410_v12, %v5297_v5 }
 0x696   : > { %v5537_v17 = vadd.f32 %v12949_v34, %v5501_v9 }
 0x697   : > { %v5486_v31 = vmul.f32 %v12937_v13, %v5411_v47 }
 0x698   : > { %v5569_v24 = vmax.f32 %v5537_v17, 0.0 }
 0x699   : > { %v5522_v8 = vadd.f32 %v12949_v34, %v5486_v31 }
 0x69a   : > { %5601 = vst [vmem:[%s12966_s29 + $0xd8] sm:$0xff] %v5569_v24 }
 0x69b   : > { %v5554_v23 = vmax.f32 %v5522_v8, 0.0 }
 0x69d   : > { %5586 = vst [vmem:[%s12966_s29 + $0x60] sm:$0xff] %v5554_v23 }
 0x6a2   : > { %v5458_v41 = vpop.f32.mrf.mxu3 }
 0x6a3   : > { %v5459_v27 = vadd.f32 %v5458_v41, %v5345_v3 }
 0x6a5   : > { %v5502_v56 = vmul.f32 %v12937_v13, %v5459_v27 }
 0x6a7   : > { %v5538_v18 = vadd.f32 %v12949_v34, %v5502_v56 }
 0x6a9   : > { %v5570_v16 = vmax.f32 %v5538_v18, 0.0 }
 0x6ab   : > { %5602 = vst [vmem:[%s12966_s29 + $0xe0] sm:$0xff] %v5570_v16  ;;  %v5413_v2 = vpop.f32.mrf.mxu1 }
 0x6ac   : > { %v5414_v32 = vadd.f32 %v5413_v2, %v5300_v1 }
 0x6ae   : > { %v5487_v63 = vmul.f32 %v12937_v13, %v5414_v32 }
 0x6b0   : > { %v5523_v26 = vadd.f32 %v12949_v34, %v5487_v63 }
 0x6b1   : > { %v5461_v55 = vpop.f32.mrf.mxu3 }
 0x6b2   : > { %v5555_v25 = vmax.f32 %v5523_v26, 0.0  ;;  %v5462_v52 = vadd.f32 %v5461_v55, %v5348_v38 }
 0x6b4   : > { %5587 = vst [vmem:[%s12966_s29 + $0x68] sm:$0xff] %v5555_v25  ;;  %v5503_v21 = vmul.f32 %v12937_v13, %v5462_v52 }
 0x6b6   : > { %v5539_v58 = vadd.f32 %v12949_v34, %v5503_v21 }
 0x6b8   : > { %v5571_v59 = vmax.f32 %v5539_v58, 0.0 }
 0x6ba   : > { %5603 = vst [vmem:[%s12966_s29 + $0xe8] sm:$0xff] %v5571_v59  ;;  %v5416_v11 = vpop.f32.mrf.mxu1 }
 0x6bb   : > { %v5417_v22 = vadd.f32 %v5416_v11, %v5303_v37 }
 0x6bd   : > { %v5488_v36 = vmul.f32 %v12937_v13, %v5417_v22 }
 0x6bf   : > { %v5524_v42 = vadd.f32 %v12949_v34, %v5488_v36 }
 0x6c1   : > { %v5556_v10 = vmax.f32 %v5524_v42, 0.0 }
 0x6c3   : > { %5588 = vst [vmem:[%s12966_s29 + $0x70] sm:$0xff] %v5556_v10 }
 0x6c9   : > { %v5464_v51 = vpop.f32.mrf.mxu3 }
 0x6ca   : > { %v5465_v4 = vadd.f32 %v5464_v51, %v5351_v15 }
 0x6cc   : > { %v5504_v14 = vmul.f32 %v12937_v13, %v5465_v4  ;;  %v5419_v33 = vpop.f32.mrf.mxu1 }
 0x6cd   : > { %v5420_v61 = vadd.f32 %v5419_v33, %v12944_v29 }
 0x6ce   : > { %v5540_v57 = vadd.f32 %v12949_v34, %v5504_v14 }
 0x6cf   : > { %v5489_v0 = vmul.f32 %v12937_v13, %v5420_v61 }
 0x6d0   : > { %v5572_v44 = vmax.f32 %v5540_v57, 0.0 }
 0x6d1   : > { %v5525_v49 = vadd.f32 %v12949_v34, %v5489_v0 }
 0x6d2   : > { %5604 = vst [vmem:[%s12966_s29 + $0xf0] sm:$0xff] %v5572_v44 }
 0x6d3   : > { %v5557_v30 = vmax.f32 %v5525_v49, 0.0 }
 0x6d5   : > { %5589 = vst [vmem:[%s12966_s29 + $0x78] sm:$0xff] %v5557_v30 }
 0x6da   : > { %v5467_v19 = vpop.f32.mrf.mxu3 }
 0x6db   : > { %v5468_v50 = vadd.f32 %v5467_v19, %v5354_v6 }
 0x6dc   : > { %v5422_v7 = vpop.f32.mrf.mxu1 }
 0x6dd   : > { %v5505_v48 = vmul.f32 %v12937_v13, %v5468_v50  ;;  %v5423_v29 = vadd.f32 %v5422_v7, %v12972_v39 }
 0x6df   : > { %v5541_v43 = vadd.f32 %v12949_v34, %v5505_v48  ;;  %v5490_v40 = vmul.f32 %v12937_v13, %v5423_v29 }
 0x6e1   : > { %v5573_v46 = vmax.f32 %v5541_v43, 0.0  ;;  %v5526_v20 = vadd.f32 %v12949_v34, %v5490_v40 }
 0x6e3   : > { %5605 = vst [vmem:[%s12966_s29 + $0xf8] sm:$0xff] %v5573_v46  ;;  %v5558_v28 = vmax.f32 %v5526_v20, 0.0 }
 0x6e5   : > { %5590 = vst [vmem:[%s12966_s29 + $0x80] sm:$0xff] %v5558_v28 }
 0x6e6 PF: > { %s14_s19 = sadd.s32 1, %s7941_s19   ;;  %s14365_s15 = smov %s7933_s17 }
 0x6e7   : > { %p11_p7 = scmp.ge.s32.totalorder %s14_s19, 6   ;;  %s14366_s16 = smov %s7937_s18 }
 0x6e8   : > { %s14367_s17 = smov %s14370_s20  ;;  %s14368_s18 = smov %s14374_s21 }
 0x6e9   :  { %13 = sbr.rel (!%p11_p7) target bundleno = 3 (0x3), region = 75 }

</bundles_post_ra>
